<compile_context>
chip_gen: v7x
topology: tpu7x:2x2x1
jax: 0.10.0
libtpu: 0.0.40
codegen_flags: <defaults>
</compile_context>

<pallas_src>
import numpy as np
import jax
import jax.numpy as jnp
from jax import lax
from jax.experimental import pallas as pl
from jax.experimental.pallas import tpu as pltpu


# ----------------------------- module setup (plain JAX glue) ---------------------------------

def circle():
    resolution = 1.0
    ang = jnp.arange(0.0, 360.0, resolution, dtype=jnp.float32) / 180.0 * 3.141592654
    return jnp.stack([jnp.cos(ang), jnp.sin(ang)], axis=1)  # (360, 2)


def doas2taus(doas, mics, fs, c=346.0):
    return (fs / c) * jnp.matmul(doas, mics.T)  # (360, n_mics)


def steering(taus, n_fft):
    frame_size = int((n_fft - 1) * 2)
    omegas = 2.0 * jnp.pi * jnp.arange(n_fft, dtype=jnp.float32) / frame_size      # (n_fft,)
    phase = -omegas[None, None, :] * taus[:, :, None]                              # (n_doas, n_mics, n_fft)
    a_re = jnp.cos(phase)
    a_im = jnp.sin(phase)
    a = jnp.stack([a_re, a_im], axis=3)                                            # (n_doas, n_mics, n_fft, 2)
    # matches: transpose(1,3) then transpose(1,2)  ->  permutation (0, 2, 3, 1)
    a = jnp.transpose(a, (0, 2, 3, 1))                                             # (n_doas, n_fft, 2, n_mics)
    return a


def _round_up(x, m):
    return ((x + m - 1) // m) * m


# ----------------------------------- Pallas kernel -------------------------------------------

def _make_srp_phat_call(M_pad, Fp, Np, tm):
    """Builds the pallas_call computing the (M_pad, Np) SRP-PHAT power map."""
    eps2 = 1e-30  # additive constant inside |X|^2 (f32-safe; review note on eps underflow)

    def kernel(xre_ref, xim_ref, w_ref, ys_ref, xcat_ref):
        # bf16 X rows -> f32 for the PHAT normalization (VPU/EUP math in f32).
        xr = xre_ref[...].astype(jnp.float32)                     # (tm, Fp)
        xi = xim_ref[...].astype(jnp.float32)
        inv = lax.rsqrt(xr * xr + xi * xi + eps2)                 # single EUP rsqrt
        # Stage normalized halves into the stacked-K bf16 scratch (the bf16 casts were
        # needed for the MXU anyway, so these stores are free).
        xcat_ref[:, :Fp] = (xr * inv).astype(jnp.bfloat16)
        xcat_ref[:, Fp:] = (xi * inv).astype(jnp.bfloat16)
        # One bf16 MXU matmul, f32 accumulation.  W_cat = [W_re^T ; -W_im^T], so this is
        # exactly Xre_norm @ W_re^T - Xim_norm @ W_im^T.
        ys_ref[...] = jnp.dot(xcat_ref[...], w_ref[...],
                              preferred_element_type=jnp.float32)

    grid = (M_pad // tm,)
    return pl.pallas_call(
        kernel,
        out_shape=jax.ShapeDtypeStruct((M_pad, Np), jnp.float32),
        grid_spec=pltpu.PrefetchScalarGridSpec(
            num_scalar_prefetch=0,
            grid=grid,
            in_specs=[
                pl.BlockSpec((tm, Fp), lambda i: (i, 0)),          # X_re rows (bf16)
                pl.BlockSpec((tm, Fp), lambda i: (i, 0)),          # X_im rows (bf16)
                pl.BlockSpec((2 * Fp, Np), lambda i: (0, 0)),      # stacked W (bf16, grid-invariant)
            ],
            out_specs=pl.BlockSpec((tm, Np), lambda i: (i, 0)),    # Ys (lane-dense)
            scratch_shapes=[pltpu.VMEM((tm, 2 * Fp), jnp.bfloat16)],
        ),
        compiler_params=pltpu.CompilerParams(
            dimension_semantics=("parallel",),
            # bf16 X tiles (<=8.3 MiB) + double-buffered stacked W (12.4 MiB) + scratch
            # (4.1 MiB) + output (0.75 MiB) + f32 normalization temporaries (~12 MiB)
            # stays well under 48 MiB, which fits v7x's 64 MiB physical VMEM.
            vmem_limit_bytes=48 * 1024 * 1024,
        ),
    )


# ----------------------------------- SrpPhat module ------------------------------------------

class SrpPhat:
    def __init__(self, mics, sample_rate=16000, speed_sound=343.0, eps=1e-20, n_fft=201):
        self.eps = float(eps)
        self.doas = circle()                                        # (360, 2)
        self.taus = doas2taus(self.doas, mics, sample_rate, speed_sound)
        self.As = steering(self.taus, n_fft)                        # (360, n_fft, 2, n_mics)

        n_doas, _, _, n_mics = self.As.shape
        rows, cols = np.triu_indices(n_mics)                        # same ordering as torch.triu_indices
        As_1_re = self.As[:, :, 0, rows]
        As_1_im = self.As[:, :, 1, rows]
        As_2_re = self.As[:, :, 0, cols]
        As_2_im = self.As[:, :, 1, cols]
        Ws_re = As_1_re * As_2_re + As_1_im * As_2_im               # (360, n_fft, n_pairs)
        Ws_im = As_1_re * As_2_im - As_1_im * As_2_re

        self.n_doas = n_doas
        self.F = int(n_fft * rows.shape[0])                         # 201 * 21 = 4221
        self.Fp = _round_up(self.F, 128)                            # 4224 (33 * 128 lanes)
        self.Np = _round_up(n_doas, 128)                            # 384

        # Stacked, pre-transposed, zero-padded bf16 steering matrix [W_re^T ; -W_im^T]:
        # folds the Ys_A - Ys_B subtraction into a single MXU matmul.
        wre_t = jnp.asarray(Ws_re.reshape(n_doas, -1).T, jnp.float32)   # (F, 360)
        wim_t = jnp.asarray(Ws_im.reshape(n_doas, -1).T, jnp.float32)
        pad = ((0, self.Fp - self.F), (0, self.Np - n_doas))
        wre_p = jnp.pad(wre_t, pad)
        wim_p = jnp.pad(-wim_t, pad)
        self.Ws_cat = jnp.concatenate([wre_p, wim_p], axis=0).astype(jnp.bfloat16)  # (2*Fp, Np)

    def __call__(self, XXs):
        """XXs: (batch, time_steps, n_fft, 2, n_pairs)  ->  doas: (batch, time_steps, 2)"""
        B, T = XXs.shape[0], XXs.shape[1]
        M = B * T
        xre = XXs[:, :, :, 0, :].reshape(M, -1)
        xim = XXs[:, :, :, 1, :].reshape(M, -1)

        # Row-tile heuristic (review): no full-tile padding for small M; >= 2 grid steps
        # for mid-size M so both v7x TensorCores get work; 256 rows for big workloads.
        if M <= 128:
            tm = max(16, _round_up(M, 16))
        elif M <= 512:
            tm = 128
        else:
            tm = 256
        M_pad = _round_up(M, tm)

        pad = ((0, M_pad - M), (0, self.Fp - self.F))
        # Stream X in bf16 (halves HBM bytes + X VMEM tiles); normalization math is
        # upcast to f32 inside the kernel.
        xre = jnp.pad(xre.astype(jnp.bfloat16), pad)
        xim = jnp.pad(xim.astype(jnp.bfloat16), pad)

        call = _make_srp_phat_call(M_pad, self.Fp, self.Np, tm)
        ys_pad = call(xre, xim, self.Ws_cat)                       # (M_pad, Np) f32

        ys = ys_pad[:M, :self.n_doas]                              # strip row/DOA padding
        # Argmax + gather are tiny; done on the XLA side (avoid masked 1-lane stores).
        idx = jnp.argmax(ys, axis=-1)
        doas_out = self.doas[idx].reshape(B, T, 2)
        return doas_out, ys


# --------------------------------------- test ------------------------------------------------

if __name__ == "__main__":
    # Deterministic 6-microphone circular array (radius 5 cm) -> 21 upper-triangular pairs.
    m_ang = np.arange(6, dtype=np.float32) * (2.0 * np.pi / 6.0)
    mics = jnp.asarray(0.05 * np.stack([np.cos(m_ang), np.sin(m_ang)], axis=1), jnp.float32)  # (6, 2)

    model = SrpPhat(mics)

    # Small-but-faithful input: (batch=2, time_steps=8, n_fft=201, 2, n_pairs=21)
    key = jax.random.PRNGKey(0)
    XXs = jax.random.normal(key, (2, 8, 201, 2, 21), dtype=jnp.float32)

    doas_out, ys = model(XXs)
    doas_out = jax.block_until_ready(doas_out)
    ys = jax.block_until_ready(ys)

    # ----- float64 numpy reference of the hot path -----
    B, T = 2, 8
    M = B * T
    XXs_np = np.asarray(XXs, dtype=np.float64)
    xre = XXs_np[:, :, :, 0, :].reshape(M, -1)
    xim = XXs_np[:, :, :, 1, :].reshape(M, -1)
    xabs = np.sqrt(xre ** 2 + xim ** 2) + model.eps

    As_np = np.asarray(model.As, dtype=np.float64)
    rows, cols = np.triu_indices(As_np.shape[3])
    Ws_re = (As_np[:, :, 0, rows] * As_np[:, :, 0, cols]
             + As_np[:, :, 1, rows] * As_np[:, :, 1, cols]).reshape(360, -1)
    Ws_im = (As_np[:, :, 0, rows] * As_np[:, :, 1, cols]
             - As_np[:, :, 1, rows] * As_np[:, :, 0, cols]).reshape(360, -1)
    ys_ref = (xre / xabs) @ Ws_re.T - (xim / xabs) @ Ws_im.T       # (16, 360)

    # Power map matches the f64 reference within bf16 tolerance.
    ys_np = np.asarray(ys, dtype=np.float64)
    np.testing.assert_allclose(ys_np, ys_ref, rtol=3e-2, atol=5e-1)

    # Tie-tolerant DOA check: the chosen direction's reference power is within the
    # numeric tolerance of the true per-frame maximum.
    idx = np.argmax(ys_np, axis=-1)
    chosen = ys_ref[np.arange(M), idx]
    row_max = ys_ref.max(axis=-1)
    assert np.all(chosen >= row_max - (1.0 + 0.03 * np.abs(row_max))), "argmax drifted beyond tolerance"

    assert doas_out.shape == (2, 8, 2)
    expected_doas = np.asarray(model.doas)[idx].reshape(2, 8, 2)
    np.testing.assert_allclose(np.asarray(doas_out), expected_doas, rtol=0, atol=0)

    print("KERNEL_OK")
</pallas_src>

<mosaic_0001>
module attributes {stable_mosaic.version = 11 : i64} {
  func.func @kernel(%arg0: i32, %arg1: memref<16x4224xbf16, #tpu.memory_space<vmem>>, %arg2: memref<16x4224xbf16, #tpu.memory_space<vmem>>, %arg3: memref<8448x384xbf16, #tpu.memory_space<vmem>>, %arg4: memref<16x384xf32, #tpu.memory_space<vmem>>, %arg5: memref<16x8448xbf16, #tpu.memory_space<vmem>>) attributes {dimension_semantics = [#tpu.dimension_semantics<parallel>], iteration_bounds = array<i64: 1>, scalar_prefetch = 0 : i64, scratch_operands = 1 : i64, tpu.core_type = #tpu.core_type<tc>, window_params = [{transform_indices = @transform_0, window_bounds = array<i64: 16, 4224>}, {transform_indices = @transform_1, window_bounds = array<i64: 16, 4224>}, {pipeline_mode = #tpu.pipeline_mode<synchronous>, transform_indices = @transform_2, window_bounds = array<i64: 8448, 384>}, {transform_indices = @transform_3, window_bounds = array<i64: 16, 384>}]} {
    %c0 = arith.constant 0 : index
    %c0_0 = arith.constant 0 : index
    %0 = vector.load %arg1[%c0, %c0_0] : memref<16x4224xbf16, #tpu.memory_space<vmem>>, vector<16x4224xbf16>
    %1 = arith.extf %0 : vector<16x4224xbf16> to vector<16x4224xf32>
    %c0_1 = arith.constant 0 : index
    %c0_2 = arith.constant 0 : index
    %2 = vector.load %arg2[%c0_1, %c0_2] : memref<16x4224xbf16, #tpu.memory_space<vmem>>, vector<16x4224xbf16>
    %3 = arith.extf %2 : vector<16x4224xbf16> to vector<16x4224xf32>
    %4 = arith.mulf %1, %1 : vector<16x4224xf32>
    %5 = arith.mulf %3, %3 : vector<16x4224xf32>
    %6 = arith.addf %4, %5 : vector<16x4224xf32>
    %cst = arith.constant 1.000000e-30 : f32
    %7 = vector.broadcast %cst : f32 to vector<16x4224xf32>
    %8 = arith.addf %6, %7 : vector<16x4224xf32>
    %9 = math.rsqrt %8 : vector<16x4224xf32>
    %10 = arith.mulf %1, %9 : vector<16x4224xf32>
    %11 = arith.truncf %10 : vector<16x4224xf32> to vector<16x4224xbf16>
    %c0_3 = arith.constant 0 : index
    %c0_4 = arith.constant 0 : index
    %12 = vector.load %arg5[%c0_3, %c0_4] : memref<16x8448xbf16, #tpu.memory_space<vmem>>, vector<16x4224xbf16>
    tpu.vector_store %arg5[%c0_3, %c0_4], %11 {strides = array<i32>} : memref<16x8448xbf16, #tpu.memory_space<vmem>>, vector<16x4224xbf16>,
    %13 = arith.mulf %3, %9 : vector<16x4224xf32>
    %14 = arith.truncf %13 : vector<16x4224xf32> to vector<16x4224xbf16>
    %c0_5 = arith.constant 0 : index
    %c4224 = arith.constant 4224 : index
    %15 = vector.load %arg5[%c0_5, %c4224] : memref<16x8448xbf16, #tpu.memory_space<vmem>>, vector<16x4224xbf16>
    tpu.vector_store %arg5[%c0_5, %c4224], %14 {strides = array<i32>} : memref<16x8448xbf16, #tpu.memory_space<vmem>>, vector<16x4224xbf16>,
    %c0_6 = arith.constant 0 : index
    %c0_7 = arith.constant 0 : index
    %16 = vector.load %arg5[%c0_6, %c0_7] : memref<16x8448xbf16, #tpu.memory_space<vmem>>, vector<16x8448xbf16>
    %c0_8 = arith.constant 0 : index
    %c0_9 = arith.constant 0 : index
    %17 = vector.load %arg3[%c0_8, %c0_9] : memref<8448x384xbf16, #tpu.memory_space<vmem>>, vector<8448x384xbf16>
    %cst_10 = arith.constant dense<0.000000e+00> : vector<16x384xf32>
    %18 = tpu.matmul %16, %17, %cst_10 {dimension_numbers = #tpu.dot_dimension_numbers<[1], [0], [0], [1], [0, 0, 1, 1], [], []>} : vector<16x8448xbf16>, vector<8448x384xbf16>, vector<16x384xf32> -> vector<16x384xf32>
    %c0_11 = arith.constant 0 : index
    %c0_12 = arith.constant 0 : index
    %19 = vector.load %arg4[%c0_11, %c0_12] : memref<16x384xf32, #tpu.memory_space<vmem>>, vector<16x384xf32>
    tpu.vector_store %arg4[%c0_11, %c0_12], %18 {strides = array<i32>} : memref<16x384xf32, #tpu.memory_space<vmem>>, vector<16x384xf32>,
    return
  }
  func.func @transform_0(%arg0: i32) -> (i32, i32) {
    %c0_i32 = arith.constant 0 : i32
    %c0_i32_0 = arith.constant 0 : i32
    return %arg0, %c0_i32 : i32, i32
  }
  func.func @transform_1(%arg0: i32) -> (i32, i32) {
    %c0_i32 = arith.constant 0 : i32
    %c0_i32_0 = arith.constant 0 : i32
    return %arg0, %c0_i32 : i32, i32
  }
  func.func @transform_2(%arg0: i32) -> (i32, i32) {
    %c0_i32 = arith.constant 0 : i32
    %c0_i32_0 = arith.constant 0 : i32
    %c0_i32_1 = arith.constant 0 : i32
    return %c0_i32, %c0_i32_0 : i32, i32
  }
  func.func @transform_3(%arg0: i32) -> (i32, i32) {
    %c0_i32 = arith.constant 0 : i32
    %c0_i32_0 = arith.constant 0 : i32
    return %arg0, %c0_i32 : i32, i32
  }
}

</mosaic_0001>

<bundles_post_ra>
// kernel: tpu_custom_call.1
= control target key start
LH: loop header
LB: loop body
LE: loop exit
PB: predicated region body
PF: predicated region fallthrough
CT: control target
= control target key end

     0   :  { %8 = vsyncpa [#allocation4], 0  ;;  %s20674_s0 = inlined_call_operand.hbm [shape: bf16[16,4224], index: 0, kind: input, shape index: {}]   ;;  %s20675_s1 = inlined_call_operand.hbm [shape: bf16[16,4224], index: 1, kind: input, shape index: {}]   ;;  %s20676_s2 = inlined_call_operand.hbm [shape: bf16[8448,384], index: 2, kind: input, shape index: {}]   ;;  %s20677_s3 = inlined_call_operand.hbm [shape: f32[16,384], index: 3, kind: output, shape index: {}]  }
   0x1   :  { %9 = vsyncpa [#allocation7], 0 }
   0x2   :  { %10 = vsyncpa [#allocation5], 0  ;;  %s19059_s12 = smov [#allocation6]   ;;  %s19060_s14 = smov [#allocation3]  }
   0x3   :  { %s28_s13 = sshll.u32 %s19059_s12, 4  ;;  %s16_s15 = sshll.u32 %s19060_s14, 4  ;;  %s29_s13 = int_to_ptr.vmem [resolvable:$true] %s28_s13  ;;  %s19089_s15 = int_to_ptr.vmem [resolvable:$true] %s16_s15 }
   0x4   :  { %s18965_s18 = scalar_lea.hbm %s20675_s1, 4224 }
   0x5   :  { %p18966_p0 = scmp.ne.s32.totalorder %s20675_s1, %s18965_s18  ;;  %p18969_p1 = scmp.lt.u32.totalorder %s18965_s18, %s20675_s1 }
   0x7   :  { %p18971_p2 = pnand %p18969_p1, %p18966_p0 }
   0x9   :  { %18974 = shalt.err (!%p18971_p2)
}
   0xa   :  { %s18975_s23 = scalar_lea.vmem %s29_s13, 4224  ;;  %p18980_p4 = scmp.lt.s32.totalorder %s29_s13, %s29_s13 }
   0xb   :  { %p18976_p3 = scmp.ne.s32.totalorder %s29_s13, %s18975_s23  ;;  %p18981_p5 = scmp.lt.s32.totalorder %s18975_s23, %s18975_s23 }
   0xd   :  { %p18982_p6 = por %p18981_p5, %p18980_p4 }
   0xf   :  { %p18983_p7 = pnand %p18982_p6, %p18976_p3 }
  0x11   :  { %18986 = shalt.err (!%p18983_p7)
}
  0x12   :  { %s19061_s24 = smov 2112   ;;  %s19062_s25 = smov 132  }
  0x13   :  { %34 = dma.hbm_to_vmem [thread:$0]  %s20675_s1, 4224, %s29_s13, [#allocation7], %s19061_s24, %s19061_s24, %s19062_s25  }
  0x14   :  { %s18987_s30 = scalar_lea.hbm %s20674_s0, 4224 }
  0x15   :  { %p18988_p8 = scmp.ne.s32.totalorder %s20674_s0, %s18987_s30  ;;  %p18991_p9 = scmp.lt.u32.totalorder %s18987_s30, %s20674_s0 }
  0x17   :  { %p18993_p10 = pnand %p18991_p9, %p18988_p8 }
  0x19   :  { %18996 = shalt.err (!%p18993_p10)
}
  0x1a   :  { %s18997_s8 = scalar_lea.vmem %s19089_s15, 4224  ;;  %p19002_p12 = scmp.lt.s32.totalorder %s19089_s15, %s19089_s15 }
  0x1b   :  { %p18998_p11 = scmp.ne.s32.totalorder %s19089_s15, %s18997_s8  ;;  %p19003_p13 = scmp.lt.s32.totalorder %s18997_s8, %s18997_s8 }
  0x1d   :  { %p19004_p0 = por %p19003_p13, %p19002_p12 }
  0x1f   :  { %p19005_p1 = pnand %p19004_p0, %p18998_p11 }
  0x21   :  { %19008 = shalt.err (!%p19005_p1)
}
  0x22   :  { %22 = dma.hbm_to_vmem [thread:$0]  %s20674_s0, 4224, %s19089_s15, [#allocation4], %s19061_s24, %s19061_s24, %s19062_s25  }
  0x23   :  { %s19063_s10 = smov [#allocation8]   ;;  %s19009_s14 = scalar_lea.hbm %s20676_s2, 202752 }
  0x24   :  { %s40_s11 = sshll.u32 %s19063_s10, 4  ;;  %p19010_p2 = scmp.ne.s32.totalorder %s20676_s2, %s19009_s14  ;;  %s41_s11 = int_to_ptr.vmem [resolvable:$true] %s40_s11 }
  0x25   :  { %p19013_p3 = scmp.lt.u32.totalorder %s19009_s14, %s20676_s2 }
  0x27   :  { %p19015_p4 = pnand %p19013_p3, %p19010_p2 }
  0x29   :  { %19018 = shalt.err (!%p19015_p4)
}
  0x2a   :  { %s19019_s20 = scalar_lea.vmem %s41_s11, 202752  ;;  %p19024_p6 = scmp.lt.s32.totalorder %s41_s11, %s41_s11 }
  0x2b   :  { %p19020_p5 = scmp.ne.s32.totalorder %s41_s11, %s19019_s20  ;;  %p19025_p7 = scmp.lt.s32.totalorder %s19019_s20, %s19019_s20 }
  0x2d   :  { %p19026_p8 = por %p19025_p7, %p19024_p6 }
  0x2f   :  { %p19027_p9 = pnand %p19026_p8, %p19020_p5 }
  0x31   :  { %19030 = shalt.err (!%p19027_p9)
}
  0x32   :  { %s19064_s0 = smov 192   ;;  %s19065_s15 = smov 12  }
  0x33   :  { %46 = dma.hbm_to_vmem [thread:$0]  %s20676_s2, 202752, %s41_s11, [#allocation7], %s19064_s0, %s19064_s0, %s19065_s15  }
  0x34   :  { %19053 = dma.done.wait [#allocation4], 4224  }
  0x35   :  { %19054 = vsyncadd [#allocation4], 4294963072 }
  0x36   :  { %19055 = dma.done.wait [#allocation7], 206976  }
  0x37   :  { %19056 = vsyncadd [#allocation7], 4294760320  ;;  %v16721_v0 = vld [vmem:[#allocation8 + $0x4] ss:$12 sps:$4 sm:$0xff]   ;;  %v16725_v2 = vld [vmem:[#allocation8] ss:$12 sps:$4 sm:$0xff]  }
  0x38   :  { %v16723_v1 = vld [vmem:[#allocation8 + $0xc04] ss:$12 sps:$4 sm:$0xff]   ;;  %11477 = vmatprep.subr.bf16.mxu1 %v16721_v0  ;;  %v16726_v3 = vld [vmem:[#allocation8 + $0xc00] ss:$12 sps:$4 sm:$0xff]   ;;  %v16727_v4 = vld [vmem:[#allocation8 + $0x1c] ss:$12 sps:$4 sm:$0xff]  }
  0x39   :  { %11821 = vmatprep.subr.bf16.mxu0 %v16723_v1  ;;  %11478 = vmatpush1.bf16.msra.mxu1 %v16725_v2  ;;  %v16729_v5 = vld [vmem:[#allocation8 + $0xc1c] ss:$12 sps:$4 sm:$0xff]   ;;  %v16731_v6 = vld [vmem:[#allocation8 + $0x18] ss:$12 sps:$4 sm:$0xff]   ;;  %v16733_v8 = vld [vmem:[#allocation8 + $0x34] ss:$12 sps:$4 sm:$0xff]  }
  0x3a   :  { %11822 = vmatpush1.bf16.msra.mxu0 %v16726_v3  ;;  %11479 = vmatprep.subr.bf16.mxu1 %v16727_v4  ;;  %v16732_v7 = vld [vmem:[#allocation8 + $0xc18] ss:$12 sps:$4 sm:$0xff]   ;;  %v16735_v9 = vld [vmem:[#allocation8 + $0xc34] ss:$12 sps:$4 sm:$0xff]   ;;  %v16737_v10 = vld [vmem:[#allocation8 + $0x30] ss:$12 sps:$4 sm:$0xff]  }
  0x3b   :  { %11823 = vmatprep.subr.bf16.mxu0 %v16729_v5  ;;  %v16738_v11 = vld [vmem:[#allocation8 + $0xc30] ss:$12 sps:$4 sm:$0xff]   ;;  %v16739_v12 = vld [vmem:[#allocation8 + $0x4c] ss:$12 sps:$4 sm:$0xff]   ;;  %v16743_v14 = vld [vmem:[#allocation8 + $0x48] ss:$12 sps:$4 sm:$0xff]  }
  0x3c   :  { %v16741_v13 = vld [vmem:[#allocation8 + $0xc4c] ss:$12 sps:$4 sm:$0xff]   ;;  %v16744_v15 = vld [vmem:[#allocation8 + $0xc48] ss:$12 sps:$4 sm:$0xff]   ;;  %v16745_v16 = vld [vmem:[#allocation8 + $0x64] ss:$12 sps:$4 sm:$0xff]  }
  0x3d   :  { %11480 = vmatpush1.bf16.msra.mxu1 %v16731_v6  ;;  %v16747_v17 = vld [vmem:[#allocation8 + $0xc64] ss:$12 sps:$4 sm:$0xff]   ;;  %v16749_v18 = vld [vmem:[#allocation8 + $0x60] ss:$12 sps:$4 sm:$0xff]   ;;  %v16751_v20 = vld [vmem:[#allocation8 + $0x7c] ss:$12 sps:$4 sm:$0xff]  }
  0x3e   :  { %11824 = vmatpush1.bf16.msra.mxu0 %v16732_v7  ;;  %11481 = vmatprep.subr.bf16.mxu1 %v16733_v8  ;;  %v16750_v19 = vld [vmem:[#allocation8 + $0xc60] ss:$12 sps:$4 sm:$0xff]   ;;  %v16753_v21 = vld [vmem:[#allocation8 + $0xc7c] ss:$12 sps:$4 sm:$0xff]   ;;  %v16755_v22 = vld [vmem:[#allocation8 + $0x78] ss:$12 sps:$4 sm:$0xff]  }
  0x3f   :  { %11825 = vmatprep.subr.bf16.mxu0 %v16735_v9  ;;  %v16756_v23 = vld [vmem:[#allocation8 + $0xc78] ss:$12 sps:$4 sm:$0xff]   ;;  %v16757_v24 = vld [vmem:[#allocation8 + $0x94] ss:$12 sps:$4 sm:$0xff]   ;;  %v16761_v26 = vld [vmem:[#allocation8 + $0x90] ss:$12 sps:$4 sm:$0xff]  }
  0x40   :  { %v16759_v25 = vld [vmem:[#allocation8 + $0xc94] ss:$12 sps:$4 sm:$0xff]   ;;  %v16762_v27 = vld [vmem:[#allocation8 + $0xc90] ss:$12 sps:$4 sm:$0xff]   ;;  %v16763_v28 = vld [vmem:[#allocation8 + $0xac] ss:$12 sps:$4 sm:$0xff]  }
  0x41   :  { %11482 = vmatpush1.bf16.msra.mxu1 %v16737_v10  ;;  %v16765_v29 = vld [vmem:[#allocation8 + $0xcac] ss:$12 sps:$4 sm:$0xff]   ;;  %v16767_v30 = vld [vmem:[#allocation8 + $0xa8] ss:$12 sps:$4 sm:$0xff]   ;;  %v16769_v32 = vld [vmem:[#allocation8 + $0xc4] ss:$12 sps:$4 sm:$0xff]  }
  0x42   :  { %11826 = vmatpush1.bf16.msra.mxu0 %v16738_v11  ;;  %11483 = vmatprep.subr.bf16.mxu1 %v16739_v12  ;;  %v16768_v31 = vld [vmem:[#allocation8 + $0xca8] ss:$12 sps:$4 sm:$0xff]   ;;  %v16771_v33 = vld [vmem:[#allocation8 + $0xcc4] ss:$12 sps:$4 sm:$0xff]   ;;  %v16773_v34 = vld [vmem:[#allocation8 + $0xc0] ss:$12 sps:$4 sm:$0xff]  }
  0x43   :  { %11827 = vmatprep.subr.bf16.mxu0 %v16741_v13  ;;  %v16774_v35 = vld [vmem:[#allocation8 + $0xcc0] ss:$12 sps:$4 sm:$0xff]   ;;  %v16775_v36 = vld [vmem:[#allocation8 + $0xdc] ss:$12 sps:$4 sm:$0xff]   ;;  %v16779_v38 = vld [vmem:[#allocation8 + $0xd8] ss:$12 sps:$4 sm:$0xff]  }
  0x44   :  { %v16777_v37 = vld [vmem:[#allocation8 + $0xcdc] ss:$12 sps:$4 sm:$0xff]   ;;  %v16780_v39 = vld [vmem:[#allocation8 + $0xcd8] ss:$12 sps:$4 sm:$0xff]   ;;  %v16781_v40 = vld [vmem:[#allocation8 + $0xf4] ss:$12 sps:$4 sm:$0xff]  }
  0x45   :  { %11484 = vmatpush1.bf16.msra.mxu1 %v16743_v14  ;;  %v16783_v41 = vld [vmem:[#allocation8 + $0xcf4] ss:$12 sps:$4 sm:$0xff]   ;;  %v16785_v42 = vld [vmem:[#allocation8 + $0xf0] ss:$12 sps:$4 sm:$0xff]   ;;  %v16787_v44 = vld [vmem:[#allocation8 + $0x10c] ss:$12 sps:$4 sm:$0xff]  }
  0x46   :  { %11828 = vmatpush1.bf16.msra.mxu0 %v16744_v15  ;;  %11485 = vmatprep.subr.bf16.mxu1 %v16745_v16  ;;  %v16786_v43 = vld [vmem:[#allocation8 + $0xcf0] ss:$12 sps:$4 sm:$0xff]   ;;  %v16789_v45 = vld [vmem:[#allocation8 + $0xd0c] ss:$12 sps:$4 sm:$0xff]   ;;  %v16791_v46 = vld [vmem:[#allocation8 + $0x108] ss:$12 sps:$4 sm:$0xff]  }
  0x47   :  { %11829 = vmatprep.subr.bf16.mxu0 %v16747_v17  ;;  %v16792_v47 = vld [vmem:[#allocation8 + $0xd08] ss:$12 sps:$4 sm:$0xff]   ;;  %v157_v52 = vld [vmem:[#allocation6] sm:$0xff]  ;;  %v16793_v54 = vld [vmem:[#allocation8 + $0x124] ss:$12 sps:$4 sm:$0xff]   ;;  %s19066_s2 = smov [#allocation9]  }
  0x48   :  { %v57_v48 = vld [vmem:[#allocation3] sm:$0xff]  ;;  %v174_v53 = vld [vmem:[#allocation6 + $0x84] sm:$0xff]  ;;  %v19140_v57 = vunpack.c.l.bf16 %v157_v52  ;;  %v19142_v58 = vunpack.c.h.bf16 %v157_v52  ;;  %s14260_s23 = sshll.u32 %s19066_s2, 4  ;;  %s14261_s23 = int_to_ptr.vmem [resolvable:$true] %s14260_s23 }
  0x49   :  { %11486 = vmatpush1.bf16.msra.mxu1 %v16749_v18  ;;  %v74_v49 = vld [vmem:[#allocation3 + $0x84] sm:$0xff]  ;;  %v19132_v50 = vunpack.c.l.bf16 %v57_v48  ;;  %v19134_v51 = vunpack.c.h.bf16 %v57_v48  ;;  %v16795_v59 = vld [vmem:[#allocation8 + $0xd24] ss:$12 sps:$4 sm:$0xff]   ;;  %v19144_v60 = vunpack.c.l.bf16 %v174_v53  ;;  %v19146_v61 = vunpack.c.h.bf16 %v174_v53  ;;  %v16797_v2 = vld [vmem:[#allocation8 + $0x120] ss:$12 sps:$4 sm:$0xff]   ;;  %s19031_s24 = scalar_lea.vmem %s14261_s23, 768  ;;  %p19036_p11 = scmp.lt.s32.totalorder %s14261_s23, %s14261_s23 }
  0x4a   :  { %11830 = vmatpush1.bf16.msra.mxu0 %v16750_v19  ;;  %11487 = vmatprep.subr.bf16.mxu1 %v16751_v20  ;;  %v19136_v55 = vunpack.c.l.bf16 %v74_v49  ;;  %v19138_v56 = vunpack.c.h.bf16 %v74_v49  ;;  %v65_v0 = vld [vmem:[#allocation3 + $0x40] sm:$0xff]  ;;  %v323_v5 = vmul.f32 %v19140_v57, %v19140_v57  ;;  %v324_v6 = vmul.f32 %v19142_v58, %v19142_v58  ;;  %v165_v7 = vld [vmem:[#allocation6 + $0x40] sm:$0xff]  ;;  %v16798_v8 = vld [vmem:[#allocation8 + $0xd20] ss:$12 sps:$4 sm:$0xff]   ;;  %p19032_p10 = scmp.ne.s32.totalorder %s14261_s23, %s19031_s24  ;;  %p19037_p12 = scmp.lt.s32.totalorder %s19031_s24, %s19031_s24 }
  0x4b   :  { %11831 = vmatprep.subr.bf16.mxu0 %v16753_v21  ;;  %20798 = vst [vmem:[#allocation13_spill] sm:$0xff] %v19146_v61  ;;  %v257_v62 = vmul.f32 %v19132_v50, %v19132_v50  ;;  %v258_v63 = vmul.f32 %v19134_v51, %v19134_v51  ;;  %v82_v1 = vld [vmem:[#allocation3 + $0xc4] sm:$0xff]  ;;  %v356_v9 = vmul.f32 %v19144_v60, %v19144_v60  ;;  %v19164_v11 = vunpack.c.l.bf16 %v65_v0  ;;  %v182_v13 = vld [vmem:[#allocation6 + $0xc4] sm:$0xff] }
  0x4c   :  { %v290_v3 = vmul.f32 %v19136_v55, %v19136_v55  ;;  %v291_v4 = vmul.f32 %v19138_v56, %v19138_v56  ;;  %v357_v10 = vmul.f32 %v19146_v61, %v19146_v61  ;;  %v19166_v12 = vunpack.c.h.bf16 %v65_v0  ;;  %v16799_v14 = vld [vmem:[#allocation8 + $0x13c] ss:$12 sps:$4 sm:$0xff]   ;;  %v16813_v49 = vld [vmem:[#allocation8 + $0xd6c] ss:$12 sps:$4 sm:$0xff]   ;;  %v16819_v0 = vld [vmem:[#allocation8 + $0x184] ss:$12 sps:$4 sm:$0xff]   ;;  %p19038_p13 = por %p19037_p12, %p19036_p11 }
  0x4d   :  { %11488 = vmatpush1.bf16.msra.mxu1 %v16755_v22  ;;  %v389_v15 = vadd.f32 %v323_v5, %v257_v62  ;;  %v390_v16 = vadd.f32 %v324_v6, %v258_v63  ;;  %v19168_v17 = vunpack.c.l.bf16 %v82_v1  ;;  %v19170_v18 = vunpack.c.h.bf16 %v82_v1  ;;  %v16801_v19 = vld [vmem:[#allocation8 + $0xd3c] ss:$12 sps:$4 sm:$0xff]   ;;  %v16822_v1 = vld [vmem:[#allocation8 + $0xd84] ss:$12 sps:$4 sm:$0xff]  }
  0x4e   :  { %11832 = vmatpush1.bf16.msra.mxu0 %v16756_v23  ;;  %11489 = vmatprep.subr.bf16.mxu1 %v16757_v24  ;;  %v422_v20 = vadd.f32 %v356_v9, %v290_v3  ;;  %v423_v21 = vadd.f32 %v357_v10, %v291_v4  ;;  %v19172_v22 = vunpack.c.l.bf16 %v165_v7  ;;  %v19174_v23 = vunpack.c.h.bf16 %v165_v7  ;;  %v16803_v24 = vld [vmem:[#allocation8 + $0x138] ss:$12 sps:$4 sm:$0xff]   ;;  %v16815_v62 = vld [vmem:[#allocation8 + $0x168] ss:$12 sps:$4 sm:$0xff]   ;;  %p19039_p0 = pnand %p19038_p13, %p19032_p10 }
  0x4f   :  { %11833 = vmatprep.subr.bf16.mxu0 %v16759_v25  ;;  %v455_v25 = vadd.f32 1e-30, %v389_v15  ;;  %v16816_v63 = vld [vmem:[#allocation8 + $0xd68] ss:$12 sps:$4 sm:$0xff]  }
  0x50   :  { %20799 = vst [vmem:[#allocation14_spill] sm:$0xff] %v19172_v22  ;;  %20800 = vst [vmem:[#allocation15_spill] sm:$0xff] %v19174_v23 }
  0x51   :  { %11490 = vmatpush1.bf16.msra.mxu1 %v16761_v26  ;;  %v456_v26 = vadd.f32 1e-30, %v390_v16  ;;  %18833 = vrsqrt.f32 %v455_v25  ;;  %v16825_v16 = vld [vmem:[#allocation8 + $0x19c] ss:$12 sps:$4 sm:$0xff]   ;;  %v16831_v25 = vld [vmem:[#allocation8 + $0x1b4] ss:$12 sps:$4 sm:$0xff]  }
  0x52   :  { %11834 = vmatpush1.bf16.msra.mxu0 %v16762_v27  ;;  %11491 = vmatprep.subr.bf16.mxu1 %v16763_v28  ;;  %v19176_v27 = vunpack.c.l.bf16 %v182_v13  ;;  %v19178_v28 = vunpack.c.h.bf16 %v182_v13 }
  0x53   :  { %11835 = vmatprep.subr.bf16.mxu0 %v16765_v29  ;;  %v16804_v29 = vld [vmem:[#allocation8 + $0xd38] ss:$12 sps:$4 sm:$0xff]   ;;  %18835 = vrsqrt.f32 %v456_v26 }
  0x54   :  { %20801 = vst [vmem:[#allocation16_spill] sm:$0xff] %v19176_v27  ;;  %20802 = vst [vmem:[#allocation17_spill] sm:$0xff] %v19178_v28 }
  0x55   :  { %11492 = vmatpush1.bf16.msra.mxu1 %v16767_v30  ;;  %v488_v30 = vadd.f32 1e-30, %v422_v20 }
  0x56   :  { %11836 = vmatpush1.bf16.msra.mxu0 %v16768_v31  ;;  %11493 = vmatprep.subr.bf16.mxu1 %v16769_v32  ;;  %v489_v31 = vadd.f32 1e-30, %v423_v21  ;;  %v273_v32 = vmul.f32 %v19164_v11, %v19164_v11 }
  0x57   :  { %11837 = vmatprep.subr.bf16.mxu0 %v16771_v33  ;;  %v274_v33 = vmul.f32 %v19166_v12, %v19166_v12  ;;  %18837 = vrsqrt.f32 %v488_v30  ;;  %v16829_v30 = vld [vmem:[#allocation8 + $0x1b0] ss:$12 sps:$4 sm:$0xff]  }
  0x58   :  { %18839 = vrsqrt.f32 %v489_v31  ;;  %v16834_v31 = vld [vmem:[#allocation8 + $0xdb4] ss:$12 sps:$4 sm:$0xff]  }
  0x59   :  { %11494 = vmatpush1.bf16.msra.mxu1 %v16773_v34  ;;  %v16805_v34 = vld [vmem:[#allocation8 + $0x154] ss:$12 sps:$4 sm:$0xff]  }
  0x5a   :  { %11838 = vmatpush1.bf16.msra.mxu0 %v16774_v35  ;;  %11495 = vmatprep.subr.bf16.mxu1 %v16775_v36  ;;  %v306_v35 = vmul.f32 %v19168_v17, %v19168_v17  ;;  %v307_v36 = vmul.f32 %v19170_v18, %v19170_v18 }
  0x5b   :  { %11839 = vmatprep.subr.bf16.mxu0 %v16777_v37  ;;  %v339_v37 = vmul.f32 %v19172_v22, %v19172_v22 }
  0x5d   :  { %11496 = vmatpush1.bf16.msra.mxu1 %v16779_v38  ;;  %v16807_v38 = vld [vmem:[#allocation8 + $0xd54] ss:$12 sps:$4 sm:$0xff]  }
  0x5e   :  { %11840 = vmatpush1.bf16.msra.mxu0 %v16780_v39  ;;  %11497 = vmatprep.subr.bf16.mxu1 %v16781_v40  ;;  %v340_v39 = vmul.f32 %v19174_v23, %v19174_v23  ;;  %v372_v40 = vmul.f32 %v19176_v27, %v19176_v27 }
  0x5f   :  { %11841 = vmatprep.subr.bf16.mxu0 %v16783_v41  ;;  %v373_v41 = vmul.f32 %v19178_v28, %v19178_v28 }
  0x61   :  { %11498 = vmatpush1.bf16.msra.mxu1 %v16785_v42  ;;  %v16809_v42 = vld [vmem:[#allocation8 + $0x150] ss:$12 sps:$4 sm:$0xff]   ;;  %v439_v48 = vadd.f32 %v373_v41, %v307_v36  ;;  %v16841_v36 = vld [vmem:[#allocation8 + $0x1e0] ss:$12 sps:$4 sm:$0xff]   ;;  %v16847_v41 = vld [vmem:[#allocation8 + $0x1f8] ss:$12 sps:$4 sm:$0xff]  }
  0x62   :  { %11842 = vmatpush1.bf16.msra.mxu0 %v16786_v43  ;;  %11499 = vmatprep.subr.bf16.mxu1 %v16787_v44  ;;  %v405_v43 = vadd.f32 %v339_v37, %v273_v32  ;;  %v16810_v44 = vld [vmem:[#allocation8 + $0xd50] ss:$12 sps:$4 sm:$0xff]   ;;  %v16835_v32 = vld [vmem:[#allocation8 + $0x1c8] ss:$12 sps:$4 sm:$0xff]  }
  0x63   :  { %11843 = vmatprep.subr.bf16.mxu0 %v16789_v45  ;;  %v16811_v45 = vld [vmem:[#allocation8 + $0x16c] ss:$12 sps:$4 sm:$0xff]   ;;  %v16849_v37 = vld [vmem:[#allocation8 + $0x1fc] ss:$12 sps:$4 sm:$0xff]  }
  0x64   :  { %v471_v52 = vadd.f32 1e-30, %v405_v43  ;;  %v16852_v43 = vld [vmem:[#allocation8 + $0xdfc] ss:$12 sps:$4 sm:$0xff]  }
  0x65   :  { %11500 = vmatpush1.bf16.msra.mxu1 %v16791_v46  ;;  %v406_v46 = vadd.f32 %v340_v39, %v274_v33  ;;  %v16843_v33 = vld [vmem:[#allocation8 + $0x1e4] ss:$12 sps:$4 sm:$0xff]  }
  0x66   :  { %11844 = vmatpush1.bf16.msra.mxu0 %v16792_v47  ;;  %11501 = vmatprep.subr.bf16.mxu1 %v16793_v54  ;;  %v438_v47 = vadd.f32 %v372_v40, %v306_v35  ;;  %18841 = vrsqrt.f32 %v471_v52  ;;  %v16840_v35 = vld [vmem:[#allocation8 + $0xdcc] ss:$12 sps:$4 sm:$0xff]   ;;  %v16846_v39 = vld [vmem:[#allocation8 + $0xde4] ss:$12 sps:$4 sm:$0xff]  }
  0x67   :  { %11845 = vmatprep.subr.bf16.mxu0 %v16795_v59  ;;  %v472_v53 = vadd.f32 1e-30, %v406_v46  ;;  %v505_v59 = vadd.f32 1e-30, %v439_v48  ;;  %v16844_v40 = vld [vmem:[#allocation8 + $0xde0] ss:$12 sps:$4 sm:$0xff]  }
  0x68   :  { %v504_v54 = vadd.f32 1e-30, %v438_v47  ;;  %v158_v48 = vld [vmem:[#allocation6 + $0x8] sm:$0xff] }
  0x69   :  { %11502 = vmatpush1.bf16.msra.mxu1 %v16797_v2  ;;  %18843 = vrsqrt.f32 %v472_v53  ;;  %v19196_v2 = vpop.eup %18833  ;;  %v16850_v52 = vld [vmem:[#allocation8 + $0xdf8] ss:$12 sps:$4 sm:$0xff]   ;;  %v16853_v53 = vld [vmem:[#allocation8 + $0x210] ss:$12 sps:$4 sm:$0xff]  }
  0x6a   :  { %11846 = vmatpush1.bf16.msra.mxu0 %v16798_v8  ;;  %11503 = vmatprep.subr.bf16.mxu1 %v16799_v14  ;;  %18845 = vrsqrt.f32 %v504_v54  ;;  %v19198_v3 = vpop.eup %18835  ;;  %v587_v4 = vmul.f32 %v19196_v2, %v19132_v50  ;;  %v16817_v14 = vld [vmem:[#allocation8 + $0x180] ss:$12 sps:$4 sm:$0xff]  }
  0x6b   :  { %11847 = vmatprep.subr.bf16.mxu0 %v16801_v19  ;;  %18847 = vrsqrt.f32 %v505_v59  ;;  %v19202_v5 = vpop.eup %18837  ;;  %v588_v6 = vmul.f32 %v19198_v3, %v19134_v51  ;;  %v16861_v54 = vld [vmem:[#allocation8 + $0x22c] ss:$12 sps:$4 sm:$0xff]   ;;  %v19244_v59 = vunpack.c.h.bf16 %v158_v48 }
  0x6c   :  { %v19206_v7 = vpop.eup %18839  ;;  %v620_v8 = vmul.f32 %v19202_v5, %v19136_v55 }
  0x6d   :  { %11504 = vmatpush1.bf16.msra.mxu1 %v16803_v24  ;;  %20803 = vst [vmem:[#allocation18_spill] sm:$0xff] %v19206_v7  ;;  %v621_v9 = vmul.f32 %v19206_v7, %v19138_v56  ;;  %20810 = vst [vmem:[#allocation25_spill] sm:$0xff] %v19244_v59 }
  0x6e   :  { %11848 = vmatpush1.bf16.msra.mxu0 %v16804_v29  ;;  %11505 = vmatprep.subr.bf16.mxu1 %v16805_v34  ;;  %v19212_v10 = vpack.c.bf16 %v620_v8, %v587_v4  ;;  %v16820_v29 = vld [vmem:[#allocation8 + $0xd80] ss:$12 sps:$4 sm:$0xff]   ;;  %v16832_v34 = vld [vmem:[#allocation8 + $0xdb0] ss:$12 sps:$4 sm:$0xff]   ;;  %v326_v8 = vmul.f32 %v19244_v59, %v19244_v59 }
  0x6f   :  { %11849 = vmatprep.subr.bf16.mxu0 %v16807_v38  ;;  %v19216_v13 = vpack.c.bf16 %v621_v9, %v588_v6  ;;  %v16838_v38 = vld [vmem:[#allocation8 + $0xdc8] ss:$12 sps:$4 sm:$0xff]   ;;  %v83_v4 = vld [vmem:[#allocation3 + $0xcc] sm:$0xff] }
  0x70   :  { %v19214_v50 = vpop.eup %18841  ;;  %v166_v6 = vld [vmem:[#allocation6 + $0x48] sm:$0xff]  ;;  %v17072_v59 = vld [vmem:[#allocation8 + $0x1170] ss:$12 sps:$4 sm:$0xff]  }
  0x71   :  { %11506 = vmatpush1.bf16.msra.mxu1 %v16809_v42  ;;  %20804 = vst [vmem:[#allocation19_spill] sm:$0xff] %v19214_v50  ;;  %v603_v51 = vmul.f32 %v19214_v50, %v19164_v11  ;;  %11509 = vmatprep.mubr.bf16.mxu1 %v19216_v13  ;;  %v16823_v11 = vld [vmem:[#allocation8 + $0x198] ss:$12 sps:$4 sm:$0xff]   ;;  %v16855_v42 = vld [vmem:[#allocation8 + $0x214] ss:$12 sps:$4 sm:$0xff]  }
  0x72   :  { %11850 = vmatpush1.bf16.msra.mxu0 %v16810_v44  ;;  %11507 = vmatprep.subr.bf16.mxu1 %v16811_v45  ;;  %v58_v44 = vld [vmem:[#allocation3 + $0x8] sm:$0xff]  ;;  %v17002_v50 = vld [vmem:[#allocation8 + $0x1054] ss:$12 sps:$4 sm:$0xff]  }
  0x73   :  { %11851 = vmatprep.subr.bf16.mxu0 %v16813_v49  ;;  %v19218_v15 = vpop.eup %18843  ;;  %v75_v45 = vld [vmem:[#allocation3 + $0x8c] sm:$0xff]  ;;  %v19240_v46 = vunpack.c.h.bf16 %v58_v44  ;;  %v175_v49 = vld [vmem:[#allocation6 + $0x8c] sm:$0xff] }
  0x74   :  { %20805 = vst [vmem:[#allocation20_spill] sm:$0xff] %v19218_v15  ;;  %v19222_v19 = vpop.eup %18845  ;;  %v604_v55 = vmul.f32 %v19218_v15, %v19166_v12  ;;  %v16828_v12 = vld [vmem:[#allocation8 + $0xd9c] ss:$12 sps:$4 sm:$0xff]   ;;  %v19242_v47 = vunpack.c.h.bf16 %v75_v45  ;;  %v16936_v15 = vld [vmem:[#allocation8 + $0xf4c] ss:$12 sps:$4 sm:$0xff]  }
  0x75   :  { %11508 = vmatpush1.bf16.msra.mxu1 %v16815_v62  ;;  %20806 = vst [vmem:[#allocation21_spill] sm:$0xff] %v19222_v19  ;;  %v19227_v56 = vpop.eup %18847  ;;  %v636_v20 = vmul.f32 %v19222_v19, %v19168_v17  ;;  %v16837_v17 = vld [vmem:[#allocation8 + $0x1cc] ss:$12 sps:$4 sm:$0xff]   ;;  %v19246_v62 = vunpack.c.h.bf16 %v175_v49 }
  0x76   :  { %11852 = vmatpush1.bf16.msra.mxu0 %v16816_v63  ;;  %11520 = vmatprep.subr.bf16.mxu1 %v16819_v0  ;;  %20807 = vst [vmem:[#allocation22_spill] sm:$0xff] %v19227_v56  ;;  %v637_v21 = vmul.f32 %v19227_v56, %v19170_v18  ;;  %v16826_v18 = vld [vmem:[#allocation8 + $0xd98] ss:$12 sps:$4 sm:$0xff]   ;;  %v260_v63 = vmul.f32 %v19240_v46, %v19240_v46  ;;  %v16928_v56 = vld [vmem:[#allocation8 + $0xf30] ss:$12 sps:$4 sm:$0xff]  }
  0x77   :  { %11864 = vmatprep.subr.bf16.mxu0 %v16822_v1  ;;  %v19234_v24 = vpack.c.bf16 %v636_v20, %v603_v51  ;;  %20811 = vst [vmem:[#allocation26_spill] sm:$0xff] %v19246_v62  ;;  %v293_v0 = vmul.f32 %v19242_v47, %v19242_v47  ;;  %v66_v1 = vld [vmem:[#allocation3 + $0x48] sm:$0xff]  ;;  %v359_v9 = vmul.f32 %v19246_v62, %v19246_v62  ;;  %v16858_v51 = vld [vmem:[#allocation8 + $0xe14] ss:$12 sps:$4 sm:$0xff]  }
  0x78   :  { %11510 = vmatmul.mubr.bf16.vlgmr.msra.gmra.mrb[0].mxu1 %v19212_v10  ;;  %v19236_v26 = vpack.c.bf16 %v637_v21, %v604_v55  ;;  %v19258_v55 = vunpack.c.h.bf16 %v83_v4  ;;  %v16859_v20 = vld [vmem:[#allocation8 + $0x228] ss:$12 sps:$4 sm:$0xff]   ;;  %v392_v21 = vadd.f32 %v326_v8, %v260_v63  ;;  %v19292_v8 = vunpack.c.l.bf16 %v83_v4  ;;  %v16877_v4 = vld [vmem:[#allocation8 + $0x270] ss:$12 sps:$4 sm:$0xff]  }
  0x79   :  { %11521 = vmatpush1.bf16.msra.mxu1 %v16817_v14  ;;  %20808 = vst [vmem:[#allocation23_spill] sm:$0xff] %v19234_v24  ;;  %v183_v14 = vld [vmem:[#allocation6 + $0xcc] sm:$0xff] }
  0x7a   :  { %11522 = vmatprep.subr.bf16.mxu1 %v16825_v16  ;;  %20809 = vst [vmem:[#allocation24_spill] sm:$0xff] %v19236_v26  ;;  %11853 = vmatprep.mubr.bf16.mxu0 %v19236_v26  ;;  %v19256_v16 = vunpack.c.h.bf16 %v66_v1 }
  0x7b   :  { %11854 = vmatmul.mubr.bf16.vlgmr.msra.gmra.mrb[0].mxu0 %v19234_v24 }
  0x7c   :  { %11865 = vmatpush1.bf16.msra.mxu0 %v16820_v29  ;;  %v19260_v29 = vunpack.c.l.bf16 %v58_v44  ;;  %v16862_v44 = vld [vmem:[#allocation8 + $0xe28] ss:$12 sps:$4 sm:$0xff]  }
  0x7d   :  { %11523 = vmatpush1.bf16.msra.mxu1 %v16823_v11  ;;  %11866 = vmatprep.subr.bf16.mxu0 %v16828_v12  ;;  %v425_v11 = vadd.f32 %v359_v9, %v293_v0  ;;  %v19262_v12 = vunpack.c.l.bf16 %v158_v48  ;;  %v16871_v0 = vld [vmem:[#allocation8 + $0x258] ss:$12 sps:$4 sm:$0xff]   ;;  %v19294_v9 = vunpack.c.l.bf16 %v183_v14 }
  0x7e   :  { %11524 = vmatprep.subr.bf16.mxu1 %v16831_v25  ;;  %v16867_v25 = vld [vmem:[#allocation8 + $0x244] ss:$12 sps:$4 sm:$0xff]  }
  0x7f   :  { %20815 = vst [vmem:[#allocation30_spill] sm:$0xff] %v19294_v9 }
  0x80   :  { %11867 = vmatpush1.bf16.msra.mxu0 %v16826_v18  ;;  %v16856_v18 = vld [vmem:[#allocation8 + $0xe10] ss:$12 sps:$4 sm:$0xff]  }
  0x81   :  { %11525 = vmatpush1.bf16.msra.mxu1 %v16829_v30  ;;  %11868 = vmatprep.subr.bf16.mxu0 %v16834_v31  ;;  %v19264_v30 = vunpack.c.h.bf16 %v166_v6  ;;  %v19268_v31 = vunpack.c.l.bf16 %v75_v45 }
  0x82   :  { %11526 = vmatprep.subr.bf16.mxu1 %v16837_v17  ;;  %v19266_v17 = vunpack.c.h.bf16 %v183_v14  ;;  %v308_v14 = vmul.f32 %v19292_v8, %v19292_v8 }
  0x83   :  { %20812 = vst [vmem:[#allocation27_spill] sm:$0xff] %v19264_v30  ;;  %v292_v45 = vmul.f32 %v19268_v31, %v19268_v31 }
  0x84   :  { %11869 = vmatpush1.bf16.msra.mxu0 %v16832_v34  ;;  %20813 = vst [vmem:[#allocation28_spill] sm:$0xff] %v19266_v17  ;;  %v16864_v34 = vld [vmem:[#allocation8 + $0xe2c] ss:$12 sps:$4 sm:$0xff]  }
  0x85   :  { %11527 = vmatpush1.bf16.msra.mxu1 %v16835_v32  ;;  %11870 = vmatprep.subr.bf16.mxu0 %v16840_v35  ;;  %v19270_v32 = vunpack.c.l.bf16 %v175_v49  ;;  %v491_v35 = vadd.f32 1e-30, %v425_v11 }
  0x86   :  { %11528 = vmatprep.subr.bf16.mxu1 %v16843_v33  ;;  %v458_v33 = vadd.f32 1e-30, %v392_v21 }
  0x87   :  { %v358_v48 = vmul.f32 %v19270_v32, %v19270_v32 }
  0x88   :  { %11871 = vmatpush1.bf16.msra.mxu0 %v16838_v38  ;;  %v16865_v38 = vld [vmem:[#allocation8 + $0x240] ss:$12 sps:$4 sm:$0xff]   ;;  %18849 = vrsqrt.f32 %v458_v33 }
  0x89   :  { %11529 = vmatpush1.bf16.msra.mxu1 %v16841_v36  ;;  %11872 = vmatprep.subr.bf16.mxu0 %v16846_v39  ;;  %v276_v36 = vmul.f32 %v19256_v16, %v19256_v16  ;;  %v342_v39 = vmul.f32 %v19264_v30, %v19264_v30  ;;  %18851 = vrsqrt.f32 %v491_v35  ;;  %v16885_v35 = vld [vmem:[#allocation8 + $0x28c] ss:$12 sps:$4 sm:$0xff]  }
  0x8a   :  { %11530 = vmatprep.subr.bf16.mxu1 %v16849_v37  ;;  %v309_v37 = vmul.f32 %v19258_v55, %v19258_v55 }
  0x8b   :  { %v408_v49 = vadd.f32 %v342_v39, %v276_v36 }
  0x8c   :  { %11873 = vmatpush1.bf16.msra.mxu0 %v16844_v40  ;;  %v16873_v40 = vld [vmem:[#allocation8 + $0x25c] ss:$12 sps:$4 sm:$0xff]  }
  0x8d   :  { %11531 = vmatpush1.bf16.msra.mxu1 %v16847_v41  ;;  %11874 = vmatprep.subr.bf16.mxu0 %v16852_v43  ;;  %v259_v41 = vmul.f32 %v19260_v29, %v19260_v29  ;;  %v375_v43 = vmul.f32 %v19266_v17, %v19266_v17  ;;  %v16939_v17 = vld [vmem:[#allocation8 + $0x364] ss:$12 sps:$4 sm:$0xff]  }
  0x8e   :  { %11532 = vmatprep.subr.bf16.mxu1 %v16855_v42  ;;  %v325_v42 = vmul.f32 %v19262_v12, %v19262_v12 }
  0x8f   :  { %v441_v63 = vadd.f32 %v375_v43, %v309_v37  ;;  %v16874_v37 = vld [vmem:[#allocation8 + $0xe58] ss:$12 sps:$4 sm:$0xff]  }
  0x90   :  { %11875 = vmatpush1.bf16.msra.mxu0 %v16850_v52  ;;  %v16870_v52 = vld [vmem:[#allocation8 + $0xe44] ss:$12 sps:$4 sm:$0xff]   ;;  %v391_v21 = vadd.f32 %v325_v42, %v259_v41  ;;  %v16883_v42 = vld [vmem:[#allocation8 + $0x288] ss:$12 sps:$4 sm:$0xff]  }
  0x91   :  { %11533 = vmatpush1.bf16.msra.mxu1 %v16853_v53  ;;  %11876 = vmatprep.subr.bf16.mxu0 %v16858_v51  ;;  %v19288_v53 = vunpack.c.l.bf16 %v66_v1  ;;  %v474_v51 = vadd.f32 1e-30, %v408_v49  ;;  %v507_v11 = vadd.f32 1e-30, %v441_v63  ;;  %v16876_v1 = vld [vmem:[#allocation8 + $0xe5c] ss:$12 sps:$4 sm:$0xff]  }
  0x92   :  { %11534 = vmatprep.subr.bf16.mxu1 %v16861_v54  ;;  %v19290_v54 = vunpack.c.l.bf16 %v166_v6  ;;  %v457_v36 = vadd.f32 1e-30, %v391_v21  ;;  %v19304_v39 = vpop.eup %18849  ;;  %v16880_v49 = vld [vmem:[#allocation8 + $0xe70] ss:$12 sps:$4 sm:$0xff]   ;;  %v16888_v63 = vld [vmem:[#allocation8 + $0xe8c] ss:$12 sps:$4 sm:$0xff]  }
  0x93   :  { %v275_v6 = vmul.f32 %v19288_v53, %v19288_v53  ;;  %18853 = vrsqrt.f32 %v474_v51  ;;  %20816 = vst [vmem:[#allocation31_spill] sm:$0xff] %v19304_v39  ;;  %v590_v43 = vmul.f32 %v19304_v39, %v19240_v46  ;;  %v16889_v51 = vld [vmem:[#allocation8 + $0x2a0] ss:$12 sps:$4 sm:$0xff]  }
  0x94   :  { %11877 = vmatpush1.bf16.msra.mxu0 %v16856_v18  ;;  %20814 = vst [vmem:[#allocation29_spill] sm:$0xff] %v19290_v54  ;;  %v424_v18 = vadd.f32 %v358_v48, %v292_v45  ;;  %v341_v33 = vmul.f32 %v19290_v54, %v19290_v54  ;;  %18855 = vrsqrt.f32 %v507_v11  ;;  %v19308_v45 = vpop.eup %18851  ;;  %v16891_v48 = vld [vmem:[#allocation8 + $0x2a4] ss:$12 sps:$4 sm:$0xff]   ;;  %v16897_v11 = vld [vmem:[#allocation8 + $0x2bc] ss:$12 sps:$4 sm:$0xff]  }
  0x95   :  { %11535 = vmatpush1.bf16.msra.mxu1 %v16859_v20  ;;  %11878 = vmatprep.subr.bf16.mxu0 %v16864_v34  ;;  %v16879_v20 = vld [vmem:[#allocation8 + $0x274] ss:$12 sps:$4 sm:$0xff]   ;;  %v374_v34 = vmul.f32 %v19294_v9, %v19294_v9  ;;  %20817 = vst [vmem:[#allocation32_spill] sm:$0xff] %v19308_v45  ;;  %18857 = vrsqrt.f32 %v457_v36  ;;  %v16994_v54 = vld [vmem:[#allocation8 + $0x1038] ss:$12 sps:$4 sm:$0xff]  }
  0x96   :  { %11536 = vmatprep.subr.bf16.mxu1 %v16867_v25  ;;  %v16868_v25 = vld [vmem:[#allocation8 + $0xe40] ss:$12 sps:$4 sm:$0xff]   ;;  %v407_v41 = vadd.f32 %v341_v33, %v275_v6  ;;  %v16895_v6 = vld [vmem:[#allocation8 + $0x2b8] ss:$12 sps:$4 sm:$0xff]  }
  0x97   :  { %v16951_v9 = vld [vmem:[#allocation8 + $0x394] ss:$12 sps:$4 sm:$0xff]  }
  0x98   :  { %11879 = vmatpush1.bf16.msra.mxu0 %v16862_v44  ;;  %v440_v44 = vadd.f32 %v374_v34, %v308_v14  ;;  %v16892_v14 = vld [vmem:[#allocation8 + $0xea0] ss:$12 sps:$4 sm:$0xff]  }
  0x99   :  { %11537 = vmatpush1.bf16.msra.mxu1 %v16865_v38  ;;  %11880 = vmatprep.subr.bf16.mxu0 %v16870_v52  ;;  %v490_v38 = vadd.f32 1e-30, %v424_v18  ;;  %v623_v52 = vmul.f32 %v19308_v45, %v19242_v47 }
  0x9a   :  { %11538 = vmatprep.subr.bf16.mxu1 %v16873_v40  ;;  %v16882_v40 = vld [vmem:[#allocation8 + $0xe74] ss:$12 sps:$4 sm:$0xff]   ;;  %v506_v46 = vadd.f32 1e-30, %v440_v44 }
  0x9b   :  { %18859 = vrsqrt.f32 %v490_v38  ;;  %v16909_v38 = vld [vmem:[#allocation8 + $0x2ec] ss:$12 sps:$4 sm:$0xff]  }
  0x9c   :  { %11881 = vmatpush1.bf16.msra.mxu0 %v16868_v25  ;;  %v16886_v25 = vld [vmem:[#allocation8 + $0xe88] ss:$12 sps:$4 sm:$0xff]  }
  0x9d   :  { %11539 = vmatpush1.bf16.msra.mxu1 %v16871_v0  ;;  %11882 = vmatprep.subr.bf16.mxu0 %v16876_v1  ;;  %v473_v0 = vadd.f32 1e-30, %v407_v41  ;;  %v19314_v21 = vpop.eup %18853  ;;  %v16894_v1 = vld [vmem:[#allocation8 + $0xea4] ss:$12 sps:$4 sm:$0xff]  }
  0x9e   :  { %11540 = vmatprep.subr.bf16.mxu1 %v16879_v20  ;;  %v19312_v20 = vpack.c.bf16 %v623_v52, %v590_v43  ;;  %20818 = vst [vmem:[#allocation33_spill] sm:$0xff] %v19314_v21  ;;  %v606_v18 = vmul.f32 %v19314_v21, %v19256_v16  ;;  %v19319_v47 = vpop.eup %18855  ;;  %v16900_v16 = vld [vmem:[#allocation8 + $0xebc] ss:$12 sps:$4 sm:$0xff]  }
  0x9f   :  { %20819 = vst [vmem:[#allocation34_spill] sm:$0xff] %v19319_v47  ;;  %18861 = vrsqrt.f32 %v473_v0  ;;  %v639_v33 = vmul.f32 %v19319_v47, %v19258_v55  ;;  %v16898_v55 = vld [vmem:[#allocation8 + $0xeb8] ss:$12 sps:$4 sm:$0xff]   ;;  %v16907_v43 = vld [vmem:[#allocation8 + $0x2e8] ss:$12 sps:$4 sm:$0xff]  }
  0xa0   :  { %11883 = vmatpush1.bf16.msra.mxu0 %v16874_v37  ;;  %11552 = vmatprep.mubr.bf16.mxu1 %v19312_v20  ;;  %18863 = vrsqrt.f32 %v506_v46  ;;  %v16901_v37 = vld [vmem:[#allocation8 + $0x2d0] ss:$12 sps:$4 sm:$0xff]  }
  0xa1   :  { %11541 = vmatpush1.bf16.msra.mxu1 %v16877_v4  ;;  %11884 = vmatprep.subr.bf16.mxu0 %v16882_v40  ;;  %v16903_v4 = vld [vmem:[#allocation8 + $0x2d4] ss:$12 sps:$4 sm:$0xff]   ;;  %v19323_v34 = vpack.c.bf16 %v639_v33, %v606_v18  ;;  %v16904_v52 = vld [vmem:[#allocation8 + $0xed0] ss:$12 sps:$4 sm:$0xff]  }
  0xa2   :  { %11542 = vmatprep.subr.bf16.mxu1 %v16885_v35  ;;  %v19325_v35 = vpop.eup %18857  ;;  %v16906_v40 = vld [vmem:[#allocation8 + $0xed4] ss:$12 sps:$4 sm:$0xff]   ;;  %v16921_v46 = vld [vmem:[#allocation8 + $0x31c] ss:$12 sps:$4 sm:$0xff]  }
  0xa3   :  { %20820 = vst [vmem:[#allocation35_spill] sm:$0xff] %v19323_v34  ;;  %11896 = vmatprep.mubr.bf16.mxu0 %v19323_v34  ;;  %v589_v41 = vmul.f32 %v19325_v35, %v19260_v29  ;;  %v16916_v18 = vld [vmem:[#allocation8 + $0xf00] ss:$12 sps:$4 sm:$0xff]   ;;  %v16924_v33 = vld [vmem:[#allocation8 + $0xf1c] ss:$12 sps:$4 sm:$0xff]  }
  0xa4   :  { %11885 = vmatpush1.bf16.msra.mxu0 %v16880_v49 }
  0xa5   :  { %11543 = vmatpush1.bf16.msra.mxu1 %v16883_v42  ;;  %11886 = vmatprep.subr.bf16.mxu0 %v16888_v63  ;;  %v19327_v36 = vpop.eup %18859  ;;  %v16912_v63 = vld [vmem:[#allocation8 + $0xeec] ss:$12 sps:$4 sm:$0xff]  }
  0xa6   :  { %11544 = vmatprep.subr.bf16.mxu1 %v16891_v48  ;;  %v622_v42 = vmul.f32 %v19327_v36, %v19268_v31  ;;  %v16915_v48 = vld [vmem:[#allocation8 + $0x304] ss:$12 sps:$4 sm:$0xff]  }
  0xa8   :  { %11887 = vmatpush1.bf16.msra.mxu0 %v16886_v25  ;;  %v19338_v0 = vpack.c.bf16 %v622_v42, %v589_v41  ;;  %v16918_v25 = vld [vmem:[#allocation8 + $0xf04] ss:$12 sps:$4 sm:$0xff]  }
  0xa9   :  { %11545 = vmatpush1.bf16.msra.mxu1 %v16889_v51  ;;  %11888 = vmatprep.subr.bf16.mxu0 %v16894_v1  ;;  %v19334_v44 = vpop.eup %18861  ;;  %v16913_v51 = vld [vmem:[#allocation8 + $0x300] ss:$12 sps:$4 sm:$0xff]   ;;  %v16919_v1 = vld [vmem:[#allocation8 + $0x318] ss:$12 sps:$4 sm:$0xff]  }
  0xaa   :  { %11546 = vmatprep.subr.bf16.mxu1 %v16897_v11  ;;  %20821 = vst [vmem:[#allocation36_spill] sm:$0xff] %v19334_v44  ;;  %v19336_v49 = vpop.eup %18863  ;;  %v605_v29 = vmul.f32 %v19334_v44, %v19288_v53  ;;  %v16910_v11 = vld [vmem:[#allocation8 + $0xee8] ss:$12 sps:$4 sm:$0xff]   ;;  %v19347_v53 = vld [vmem:[#allocation3 + $0x10] sm:$0xff] }
  0xab   :  { %20822 = vst [vmem:[#allocation37_spill] sm:$0xff] %v19336_v49  ;;  %v638_v31 = vmul.f32 %v19336_v49, %v19292_v8  ;;  %v19351_v8 = vld [vmem:[#allocation6 + $0x10] sm:$0xff]  ;;  %v16943_v49 = vld [vmem:[#allocation8 + $0x378] ss:$12 sps:$4 sm:$0xff]  }
  0xac   :  { %11889 = vmatpush1.bf16.msra.mxu0 %v16892_v14  ;;  %v19349_v14 = vld [vmem:[#allocation3 + $0x94] sm:$0xff]  ;;  %v19362_v41 = vunpack.c.h.bf16 %v19351_v8 }
  0xad   :  { %11547 = vmatpush1.bf16.msra.mxu1 %v16895_v6  ;;  %11890 = vmatprep.subr.bf16.mxu0 %v16900_v16  ;;  %v19345_v6 = vpack.c.bf16 %v638_v31, %v605_v29  ;;  %v19354_v16 = vunpack.c.h.bf16 %v19347_v53 }
  0xae   :  { %11548 = vmatprep.subr.bf16.mxu1 %v16903_v4  ;;  %v16927_v4 = vld [vmem:[#allocation8 + $0x334] ss:$12 sps:$4 sm:$0xff]   ;;  %20824 = vst [vmem:[#allocation39_spill] sm:$0xff] %v19362_v41  ;;  %v328_v31 = vmul.f32 %v19362_v41, %v19362_v41 }
  0xaf   :  { %20823 = vst [vmem:[#allocation38_spill] sm:$0xff] %v19345_v6 }
  0xb0   :  { %11891 = vmatpush1.bf16.msra.mxu0 %v16898_v55  ;;  %v16922_v55 = vld [vmem:[#allocation8 + $0xf18] ss:$12 sps:$4 sm:$0xff]  }
  0xb1   :  { %11549 = vmatpush1.bf16.msra.mxu1 %v16901_v37  ;;  %11892 = vmatprep.subr.bf16.mxu0 %v16906_v40  ;;  %v19357_v37 = vunpack.c.h.bf16 %v19349_v14  ;;  %v16925_v40 = vld [vmem:[#allocation8 + $0x330] ss:$12 sps:$4 sm:$0xff]  }
  0xb2   :  { %11550 = vmatprep.subr.bf16.mxu1 %v16909_v38  ;;  %v19359_v38 = vld [vmem:[#allocation6 + $0x94] sm:$0xff] }
  0xb3   :  { %v19365_v42 = vunpack.c.h.bf16 %v19359_v38  ;;  %v295_v29 = vmul.f32 %v19357_v37, %v19357_v37 }
  0xb4   :  { %11893 = vmatpush1.bf16.msra.mxu0 %v16904_v52  ;;  %v262_v52 = vmul.f32 %v19354_v16, %v19354_v16 }
  0xb5   :  { %11551 = vmatpush1.bf16.msra.mxu1 %v16907_v43  ;;  %11894 = vmatprep.subr.bf16.mxu0 %v16912_v63  ;;  %20825 = vst [vmem:[#allocation40_spill] sm:$0xff] %v19365_v42  ;;  %v19367_v43 = vld [vmem:[#allocation3 + $0x50] sm:$0xff] }
  0xb6   :  { %11563 = vmatprep.subr.bf16.mxu1 %v16915_v48  ;;  %v16933_v48 = vld [vmem:[#allocation8 + $0x34c] ss:$12 sps:$4 sm:$0xff]   ;;  %v19372_v63 = vld [vmem:[#allocation3 + $0xd4] sm:$0xff]  ;;  %v394_v47 = vadd.f32 %v328_v31, %v262_v52 }
  0xb7   :  { %v16937_v52 = vld [vmem:[#allocation8 + $0x360] ss:$12 sps:$4 sm:$0xff]   ;;  %v16945_v31 = vld [vmem:[#allocation8 + $0x37c] ss:$12 sps:$4 sm:$0xff]  }
  0xb8   :  { %11553 = vmatmul.mubr.bf16.vlgmr.msra.gmra.mrb[0].mxu1 %v19338_v0  ;;  %11895 = vmatpush1.bf16.msra.mxu0 %v16910_v11  ;;  %v16930_v11 = vld [vmem:[#allocation8 + $0xf34] ss:$12 sps:$4 sm:$0xff]   ;;  %v460_v28 = vadd.f32 1e-30, %v394_v47 }
  0xb9   :  { %11564 = vmatpush1.bf16.msra.mxu1 %v16913_v51  ;;  %11907 = vmatprep.subr.bf16.mxu0 %v16918_v25  ;;  %v19374_v51 = vld [vmem:[#allocation6 + $0x50] sm:$0xff]  ;;  %v361_v25 = vmul.f32 %v19365_v42, %v19365_v42  ;;  %v19640_v42 = vld [vmem:[#allocation6 + $0xe4] sm:$0xff] }
  0xba   :  { %11565 = vmatprep.subr.bf16.mxu1 %v16921_v46  ;;  %v19380_v46 = vld [vmem:[#allocation6 + $0xd4] sm:$0xff]  ;;  %v19391_v30 = vunpack.c.h.bf16 %v19374_v51  ;;  %18865 = vrsqrt.f32 %v460_v28  ;;  %v16948_v28 = vld [vmem:[#allocation8 + $0xf7c] ss:$12 sps:$4 sm:$0xff]  }
  0xbb   :  { %11897 = vmatmul.mubr.bf16.vlgmr.msra.gmra.mrb[0].mxu0 %v19345_v6  ;;  %v427_v21 = vadd.f32 %v361_v25, %v295_v29 }
  0xbc   :  { %11908 = vmatpush1.bf16.msra.mxu0 %v16916_v18  ;;  %v16931_v18 = vld [vmem:[#allocation8 + $0x348] ss:$12 sps:$4 sm:$0xff]   ;;  %20826 = vst [vmem:[#allocation41_spill] sm:$0xff] %v19391_v30  ;;  %v344_v29 = vmul.f32 %v19391_v30, %v19391_v30  ;;  %v16984_v30 = vld [vmem:[#allocation8 + $0x100c] ss:$12 sps:$4 sm:$0xff]  }
  0xbd   :  { %11566 = vmatpush1.bf16.msra.mxu1 %v16919_v1  ;;  %11909 = vmatprep.subr.bf16.mxu0 %v16924_v33  ;;  %v19385_v1 = vunpack.c.h.bf16 %v19367_v43  ;;  %v19394_v33 = vunpack.c.h.bf16 %v19380_v46  ;;  %v493_v23 = vadd.f32 1e-30, %v427_v21 }
  0xbe   :  { %11567 = vmatprep.subr.bf16.mxu1 %v16927_v4  ;;  %v19388_v4 = vunpack.c.h.bf16 %v19372_v63 }
  0xbf   :  { %20827 = vst [vmem:[#allocation42_spill] sm:$0xff] %v19394_v33  ;;  %v377_v47 = vmul.f32 %v19394_v33, %v19394_v33  ;;  %18867 = vrsqrt.f32 %v493_v23  ;;  %v16949_v33 = vld [vmem:[#allocation8 + $0x390] ss:$12 sps:$4 sm:$0xff]  }
  0xc0   :  { %11910 = vmatpush1.bf16.msra.mxu0 %v16922_v55  ;;  %v16934_v55 = vld [vmem:[#allocation8 + $0xf48] ss:$12 sps:$4 sm:$0xff]  }
  0xc1   :  { %11568 = vmatpush1.bf16.msra.mxu1 %v16925_v40  ;;  %11911 = vmatprep.subr.bf16.mxu0 %v16930_v11  ;;  %v278_v40 = vmul.f32 %v19385_v1, %v19385_v1  ;;  %v16942_v11 = vld [vmem:[#allocation8 + $0xf64] ss:$12 sps:$4 sm:$0xff]  }
  0xc2   :  { %11569 = vmatprep.subr.bf16.mxu1 %v16933_v48  ;;  %v311_v48 = vmul.f32 %v19388_v4, %v19388_v4 }
  0xc3   :  { %v410_v21 = vadd.f32 %v344_v29, %v278_v40  ;;  %v16954_v40 = vld [vmem:[#allocation8 + $0xf94] ss:$12 sps:$4 sm:$0xff]  }
  0xc4   :  { %11912 = vmatpush1.bf16.msra.mxu0 %v16928_v56  ;;  %v443_v25 = vadd.f32 %v377_v47, %v311_v48  ;;  %v16957_v56 = vld [vmem:[#allocation8 + $0x3ac] ss:$12 sps:$4 sm:$0xff]   ;;  %v19404_v23 = vpop.eup %18865  ;;  %v16955_v48 = vld [vmem:[#allocation8 + $0x3a8] ss:$12 sps:$4 sm:$0xff]   ;;  %v19417_v47 = vunpack.c.l.bf16 %v19349_v14 }
  0xc5   :  { %11570 = vmatpush1.bf16.msra.mxu1 %v16931_v18  ;;  %11913 = vmatprep.subr.bf16.mxu0 %v16936_v15  ;;  %v476_v18 = vadd.f32 1e-30, %v410_v21  ;;  %v16946_v15 = vld [vmem:[#allocation8 + $0xf78] ss:$12 sps:$4 sm:$0xff]   ;;  %20828 = vst [vmem:[#allocation43_spill] sm:$0xff] %v19404_v23 }
  0xc6   :  { %11571 = vmatprep.subr.bf16.mxu1 %v16939_v17  ;;  %v509_v44 = vadd.f32 1e-30, %v443_v25  ;;  %v16940_v17 = vld [vmem:[#allocation8 + $0xf60] ss:$12 sps:$4 sm:$0xff]   ;;  %v16958_v25 = vld [vmem:[#allocation8 + $0xfa8] ss:$12 sps:$4 sm:$0xff]  }
  0xc7   :  { %18869 = vrsqrt.f32 %v476_v18  ;;  %v16961_v21 = vld [vmem:[#allocation8 + $0x3c0] ss:$12 sps:$4 sm:$0xff]  }
  0xc8   :  { %11914 = vmatpush1.bf16.msra.mxu0 %v16934_v55  ;;  %18871 = vrsqrt.f32 %v509_v44  ;;  %v16952_v44 = vld [vmem:[#allocation8 + $0xf90] ss:$12 sps:$4 sm:$0xff]   ;;  %v16960_v55 = vld [vmem:[#allocation8 + $0xfac] ss:$12 sps:$4 sm:$0xff]  }
  0xc9   :  { %11572 = vmatpush1.bf16.msra.mxu1 %v16937_v52  ;;  %11915 = vmatprep.subr.bf16.mxu0 %v16942_v11  ;;  %v592_v52 = vmul.f32 %v19404_v23, %v19354_v16  ;;  %v19408_v29 = vpop.eup %18867 }
  0xca   :  { %11573 = vmatprep.subr.bf16.mxu1 %v16945_v31  ;;  %20829 = vst [vmem:[#allocation44_spill] sm:$0xff] %v19408_v29  ;;  %v16963_v31 = vld [vmem:[#allocation8 + $0x3c4] ss:$12 sps:$4 sm:$0xff]   ;;  %v625_v16 = vmul.f32 %v19408_v29, %v19357_v37  ;;  %v294_v37 = vmul.f32 %v19417_v47, %v19417_v47 }
  0xcc   :  { %11916 = vmatpush1.bf16.msra.mxu0 %v16940_v17 }
  0xcd   :  { %11574 = vmatpush1.bf16.msra.mxu1 %v16943_v49  ;;  %11917 = vmatprep.subr.bf16.mxu0 %v16948_v28  ;;  %v19411_v49 = vunpack.c.l.bf16 %v19347_v53  ;;  %v19424_v53 = vpack.c.bf16 %v625_v16, %v592_v52  ;;  %v19448_v52 = vunpack.c.l.bf16 %v19372_v63 }
  0xce   :  { %11575 = vmatprep.subr.bf16.mxu1 %v16951_v9  ;;  %v19414_v9 = vunpack.c.l.bf16 %v19351_v8  ;;  %v16969_v8 = vld [vmem:[#allocation8 + $0x3dc] ss:$12 sps:$4 sm:$0xff]  }
  0xcf   :  { %v261_v14 = vmul.f32 %v19411_v49, %v19411_v49  ;;  %11595 = vmatprep.mubr.bf16.mxu1 %v19424_v53 }
  0xd0   :  { %20830 = vst [vmem:[#allocation45_spill] sm:$0xff] %v19414_v9  ;;  %11918 = vmatpush1.bf16.msra.mxu0 %v16946_v15  ;;  %v19442_v15 = vunpack.c.l.bf16 %v19367_v43  ;;  %v16964_v43 = vld [vmem:[#allocation8 + $0xfc0] ss:$12 sps:$4 sm:$0xff]  }
  0xd1   :  { %11576 = vmatpush1.bf16.msra.mxu1 %v16949_v33  ;;  %v19420_v33 = vunpack.c.l.bf16 %v19359_v38  ;;  %11919 = vmatprep.subr.bf16.mxu0 %v16954_v40  ;;  %v19426_v11 = vpop.eup %18869  ;;  %v327_v38 = vmul.f32 %v19414_v9, %v19414_v9  ;;  %v19445_v40 = vunpack.c.l.bf16 %v19374_v51  ;;  %v16972_v51 = vld [vmem:[#allocation8 + $0xfdc] ss:$12 sps:$4 sm:$0xff]  }
  0xd2   :  { %11577 = vmatprep.subr.bf16.mxu1 %v16957_v56  ;;  %20832 = vst [vmem:[#allocation47_spill] sm:$0xff] %v19426_v11  ;;  %v608_v17 = vmul.f32 %v19426_v11, %v19385_v1  ;;  %v19439_v28 = vpop.eup %18871  ;;  %v16966_v56 = vld [vmem:[#allocation8 + $0xfc4] ss:$12 sps:$4 sm:$0xff]   ;;  %v277_v63 = vmul.f32 %v19442_v15, %v19442_v15 }
  0xd3   :  { %20831 = vst [vmem:[#allocation46_spill] sm:$0xff] %v19420_v33  ;;  %v360_v18 = vmul.f32 %v19420_v33, %v19420_v33  ;;  %20833 = vst [vmem:[#allocation48_spill] sm:$0xff] %v19439_v28  ;;  %v641_v1 = vmul.f32 %v19439_v28, %v19388_v4  ;;  %v393_v16 = vadd.f32 %v327_v38, %v261_v14  ;;  %v16981_v14 = vld [vmem:[#allocation8 + $0x40c] ss:$12 sps:$4 sm:$0xff]   ;;  %v16976_v28 = vld [vmem:[#allocation8 + $0xff0] ss:$12 sps:$4 sm:$0xff]  }
  0xd4   :  { %11920 = vmatpush1.bf16.msra.mxu0 %v16952_v44  ;;  %20834 = vst [vmem:[#allocation49_spill] sm:$0xff] %v19445_v40  ;;  %v16975_v44 = vld [vmem:[#allocation8 + $0x3f4] ss:$12 sps:$4 sm:$0xff]   ;;  %v310_v4 = vmul.f32 %v19448_v52, %v19448_v52 }
  0xd5   :  { %11578 = vmatpush1.bf16.msra.mxu1 %v16955_v48  ;;  %11921 = vmatprep.subr.bf16.mxu0 %v16960_v55  ;;  %v16967_v48 = vld [vmem:[#allocation8 + $0x3d8] ss:$12 sps:$4 sm:$0xff]   ;;  %v426_v55 = vadd.f32 %v360_v18, %v294_v37  ;;  %v19455_v11 = vpack.c.bf16 %v641_v1, %v608_v17  ;;  %v459_v38 = vadd.f32 1e-30, %v393_v16  ;;  %v16978_v18 = vld [vmem:[#allocation8 + $0xff4] ss:$12 sps:$4 sm:$0xff]  }
  0xd6   :  { %11579 = vmatprep.subr.bf16.mxu1 %v16963_v31  ;;  %v19451_v31 = vunpack.c.l.bf16 %v19380_v46  ;;  %v343_v46 = vmul.f32 %v19445_v40, %v19445_v40  ;;  %v16987_v1 = vld [vmem:[#allocation8 + $0x424] ss:$12 sps:$4 sm:$0xff]   ;;  %v16985_v16 = vld [vmem:[#allocation8 + $0x420] ss:$12 sps:$4 sm:$0xff]   ;;  %v17171_v33 = vld [vmem:[#allocation8 + $0x708] ss:$12 sps:$4 sm:$0xff]  }
  0xd7   :  { %20836 = vst [vmem:[#allocation51_spill] sm:$0xff] %v19455_v11  ;;  %11939 = vmatprep.mubr.bf16.mxu0 %v19455_v11  ;;  %v492_v37 = vadd.f32 1e-30, %v426_v55  ;;  %18873 = vrsqrt.f32 %v459_v38  ;;  %v16993_v55 = vld [vmem:[#allocation8 + $0x43c] ss:$12 sps:$4 sm:$0xff]   ;;  %v19468_v38 = vld [vmem:[#allocation3 + $0x9c] sm:$0xff] }
  0xd8   :  { %20835 = vst [vmem:[#allocation50_spill] sm:$0xff] %v19451_v31  ;;  %11922 = vmatpush1.bf16.msra.mxu0 %v16958_v25  ;;  %v16970_v25 = vld [vmem:[#allocation8 + $0xfd8] ss:$12 sps:$4 sm:$0xff]   ;;  %v409_v17 = vadd.f32 %v343_v46, %v277_v63  ;;  %v16988_v46 = vld [vmem:[#allocation8 + $0x1020] ss:$12 sps:$4 sm:$0xff]  }
  0xd9   :  { %11580 = vmatpush1.bf16.msra.mxu1 %v16961_v21  ;;  %11923 = vmatprep.subr.bf16.mxu0 %v16966_v56  ;;  %v16973_v21 = vld [vmem:[#allocation8 + $0x3f0] ss:$12 sps:$4 sm:$0xff]   ;;  %v16979_v56 = vld [vmem:[#allocation8 + $0x408] ss:$12 sps:$4 sm:$0xff]   ;;  %18875 = vrsqrt.f32 %v492_v37 }
  0xda   :  { %11581 = vmatprep.subr.bf16.mxu1 %v16969_v8  ;;  %v376_v8 = vmul.f32 %v19451_v31, %v19451_v31  ;;  %v16990_v63 = vld [vmem:[#allocation8 + $0x1024] ss:$12 sps:$4 sm:$0xff]   ;;  %v19478_v37 = vld [vmem:[#allocation6 + $0x9c] sm:$0xff] }
  0xdc   :  { %11924 = vmatpush1.bf16.msra.mxu0 %v16964_v43 }
  0xdd   :  { %11582 = vmatpush1.bf16.msra.mxu1 %v16967_v48  ;;  %11925 = vmatprep.subr.bf16.mxu0 %v16972_v51  ;;  %v442_v48 = vadd.f32 %v376_v8, %v310_v4  ;;  %v16982_v51 = vld [vmem:[#allocation8 + $0x1008] ss:$12 sps:$4 sm:$0xff]  }
  0xde   :  { %11583 = vmatprep.subr.bf16.mxu1 %v16975_v44  ;;  %v475_v44 = vadd.f32 1e-30, %v409_v17  ;;  %v16996_v4 = vld [vmem:[#allocation8 + $0x103c] ss:$12 sps:$4 sm:$0xff]   ;;  %v16999_v8 = vld [vmem:[#allocation8 + $0x454] ss:$12 sps:$4 sm:$0xff]  }
  0xdf   :  { %v508_v43 = vadd.f32 1e-30, %v442_v48  ;;  %v16997_v17 = vld [vmem:[#allocation8 + $0x450] ss:$12 sps:$4 sm:$0xff]  }
  0xe0   :  { %11926 = vmatpush1.bf16.msra.mxu0 %v16970_v25  ;;  %18877 = vrsqrt.f32 %v475_v44 }
  0xe1   :  { %11584 = vmatpush1.bf16.msra.mxu1 %v16973_v21  ;;  %11927 = vmatprep.subr.bf16.mxu0 %v16978_v18  ;;  %v16991_v21 = vld [vmem:[#allocation8 + $0x438] ss:$12 sps:$4 sm:$0xff]   ;;  %18879 = vrsqrt.f32 %v508_v43  ;;  %v19480_v18 = vpop.eup %18873 }
  0xe2   :  { %11585 = vmatprep.subr.bf16.mxu1 %v16981_v14  ;;  %v19466_v14 = vld [vmem:[#allocation3 + $0x18] sm:$0xff]  ;;  %20837 = vst [vmem:[#allocation52_spill] sm:$0xff] %v19480_v18 }
  0xe3   :  { %v19471_v25 = vunpack.c.h.bf16 %v19466_v14  ;;  %v19488_v44 = vpop.eup %18875 }
  0xe4   :  { %11928 = vmatpush1.bf16.msra.mxu0 %v16976_v28  ;;  %v19474_v28 = vunpack.c.h.bf16 %v19468_v38  ;;  %20840 = vst [vmem:[#allocation55_spill] sm:$0xff] %v19488_v44  ;;  %v624_v22 = vmul.f32 %v19488_v44, %v19417_v47 }
  0xe5   :  { %11586 = vmatpush1.bf16.msra.mxu1 %v16979_v56  ;;  %11929 = vmatprep.subr.bf16.mxu0 %v16984_v30  ;;  %v19476_v30 = vld [vmem:[#allocation6 + $0x18] sm:$0xff]  ;;  %v17005_v56 = vld [vmem:[#allocation8 + $0x46c] ss:$12 sps:$4 sm:$0xff]  }
  0xe6   :  { %11587 = vmatprep.subr.bf16.mxu1 %v16987_v1  ;;  %v19483_v48 = vunpack.c.h.bf16 %v19476_v30  ;;  %v19486_v1 = vunpack.c.h.bf16 %v19478_v37  ;;  %v297_v43 = vmul.f32 %v19474_v28, %v19474_v28 }
  0xe8   :  { %11930 = vmatpush1.bf16.msra.mxu0 %v16982_v51  ;;  %20838 = vst [vmem:[#allocation53_spill] sm:$0xff] %v19483_v48  ;;  %20839 = vst [vmem:[#allocation54_spill] sm:$0xff] %v19486_v1  ;;  %v19496_v51 = vld [vmem:[#allocation3 + $0xdc] sm:$0xff]  ;;  %v330_v31 = vmul.f32 %v19483_v48, %v19483_v48  ;;  %v363_v40 = vmul.f32 %v19486_v1, %v19486_v1  ;;  %v17003_v1 = vld [vmem:[#allocation8 + $0x468] ss:$12 sps:$4 sm:$0xff]  }
  0xe9   :  { %11588 = vmatpush1.bf16.msra.mxu1 %v16985_v16  ;;  %11931 = vmatprep.subr.bf16.mxu0 %v16990_v63  ;;  %v264_v16 = vmul.f32 %v19471_v25, %v19471_v25  ;;  %v19498_v63 = vld [vmem:[#allocation6 + $0x58] sm:$0xff]  ;;  %v19510_v27 = vunpack.c.h.bf16 %v19496_v51 }
  0xea   :  { %11589 = vmatprep.subr.bf16.mxu1 %v16993_v55  ;;  %v19494_v55 = vld [vmem:[#allocation3 + $0x58] sm:$0xff]  ;;  %v429_v6 = vadd.f32 %v363_v40, %v297_v43  ;;  %v19522_v34 = vpop.eup %18877 }
  0xeb   :  { %v19507_v19 = vunpack.c.h.bf16 %v19494_v55  ;;  %v396_v11 = vadd.f32 %v330_v31, %v264_v16  ;;  %20843 = vst [vmem:[#allocation58_spill] sm:$0xff] %v19522_v34  ;;  %v19524_v26 = vpop.eup %18879  ;;  %v313_v31 = vmul.f32 %v19510_v27, %v19510_v27 }
  0xec   :  { %11932 = vmatpush1.bf16.msra.mxu0 %v16988_v46  ;;  %v19517_v46 = vunpack.c.h.bf16 %v19498_v63  ;;  %20844 = vst [vmem:[#allocation59_spill] sm:$0xff] %v19524_v26  ;;  %v495_v47 = vadd.f32 1e-30, %v429_v6  ;;  %v607_v6 = vmul.f32 %v19522_v34, %v19442_v15  ;;  %v640_v43 = vmul.f32 %v19524_v26, %v19448_v52  ;;  %v17023_v15 = vld [vmem:[#allocation8 + $0x4b4] ss:$12 sps:$4 sm:$0xff]  }
  0xed   :  { %11590 = vmatpush1.bf16.msra.mxu1 %v16991_v21  ;;  %v19504_v21 = vld [vmem:[#allocation6 + $0xdc] sm:$0xff]  ;;  %11933 = vmatprep.subr.bf16.mxu0 %v16996_v4  ;;  %v17011_v4 = vld [vmem:[#allocation8 + $0x484] ss:$12 sps:$4 sm:$0xff]   ;;  %v462_v24 = vadd.f32 1e-30, %v396_v11  ;;  %v280_v40 = vmul.f32 %v19507_v19, %v19507_v19 }
  0xee   :  { %11591 = vmatprep.subr.bf16.mxu1 %v16999_v8  ;;  %v591_v8 = vmul.f32 %v19480_v18, %v19411_v49  ;;  %20841 = vst [vmem:[#allocation56_spill] sm:$0xff] %v19517_v46  ;;  %v19520_v48 = vunpack.c.h.bf16 %v19504_v21  ;;  %v17000_v49 = vld [vmem:[#allocation8 + $0x1050] ss:$12 sps:$4 sm:$0xff]   ;;  %v17009_v11 = vld [vmem:[#allocation8 + $0x480] ss:$12 sps:$4 sm:$0xff]  }
  0xef   :  { %18881 = vrsqrt.f32 %v462_v24  ;;  %v17012_v52 = vld [vmem:[#allocation8 + $0x1080] ss:$12 sps:$4 sm:$0xff]   ;;  %v17168_v18 = vld [vmem:[#allocation8 + $0x12f0] ss:$12 sps:$4 sm:$0xff]  }
  0xf0   :  { %20842 = vst [vmem:[#allocation57_spill] sm:$0xff] %v19520_v48  ;;  %11934 = vmatpush1.bf16.msra.mxu0 %v16994_v54  ;;  %v19530_v16 = vpack.c.bf16 %v624_v22, %v591_v8  ;;  %v379_v54 = vmul.f32 %v19520_v48, %v19520_v48  ;;  %v17006_v22 = vld [vmem:[#allocation8 + $0x1068] ss:$12 sps:$4 sm:$0xff]   ;;  %18883 = vrsqrt.f32 %v495_v47  ;;  %v17015_v48 = vld [vmem:[#allocation8 + $0x498] ss:$12 sps:$4 sm:$0xff]  }
  0xf1   :  { %11592 = vmatpush1.bf16.msra.mxu1 %v16997_v17  ;;  %11935 = vmatprep.subr.bf16.mxu0 %v17002_v50  ;;  %v17008_v17 = vld [vmem:[#allocation8 + $0x106c] ss:$12 sps:$4 sm:$0xff]   ;;  %v17017_v50 = vld [vmem:[#allocation8 + $0x49c] ss:$12 sps:$4 sm:$0xff]  }
  0xf2   :  { %11593 = vmatprep.subr.bf16.mxu1 %v17005_v56  ;;  %v346_v56 = vmul.f32 %v19517_v46, %v19517_v46  ;;  %v445_v8 = vadd.f32 %v379_v54, %v313_v31  ;;  %v19541_v46 = vpack.c.bf16 %v640_v43, %v607_v6  ;;  %v17021_v47 = vld [vmem:[#allocation8 + $0x4b0] ss:$12 sps:$4 sm:$0xff]   ;;  %v17018_v31 = vld [vmem:[#allocation8 + $0x1098] ss:$12 sps:$4 sm:$0xff]   ;;  %v17027_v54 = vld [vmem:[#allocation8 + $0x4c8] ss:$12 sps:$4 sm:$0xff]  }
  0xf3   :  { %v17024_v43 = vld [vmem:[#allocation8 + $0x10b0] ss:$12 sps:$4 sm:$0xff]  }
  0xf4   :  { %v412_v29 = vadd.f32 %v346_v56, %v280_v40  ;;  %11936 = vmatpush1.bf16.msra.mxu0 %v17000_v49  ;;  %20845 = vst [vmem:[#allocation60_spill] sm:$0xff] %v19541_v46  ;;  %v17020_v49 = vld [vmem:[#allocation8 + $0x109c] ss:$12 sps:$4 sm:$0xff]   ;;  %v17029_v40 = vld [vmem:[#allocation8 + $0x4cc] ss:$12 sps:$4 sm:$0xff]  }
  0xf5   :  { %11594 = vmatpush1.bf16.msra.mxu1 %v17003_v1  ;;  %11937 = vmatprep.subr.bf16.mxu0 %v17008_v17  ;;  %v17014_v1 = vld [vmem:[#allocation8 + $0x1084] ss:$12 sps:$4 sm:$0xff]   ;;  %v17026_v17 = vld [vmem:[#allocation8 + $0x10b4] ss:$12 sps:$4 sm:$0xff]  }
  0xf6   :  { %11606 = vmatprep.subr.bf16.mxu1 %v17011_v4  ;;  %v478_v24 = vadd.f32 1e-30, %v412_v29  ;;  %v511_v4 = vadd.f32 1e-30, %v445_v8 }
  0xf8   :  { %11596 = vmatmul.mubr.bf16.vlgmr.msra.gmra.mrb[0].mxu1 %v19530_v16  ;;  %11938 = vmatpush1.bf16.msra.mxu0 %v17006_v22  ;;  %18885 = vrsqrt.f32 %v478_v24 }
  0xf9   :  { %11607 = vmatpush1.bf16.msra.mxu1 %v17009_v11  ;;  %11950 = vmatprep.subr.bf16.mxu0 %v17014_v1  ;;  %18887 = vrsqrt.f32 %v511_v4  ;;  %v19544_v29 = vpop.eup %18881  ;;  %v17033_v1 = vld [vmem:[#allocation8 + $0x4e0] ss:$12 sps:$4 sm:$0xff]  }
  0xfa   :  { %11608 = vmatprep.subr.bf16.mxu1 %v17017_v50  ;;  %20846 = vst [vmem:[#allocation61_spill] sm:$0xff] %v19544_v29  ;;  %v594_v56 = vmul.f32 %v19544_v29, %v19471_v25  ;;  %v19548_v11 = vpop.eup %18883  ;;  %v17032_v50 = vld [vmem:[#allocation8 + $0x10cc] ss:$12 sps:$4 sm:$0xff]   ;;  %v17041_v25 = vld [vmem:[#allocation8 + $0x4fc] ss:$12 sps:$4 sm:$0xff]  }
  0xfb   :  { %11940 = vmatmul.mubr.bf16.vlgmr.msra.gmra.mrb[0].mxu0 %v19541_v46  ;;  %20847 = vst [vmem:[#allocation62_spill] sm:$0xff] %v19548_v11  ;;  %v627_v6 = vmul.f32 %v19548_v11, %v19474_v28  ;;  %v17030_v28 = vld [vmem:[#allocation8 + $0x10c8] ss:$12 sps:$4 sm:$0xff]   ;;  %v19634_v46 = vld [vmem:[#allocation6 + $0x60] sm:$0xff] }
  0xfc   :  { %11951 = vmatpush1.bf16.msra.mxu0 %v17012_v52 }
  0xfd   :  { %11609 = vmatpush1.bf16.msra.mxu1 %v17015_v48  ;;  %11952 = vmatprep.subr.bf16.mxu0 %v17020_v49  ;;  %v17035_v48 = vld [vmem:[#allocation8 + $0x4e4] ss:$12 sps:$4 sm:$0xff]   ;;  %v19552_v22 = vpack.c.bf16 %v627_v6, %v594_v56  ;;  %v17053_v56 = vld [vmem:[#allocation8 + $0x52c] ss:$12 sps:$4 sm:$0xff]  }
  0xfe   :  { %11610 = vmatprep.subr.bf16.mxu1 %v17023_v15  ;;  %v17038_v15 = vld [vmem:[#allocation8 + $0x10e4] ss:$12 sps:$4 sm:$0xff]  }
  0xff   :  { %11638 = vmatprep.mubr.bf16.mxu1 %v19552_v22  ;;  %v17039_v49 = vld [vmem:[#allocation8 + $0x4f8] ss:$12 sps:$4 sm:$0xff]  }
 0x100   :  { %11953 = vmatpush1.bf16.msra.mxu0 %v17018_v31  ;;  %v17036_v31 = vld [vmem:[#allocation8 + $0x10e0] ss:$12 sps:$4 sm:$0xff]   ;;  %v17059_v6 = vld [vmem:[#allocation8 + $0x544] ss:$12 sps:$4 sm:$0xff]  }
 0x101   :  { %11611 = vmatpush1.bf16.msra.mxu1 %v17021_v47  ;;  %11954 = vmatprep.subr.bf16.mxu0 %v17026_v17  ;;  %v17047_v47 = vld [vmem:[#allocation8 + $0x514] ss:$12 sps:$4 sm:$0xff]   ;;  %v17044_v17 = vld [vmem:[#allocation8 + $0x10fc] ss:$12 sps:$4 sm:$0xff]  }
 0x102   :  { %11612 = vmatprep.subr.bf16.mxu1 %v17029_v40  ;;  %v19554_v8 = vpop.eup %18885 }
 0x103   :  { %20848 = vst [vmem:[#allocation63_spill] sm:$0xff] %v19554_v8  ;;  %v610_v24 = vmul.f32 %v19554_v8, %v19507_v19  ;;  %v19559_v4 = vpop.eup %18887  ;;  %v17045_v19 = vld [vmem:[#allocation8 + $0x510] ss:$12 sps:$4 sm:$0xff]   ;;  %v17077_v8 = vld [vmem:[#allocation8 + $0x58c] ss:$12 sps:$4 sm:$0xff]  }
 0x104   :  { %20849 = vst [vmem:[#allocation64_spill] sm:$0xff] %v19559_v4  ;;  %11955 = vmatpush1.bf16.msra.mxu0 %v17024_v43  ;;  %v643_v52 = vmul.f32 %v19559_v4, %v19510_v27  ;;  %v17050_v27 = vld [vmem:[#allocation8 + $0x1114] ss:$12 sps:$4 sm:$0xff]   ;;  %v19567_v43 = vunpack.c.l.bf16 %v19466_v14 }
 0x105   :  { %11613 = vmatpush1.bf16.msra.mxu1 %v17027_v54  ;;  %11956 = vmatprep.subr.bf16.mxu0 %v17032_v50  ;;  %v17042_v54 = vld [vmem:[#allocation8 + $0x10f8] ss:$12 sps:$4 sm:$0xff]   ;;  %v19570_v50 = vunpack.c.l.bf16 %v19476_v30 }
 0x106   :  { %11614 = vmatprep.subr.bf16.mxu1 %v17035_v48  ;;  %v19563_v40 = vpack.c.bf16 %v643_v52, %v610_v24  ;;  %v17051_v48 = vld [vmem:[#allocation8 + $0x528] ss:$12 sps:$4 sm:$0xff]   ;;  %v19576_v24 = vunpack.c.l.bf16 %v19478_v37  ;;  %v263_v14 = vmul.f32 %v19567_v43, %v19567_v43 }
 0x107   :  { %20851 = vst [vmem:[#allocation66_spill] sm:$0xff] %v19570_v50  ;;  %v17065_v52 = vld [vmem:[#allocation8 + $0x55c] ss:$12 sps:$4 sm:$0xff]   ;;  %v329_v30 = vmul.f32 %v19570_v50, %v19570_v50 }
 0x108   :  { %20850 = vst [vmem:[#allocation65_spill] sm:$0xff] %v19563_v40  ;;  %11957 = vmatpush1.bf16.msra.mxu0 %v17030_v28  ;;  %11982 = vmatprep.mubr.bf16.mxu0 %v19563_v40  ;;  %20852 = vst [vmem:[#allocation67_spill] sm:$0xff] %v19576_v24  ;;  %v17056_v28 = vld [vmem:[#allocation8 + $0x112c] ss:$12 sps:$4 sm:$0xff]   ;;  %v362_v37 = vmul.f32 %v19576_v24, %v19576_v24 }
 0x109   :  { %11615 = vmatpush1.bf16.msra.mxu1 %v17033_v1  ;;  %11958 = vmatprep.subr.bf16.mxu0 %v17038_v15  ;;  %v17048_v1 = vld [vmem:[#allocation8 + $0x1110] ss:$12 sps:$4 sm:$0xff]   ;;  %v17057_v15 = vld [vmem:[#allocation8 + $0x540] ss:$12 sps:$4 sm:$0xff]   ;;  %v19632_v40 = vld [vmem:[#allocation3 + $0xe4] sm:$0xff] }
 0x10a   :  { %11616 = vmatprep.subr.bf16.mxu1 %v17041_v25  ;;  %v19573_v25 = vunpack.c.l.bf16 %v19468_v38  ;;  %v19646_v24 = vunpack.c.h.bf16 %v19632_v40 }
 0x10c   :  { %11959 = vmatpush1.bf16.msra.mxu0 %v17036_v31  ;;  %v296_v38 = vmul.f32 %v19573_v25, %v19573_v25  ;;  %v19587_v31 = vunpack.c.l.bf16 %v19494_v55  ;;  %v19602_v55 = vld [vmem:[#allocation6 + $0x20] sm:$0xff] }
 0x10d   :  { %11617 = vmatpush1.bf16.msra.mxu1 %v17039_v49  ;;  %11960 = vmatprep.subr.bf16.mxu0 %v17044_v17  ;;  %v17054_v49 = vld [vmem:[#allocation8 + $0x1128] ss:$12 sps:$4 sm:$0xff]   ;;  %v19590_v17 = vunpack.c.l.bf16 %v19498_v63 }
 0x10e   :  { %11618 = vmatprep.subr.bf16.mxu1 %v17047_v47  ;;  %v17062_v47 = vld [vmem:[#allocation8 + $0x1144] ss:$12 sps:$4 sm:$0xff]   ;;  %v428_v63 = vadd.f32 %v362_v37, %v296_v38 }
 0x10f   :  { %20853 = vst [vmem:[#allocation68_spill] sm:$0xff] %v19590_v17  ;;  %v19622_v37 = vld [vmem:[#allocation3 + $0x60] sm:$0xff] }
 0x110   :  { %11961 = vmatpush1.bf16.msra.mxu0 %v17042_v54  ;;  %v17071_v54 = vld [vmem:[#allocation8 + $0x574] ss:$12 sps:$4 sm:$0xff]   ;;  %v494_v23 = vadd.f32 1e-30, %v428_v63  ;;  %v19643_v41 = vunpack.c.h.bf16 %v19622_v37  ;;  %v17083_v63 = vld [vmem:[#allocation8 + $0x5a4] ss:$12 sps:$4 sm:$0xff]  }
 0x111   :  { %11619 = vmatpush1.bf16.msra.mxu1 %v17045_v19  ;;  %11962 = vmatprep.subr.bf16.mxu0 %v17050_v27  ;;  %v17060_v19 = vld [vmem:[#allocation8 + $0x1140] ss:$12 sps:$4 sm:$0xff]   ;;  %v19593_v27 = vunpack.c.l.bf16 %v19496_v51 }
 0x112   :  { %11620 = vmatprep.subr.bf16.mxu1 %v17053_v56  ;;  %v17063_v56 = vld [vmem:[#allocation8 + $0x558] ss:$12 sps:$4 sm:$0xff]   ;;  %v19610_v51 = vld [vmem:[#allocation6 + $0xa4] sm:$0xff] }
 0x113   :  { %v19620_v38 = vunpack.c.h.bf16 %v19610_v51 }
 0x114   :  { %11963 = vmatpush1.bf16.msra.mxu0 %v17048_v1  ;;  %v19598_v1 = vld [vmem:[#allocation3 + $0x20] sm:$0xff] }
 0x115   :  { %11621 = vmatpush1.bf16.msra.mxu1 %v17051_v48  ;;  %11964 = vmatprep.subr.bf16.mxu0 %v17056_v28  ;;  %v19596_v48 = vunpack.c.l.bf16 %v19504_v21  ;;  %v19600_v28 = vld [vmem:[#allocation3 + $0xa4] sm:$0xff]  ;;  %v17068_v21 = vld [vmem:[#allocation8 + $0x115c] ss:$12 sps:$4 sm:$0xff]   ;;  %20856 = vst [vmem:[#allocation71_spill] sm:$0xff] %v19620_v38  ;;  %v365_v29 = vmul.f32 %v19620_v38, %v19620_v38  ;;  %v19649_v38 = vunpack.c.h.bf16 %v19634_v46 }
 0x116   :  { %11622 = vmatprep.subr.bf16.mxu1 %v17059_v6  ;;  %v395_v6 = vadd.f32 %v329_v30, %v263_v14  ;;  %v19608_v4 = vunpack.c.h.bf16 %v19600_v28  ;;  %v279_v14 = vmul.f32 %v19587_v31, %v19587_v31  ;;  %v345_v30 = vmul.f32 %v19590_v17, %v19590_v17 }
 0x117   :  { %20854 = vst [vmem:[#allocation69_spill] sm:$0xff] %v19596_v48  ;;  %v378_v26 = vmul.f32 %v19596_v48, %v19596_v48  ;;  %v17066_v48 = vld [vmem:[#allocation8 + $0x1158] ss:$12 sps:$4 sm:$0xff]   ;;  %20857 = vst [vmem:[#allocation72_spill] sm:$0xff] %v19649_v38 }
 0x118   :  { %11965 = vmatpush1.bf16.msra.mxu0 %v17054_v49  ;;  %v19617_v49 = vunpack.c.h.bf16 %v19602_v55  ;;  %v299_v17 = vmul.f32 %v19608_v4, %v19608_v4  ;;  %v461_v11 = vadd.f32 1e-30, %v395_v6  ;;  %v411_v6 = vadd.f32 %v345_v30, %v279_v14  ;;  %v17086_v30 = vld [vmem:[#allocation8 + $0x11a4] ss:$12 sps:$4 sm:$0xff]  }
 0x119   :  { %11623 = vmatpush1.bf16.msra.mxu1 %v17057_v15  ;;  %v19605_v15 = vunpack.c.h.bf16 %v19598_v1  ;;  %11966 = vmatprep.subr.bf16.mxu0 %v17062_v47  ;;  %v312_v47 = vmul.f32 %v19593_v27, %v19593_v27 }
 0x11a   :  { %11624 = vmatprep.subr.bf16.mxu1 %v17065_v52  ;;  %v17069_v52 = vld [vmem:[#allocation8 + $0x570] ss:$12 sps:$4 sm:$0xff]   ;;  %20855 = vst [vmem:[#allocation70_spill] sm:$0xff] %v19617_v49  ;;  %v431_v45 = vadd.f32 %v365_v29, %v299_v17  ;;  %18889 = vrsqrt.f32 %v461_v11  ;;  %v17080_v29 = vld [vmem:[#allocation8 + $0x118c] ss:$12 sps:$4 sm:$0xff]  }
 0x11b   :  { %v266_v34 = vmul.f32 %v19605_v15, %v19605_v15  ;;  %v444_v62 = vadd.f32 %v378_v26, %v312_v47  ;;  %18891 = vrsqrt.f32 %v494_v23  ;;  %v315_v26 = vmul.f32 %v19646_v24, %v19646_v24 }
 0x11c   :  { %11967 = vmatpush1.bf16.msra.mxu0 %v17060_v19  ;;  %v19652_v19 = vunpack.c.h.bf16 %v19640_v42  ;;  %v477_v17 = vadd.f32 1e-30, %v411_v6 }
 0x11d   :  { %11625 = vmatpush1.bf16.msra.mxu1 %v17063_v56  ;;  %v332_v56 = vmul.f32 %v19617_v49, %v19617_v49  ;;  %11968 = vmatprep.subr.bf16.mxu0 %v17068_v21  ;;  %v17075_v49 = vld [vmem:[#allocation8 + $0x588] ss:$12 sps:$4 sm:$0xff]   ;;  %v497_v21 = vadd.f32 1e-30, %v431_v45  ;;  %v510_v11 = vadd.f32 1e-30, %v444_v62 }
 0x11e   :  { %11626 = vmatprep.subr.bf16.mxu1 %v17071_v54  ;;  %v17074_v54 = vld [vmem:[#allocation8 + $0x1174] ss:$12 sps:$4 sm:$0xff]   ;;  %20858 = vst [vmem:[#allocation73_spill] sm:$0xff] %v19652_v19  ;;  %v381_v23 = vmul.f32 %v19652_v19, %v19652_v19  ;;  %v17089_v45 = vld [vmem:[#allocation8 + $0x5bc] ss:$12 sps:$4 sm:$0xff]  }
 0x11f   :  { %v398_v50 = vadd.f32 %v332_v56, %v266_v34  ;;  %v282_v34 = vmul.f32 %v19643_v41, %v19643_v41  ;;  %v17087_v56 = vld [vmem:[#allocation8 + $0x5b8] ss:$12 sps:$4 sm:$0xff]   ;;  %v17095_v62 = vld [vmem:[#allocation8 + $0x5d4] ss:$12 sps:$4 sm:$0xff]  }
 0x120   :  { %11969 = vmatpush1.bf16.msra.mxu0 %v17066_v48  ;;  %v17078_v48 = vld [vmem:[#allocation8 + $0x1188] ss:$12 sps:$4 sm:$0xff]   ;;  %v447_v14 = vadd.f32 %v381_v23, %v315_v26  ;;  %v17090_v26 = vld [vmem:[#allocation8 + $0x11b8] ss:$12 sps:$4 sm:$0xff]  }
 0x121   :  { %11627 = vmatpush1.bf16.msra.mxu1 %v17069_v52  ;;  %v464_v39 = vadd.f32 1e-30, %v398_v50  ;;  %11970 = vmatprep.subr.bf16.mxu0 %v17074_v54  ;;  %v348_v52 = vmul.f32 %v19649_v38, %v19649_v38  ;;  %v17150_v19 = vld [vmem:[#allocation8 + $0x12a8] ss:$12 sps:$4 sm:$0xff]  }
 0x122   :  { %11628 = vmatprep.subr.bf16.mxu1 %v17077_v8  ;;  %v17081_v8 = vld [vmem:[#allocation8 + $0x5a0] ss:$12 sps:$4 sm:$0xff]  }
 0x123   :  { %18893 = vrsqrt.f32 %v464_v39  ;;  %v414_v50 = vadd.f32 %v348_v52, %v282_v34  ;;  %v17084_v39 = vld [vmem:[#allocation8 + $0x11a0] ss:$12 sps:$4 sm:$0xff]  }
 0x124   :  { %11971 = vmatpush1.bf16.msra.mxu0 %v17072_v59  ;;  %18895 = vrsqrt.f32 %v497_v21  ;;  %v19662_v54 = vpop.eup %18889  ;;  %v17092_v59 = vld [vmem:[#allocation8 + $0x11bc] ss:$12 sps:$4 sm:$0xff]   ;;  %v17101_v21 = vld [vmem:[#allocation8 + $0x5ec] ss:$12 sps:$4 sm:$0xff]  }
 0x125   :  { %11629 = vmatpush1.bf16.msra.mxu1 %v17075_v49  ;;  %11972 = vmatprep.subr.bf16.mxu0 %v17080_v29  ;;  %18897 = vrsqrt.f32 %v477_v17  ;;  %v480_v47 = vadd.f32 1e-30, %v414_v50  ;;  %v513_v49 = vadd.f32 1e-30, %v447_v14  ;;  %20859 = vst [vmem:[#allocation74_spill] sm:$0xff] %v19662_v54  ;;  %v19664_v6 = vpop.eup %18891  ;;  %v593_v17 = vmul.f32 %v19662_v54, %v19567_v43 }
 0x126   :  { %11630 = vmatprep.subr.bf16.mxu1 %v17083_v63  ;;  %18899 = vrsqrt.f32 %v510_v11  ;;  %20860 = vst [vmem:[#allocation75_spill] sm:$0xff] %v19664_v6  ;;  %v17093_v63 = vld [vmem:[#allocation8 + $0x5d0] ss:$12 sps:$4 sm:$0xff]   ;;  %v17098_v29 = vld [vmem:[#allocation8 + $0x11d4] ss:$12 sps:$4 sm:$0xff]   ;;  %v626_v52 = vmul.f32 %v19664_v6, %v19573_v25 }
 0x127   :  { %18901 = vrsqrt.f32 %v480_v47  ;;  %v17099_v11 = vld [vmem:[#allocation8 + $0x5e8] ss:$12 sps:$4 sm:$0xff]   ;;  %v17107_v50 = vld [vmem:[#allocation8 + $0x604] ss:$12 sps:$4 sm:$0xff]   ;;  %v17104_v25 = vld [vmem:[#allocation8 + $0x11ec] ss:$12 sps:$4 sm:$0xff]  }
 0x128   :  { %11973 = vmatpush1.bf16.msra.mxu0 %v17078_v48  ;;  %18903 = vrsqrt.f32 %v513_v49  ;;  %v17096_v43 = vld [vmem:[#allocation8 + $0x11d0] ss:$12 sps:$4 sm:$0xff]  }
 0x129   :  { %11631 = vmatpush1.bf16.msra.mxu1 %v17081_v8  ;;  %11974 = vmatprep.subr.bf16.mxu0 %v17086_v30  ;;  %v19682_v30 = vpack.c.bf16 %v626_v52, %v593_v17  ;;  %v17108_v17 = vld [vmem:[#allocation8 + $0x1200] ss:$12 sps:$4 sm:$0xff]   ;;  %v17164_v6 = vld [vmem:[#allocation8 + $0x12dc] ss:$12 sps:$4 sm:$0xff]  }
 0x12a   :  { %11632 = vmatprep.subr.bf16.mxu1 %v17089_v45  ;;  %v17165_v54 = vld [vmem:[#allocation8 + $0x6f0] ss:$12 sps:$4 sm:$0xff]  }
 0x12b   :  { %20865 = vst [vmem:[#allocation80_spill] sm:$0xff] %v19682_v30 }
 0x12c   :  { %11975 = vmatpush1.bf16.msra.mxu0 %v17084_v39 }
 0x12d   :  { %11633 = vmatpush1.bf16.msra.mxu1 %v17087_v56  ;;  %v19666_v34 = vpop.eup %18893  ;;  %11976 = vmatprep.subr.bf16.mxu0 %v17092_v59  ;;  %v17105_v56 = vld [vmem:[#allocation8 + $0x600] ss:$12 sps:$4 sm:$0xff]   ;;  %v17102_v59 = vld [vmem:[#allocation8 + $0x11e8] ss:$12 sps:$4 sm:$0xff]  }
 0x12e   :  { %11634 = vmatprep.subr.bf16.mxu1 %v17095_v62  ;;  %20861 = vst [vmem:[#allocation76_spill] sm:$0xff] %v19666_v34  ;;  %v19672_v8 = vpop.eup %18895  ;;  %v596_v23 = vmul.f32 %v19666_v34, %v19605_v15  ;;  %v17113_v62 = vld [vmem:[#allocation8 + $0x61c] ss:$12 sps:$4 sm:$0xff]  }
 0x12f   :  { %20862 = vst [vmem:[#allocation77_spill] sm:$0xff] %v19672_v8  ;;  %v19676_v45 = vpop.eup %18897  ;;  %v629_v48 = vmul.f32 %v19672_v8, %v19608_v4 }
 0x130   :  { %20863 = vst [vmem:[#allocation78_spill] sm:$0xff] %v19676_v45  ;;  %v19680_v14 = vpop.eup %18899  ;;  %11977 = vmatpush1.bf16.msra.mxu0 %v17090_v26  ;;  %v609_v49 = vmul.f32 %v19676_v45, %v19587_v31  ;;  %v17111_v31 = vld [vmem:[#allocation8 + $0x618] ss:$12 sps:$4 sm:$0xff]  }
 0x131   :  { %11635 = vmatpush1.bf16.msra.mxu1 %v17093_v63  ;;  %20864 = vst [vmem:[#allocation79_spill] sm:$0xff] %v19680_v14  ;;  %11978 = vmatprep.subr.bf16.mxu0 %v17098_v29  ;;  %v19684_v47 = vpop.eup %18901  ;;  %v19686_v15 = vpack.c.bf16 %v629_v48, %v596_v23  ;;  %v642_v4 = vmul.f32 %v19680_v14, %v19593_v27  ;;  %v17119_v29 = vld [vmem:[#allocation8 + $0x634] ss:$12 sps:$4 sm:$0xff]   ;;  %v17114_v23 = vld [vmem:[#allocation8 + $0x1218] ss:$12 sps:$4 sm:$0xff]  }
 0x132   :  { %11636 = vmatprep.subr.bf16.mxu1 %v17101_v21  ;;  %20866 = vst [vmem:[#allocation81_spill] sm:$0xff] %v19684_v47  ;;  %v19692_v39 = vpop.eup %18903  ;;  %v612_v63 = vmul.f32 %v19684_v47, %v19643_v41  ;;  %v17110_v21 = vld [vmem:[#allocation8 + $0x1204] ss:$12 sps:$4 sm:$0xff]   ;;  %v17116_v41 = vld [vmem:[#allocation8 + $0x121c] ss:$12 sps:$4 sm:$0xff]   ;;  %v19754_v47 = vunpack.c.l.bf16 %v19634_v46 }
 0x133   :  { %20867 = vst [vmem:[#allocation82_spill] sm:$0xff] %v19686_v15  ;;  %20868 = vst [vmem:[#allocation83_spill] sm:$0xff] %v19692_v39  ;;  %v645_v26 = vmul.f32 %v19692_v39, %v19646_v24  ;;  %v19700_v27 = vpack.c.bf16 %v642_v4, %v609_v49  ;;  %v17125_v24 = vld [vmem:[#allocation8 + $0x64c] ss:$12 sps:$4 sm:$0xff]   ;;  %v17123_v48 = vld [vmem:[#allocation8 + $0x648] ss:$12 sps:$4 sm:$0xff]  }
 0x134   :  { %11979 = vmatpush1.bf16.msra.mxu0 %v17096_v43  ;;  %v17131_v43 = vld [vmem:[#allocation8 + $0x664] ss:$12 sps:$4 sm:$0xff]   ;;  %v17129_v49 = vld [vmem:[#allocation8 + $0x660] ss:$12 sps:$4 sm:$0xff]   ;;  %v17137_v4 = vld [vmem:[#allocation8 + $0x67c] ss:$12 sps:$4 sm:$0xff]  }
 0x135   :  { %11637 = vmatpush1.bf16.msra.mxu1 %v17099_v11  ;;  %11980 = vmatprep.subr.bf16.mxu0 %v17104_v25  ;;  %20869 = vst [vmem:[#allocation84_spill] sm:$0xff] %v19700_v27  ;;  %v19702_v52 = vpack.c.bf16 %v645_v26, %v612_v63  ;;  %v17117_v11 = vld [vmem:[#allocation8 + $0x630] ss:$12 sps:$4 sm:$0xff]   ;;  %v17135_v63 = vld [vmem:[#allocation8 + $0x678] ss:$12 sps:$4 sm:$0xff]   ;;  %20875 = vst [vmem:[#allocation90_spill] sm:$0xff] %v19754_v47 }
 0x136   :  { %11649 = vmatprep.subr.bf16.mxu1 %v17107_v50  ;;  %v17122_v50 = vld [vmem:[#allocation8 + $0x1234] ss:$12 sps:$4 sm:$0xff]   ;;  %v17120_v25 = vld [vmem:[#allocation8 + $0x1230] ss:$12 sps:$4 sm:$0xff]   ;;  %v19762_v45 = vld [vmem:[#allocation6 + $0xec] sm:$0xff] }
 0x137   :  { %20870 = vst [vmem:[#allocation85_spill] sm:$0xff] %v19702_v52  ;;  %v17132_v26 = vld [vmem:[#allocation8 + $0x1260] ss:$12 sps:$4 sm:$0xff]  }
 0x138   :  { %11639 = vmatmul.mubr.bf16.vlgmr.msra.gmra.mrb[0].mxu1 %v19682_v30  ;;  %11981 = vmatpush1.bf16.msra.mxu0 %v17102_v59  ;;  %v17134_v59 = vld [vmem:[#allocation8 + $0x1264] ss:$12 sps:$4 sm:$0xff]   ;;  %v19760_v14 = vld [vmem:[#allocation3 + $0xec] sm:$0xff] }
 0x139   :  { %11650 = vmatpush1.bf16.msra.mxu1 %v17105_v56  ;;  %11681 = vmatprep.mubr.bf16.mxu1 %v19686_v15  ;;  %v17128_v56 = vld [vmem:[#allocation8 + $0x124c] ss:$12 sps:$4 sm:$0xff]   ;;  %v19748_v39 = vld [vmem:[#allocation6 + $0x68] sm:$0xff] }
 0x13a   :  { %11651 = vmatprep.subr.bf16.mxu1 %v17113_v62  ;;  %11993 = vmatprep.subr.bf16.mxu0 %v17110_v21  ;;  %v17126_v62 = vld [vmem:[#allocation8 + $0x1248] ss:$12 sps:$4 sm:$0xff]  }
 0x13b   :  { %11983 = vmatmul.mubr.bf16.vlgmr.msra.gmra.mrb[0].mxu0 %v19700_v27  ;;  %v17143_v21 = vld [vmem:[#allocation8 + $0x694] ss:$12 sps:$4 sm:$0xff]  }
 0x13c   :  { %11994 = vmatpush1.bf16.msra.mxu0 %v17108_v17  ;;  %12025 = vmatprep.mubr.bf16.mxu0 %v19702_v52  ;;  %v17138_v17 = vld [vmem:[#allocation8 + $0x1278] ss:$12 sps:$4 sm:$0xff]  }
 0x13d   :  { %11652 = vmatpush1.bf16.msra.mxu1 %v17111_v31  ;;  %11995 = vmatprep.subr.bf16.mxu0 %v17116_v41  ;;  %v17140_v31 = vld [vmem:[#allocation8 + $0x127c] ss:$12 sps:$4 sm:$0xff]   ;;  %v17149_v41 = vld [vmem:[#allocation8 + $0x6ac] ss:$12 sps:$4 sm:$0xff]   ;;  %v17158_v52 = vld [vmem:[#allocation8 + $0x12c4] ss:$12 sps:$4 sm:$0xff]  }
 0x13e   :  { %11653 = vmatprep.subr.bf16.mxu1 %v17119_v29  ;;  %v17141_v29 = vld [vmem:[#allocation8 + $0x690] ss:$12 sps:$4 sm:$0xff]  }
 0x140   :  { %11996 = vmatpush1.bf16.msra.mxu0 %v17114_v23  ;;  %v19708_v23 = vld [vmem:[#allocation6 + $0x28] sm:$0xff] }
 0x141   :  { %11654 = vmatpush1.bf16.msra.mxu1 %v17117_v11  ;;  %11997 = vmatprep.subr.bf16.mxu0 %v17122_v50  ;;  %v17146_v11 = vld [vmem:[#allocation8 + $0x1294] ss:$12 sps:$4 sm:$0xff]  }
 0x142   :  { %11655 = vmatprep.subr.bf16.mxu1 %v17125_v24  ;;  %v19706_v24 = vld [vmem:[#allocation3 + $0x28] sm:$0xff]  ;;  %v17147_v50 = vld [vmem:[#allocation8 + $0x6a8] ss:$12 sps:$4 sm:$0xff]  }
 0x144   :  { %11998 = vmatpush1.bf16.msra.mxu0 %v17120_v25  ;;  %v19716_v25 = vld [vmem:[#allocation3 + $0xac] sm:$0xff] }
 0x145   :  { %11656 = vmatpush1.bf16.msra.mxu1 %v17123_v48  ;;  %11999 = vmatprep.subr.bf16.mxu0 %v17128_v56  ;;  %v19711_v48 = vunpack.c.l.bf16 %v19598_v1  ;;  %v19718_v56 = vld [vmem:[#allocation6 + $0xac] sm:$0xff]  ;;  %v19727_v1 = vunpack.c.h.bf16 %v19706_v24 }
 0x146   :  { %11657 = vmatprep.subr.bf16.mxu1 %v17131_v43  ;;  %v19714_v43 = vunpack.c.l.bf16 %v19602_v55  ;;  %v19730_v55 = vunpack.c.h.bf16 %v19708_v23 }
 0x147   :  { %v268_v38 = vmul.f32 %v19727_v1, %v19727_v1 }
 0x148   :  { %12000 = vmatpush1.bf16.msra.mxu0 %v17126_v62  ;;  %20871 = vst [vmem:[#allocation86_spill] sm:$0xff] %v19714_v43  ;;  %v19724_v62 = vunpack.c.l.bf16 %v19610_v51  ;;  %20873 = vst [vmem:[#allocation88_spill] sm:$0xff] %v19730_v55  ;;  %v265_v51 = vmul.f32 %v19711_v48, %v19711_v48 }
 0x149   :  { %11658 = vmatpush1.bf16.msra.mxu1 %v17129_v49  ;;  %12001 = vmatprep.subr.bf16.mxu0 %v17134_v59  ;;  %v17155_v49 = vld [vmem:[#allocation8 + $0x6c4] ss:$12 sps:$4 sm:$0xff]  }
 0x14a   :  { %11659 = vmatprep.subr.bf16.mxu1 %v17137_v4  ;;  %v19721_v4 = vunpack.c.l.bf16 %v19600_v28  ;;  %20872 = vst [vmem:[#allocation87_spill] sm:$0xff] %v19724_v62  ;;  %v17144_v59 = vld [vmem:[#allocation8 + $0x1290] ss:$12 sps:$4 sm:$0xff]   ;;  %v19736_v28 = vunpack.c.h.bf16 %v19718_v56 }
 0x14c   :  { %12002 = vmatpush1.bf16.msra.mxu0 %v17132_v26  ;;  %v17161_v26 = vld [vmem:[#allocation8 + $0x6dc] ss:$12 sps:$4 sm:$0xff]   ;;  %20874 = vst [vmem:[#allocation89_spill] sm:$0xff] %v19736_v28  ;;  %v367_v27 = vmul.f32 %v19736_v28, %v19736_v28  ;;  %v17156_v28 = vld [vmem:[#allocation8 + $0x12c0] ss:$12 sps:$4 sm:$0xff]  }
 0x14d   :  { %11660 = vmatpush1.bf16.msra.mxu1 %v17135_v63  ;;  %12003 = vmatprep.subr.bf16.mxu0 %v17140_v31  ;;  %v17152_v63 = vld [vmem:[#allocation8 + $0x12ac] ss:$12 sps:$4 sm:$0xff]   ;;  %v19733_v31 = vunpack.c.h.bf16 %v19716_v25 }
 0x14e   :  { %11661 = vmatprep.subr.bf16.mxu1 %v17143_v21  ;;  %v17153_v21 = vld [vmem:[#allocation8 + $0x6c0] ss:$12 sps:$4 sm:$0xff]  }
 0x14f   :  { %v301_v46 = vmul.f32 %v19733_v31, %v19733_v31 }
 0x150   :  { %12004 = vmatpush1.bf16.msra.mxu0 %v17138_v17  ;;  %v19742_v17 = vld [vmem:[#allocation3 + $0x68] sm:$0xff] }
 0x151   :  { %11662 = vmatpush1.bf16.msra.mxu1 %v17141_v29  ;;  %12005 = vmatprep.subr.bf16.mxu0 %v17146_v11  ;;  %v331_v29 = vmul.f32 %v19714_v43, %v19714_v43  ;;  %v364_v11 = vmul.f32 %v19724_v62, %v19724_v62  ;;  %v19775_v34 = vunpack.c.h.bf16 %v19742_v17  ;;  %v19784_v43 = vunpack.c.h.bf16 %v19762_v45 }
 0x152   :  { %11663 = vmatprep.subr.bf16.mxu1 %v17149_v41  ;;  %v298_v41 = vmul.f32 %v19721_v4, %v19721_v4 }
 0x153   :  { %v397_v8 = vadd.f32 %v331_v29, %v265_v51  ;;  %20878 = vst [vmem:[#allocation93_spill] sm:$0xff] %v19784_v43  ;;  %v347_v51 = vmul.f32 %v19754_v47, %v19754_v47  ;;  %v284_v15 = vmul.f32 %v19775_v34, %v19775_v34  ;;  %v383_v47 = vmul.f32 %v19784_v43, %v19784_v43  ;;  %v19900_v43 = vld [vmem:[#allocation3 + $0xf4] sm:$0xff] }
 0x154   :  { %12006 = vmatpush1.bf16.msra.mxu0 %v17144_v59  ;;  %v19765_v59 = vunpack.c.l.bf16 %v19632_v40  ;;  %v17167_v40 = vld [vmem:[#allocation8 + $0x6f4] ss:$12 sps:$4 sm:$0xff]   ;;  %v430_v62 = vadd.f32 %v364_v11, %v298_v41  ;;  %v433_v11 = vadd.f32 %v367_v27, %v301_v46  ;;  %v17162_v27 = vld [vmem:[#allocation8 + $0x12d8] ss:$12 sps:$4 sm:$0xff]  }
 0x155   :  { %11664 = vmatpush1.bf16.msra.mxu1 %v17147_v50  ;;  %v19751_v50 = vunpack.c.l.bf16 %v19622_v37  ;;  %12007 = vmatprep.subr.bf16.mxu0 %v17152_v63  ;;  %v19768_v37 = vunpack.c.l.bf16 %v19640_v42  ;;  %v19778_v63 = vunpack.c.h.bf16 %v19748_v39  ;;  %v19781_v42 = vunpack.c.h.bf16 %v19760_v14 }
 0x156   :  { %11665 = vmatprep.subr.bf16.mxu1 %v17155_v49  ;;  %v334_v49 = vmul.f32 %v19730_v55, %v19730_v55  ;;  %v17159_v55 = vld [vmem:[#allocation8 + $0x6d8] ss:$12 sps:$4 sm:$0xff]   ;;  %v499_v44 = vadd.f32 1e-30, %v433_v11 }
 0x157   :  { %20876 = vst [vmem:[#allocation91_spill] sm:$0xff] %v19768_v37  ;;  %20877 = vst [vmem:[#allocation92_spill] sm:$0xff] %v19778_v63  ;;  %v380_v41 = vmul.f32 %v19768_v37, %v19768_v37  ;;  %v350_v30 = vmul.f32 %v19778_v63, %v19778_v63  ;;  %v17197_v11 = vld [vmem:[#allocation8 + $0x76c] ss:$12 sps:$4 sm:$0xff]  }
 0x158   :  { %12008 = vmatpush1.bf16.msra.mxu0 %v17150_v19  ;;  %v400_v29 = vadd.f32 %v334_v49, %v268_v38  ;;  %v463_v19 = vadd.f32 1e-30, %v397_v8  ;;  %v17173_v38 = vld [vmem:[#allocation8 + $0x70c] ss:$12 sps:$4 sm:$0xff]   ;;  %v317_v49 = vmul.f32 %v19781_v42, %v19781_v42  ;;  %v17170_v8 = vld [vmem:[#allocation8 + $0x12f4] ss:$12 sps:$4 sm:$0xff]  }
 0x159   :  { %11666 = vmatpush1.bf16.msra.mxu1 %v17153_v21  ;;  %v281_v21 = vmul.f32 %v19751_v50, %v19751_v50  ;;  %12009 = vmatprep.subr.bf16.mxu0 %v17158_v52  ;;  %v496_v52 = vadd.f32 1e-30, %v430_v62  ;;  %v17179_v62 = vld [vmem:[#allocation8 + $0x724] ss:$12 sps:$4 sm:$0xff]  }
 0x15a   :  { %11667 = vmatprep.subr.bf16.mxu1 %v17161_v26  ;;  %v314_v26 = vmul.f32 %v19765_v59, %v19765_v59  ;;  %v466_v46 = vadd.f32 1e-30, %v400_v29  ;;  %18905 = vrsqrt.f32 %v463_v19  ;;  %v449_v63 = vadd.f32 %v383_v47, %v317_v49  ;;  %v17183_v47 = vld [vmem:[#allocation8 + $0x738] ss:$12 sps:$4 sm:$0xff]  }
 0x15b   :  { %18907 = vrsqrt.f32 %v496_v52  ;;  %v17186_v19 = vld [vmem:[#allocation8 + $0x1338] ss:$12 sps:$4 sm:$0xff]  }
 0x15c   :  { %12010 = vmatpush1.bf16.msra.mxu0 %v17156_v28  ;;  %v446_v37 = vadd.f32 %v380_v41, %v314_v26  ;;  %18909 = vrsqrt.f32 %v466_v46  ;;  %v17176_v28 = vld [vmem:[#allocation8 + $0x130c] ss:$12 sps:$4 sm:$0xff]   ;;  %v515_v29 = vadd.f32 1e-30, %v449_v63  ;;  %v17191_v26 = vld [vmem:[#allocation8 + $0x754] ss:$12 sps:$4 sm:$0xff]  }
 0x15d   :  { %11668 = vmatpush1.bf16.msra.mxu1 %v17159_v55  ;;  %v413_v55 = vadd.f32 %v347_v51, %v281_v21  ;;  %12011 = vmatprep.subr.bf16.mxu0 %v17164_v6  ;;  %18911 = vrsqrt.f32 %v499_v44  ;;  %v17177_v6 = vld [vmem:[#allocation8 + $0x720] ss:$12 sps:$4 sm:$0xff]   ;;  %v17188_v63 = vld [vmem:[#allocation8 + $0x133c] ss:$12 sps:$4 sm:$0xff]  }
 0x15e   :  { %11669 = vmatprep.subr.bf16.mxu1 %v17167_v40  ;;  %v416_v40 = vadd.f32 %v350_v30, %v284_v15  ;;  %v512_v21 = vadd.f32 1e-30, %v446_v37  ;;  %v17174_v30 = vld [vmem:[#allocation8 + $0x1308] ss:$12 sps:$4 sm:$0xff]   ;;  %v17182_v15 = vld [vmem:[#allocation8 + $0x1324] ss:$12 sps:$4 sm:$0xff]  }
 0x15f   :  { %v479_v9 = vadd.f32 1e-30, %v413_v55  ;;  %v17195_v55 = vld [vmem:[#allocation8 + $0x768] ss:$12 sps:$4 sm:$0xff]  }
 0x160   :  { %12012 = vmatpush1.bf16.msra.mxu0 %v17162_v27  ;;  %v482_v51 = vadd.f32 1e-30, %v416_v40 }
 0x161   :  { %11670 = vmatpush1.bf16.msra.mxu1 %v17165_v54  ;;  %12013 = vmatprep.subr.bf16.mxu0 %v17170_v8  ;;  %v17185_v54 = vld [vmem:[#allocation8 + $0x73c] ss:$12 sps:$4 sm:$0xff]   ;;  %18913 = vrsqrt.f32 %v479_v9 }
 0x162   :  { %11671 = vmatprep.subr.bf16.mxu1 %v17173_v38  ;;  %18915 = vrsqrt.f32 %v512_v21  ;;  %v17189_v9 = vld [vmem:[#allocation8 + $0x750] ss:$12 sps:$4 sm:$0xff]   ;;  %v17194_v38 = vld [vmem:[#allocation8 + $0x1354] ss:$12 sps:$4 sm:$0xff]  }
 0x163   :  { %18917 = vrsqrt.f32 %v482_v51  ;;  %v17201_v51 = vld [vmem:[#allocation8 + $0x780] ss:$12 sps:$4 sm:$0xff]  }
 0x164   :  { %12014 = vmatpush1.bf16.msra.mxu0 %v17168_v18  ;;  %18919 = vrsqrt.f32 %v515_v29  ;;  %v19802_v37 = vpop.eup %18905  ;;  %v17209_v29 = vld [vmem:[#allocation8 + $0x79c] ss:$12 sps:$4 sm:$0xff]  }
 0x165   :  { %11672 = vmatpush1.bf16.msra.mxu1 %v17171_v33  ;;  %12015 = vmatprep.subr.bf16.mxu0 %v17176_v28  ;;  %20879 = vst [vmem:[#allocation94_spill] sm:$0xff] %v19802_v37  ;;  %v17180_v33 = vld [vmem:[#allocation8 + $0x1320] ss:$12 sps:$4 sm:$0xff]   ;;  %v19804_v44 = vpop.eup %18907  ;;  %v595_v52 = vmul.f32 %v19802_v37, %v19711_v48  ;;  %v17192_v48 = vld [vmem:[#allocation8 + $0x1350] ss:$12 sps:$4 sm:$0xff]  }
 0x166   :  { %11673 = vmatprep.subr.bf16.mxu1 %v17179_v62  ;;  %20880 = vst [vmem:[#allocation95_spill] sm:$0xff] %v19804_v44  ;;  %v19806_v18 = vpop.eup %18909  ;;  %v628_v49 = vmul.f32 %v19804_v44, %v19721_v4  ;;  %v17203_v62 = vld [vmem:[#allocation8 + $0x784] ss:$12 sps:$4 sm:$0xff]   ;;  %v17200_v4 = vld [vmem:[#allocation8 + $0x136c] ss:$12 sps:$4 sm:$0xff]  }
 0x167   :  { %20881 = vst [vmem:[#allocation96_spill] sm:$0xff] %v19806_v18  ;;  %v19808_v41 = vpop.eup %18911  ;;  %v598_v46 = vmul.f32 %v19806_v18, %v19727_v1  ;;  %v19921_v18 = vunpack.c.h.bf16 %v19900_v43 }
 0x168   :  { %12016 = vmatpush1.bf16.msra.mxu0 %v17174_v30  ;;  %20882 = vst [vmem:[#allocation97_spill] sm:$0xff] %v19808_v41  ;;  %v631_v8 = vmul.f32 %v19808_v41, %v19733_v31  ;;  %v17198_v30 = vld [vmem:[#allocation8 + $0x1368] ss:$12 sps:$4 sm:$0xff]  }
 0x169   :  { %11674 = vmatpush1.bf16.msra.mxu1 %v17177_v6  ;;  %12017 = vmatprep.subr.bf16.mxu0 %v17182_v15  ;;  %v19826_v6 = vpack.c.bf16 %v628_v49, %v595_v52  ;;  %v17219_v52 = vld [vmem:[#allocation8 + $0x7c8] ss:$12 sps:$4 sm:$0xff]   ;;  %v17227_v49 = vld [vmem:[#allocation8 + $0x7e4] ss:$12 sps:$4 sm:$0xff]  }
 0x16a   :  { %11675 = vmatprep.subr.bf16.mxu1 %v17185_v54  ;;  %v19828_v1 = vpack.c.bf16 %v631_v8, %v598_v46  ;;  %v17224_v46 = vld [vmem:[#allocation8 + $0x13cc] ss:$12 sps:$4 sm:$0xff]  }
 0x16b   :  { %v19814_v27 = vpop.eup %18913  ;;  %20887 = vst [vmem:[#allocation102_spill] sm:$0xff] %v19826_v6  ;;  %v17225_v8 = vld [vmem:[#allocation8 + $0x7e0] ss:$12 sps:$4 sm:$0xff]  }
 0x16c   :  { %12018 = vmatpush1.bf16.msra.mxu0 %v17180_v33  ;;  %20883 = vst [vmem:[#allocation98_spill] sm:$0xff] %v19814_v27  ;;  %v19820_v40 = vpop.eup %18915  ;;  %20888 = vst [vmem:[#allocation103_spill] sm:$0xff] %v19828_v1  ;;  %v611_v31 = vmul.f32 %v19814_v27, %v19751_v50  ;;  %v17207_v33 = vld [vmem:[#allocation8 + $0x798] ss:$12 sps:$4 sm:$0xff]  }
 0x16d   :  { %11676 = vmatpush1.bf16.msra.mxu1 %v17183_v47  ;;  %12019 = vmatprep.subr.bf16.mxu0 %v17188_v63  ;;  %20884 = vst [vmem:[#allocation99_spill] sm:$0xff] %v19820_v40  ;;  %v19822_v28 = vpop.eup %18917  ;;  %v644_v54 = vmul.f32 %v19820_v40, %v19765_v59  ;;  %v17215_v59 = vld [vmem:[#allocation8 + $0x7b4] ss:$12 sps:$4 sm:$0xff]  }
 0x16e   :  { %11677 = vmatprep.subr.bf16.mxu1 %v17191_v26  ;;  %20885 = vst [vmem:[#allocation100_spill] sm:$0xff] %v19822_v28  ;;  %v19824_v21 = vpop.eup %18919  ;;  %v614_v15 = vmul.f32 %v19822_v28, %v19775_v34  ;;  %v17206_v26 = vld [vmem:[#allocation8 + $0x1384] ss:$12 sps:$4 sm:$0xff]   ;;  %v17204_v63 = vld [vmem:[#allocation8 + $0x1380] ss:$12 sps:$4 sm:$0xff]  }
 0x16f   :  { %20886 = vst [vmem:[#allocation101_spill] sm:$0xff] %v19824_v21  ;;  %v647_v47 = vmul.f32 %v19824_v21, %v19781_v42  ;;  %v19840_v50 = vpack.c.bf16 %v644_v54, %v611_v31  ;;  %v17212_v34 = vld [vmem:[#allocation8 + $0x139c] ss:$12 sps:$4 sm:$0xff]   ;;  %v17239_v31 = vld [vmem:[#allocation8 + $0x814] ss:$12 sps:$4 sm:$0xff]   ;;  %v19902_v28 = vld [vmem:[#allocation6 + $0xf4] sm:$0xff] }
 0x170   :  { %12020 = vmatpush1.bf16.msra.mxu0 %v17186_v19  ;;  %v17213_v42 = vld [vmem:[#allocation8 + $0x7b0] ss:$12 sps:$4 sm:$0xff]   ;;  %v17210_v19 = vld [vmem:[#allocation8 + $0x1398] ss:$12 sps:$4 sm:$0xff]   ;;  %v17228_v54 = vld [vmem:[#allocation8 + $0x13e0] ss:$12 sps:$4 sm:$0xff]  }
 0x171   :  { %11678 = vmatpush1.bf16.msra.mxu1 %v17189_v9  ;;  %12021 = vmatprep.subr.bf16.mxu0 %v17194_v38  ;;  %20889 = vst [vmem:[#allocation104_spill] sm:$0xff] %v19840_v50  ;;  %v19842_v9 = vpack.c.bf16 %v647_v47, %v614_v15  ;;  %v17218_v38 = vld [vmem:[#allocation8 + $0x13b4] ss:$12 sps:$4 sm:$0xff]   ;;  %v17245_v15 = vld [vmem:[#allocation8 + $0x82c] ss:$12 sps:$4 sm:$0xff]  }
 0x172   :  { %11679 = vmatprep.subr.bf16.mxu1 %v17197_v11  ;;  %v17221_v11 = vld [vmem:[#allocation8 + $0x7cc] ss:$12 sps:$4 sm:$0xff]   ;;  %v17263_v40 = vld [vmem:[#allocation8 + $0x874] ss:$12 sps:$4 sm:$0xff]  }
 0x173   :  { %20890 = vst [vmem:[#allocation105_spill] sm:$0xff] %v19842_v9  ;;  %v17234_v47 = vld [vmem:[#allocation8 + $0x13f8] ss:$12 sps:$4 sm:$0xff]  }
 0x174   :  { %12022 = vmatpush1.bf16.msra.mxu0 %v17192_v48  ;;  %v17222_v48 = vld [vmem:[#allocation8 + $0x13c8] ss:$12 sps:$4 sm:$0xff]  }
 0x175   :  { %11680 = vmatpush1.bf16.msra.mxu1 %v17195_v55  ;;  %12023 = vmatprep.subr.bf16.mxu0 %v17200_v4  ;;  %v17216_v55 = vld [vmem:[#allocation8 + $0x13b0] ss:$12 sps:$4 sm:$0xff]  }
 0x176   :  { %11692 = vmatprep.subr.bf16.mxu1 %v17203_v62  ;;  %v17233_v62 = vld [vmem:[#allocation8 + $0x7fc] ss:$12 sps:$4 sm:$0xff]   ;;  %v17230_v4 = vld [vmem:[#allocation8 + $0x13e4] ss:$12 sps:$4 sm:$0xff]  }
 0x178   :  { %11682 = vmatmul.mubr.bf16.vlgmr.msra.gmra.mrb[0].mxu1 %v19826_v6  ;;  %12024 = vmatpush1.bf16.msra.mxu0 %v17198_v30  ;;  %v17237_v30 = vld [vmem:[#allocation8 + $0x810] ss:$12 sps:$4 sm:$0xff]   ;;  %v17272_v6 = vld [vmem:[#allocation8 + $0x148c] ss:$12 sps:$4 sm:$0xff]  }
 0x179   :  { %11693 = vmatpush1.bf16.msra.mxu1 %v17201_v51  ;;  %11724 = vmatprep.mubr.bf16.mxu1 %v19828_v1  ;;  %v17231_v51 = vld [vmem:[#allocation8 + $0x7f8] ss:$12 sps:$4 sm:$0xff]  }
 0x17a   :  { %11694 = vmatprep.subr.bf16.mxu1 %v17209_v29  ;;  %12036 = vmatprep.subr.bf16.mxu0 %v17206_v26  ;;  %v17236_v29 = vld [vmem:[#allocation8 + $0x13fc] ss:$12 sps:$4 sm:$0xff]   ;;  %v17242_v26 = vld [vmem:[#allocation8 + $0x1414] ss:$12 sps:$4 sm:$0xff]  }
 0x17b   :  { %12026 = vmatmul.mubr.bf16.vlgmr.msra.gmra.mrb[0].mxu0 %v19840_v50  ;;  %v17260_v50 = vld [vmem:[#allocation8 + $0x145c] ss:$12 sps:$4 sm:$0xff]  }
 0x17c   :  { %12037 = vmatpush1.bf16.msra.mxu0 %v17204_v63  ;;  %12068 = vmatprep.mubr.bf16.mxu0 %v19842_v9  ;;  %v19848_v63 = vld [vmem:[#allocation3 + $0xb4] sm:$0xff]  ;;  %v17252_v9 = vld [vmem:[#allocation8 + $0x1440] ss:$12 sps:$4 sm:$0xff]  }
 0x17d   :  { %11695 = vmatpush1.bf16.msra.mxu1 %v17207_v33  ;;  %12038 = vmatprep.subr.bf16.mxu0 %v17212_v34  ;;  %v17243_v33 = vld [vmem:[#allocation8 + $0x828] ss:$12 sps:$4 sm:$0xff]  }
 0x17e   :  { %11696 = vmatprep.subr.bf16.mxu1 %v17215_v59  ;;  %v19846_v59 = vld [vmem:[#allocation3 + $0x30] sm:$0xff]  ;;  %v19850_v34 = vld [vmem:[#allocation6 + $0x30] sm:$0xff] }
 0x180   :  { %12039 = vmatpush1.bf16.msra.mxu0 %v17210_v19  ;;  %v19855_v19 = vunpack.c.l.bf16 %v19706_v24  ;;  %v19870_v24 = vunpack.c.h.bf16 %v19850_v34 }
 0x181   :  { %11697 = vmatpush1.bf16.msra.mxu1 %v17213_v42  ;;  %12040 = vmatprep.subr.bf16.mxu0 %v17218_v38  ;;  %v17251_v42 = vld [vmem:[#allocation8 + $0x844] ss:$12 sps:$4 sm:$0xff]   ;;  %v19858_v38 = vunpack.c.l.bf16 %v19708_v23  ;;  %v17257_v23 = vld [vmem:[#allocation8 + $0x85c] ss:$12 sps:$4 sm:$0xff]  }
 0x182   :  { %11698 = vmatprep.subr.bf16.mxu1 %v17221_v11  ;;  %v19852_v11 = vld [vmem:[#allocation6 + $0xb4] sm:$0xff]  ;;  %20893 = vst [vmem:[#allocation108_spill] sm:$0xff] %v19870_v24 }
 0x183   :  { %20891 = vst [vmem:[#allocation106_spill] sm:$0xff] %v19858_v38 }
 0x184   :  { %12041 = vmatpush1.bf16.msra.mxu0 %v17216_v55  ;;  %v17240_v55 = vld [vmem:[#allocation8 + $0x1410] ss:$12 sps:$4 sm:$0xff]  }
 0x185   :  { %11699 = vmatpush1.bf16.msra.mxu1 %v17219_v52  ;;  %12042 = vmatprep.subr.bf16.mxu0 %v17224_v46  ;;  %v19861_v52 = vunpack.c.l.bf16 %v19716_v25  ;;  %v17248_v46 = vld [vmem:[#allocation8 + $0x142c] ss:$12 sps:$4 sm:$0xff]   ;;  %v19876_v25 = vunpack.c.h.bf16 %v19852_v11 }
 0x186   :  { %11700 = vmatprep.subr.bf16.mxu1 %v17227_v49  ;;  %v19864_v49 = vunpack.c.l.bf16 %v19718_v56  ;;  %v19878_v56 = vld [vmem:[#allocation3 + $0x70] sm:$0xff] }
 0x187   :  { %20894 = vst [vmem:[#allocation109_spill] sm:$0xff] %v19876_v25  ;;  %v369_v27 = vmul.f32 %v19876_v25, %v19876_v25  ;;  %v19915_v41 = vunpack.c.h.bf16 %v19878_v56  ;;  %v17261_v25 = vld [vmem:[#allocation8 + $0x870] ss:$12 sps:$4 sm:$0xff]  }
 0x188   :  { %12043 = vmatpush1.bf16.msra.mxu0 %v17222_v48  ;;  %20892 = vst [vmem:[#allocation107_spill] sm:$0xff] %v19864_v49  ;;  %v19873_v48 = vunpack.c.h.bf16 %v19848_v63 }
 0x189   :  { %11701 = vmatpush1.bf16.msra.mxu1 %v17225_v8  ;;  %12044 = vmatprep.subr.bf16.mxu0 %v17230_v4  ;;  %v17249_v8 = vld [vmem:[#allocation8 + $0x840] ss:$12 sps:$4 sm:$0xff]   ;;  %v286_v44 = vmul.f32 %v19915_v41, %v19915_v41 }
 0x18a   :  { %11702 = vmatprep.subr.bf16.mxu1 %v17233_v62  ;;  %v19867_v62 = vunpack.c.h.bf16 %v19846_v59  ;;  %v19880_v4 = vld [vmem:[#allocation6 + $0x70] sm:$0xff] }
 0x18c   :  { %12045 = vmatpush1.bf16.msra.mxu0 %v17228_v54  ;;  %v333_v54 = vmul.f32 %v19858_v38, %v19858_v38  ;;  %v270_v21 = vmul.f32 %v19867_v62, %v19867_v62 }
 0x18d   :  { %11703 = vmatpush1.bf16.msra.mxu1 %v17231_v51  ;;  %12046 = vmatprep.subr.bf16.mxu0 %v17236_v29  ;;  %v17246_v51 = vld [vmem:[#allocation8 + $0x1428] ss:$12 sps:$4 sm:$0xff]   ;;  %v17254_v29 = vld [vmem:[#allocation8 + $0x1444] ss:$12 sps:$4 sm:$0xff]  }
 0x18e   :  { %11704 = vmatprep.subr.bf16.mxu1 %v17239_v31  ;;  %v267_v31 = vmul.f32 %v19855_v19, %v19855_v19 }
 0x190   :  { %12047 = vmatpush1.bf16.msra.mxu0 %v17234_v47  ;;  %v17255_v47 = vld [vmem:[#allocation8 + $0x858] ss:$12 sps:$4 sm:$0xff]  }
 0x191   :  { %11705 = vmatpush1.bf16.msra.mxu1 %v17237_v30  ;;  %12048 = vmatprep.subr.bf16.mxu0 %v17242_v26  ;;  %v300_v30 = vmul.f32 %v19861_v52, %v19861_v52  ;;  %v19891_v26 = vunpack.c.l.bf16 %v19742_v17  ;;  %v19908_v17 = vunpack.c.l.bf16 %v19762_v45  ;;  %v19924_v45 = vunpack.c.h.bf16 %v19902_v28 }
 0x192   :  { %11706 = vmatprep.subr.bf16.mxu1 %v17245_v15  ;;  %v366_v15 = vmul.f32 %v19864_v49, %v19864_v49 }
 0x193   :  { %20896 = vst [vmem:[#allocation111_spill] sm:$0xff] %v19908_v17  ;;  %20898 = vst [vmem:[#allocation113_spill] sm:$0xff] %v19924_v45 }
 0x194   :  { %12049 = vmatpush1.bf16.msra.mxu0 %v17240_v55  ;;  %v19905_v55 = vunpack.c.l.bf16 %v19760_v14  ;;  %v432_v14 = vadd.f32 %v366_v15, %v300_v30  ;;  %v382_v15 = vmul.f32 %v19908_v17, %v19908_v17  ;;  %v17266_v17 = vld [vmem:[#allocation8 + $0x1474] ss:$12 sps:$4 sm:$0xff]  }
 0x195   :  { %11707 = vmatpush1.bf16.msra.mxu1 %v17243_v33  ;;  %v19894_v33 = vunpack.c.l.bf16 %v19748_v39  ;;  %12050 = vmatprep.subr.bf16.mxu0 %v17248_v46  ;;  %v303_v39 = vmul.f32 %v19873_v48, %v19873_v48  ;;  %v19918_v46 = vunpack.c.h.bf16 %v19880_v4 }
 0x196   :  { %11708 = vmatprep.subr.bf16.mxu1 %v17251_v42  ;;  %v336_v42 = vmul.f32 %v19870_v24, %v19870_v24  ;;  %v399_v24 = vadd.f32 %v333_v54, %v267_v31  ;;  %v316_v30 = vmul.f32 %v19905_v55, %v19905_v55 }
 0x197   :  { %20895 = vst [vmem:[#allocation110_spill] sm:$0xff] %v19894_v33  ;;  %20897 = vst [vmem:[#allocation112_spill] sm:$0xff] %v19918_v46  ;;  %v349_v31 = vmul.f32 %v19894_v33, %v19894_v33  ;;  %v435_v49 = vadd.f32 %v369_v27, %v303_v39  ;;  %v352_v37 = vmul.f32 %v19918_v46, %v19918_v46  ;;  %v17267_v27 = vld [vmem:[#allocation8 + $0x888] ss:$12 sps:$4 sm:$0xff]  }
 0x198   :  { %12051 = vmatpush1.bf16.msra.mxu0 %v17246_v51  ;;  %v402_v54 = vadd.f32 %v336_v42, %v270_v21  ;;  %v17258_v51 = vld [vmem:[#allocation8 + $0x1458] ss:$12 sps:$4 sm:$0xff]   ;;  %v465_v38 = vadd.f32 1e-30, %v399_v24  ;;  %v498_v21 = vadd.f32 1e-30, %v432_v14  ;;  %v385_v42 = vmul.f32 %v19924_v45, %v19924_v45 }
 0x199   :  { %11709 = vmatpush1.bf16.msra.mxu1 %v17249_v8  ;;  %v283_v8 = vmul.f32 %v19891_v26, %v19891_v26  ;;  %12052 = vmatprep.subr.bf16.mxu0 %v17254_v29  ;;  %v319_v29 = vmul.f32 %v19921_v18, %v19921_v18  ;;  %v17275_v24 = vld [vmem:[#allocation8 + $0x8a4] ss:$12 sps:$4 sm:$0xff]   ;;  %v448_v33 = vadd.f32 %v382_v15, %v316_v30  ;;  %v501_v1 = vadd.f32 1e-30, %v435_v49  ;;  %v17290_v15 = vld [vmem:[#allocation8 + $0x14d4] ss:$12 sps:$4 sm:$0xff]  }
 0x19a   :  { %11710 = vmatprep.subr.bf16.mxu1 %v17257_v23  ;;  %v17269_v23 = vld [vmem:[#allocation8 + $0x88c] ss:$12 sps:$4 sm:$0xff]   ;;  %18921 = vrsqrt.f32 %v465_v38  ;;  %v418_v46 = vadd.f32 %v352_v37, %v286_v44  ;;  %v17264_v14 = vld [vmem:[#allocation8 + $0x1470] ss:$12 sps:$4 sm:$0xff]   ;;  %v17270_v38 = vld [vmem:[#allocation8 + $0x1488] ss:$12 sps:$4 sm:$0xff]  }
 0x19b   :  { %v415_v39 = vadd.f32 %v349_v31, %v283_v8  ;;  %18923 = vrsqrt.f32 %v498_v21  ;;  %v17273_v8 = vld [vmem:[#allocation8 + $0x8a0] ss:$12 sps:$4 sm:$0xff]   ;;  %v17281_v31 = vld [vmem:[#allocation8 + $0x8bc] ss:$12 sps:$4 sm:$0xff]   ;;  %v17278_v37 = vld [vmem:[#allocation8 + $0x14a4] ss:$12 sps:$4 sm:$0xff]  }
 0x19c   :  { %12053 = vmatpush1.bf16.msra.mxu0 %v17252_v9  ;;  %v514_v9 = vadd.f32 1e-30, %v448_v33  ;;  %v17279_v44 = vld [vmem:[#allocation8 + $0x8b8] ss:$12 sps:$4 sm:$0xff]   ;;  %v20043_v45 = vld [vmem:[#allocation3 + $0xfc] sm:$0xff] }
 0x19d   :  { %11711 = vmatpush1.bf16.msra.mxu1 %v17255_v47  ;;  %v468_v47 = vadd.f32 1e-30, %v402_v54  ;;  %12054 = vmatprep.subr.bf16.mxu0 %v17260_v50  ;;  %v481_v7 = vadd.f32 1e-30, %v415_v39  ;;  %v484_v50 = vadd.f32 1e-30, %v418_v46 }
 0x19e   :  { %11712 = vmatprep.subr.bf16.mxu1 %v17263_v40  ;;  %v451_v40 = vadd.f32 %v385_v42, %v319_v29  ;;  %v17284_v46 = vld [vmem:[#allocation8 + $0x14bc] ss:$12 sps:$4 sm:$0xff]   ;;  %v17282_v30 = vld [vmem:[#allocation8 + $0x14b8] ss:$12 sps:$4 sm:$0xff]  }
 0x19f   :  { %18925 = vrsqrt.f32 %v468_v47  ;;  %v17299_v21 = vld [vmem:[#allocation8 + $0x904] ss:$12 sps:$4 sm:$0xff]  }
 0x1a0   :  { %12055 = vmatpush1.bf16.msra.mxu0 %v17258_v51  ;;  %18927 = vrsqrt.f32 %v501_v1  ;;  %v517_v49 = vadd.f32 1e-30, %v451_v40  ;;  %v17276_v1 = vld [vmem:[#allocation8 + $0x14a0] ss:$12 sps:$4 sm:$0xff]   ;;  %v17291_v51 = vld [vmem:[#allocation8 + $0x8e8] ss:$12 sps:$4 sm:$0xff]  }
 0x1a1   :  { %11713 = vmatpush1.bf16.msra.mxu1 %v17261_v25  ;;  %12056 = vmatprep.subr.bf16.mxu0 %v17266_v17  ;;  %18929 = vrsqrt.f32 %v481_v7  ;;  %v17287_v25 = vld [vmem:[#allocation8 + $0x8d4] ss:$12 sps:$4 sm:$0xff]   ;;  %v17285_v7 = vld [vmem:[#allocation8 + $0x8d0] ss:$12 sps:$4 sm:$0xff]  }
 0x1a2   :  { %11714 = vmatprep.subr.bf16.mxu1 %v17269_v23  ;;  %18931 = vrsqrt.f32 %v514_v9 }
 0x1a3   :  { %18933 = vrsqrt.f32 %v484_v50  ;;  %v17305_v50 = vld [vmem:[#allocation8 + $0x91c] ss:$12 sps:$4 sm:$0xff]  }
 0x1a4   :  { %12057 = vmatpush1.bf16.msra.mxu0 %v17264_v14  ;;  %18935 = vrsqrt.f32 %v517_v49  ;;  %v19942_v33 = vpop.eup %18921  ;;  %v17288_v14 = vld [vmem:[#allocation8 + $0x14d0] ss:$12 sps:$4 sm:$0xff]   ;;  %v17294_v49 = vld [vmem:[#allocation8 + $0x14e8] ss:$12 sps:$4 sm:$0xff]  }
 0x1a5   :  { %11715 = vmatpush1.bf16.msra.mxu1 %v17267_v27  ;;  %12058 = vmatprep.subr.bf16.mxu0 %v17272_v6  ;;  %20899 = vst [vmem:[#allocation114_spill] sm:$0xff] %v19942_v33  ;;  %v19944_v17 = vpop.eup %18923  ;;  %v17293_v6 = vld [vmem:[#allocation8 + $0x8ec] ss:$12 sps:$4 sm:$0xff]   ;;  %v597_v29 = vmul.f32 %v19942_v33, %v19855_v19  ;;  %v17371_v33 = vld [vmem:[#allocation8 + $0xa24] ss:$12 sps:$4 sm:$0xff]  }
 0x1a6   :  { %11716 = vmatprep.subr.bf16.mxu1 %v17275_v24  ;;  %20900 = vst [vmem:[#allocation115_spill] sm:$0xff] %v19944_v17  ;;  %v630_v42 = vmul.f32 %v19944_v17, %v19861_v52  ;;  %v17296_v52 = vld [vmem:[#allocation8 + $0x14ec] ss:$12 sps:$4 sm:$0xff]  }
 0x1a8   :  { %12059 = vmatpush1.bf16.msra.mxu0 %v17270_v38  ;;  %v19966_v9 = vpack.c.bf16 %v630_v42, %v597_v29  ;;  %v17302_v38 = vld [vmem:[#allocation8 + $0x1504] ss:$12 sps:$4 sm:$0xff]   ;;  %v17320_v29 = vld [vmem:[#allocation8 + $0x154c] ss:$12 sps:$4 sm:$0xff]  }
 0x1a9   :  { %11717 = vmatpush1.bf16.msra.mxu1 %v17273_v8  ;;  %12060 = vmatprep.subr.bf16.mxu0 %v17278_v37  ;;  %v19946_v54 = vpop.eup %18925  ;;  %v17297_v8 = vld [vmem:[#allocation8 + $0x900] ss:$12 sps:$4 sm:$0xff]   ;;  %v17303_v37 = vld [vmem:[#allocation8 + $0x918] ss:$12 sps:$4 sm:$0xff]  }
 0x1aa   :  { %11718 = vmatprep.subr.bf16.mxu1 %v17281_v31  ;;  %20901 = vst [vmem:[#allocation116_spill] sm:$0xff] %v19946_v54  ;;  %v19948_v23 = vpop.eup %18927  ;;  %v600_v39 = vmul.f32 %v19946_v54, %v19867_v62  ;;  %20907 = vst [vmem:[#allocation122_spill] sm:$0xff] %v19966_v9  ;;  %v17321_v42 = vld [vmem:[#allocation8 + $0x960] ss:$12 sps:$4 sm:$0xff]  }
 0x1ab   :  { %20902 = vst [vmem:[#allocation117_spill] sm:$0xff] %v19948_v23  ;;  %v19954_v27 = vpop.eup %18929  ;;  %v633_v47 = vmul.f32 %v19948_v23, %v19873_v48  ;;  %v17365_v54 = vld [vmem:[#allocation8 + $0xa0c] ss:$12 sps:$4 sm:$0xff]  }
 0x1ac   :  { %12061 = vmatpush1.bf16.msra.mxu0 %v17276_v1  ;;  %20903 = vst [vmem:[#allocation118_spill] sm:$0xff] %v19954_v27  ;;  %v19960_v24 = vpop.eup %18931  ;;  %v613_v48 = vmul.f32 %v19954_v27, %v19891_v26  ;;  %v17311_v1 = vld [vmem:[#allocation8 + $0x934] ss:$12 sps:$4 sm:$0xff]  }
 0x1ad   :  { %11719 = vmatpush1.bf16.msra.mxu1 %v17279_v44  ;;  %12062 = vmatprep.subr.bf16.mxu0 %v17284_v46  ;;  %20904 = vst [vmem:[#allocation119_spill] sm:$0xff] %v19960_v24  ;;  %v19962_v40 = vpop.eup %18933  ;;  %v19968_v62 = vpack.c.bf16 %v633_v47, %v600_v39  ;;  %v646_v31 = vmul.f32 %v19960_v24, %v19905_v55  ;;  %v17300_v55 = vld [vmem:[#allocation8 + $0x1500] ss:$12 sps:$4 sm:$0xff]   ;;  %v17308_v46 = vld [vmem:[#allocation8 + $0x151c] ss:$12 sps:$4 sm:$0xff]  }
 0x1ae   :  { %11720 = vmatprep.subr.bf16.mxu1 %v17287_v25  ;;  %20905 = vst [vmem:[#allocation120_spill] sm:$0xff] %v19962_v40  ;;  %v19964_v19 = vpop.eup %18935  ;;  %v616_v44 = vmul.f32 %v19962_v40, %v19915_v41  ;;  %v17309_v41 = vld [vmem:[#allocation8 + $0x930] ss:$12 sps:$4 sm:$0xff]   ;;  %v17318_v47 = vld [vmem:[#allocation8 + $0x1548] ss:$12 sps:$4 sm:$0xff]  }
 0x1af   :  { %20906 = vst [vmem:[#allocation121_spill] sm:$0xff] %v19964_v19  ;;  %20908 = vst [vmem:[#allocation123_spill] sm:$0xff] %v19968_v62  ;;  %v649_v25 = vmul.f32 %v19964_v19, %v19921_v18  ;;  %v19980_v26 = vpack.c.bf16 %v646_v31, %v613_v48  ;;  %v17306_v18 = vld [vmem:[#allocation8 + $0x1518] ss:$12 sps:$4 sm:$0xff]   ;;  %v17329_v39 = vld [vmem:[#allocation8 + $0x97c] ss:$12 sps:$4 sm:$0xff]  }
 0x1b0   :  { %12063 = vmatpush1.bf16.msra.mxu0 %v17282_v30  ;;  %v17314_v30 = vld [vmem:[#allocation8 + $0x1534] ss:$12 sps:$4 sm:$0xff]   ;;  %v17332_v48 = vld [vmem:[#allocation8 + $0x157c] ss:$12 sps:$4 sm:$0xff]  }
 0x1b1   :  { %11721 = vmatpush1.bf16.msra.mxu1 %v17285_v7  ;;  %12064 = vmatprep.subr.bf16.mxu0 %v17290_v15  ;;  %20909 = vst [vmem:[#allocation124_spill] sm:$0xff] %v19980_v26  ;;  %v19982_v7 = vpack.c.bf16 %v649_v25, %v616_v44  ;;  %v17315_v15 = vld [vmem:[#allocation8 + $0x948] ss:$12 sps:$4 sm:$0xff]   ;;  %v17333_v31 = vld [vmem:[#allocation8 + $0x990] ss:$12 sps:$4 sm:$0xff]  }
 0x1b2   :  { %11722 = vmatprep.subr.bf16.mxu1 %v17293_v6  ;;  %v17317_v6 = vld [vmem:[#allocation8 + $0x94c] ss:$12 sps:$4 sm:$0xff]   ;;  %v17339_v44 = vld [vmem:[#allocation8 + $0x9a8] ss:$12 sps:$4 sm:$0xff]  }
 0x1b3   :  { %20910 = vst [vmem:[#allocation125_spill] sm:$0xff] %v19982_v7  ;;  %v19986_v25 = vld [vmem:[#allocation3 + $0x38] sm:$0xff]  ;;  %v17359_v27 = vld [vmem:[#allocation8 + $0x9f4] ss:$12 sps:$4 sm:$0xff]  }
 0x1b4   :  { %12065 = vmatpush1.bf16.msra.mxu0 %v17288_v14  ;;  %v17326_v14 = vld [vmem:[#allocation8 + $0x1564] ss:$12 sps:$4 sm:$0xff]   ;;  %v17348_v24 = vld [vmem:[#allocation8 + $0x15c0] ss:$12 sps:$4 sm:$0xff]  }
 0x1b5   :  { %11723 = vmatpush1.bf16.msra.mxu1 %v17291_v51  ;;  %12066 = vmatprep.subr.bf16.mxu0 %v17296_v52  ;;  %v17323_v51 = vld [vmem:[#allocation8 + $0x964] ss:$12 sps:$4 sm:$0xff]  }
 0x1b6   :  { %11735 = vmatprep.subr.bf16.mxu1 %v17299_v21  ;;  %v17312_v21 = vld [vmem:[#allocation8 + $0x1530] ss:$12 sps:$4 sm:$0xff]   ;;  %v17327_v52 = vld [vmem:[#allocation8 + $0x978] ss:$12 sps:$4 sm:$0xff]  }
 0x1b8   :  { %11725 = vmatmul.mubr.bf16.vlgmr.msra.gmra.mrb[0].mxu1 %v19966_v9  ;;  %12067 = vmatpush1.bf16.msra.mxu0 %v17294_v49  ;;  %v17330_v49 = vld [vmem:[#allocation8 + $0x1578] ss:$12 sps:$4 sm:$0xff]   ;;  %v17369_v9 = vld [vmem:[#allocation8 + $0xa20] ss:$12 sps:$4 sm:$0xff]  }
 0x1b9   :  { %11736 = vmatpush1.bf16.msra.mxu1 %v17297_v8  ;;  %11767 = vmatprep.mubr.bf16.mxu1 %v19968_v62  ;;  %v17335_v8 = vld [vmem:[#allocation8 + $0x994] ss:$12 sps:$4 sm:$0xff]  }
 0x1ba   :  { %11737 = vmatprep.subr.bf16.mxu1 %v17305_v50  ;;  %12079 = vmatprep.subr.bf16.mxu0 %v17302_v38  ;;  %v17324_v50 = vld [vmem:[#allocation8 + $0x1560] ss:$12 sps:$4 sm:$0xff]  }
 0x1bb   :  { %12069 = vmatmul.mubr.bf16.vlgmr.msra.gmra.mrb[0].mxu0 %v19980_v26  ;;  %v17341_v38 = vld [vmem:[#allocation8 + $0x9ac] ss:$12 sps:$4 sm:$0xff]  }
 0x1bc   :  { %12080 = vmatpush1.bf16.msra.mxu0 %v17300_v55  ;;  %12111 = vmatprep.mubr.bf16.mxu0 %v19982_v7  ;;  %v17347_v55 = vld [vmem:[#allocation8 + $0x9c4] ss:$12 sps:$4 sm:$0xff]  }
 0x1bd   :  { %11738 = vmatpush1.bf16.msra.mxu1 %v17303_v37  ;;  %12081 = vmatprep.subr.bf16.mxu0 %v17308_v46  ;;  %v17338_v37 = vld [vmem:[#allocation8 + $0x1594] ss:$12 sps:$4 sm:$0xff]   ;;  %v19991_v46 = vunpack.c.l.bf16 %v19846_v59 }
 0x1be   :  { %11739 = vmatprep.subr.bf16.mxu1 %v17311_v1  ;;  %v19988_v1 = vld [vmem:[#allocation3 + $0xbc] sm:$0xff] }
 0x1bf   :  { %v17345_v59 = vld [vmem:[#allocation8 + $0x9c0] ss:$12 sps:$4 sm:$0xff]  }
 0x1c0   :  { %12082 = vmatpush1.bf16.msra.mxu0 %v17306_v18  ;;  %v17336_v18 = vld [vmem:[#allocation8 + $0x1590] ss:$12 sps:$4 sm:$0xff]  }
 0x1c1   :  { %11740 = vmatpush1.bf16.msra.mxu1 %v17309_v41  ;;  %12083 = vmatprep.subr.bf16.mxu0 %v17314_v30  ;;  %v19994_v41 = vunpack.c.l.bf16 %v19850_v34  ;;  %v19999_v30 = vunpack.c.l.bf16 %v19848_v63  ;;  %v269_v63 = vmul.f32 %v19991_v46, %v19991_v46 }
 0x1c2   :  { %11741 = vmatprep.subr.bf16.mxu1 %v17317_v6  ;;  %v19996_v6 = vld [vmem:[#allocation6 + $0x38] sm:$0xff] }
 0x1c3   :  { %20911 = vst [vmem:[#allocation126_spill] sm:$0xff] %v19994_v41  ;;  %v20010_v34 = vunpack.c.h.bf16 %v19996_v6 }
 0x1c4   :  { %12084 = vmatpush1.bf16.msra.mxu0 %v17312_v21  ;;  %v17344_v21 = vld [vmem:[#allocation8 + $0x15ac] ss:$12 sps:$4 sm:$0xff]  }
 0x1c5   :  { %11742 = vmatpush1.bf16.msra.mxu1 %v17315_v15  ;;  %12085 = vmatprep.subr.bf16.mxu0 %v17320_v29  ;;  %v20002_v15 = vunpack.c.l.bf16 %v19852_v11  ;;  %v20007_v29 = vunpack.c.h.bf16 %v19986_v25  ;;  %20913 = vst [vmem:[#allocation128_spill] sm:$0xff] %v20010_v34  ;;  %v335_v11 = vmul.f32 %v19994_v41, %v19994_v41  ;;  %v338_v19 = vmul.f32 %v20010_v34, %v20010_v34 }
 0x1c6   :  { %11743 = vmatprep.subr.bf16.mxu1 %v17323_v51  ;;  %v20004_v51 = vld [vmem:[#allocation6 + $0xbc] sm:$0xff] }
 0x1c7   :  { %20912 = vst [vmem:[#allocation127_spill] sm:$0xff] %v20002_v15  ;;  %v401_v40 = vadd.f32 %v335_v11, %v269_v63  ;;  %v17356_v11 = vld [vmem:[#allocation8 + $0x15dc] ss:$12 sps:$4 sm:$0xff]  }
 0x1c8   :  { %12086 = vmatpush1.bf16.msra.mxu0 %v17318_v47  ;;  %v20020_v47 = vunpack.c.h.bf16 %v20004_v51 }
 0x1c9   :  { %11744 = vmatpush1.bf16.msra.mxu1 %v17321_v42  ;;  %12087 = vmatprep.subr.bf16.mxu0 %v17326_v14  ;;  %v17353_v42 = vld [vmem:[#allocation8 + $0x9dc] ss:$12 sps:$4 sm:$0xff]   ;;  %v467_v7 = vadd.f32 1e-30, %v401_v40 }
 0x1ca   :  { %11745 = vmatprep.subr.bf16.mxu1 %v17329_v39  ;;  %v20017_v39 = vunpack.c.h.bf16 %v19988_v1  ;;  %20914 = vst [vmem:[#allocation129_spill] sm:$0xff] %v20020_v47  ;;  %v20022_v14 = vld [vmem:[#allocation3 + $0x78] sm:$0xff] }
 0x1cb   :  { %v20055_v23 = vunpack.c.h.bf16 %v20022_v14  ;;  %18937 = vrsqrt.f32 %v467_v7  ;;  %v17383_v7 = vld [vmem:[#allocation8 + $0xa54] ss:$12 sps:$4 sm:$0xff]  }
 0x1cc   :  { %12088 = vmatpush1.bf16.msra.mxu0 %v17324_v50  ;;  %v368_v50 = vmul.f32 %v20002_v15, %v20002_v15 }
 0x1cd   :  { %11746 = vmatpush1.bf16.msra.mxu1 %v17327_v52  ;;  %12089 = vmatprep.subr.bf16.mxu0 %v17332_v48  ;;  %v17342_v52 = vld [vmem:[#allocation8 + $0x15a8] ss:$12 sps:$4 sm:$0xff]   ;;  %v288_v17 = vmul.f32 %v20055_v23, %v20055_v23 }
 0x1ce   :  { %11747 = vmatprep.subr.bf16.mxu1 %v17335_v8  ;;  %v302_v8 = vmul.f32 %v19999_v30, %v19999_v30  ;;  %v20028_v48 = vld [vmem:[#allocation6 + $0x78] sm:$0xff] }
 0x1d0   :  { %12090 = vmatpush1.bf16.msra.mxu0 %v17330_v49  ;;  %v20031_v49 = vunpack.c.l.bf16 %v19878_v56  ;;  %v17351_v56 = vld [vmem:[#allocation8 + $0x9d8] ss:$12 sps:$4 sm:$0xff]   ;;  %v434_v34 = vadd.f32 %v368_v50, %v302_v8 }
 0x1d1   :  { %11748 = vmatpush1.bf16.msra.mxu1 %v17333_v31  ;;  %12091 = vmatprep.subr.bf16.mxu0 %v17338_v37  ;;  %v17350_v31 = vld [vmem:[#allocation8 + $0x15c4] ss:$12 sps:$4 sm:$0xff]   ;;  %v20037_v37 = vunpack.c.l.bf16 %v19880_v4  ;;  %v371_v4 = vmul.f32 %v20020_v47, %v20020_v47 }
 0x1d2   :  { %11749 = vmatprep.subr.bf16.mxu1 %v17341_v38  ;;  %v20034_v38 = vunpack.c.l.bf16 %v19900_v43  ;;  %v305_v43 = vmul.f32 %v20017_v39, %v20017_v39  ;;  %v17357_v47 = vld [vmem:[#allocation8 + $0x9f0] ss:$12 sps:$4 sm:$0xff]   ;;  %v500_v41 = vadd.f32 1e-30, %v434_v34 }
 0x1d3   :  { %20915 = vst [vmem:[#allocation130_spill] sm:$0xff] %v20037_v37  ;;  %v351_v8 = vmul.f32 %v20037_v37, %v20037_v37 }
 0x1d4   :  { %12092 = vmatpush1.bf16.msra.mxu0 %v17336_v18  ;;  %v20048_v18 = vunpack.c.l.bf16 %v19902_v28  ;;  %v20061_v28 = vunpack.c.h.bf16 %v20043_v45  ;;  %v437_v15 = vadd.f32 %v371_v4, %v305_v43  ;;  %18939 = vrsqrt.f32 %v500_v41 }
 0x1d5   :  { %11750 = vmatpush1.bf16.msra.mxu1 %v17339_v44  ;;  %v272_v44 = vmul.f32 %v20007_v29, %v20007_v29  ;;  %12093 = vmatprep.subr.bf16.mxu0 %v17344_v21  ;;  %v20058_v21 = vunpack.c.h.bf16 %v20028_v48  ;;  %v20082_v41 = vpop.eup %18937 }
 0x1d6   :  { %11751 = vmatprep.subr.bf16.mxu1 %v17347_v55  ;;  %v20045_v55 = vld [vmem:[#allocation6 + $0xfc] sm:$0xff]  ;;  %20916 = vst [vmem:[#allocation131_spill] sm:$0xff] %v20048_v18  ;;  %v384_v26 = vmul.f32 %v20048_v18, %v20048_v18  ;;  %v321_v40 = vmul.f32 %v20061_v28, %v20061_v28  ;;  %v17360_v18 = vld [vmem:[#allocation8 + $0x15f0] ss:$12 sps:$4 sm:$0xff]  }
 0x1d7   :  { %20917 = vst [vmem:[#allocation132_spill] sm:$0xff] %v20058_v21  ;;  %v20064_v63 = vunpack.c.h.bf16 %v20045_v55  ;;  %v404_v50 = vadd.f32 %v338_v19, %v272_v44  ;;  %v354_v37 = vmul.f32 %v20058_v21, %v20058_v21  ;;  %v17362_v19 = vld [vmem:[#allocation8 + $0x15f4] ss:$12 sps:$4 sm:$0xff]  }
 0x1d8   :  { %12094 = vmatpush1.bf16.msra.mxu0 %v17342_v52  ;;  %v17354_v52 = vld [vmem:[#allocation8 + $0x15d8] ss:$12 sps:$4 sm:$0xff]   ;;  %v17363_v44 = vld [vmem:[#allocation8 + $0xa08] ss:$12 sps:$4 sm:$0xff]  }
 0x1d9   :  { %11752 = vmatpush1.bf16.msra.mxu1 %v17345_v59  ;;  %v285_v59 = vmul.f32 %v20031_v49, %v20031_v49  ;;  %12095 = vmatprep.subr.bf16.mxu0 %v17350_v31  ;;  %v387_v31 = vmul.f32 %v20064_v63, %v20064_v63  ;;  %v470_v4 = vadd.f32 1e-30, %v404_v50  ;;  %v420_v21 = vadd.f32 %v354_v37, %v288_v17  ;;  %v17374_v17 = vld [vmem:[#allocation8 + $0x1624] ss:$12 sps:$4 sm:$0xff]   ;;  %v17372_v37 = vld [vmem:[#allocation8 + $0x1620] ss:$12 sps:$4 sm:$0xff]  }
 0x1da   :  { %11753 = vmatprep.subr.bf16.mxu1 %v17353_v42  ;;  %v318_v42 = vmul.f32 %v20034_v38, %v20034_v38  ;;  %v17387_v50 = vld [vmem:[#allocation8 + $0xa68] ss:$12 sps:$4 sm:$0xff]  }
 0x1db   :  { %v417_v43 = vadd.f32 %v351_v8, %v285_v59  ;;  %v453_v62 = vadd.f32 %v387_v31, %v321_v40  ;;  %18941 = vrsqrt.f32 %v470_v4  ;;  %v17386_v8 = vld [vmem:[#allocation8 + $0x1654] ss:$12 sps:$4 sm:$0xff]   ;;  %v17395_v40 = vld [vmem:[#allocation8 + $0xa84] ss:$12 sps:$4 sm:$0xff]  }
 0x1dc   :  { %12096 = vmatpush1.bf16.msra.mxu0 %v17348_v24  ;;  %v450_v34 = vadd.f32 %v384_v26, %v318_v42  ;;  %v17377_v24 = vld [vmem:[#allocation8 + $0xa3c] ss:$12 sps:$4 sm:$0xff]   ;;  %v486_v26 = vadd.f32 1e-30, %v420_v21  ;;  %v599_v42 = vmul.f32 %v20082_v41, %v19991_v46 }
 0x1dd   :  { %11754 = vmatpush1.bf16.msra.mxu1 %v17351_v56  ;;  %12097 = vmatprep.subr.bf16.mxu0 %v17356_v11  ;;  %v503_v56 = vadd.f32 1e-30, %v437_v15  ;;  %v483_v61 = vadd.f32 1e-30, %v417_v43  ;;  %v519_v15 = vadd.f32 1e-30, %v453_v62 }
 0x1de   :  { %11755 = vmatprep.subr.bf16.mxu1 %v17359_v27  ;;  %v17368_v27 = vld [vmem:[#allocation8 + $0x160c] ss:$12 sps:$4 sm:$0xff]   ;;  %v516_v59 = vadd.f32 1e-30, %v450_v34  ;;  %v17380_v11 = vld [vmem:[#allocation8 + $0x163c] ss:$12 sps:$4 sm:$0xff]   ;;  %v20084_v21 = vpop.eup %18939 }
 0x1df   :  { %18943 = vrsqrt.f32 %v503_v56  ;;  %v17384_v46 = vld [vmem:[#allocation8 + $0x1650] ss:$12 sps:$4 sm:$0xff]   ;;  %v17392_v34 = vld [vmem:[#allocation8 + $0x166c] ss:$12 sps:$4 sm:$0xff]  }
 0x1e0   :  { %12098 = vmatpush1.bf16.msra.mxu0 %v17354_v52  ;;  %18945 = vrsqrt.f32 %v483_v61  ;;  %v17389_v61 = vld [vmem:[#allocation8 + $0xa6c] ss:$12 sps:$4 sm:$0xff]   ;;  %v632_v52 = vmul.f32 %v20084_v21, %v19999_v30 }
 0x1e1   :  { %11756 = vmatpush1.bf16.msra.mxu1 %v17357_v47  ;;  %12099 = vmatprep.subr.bf16.mxu0 %v17362_v19  ;;  %v17366_v47 = vld [vmem:[#allocation8 + $0x1608] ss:$12 sps:$4 sm:$0xff]   ;;  %18947 = vrsqrt.f32 %v516_v59  ;;  %v17393_v30 = vld [vmem:[#allocation8 + $0xa80] ss:$12 sps:$4 sm:$0xff]  }
 0x1e2   :  { %11757 = vmatprep.subr.bf16.mxu1 %v17365_v54  ;;  %v17375_v54 = vld [vmem:[#allocation8 + $0xa38] ss:$12 sps:$4 sm:$0xff]   ;;  %18949 = vrsqrt.f32 %v486_v26  ;;  %v17390_v26 = vld [vmem:[#allocation8 + $0x1668] ss:$12 sps:$4 sm:$0xff]  }
 0x1e3   :  { %18951 = vrsqrt.f32 %v519_v15  ;;  %v17398_v15 = vld [vmem:[#allocation8 + $0x1684] ss:$12 sps:$4 sm:$0xff]  }
 0x1e4   :  { %12100 = vmatpush1.bf16.msra.mxu0 %v17360_v18 }
 0x1e5   :  { %11758 = vmatpush1.bf16.msra.mxu1 %v17363_v44  ;;  %12101 = vmatprep.subr.bf16.mxu0 %v17368_v27  ;;  %v20086_v62 = vpop.eup %18941  ;;  %v20106_v27 = vpack.c.bf16 %v632_v52, %v599_v42  ;;  %v17416_v42 = vld [vmem:[#allocation8 + $0x16cc] ss:$12 sps:$4 sm:$0xff]  }
 0x1e6   :  { %11759 = vmatprep.subr.bf16.mxu1 %v17371_v33  ;;  %v17381_v33 = vld [vmem:[#allocation8 + $0xa50] ss:$12 sps:$4 sm:$0xff]   ;;  %v602_v31 = vmul.f32 %v20086_v62, %v20007_v29  ;;  %v17417_v52 = vld [vmem:[#allocation8 + $0xae0] ss:$12 sps:$4 sm:$0xff]  }
 0x1e8   :  { %12102 = vmatpush1.bf16.msra.mxu0 %v17366_v47 }
 0x1e9   :  { %11760 = vmatpush1.bf16.msra.mxu1 %v17369_v9  ;;  %12103 = vmatprep.subr.bf16.mxu0 %v17374_v17  ;;  %v20088_v18 = vpop.eup %18943  ;;  %v17378_v9 = vld [vmem:[#allocation8 + $0x1638] ss:$12 sps:$4 sm:$0xff]  }
 0x1ea   :  { %11761 = vmatprep.subr.bf16.mxu1 %v17377_v24  ;;  %v20094_v19 = vpop.eup %18945  ;;  %v635_v44 = vmul.f32 %v20088_v18, %v20017_v39  ;;  %v17401_v24 = vld [vmem:[#allocation8 + $0xa9c] ss:$12 sps:$4 sm:$0xff]  }
 0x1eb   :  { %v20100_v43 = vpop.eup %18947  ;;  %v615_v39 = vmul.f32 %v20094_v19, %v20031_v49 }
 0x1ec   :  { %12104 = vmatpush1.bf16.msra.mxu0 %v17372_v37  ;;  %v20102_v4 = vpop.eup %18949  ;;  %v20108_v29 = vpack.c.bf16 %v635_v44, %v602_v31  ;;  %v648_v59 = vmul.f32 %v20100_v43, %v20034_v38  ;;  %v17396_v38 = vld [vmem:[#allocation8 + $0x1680] ss:$12 sps:$4 sm:$0xff]   ;;  %v17404_v37 = vld [vmem:[#allocation8 + $0x169c] ss:$12 sps:$4 sm:$0xff]   ;;  %v17422_v44 = vld [vmem:[#allocation8 + $0x16e4] ss:$12 sps:$4 sm:$0xff]  }
 0x1ed   :  { %11762 = vmatpush1.bf16.msra.mxu1 %v17375_v54  ;;  %12105 = vmatprep.subr.bf16.mxu0 %v17380_v11  ;;  %v20104_v56 = vpop.eup %18951  ;;  %v618_v47 = vmul.f32 %v20102_v4, %v20055_v23  ;;  %v17399_v54 = vld [vmem:[#allocation8 + $0xa98] ss:$12 sps:$4 sm:$0xff]   ;;  %v17405_v23 = vld [vmem:[#allocation8 + $0xab0] ss:$12 sps:$4 sm:$0xff]   ;;  %v17414_v31 = vld [vmem:[#allocation8 + $0x16c8] ss:$12 sps:$4 sm:$0xff]  }
 0x1ee   :  { %11763 = vmatprep.subr.bf16.mxu1 %v17383_v7  ;;  %v651_v17 = vmul.f32 %v20104_v56, %v20061_v28  ;;  %v17407_v7 = vld [vmem:[#allocation8 + $0xab4] ss:$12 sps:$4 sm:$0xff]   ;;  %v20120_v49 = vpack.c.bf16 %v648_v59, %v615_v39  ;;  %v17413_v28 = vld [vmem:[#allocation8 + $0xacc] ss:$12 sps:$4 sm:$0xff]   ;;  %v17429_v39 = vld [vmem:[#allocation8 + $0xb10] ss:$12 sps:$4 sm:$0xff]  }
 0x1ef   :  { %v17437_v59 = vld [vmem:[#allocation8 + $0xb2c] ss:$12 sps:$4 sm:$0xff]  }
 0x1f0   :  { %12106 = vmatpush1.bf16.msra.mxu0 %v17378_v9  ;;  %v20122_v11 = vpack.c.bf16 %v651_v17, %v618_v47  ;;  %v17411_v9 = vld [vmem:[#allocation8 + $0xac8] ss:$12 sps:$4 sm:$0xff]   ;;  %v17443_v17 = vld [vmem:[#allocation8 + $0xb44] ss:$12 sps:$4 sm:$0xff]  }
 0x1f1   :  { %11764 = vmatpush1.bf16.msra.mxu1 %v17381_v33  ;;  %12107 = vmatprep.subr.bf16.mxu0 %v17386_v8  ;;  %v17402_v33 = vld [vmem:[#allocation8 + $0x1698] ss:$12 sps:$4 sm:$0xff]   ;;  %v17435_v47 = vld [vmem:[#allocation8 + $0xb28] ss:$12 sps:$4 sm:$0xff]  }
 0x1f2   :  { %11765 = vmatprep.subr.bf16.mxu1 %v17389_v61  ;;  %v17410_v61 = vld [vmem:[#allocation8 + $0x16b4] ss:$12 sps:$4 sm:$0xff]   ;;  %v17419_v8 = vld [vmem:[#allocation8 + $0xae4] ss:$12 sps:$4 sm:$0xff]  }
 0x1f4   :  { %12108 = vmatpush1.bf16.msra.mxu0 %v17384_v46  ;;  %v17423_v46 = vld [vmem:[#allocation8 + $0xaf8] ss:$12 sps:$4 sm:$0xff]  }
 0x1f5   :  { %11766 = vmatpush1.bf16.msra.mxu1 %v17387_v50  ;;  %12109 = vmatprep.subr.bf16.mxu0 %v17392_v34  ;;  %v17408_v50 = vld [vmem:[#allocation8 + $0x16b0] ss:$12 sps:$4 sm:$0xff]   ;;  %v17431_v34 = vld [vmem:[#allocation8 + $0xb14] ss:$12 sps:$4 sm:$0xff]  }
 0x1f6   :  { %11778 = vmatprep.subr.bf16.mxu1 %v17395_v40  ;;  %v17425_v40 = vld [vmem:[#allocation8 + $0xafc] ss:$12 sps:$4 sm:$0xff]  }
 0x1f8   :  { %11768 = vmatmul.mubr.bf16.vlgmr.msra.gmra.mrb[0].mxu1 %v20106_v27  ;;  %12110 = vmatpush1.bf16.msra.mxu0 %v17390_v26  ;;  %v17426_v26 = vld [vmem:[#allocation8 + $0x16f8] ss:$12 sps:$4 sm:$0xff]  }
 0x1f9   :  { %11779 = vmatpush1.bf16.msra.mxu1 %v17393_v30  ;;  %11810 = vmatprep.mubr.bf16.mxu1 %v20108_v29  ;;  %v17420_v30 = vld [vmem:[#allocation8 + $0x16e0] ss:$12 sps:$4 sm:$0xff]  }
 0x1fa   :  { %11780 = vmatprep.subr.bf16.mxu1 %v17401_v24  ;;  %12122 = vmatprep.subr.bf16.mxu0 %v17398_v15  ;;  %v17428_v24 = vld [vmem:[#allocation8 + $0x16fc] ss:$12 sps:$4 sm:$0xff]   ;;  %v17434_v15 = vld [vmem:[#allocation8 + $0x1714] ss:$12 sps:$4 sm:$0xff]  }
 0x1fb   :  { %12112 = vmatmul.mubr.bf16.vlgmr.msra.gmra.mrb[0].mxu0 %v20120_v49 }
 0x1fc   :  { %12123 = vmatpush1.bf16.msra.mxu0 %v17396_v38  ;;  %12154 = vmatprep.mubr.bf16.mxu0 %v20122_v11  ;;  %v17432_v38 = vld [vmem:[#allocation8 + $0x1710] ss:$12 sps:$4 sm:$0xff]  }
 0x1fd   :  { %11781 = vmatpush1.bf16.msra.mxu1 %v17399_v54  ;;  %12124 = vmatprep.subr.bf16.mxu0 %v17404_v37  ;;  %v20127_v54 = vunpack.c.l.bf16 %v19986_v25  ;;  %v17440_v37 = vld [vmem:[#allocation8 + $0x172c] ss:$12 sps:$4 sm:$0xff]  }
 0x1fe   :  { %11782 = vmatprep.subr.bf16.mxu1 %v17407_v7  ;;  %v20130_v7 = vunpack.c.l.bf16 %v19996_v6 }
 0x1ff   :  { %v271_v25 = vmul.f32 %v20127_v54, %v20127_v54 }
 0x200   :  { %12125 = vmatpush1.bf16.msra.mxu0 %v17402_v33  ;;  %v17441_v33 = vld [vmem:[#allocation8 + $0xb40] ss:$12 sps:$4 sm:$0xff]   ;;  %v337_v6 = vmul.f32 %v20130_v7, %v20130_v7 }
 0x201   :  { %11783 = vmatpush1.bf16.msra.mxu1 %v17405_v23  ;;  %12126 = vmatprep.subr.bf16.mxu0 %v17410_v61  ;;  %v20133_v23 = vunpack.c.l.bf16 %v19988_v1  ;;  %v17449_v61 = vld [vmem:[#allocation8 + $0xb5c] ss:$12 sps:$4 sm:$0xff]  }
 0x202   :  { %11784 = vmatprep.subr.bf16.mxu1 %v17413_v28  ;;  %v20136_v28 = vunpack.c.l.bf16 %v20004_v51 }
 0x203   :  { %v304_v1 = vmul.f32 %v20133_v23, %v20133_v23 }
 0x204   :  { %12127 = vmatpush1.bf16.msra.mxu0 %v17408_v50  ;;  %v370_v51 = vmul.f32 %v20136_v28, %v20136_v28  ;;  %v17447_v50 = vld [vmem:[#allocation8 + $0xb58] ss:$12 sps:$4 sm:$0xff]  }
 0x205   :  { %11785 = vmatpush1.bf16.msra.mxu1 %v17411_v9  ;;  %12128 = vmatprep.subr.bf16.mxu0 %v17416_v42  ;;  %v17438_v9 = vld [vmem:[#allocation8 + $0x1728] ss:$12 sps:$4 sm:$0xff]   ;;  %v20147_v42 = vunpack.c.l.bf16 %v20022_v14  ;;  %v17453_v14 = vld [vmem:[#allocation8 + $0xb70] ss:$12 sps:$4 sm:$0xff]  }
 0x206   :  { %11786 = vmatprep.subr.bf16.mxu1 %v17419_v8  ;;  %v17446_v8 = vld [vmem:[#allocation8 + $0x1744] ss:$12 sps:$4 sm:$0xff]  }
 0x208   :  { %12129 = vmatpush1.bf16.msra.mxu0 %v17414_v31  ;;  %v20153_v31 = vunpack.c.l.bf16 %v20043_v45  ;;  %v17461_v45 = vld [vmem:[#allocation8 + $0xb8c] ss:$12 sps:$4 sm:$0xff]  }
 0x209   :  { %11787 = vmatpush1.bf16.msra.mxu1 %v17417_v52  ;;  %12130 = vmatprep.subr.bf16.mxu0 %v17422_v44  ;;  %v20150_v52 = vunpack.c.l.bf16 %v20028_v48  ;;  %v20156_v44 = vunpack.c.l.bf16 %v20045_v55  ;;  %v287_v48 = vmul.f32 %v20147_v42, %v20147_v42 }
 0x20a   :  { %11788 = vmatprep.subr.bf16.mxu1 %v17425_v40  ;;  %v17455_v40 = vld [vmem:[#allocation8 + $0xb74] ss:$12 sps:$4 sm:$0xff]   ;;  %v320_v55 = vmul.f32 %v20153_v31, %v20153_v31 }
 0x20c   :  { %12131 = vmatpush1.bf16.msra.mxu0 %v17420_v30  ;;  %v17452_v30 = vld [vmem:[#allocation8 + $0x175c] ss:$12 sps:$4 sm:$0xff]  }
 0x20d   :  { %11789 = vmatpush1.bf16.msra.mxu1 %v17423_v46  ;;  %12132 = vmatprep.subr.bf16.mxu0 %v17428_v24  ;;  %v403_v46 = vadd.f32 %v337_v6, %v271_v25  ;;  %v436_v24 = vadd.f32 %v370_v51, %v304_v1  ;;  %v17464_v6 = vld [vmem:[#allocation8 + $0x178c] ss:$12 sps:$4 sm:$0xff]  }
 0x20e   :  { %11790 = vmatprep.subr.bf16.mxu1 %v17431_v34  ;;  %v17444_v34 = vld [vmem:[#allocation8 + $0x1740] ss:$12 sps:$4 sm:$0xff]  }
 0x210   :  { %12133 = vmatpush1.bf16.msra.mxu0 %v17426_v26  ;;  %v386_v26 = vmul.f32 %v20156_v44, %v20156_v44 }
 0x211   :  { %11791 = vmatpush1.bf16.msra.mxu1 %v17429_v39  ;;  %12134 = vmatprep.subr.bf16.mxu0 %v17434_v15  ;;  %v353_v39 = vmul.f32 %v20150_v52, %v20150_v52  ;;  %v469_v15 = vadd.f32 1e-30, %v403_v46  ;;  %v17471_v46 = vld [vmem:[#allocation8 + $0xbb8] ss:$12 sps:$4 sm:$0xff]  }
 0x212   :  { %11792 = vmatprep.subr.bf16.mxu1 %v17437_v59  ;;  %v17450_v59 = vld [vmem:[#allocation8 + $0x1758] ss:$12 sps:$4 sm:$0xff]   ;;  %v452_v25 = vadd.f32 %v386_v26, %v320_v55  ;;  %v17482_v55 = vld [vmem:[#allocation8 + $0x17d4] ss:$12 sps:$4 sm:$0xff]  }
 0x213   :  { %18953 = vrsqrt.f32 %v469_v15  ;;  %v17483_v26 = vld [vmem:[#allocation8 + $0xbe8] ss:$12 sps:$4 sm:$0xff]  }
 0x214   :  { %12135 = vmatpush1.bf16.msra.mxu0 %v17432_v38  ;;  %v17459_v38 = vld [vmem:[#allocation8 + $0xb88] ss:$12 sps:$4 sm:$0xff]   ;;  %v518_v51 = vadd.f32 1e-30, %v452_v25 }
 0x215   :  { %11793 = vmatpush1.bf16.msra.mxu1 %v17435_v47  ;;  %12136 = vmatprep.subr.bf16.mxu0 %v17440_v37  ;;  %v17458_v47 = vld [vmem:[#allocation8 + $0x1774] ss:$12 sps:$4 sm:$0xff]   ;;  %v419_v37 = vadd.f32 %v353_v39, %v287_v48  ;;  %v17477_v48 = vld [vmem:[#allocation8 + $0xbd0] ss:$12 sps:$4 sm:$0xff]  }
 0x216   :  { %11794 = vmatprep.subr.bf16.mxu1 %v17443_v17  ;;  %v502_v17 = vadd.f32 1e-30, %v436_v24  ;;  %v17476_v24 = vld [vmem:[#allocation8 + $0x17bc] ss:$12 sps:$4 sm:$0xff]  }
 0x217   :  { %v485_v1 = vadd.f32 1e-30, %v419_v37 }
 0x218   :  { %12137 = vmatpush1.bf16.msra.mxu0 %v17438_v9  ;;  %v17465_v9 = vld [vmem:[#allocation8 + $0xba0] ss:$12 sps:$4 sm:$0xff]   ;;  %18955 = vrsqrt.f32 %v502_v17  ;;  %v17492_v17 = vld [vmem:[#allocation8 + $0xc8] ss:$12 sps:$4 sm:$0xff]  }
 0x219   :  { %11795 = vmatpush1.bf16.msra.mxu1 %v17441_v33  ;;  %12138 = vmatprep.subr.bf16.mxu0 %v17446_v8  ;;  %v17456_v33 = vld [vmem:[#allocation8 + $0x1770] ss:$12 sps:$4 sm:$0xff]   ;;  %18957 = vrsqrt.f32 %v485_v1 }
 0x21a   :  { %11796 = vmatprep.subr.bf16.mxu1 %v17449_v61  ;;  %v17467_v61 = vld [vmem:[#allocation8 + $0xba4] ss:$12 sps:$4 sm:$0xff]   ;;  %v17473_v8 = vld [vmem:[#allocation8 + $0xbbc] ss:$12 sps:$4 sm:$0xff]   ;;  %18959 = vrsqrt.f32 %v518_v51  ;;  %v719_v51 = vmul.f32 %v19196_v2, %v19140_v57 }
 0x21b   :  { %v17491_v1 = vld [vmem:[#allocation8 + $0x1804] ss:$12 sps:$4 sm:$0xff]  }
 0x21c   :  { %12139 = vmatpush1.bf16.msra.mxu0 %v17444_v34  ;;  %v17479_v34 = vld [vmem:[#allocation8 + $0xbd4] ss:$12 sps:$4 sm:$0xff]   ;;  %v17503_v57 = vld [vmem:[#allocation8 + $0x38] ss:$12 sps:$4 sm:$0xff]  }
 0x21d   :  { %11797 = vmatpush1.bf16.msra.mxu1 %v17447_v50  ;;  %12140 = vmatprep.subr.bf16.mxu0 %v17452_v30  ;;  %v17462_v50 = vld [vmem:[#allocation8 + $0x1788] ss:$12 sps:$4 sm:$0xff]   ;;  %v17468_v30 = vld [vmem:[#allocation8 + $0x17a0] ss:$12 sps:$4 sm:$0xff]   ;;  %v17494_v2 = vld [vmem:[#allocation8 + $0x1818] ss:$12 sps:$4 sm:$0xff]  }
 0x21e   :  { %11798 = vmatprep.subr.bf16.mxu1 %v17455_v40  ;;  %v17470_v40 = vld [vmem:[#allocation8 + $0x17a4] ss:$12 sps:$4 sm:$0xff]  }
 0x220   :  { %12141 = vmatpush1.bf16.msra.mxu0 %v17450_v59  ;;  %v17485_v59 = vld [vmem:[#allocation8 + $0xbec] ss:$12 sps:$4 sm:$0xff]  }
 0x221   :  { %11799 = vmatpush1.bf16.msra.mxu1 %v17453_v14  ;;  %12142 = vmatprep.subr.bf16.mxu0 %v17458_v47  ;;  %v20166_v14 = vpop.eup %18953 }
 0x222   :  { %11800 = vmatprep.subr.bf16.mxu1 %v17461_v45  ;;  %v20168_v39 = vpop.eup %18955  ;;  %v17474_v45 = vld [vmem:[#allocation8 + $0x17b8] ss:$12 sps:$4 sm:$0xff]   ;;  %v601_v15 = vmul.f32 %v20166_v14, %v20127_v54 }
 0x223   :  { %v634_v47 = vmul.f32 %v20168_v39, %v20133_v23 }
 0x224   :  { %12143 = vmatpush1.bf16.msra.mxu0 %v17456_v33  ;;  %v17480_v33 = vld [vmem:[#allocation8 + $0x17d0] ss:$12 sps:$4 sm:$0xff]  }
 0x225   :  { %11801 = vmatpush1.bf16.msra.mxu1 %v17459_v38  ;;  %12144 = vmatprep.subr.bf16.mxu0 %v17464_v6  ;;  %v20174_v38 = vpop.eup %18957  ;;  %v20178_v25 = vpack.c.bf16 %v634_v47, %v601_v15  ;;  %v17493_v6 = vld [vmem:[#allocation8 + $0x8] ss:$12 sps:$4 sm:$0xff]   ;;  %v17511_v15 = vld [vmem:[#allocation8 + $0x1864] ss:$12 sps:$4 sm:$0xff]   ;;  %v17518_v47 = vld [vmem:[#allocation8 + $0x80] ss:$12 sps:$4 sm:$0xff]  }
 0x226   :  { %11802 = vmatprep.subr.bf16.mxu1 %v17467_v61  ;;  %v20176_v37 = vpop.eup %18959  ;;  %v17488_v61 = vld [vmem:[#allocation8 + $0x17ec] ss:$12 sps:$4 sm:$0xff]   ;;  %v617_v54 = vmul.f32 %v20174_v38, %v20147_v42 }
 0x227   :  { %v650_v23 = vmul.f32 %v20176_v37, %v20153_v31  ;;  %v17489_v31 = vld [vmem:[#allocation8 + $0x1800] ss:$12 sps:$4 sm:$0xff]  }
 0x228   :  { %12145 = vmatpush1.bf16.msra.mxu0 %v17462_v50  ;;  %v752_v50 = vmul.f32 %v19202_v5, %v19144_v60  ;;  %v17507_v60 = vld [vmem:[#allocation8 + $0x110] ss:$12 sps:$4 sm:$0xff]   ;;  %v17501_v5 = vld [vmem:[#allocation8 + $0x1834] ss:$12 sps:$4 sm:$0xff]  }
 0x229   :  { %11803 = vmatpush1.bf16.msra.mxu1 %v17465_v9  ;;  %12146 = vmatprep.subr.bf16.mxu0 %v17470_v40  ;;  %v17497_v9 = vld [vmem:[#allocation8 + $0xe0] ss:$12 sps:$4 sm:$0xff]   ;;  %v20190_v42 = vpack.c.bf16 %v650_v23, %v617_v54  ;;  %v17514_v54 = vld [vmem:[#allocation8 + $0x1878] ss:$12 sps:$4 sm:$0xff]  }
 0x22a   :  { %11804 = vmatprep.subr.bf16.mxu1 %v17473_v8  ;;  %v17486_v8 = vld [vmem:[#allocation8 + $0x17e8] ss:$12 sps:$4 sm:$0xff]   ;;  %v17498_v40 = vld [vmem:[#allocation8 + $0x20] ss:$12 sps:$4 sm:$0xff]  }
 0x22b   :  { %v17521_v23 = vld [vmem:[#allocation8 + $0x1894] ss:$12 sps:$4 sm:$0xff]  }
 0x22c   :  { %12147 = vmatpush1.bf16.msra.mxu0 %v17468_v30  ;;  %v20192_v30 = vpack.c.bf16 %v752_v50, %v719_v51  ;;  %v17532_v51 = vld [vmem:[#allocation8 + $0x248] ss:$12 sps:$4 sm:$0xff]   ;;  %v17526_v50 = vld [vmem:[#allocation8 + $0x18ac] ss:$12 sps:$4 sm:$0xff]  }
 0x22d   :  { %11805 = vmatpush1.bf16.msra.mxu1 %v17471_v46  ;;  %12148 = vmatprep.subr.bf16.mxu0 %v17476_v24  ;;  %v17502_v46 = vld [vmem:[#allocation8 + $0xf8] ss:$12 sps:$4 sm:$0xff]   ;;  %v17512_v24 = vld [vmem:[#allocation8 + $0x128] ss:$12 sps:$4 sm:$0xff]  }
 0x22e   :  { %11806 = vmatprep.subr.bf16.mxu1 %v17479_v34  ;;  %v17496_v34 = vld [vmem:[#allocation8 + $0x181c] ss:$12 sps:$4 sm:$0xff]  }
 0x230   :  { %12149 = vmatpush1.bf16.msra.mxu0 %v17474_v45  ;;  %v17513_v45 = vld [vmem:[#allocation8 + $0x68] ss:$12 sps:$4 sm:$0xff]  }
 0x231   :  { %11807 = vmatpush1.bf16.msra.mxu1 %v17477_v48  ;;  %12150 = vmatprep.subr.bf16.mxu0 %v17482_v55  ;;  %v17499_v48 = vld [vmem:[#allocation8 + $0x1830] ss:$12 sps:$4 sm:$0xff]   ;;  %v17517_v55 = vld [vmem:[#allocation8 + $0x140] ss:$12 sps:$4 sm:$0xff]  }
 0x232   :  { %11808 = vmatprep.subr.bf16.mxu1 %v17485_v59  ;;  %v17506_v59 = vld [vmem:[#allocation8 + $0x184c] ss:$12 sps:$4 sm:$0xff]  }
 0x234   :  { %12151 = vmatpush1.bf16.msra.mxu0 %v17480_v33  ;;  %v17509_v33 = vld [vmem:[#allocation8 + $0x1860] ss:$12 sps:$4 sm:$0xff]  }
 0x235   :  { %11809 = vmatpush1.bf16.msra.mxu1 %v17483_v26  ;;  %12152 = vmatprep.subr.bf16.mxu0 %v17488_v61  ;;  %v17504_v26 = vld [vmem:[#allocation8 + $0x1848] ss:$12 sps:$4 sm:$0xff]  }
 0x236   :  { %15857 = vmatprep.subr.bf16.mxu1 %v17492_v17  ;;  %v17522_v17 = vld [vmem:[#allocation8 + $0x158] ss:$12 sps:$4 sm:$0xff]   ;;  %v17516_v61 = vld [vmem:[#allocation8 + $0x187c] ss:$12 sps:$4 sm:$0xff]  }
 0x238   :  { %11811 = vmatmul.mubr.bf16.vlgmr.msra.gmra.mrb[0].mxu1 %v20178_v25  ;;  %12153 = vmatpush1.bf16.msra.mxu0 %v17486_v8  ;;  %v17528_v8 = vld [vmem:[#allocation8 + $0xb0] ss:$12 sps:$4 sm:$0xff]  }
 0x239   :  { %15858 = vmatpush3.bf16.msra.mxu1 %v17493_v6  ;;  %12928 = vmatprep.mubr.bf16.mxu1 %v19216_v13  ;;  %v17508_v13 = vld [vmem:[#allocation8 + $0x50] ss:$12 sps:$4 sm:$0xff]   ;;  %v17523_v6 = vld [vmem:[#allocation8 + $0x98] ss:$12 sps:$4 sm:$0xff]  }
 0x23a   :  { %15859 = vmatprep.subr.bf16.mxu1 %v17497_v9  ;;  %12165 = vmatprep.subr.bf16.mxu0 %v17491_v1  ;;  %v17527_v9 = vld [vmem:[#allocation8 + $0x170] ss:$12 sps:$4 sm:$0xff]  }
 0x23b   :  { %12155 = vmatmul.mubr.bf16.vlgmr.msra.gmra.mrb[0].mxu0 %v20190_v42  ;;  %v17519_v1 = vld [vmem:[#allocation8 + $0x1890] ss:$12 sps:$4 sm:$0xff]  }
 0x23c   :  { %12166 = vmatpush1.bf16.msra.mxu0 %v17489_v31  ;;  %12197 = vmatprep.mubr.bf16.mxu0 %v20192_v30  ;;  %v173_v31 = vld [vmem:[#allocation6 + $0x80] ss:$132 sps:$4 sm:$0xff]  }
 0x23d   :  { %15860 = vmatpush3.bf16.msra.mxu1 %v17498_v40  ;;  %12167 = vmatprep.subr.bf16.mxu0 %v17496_v34  ;;  %v17533_v40 = vld [vmem:[#allocation8 + $0x188] ss:$12 sps:$4 sm:$0xff]   ;;  %v17537_v34 = vld [vmem:[#allocation8 + $0x260] ss:$12 sps:$4 sm:$0xff]  }
 0x23e   :  { %15861 = vmatprep.subr.bf16.mxu1 %v17502_v46  ;;  %v73_v46 = vld [vmem:[#allocation3 + $0x80] ss:$132 sps:$4 sm:$0xff]  }
 0x240   :  { %12168 = vmatpush1.bf16.msra.mxu0 %v17494_v2  ;;  %v20196_v2 = vunpack.c.l.bf16 %v73_v46 }
 0x241   :  { %15862 = vmatpush3.bf16.msra.mxu1 %v17503_v57  ;;  %12169 = vmatprep.subr.bf16.mxu0 %v17501_v5  ;;  %v17524_v57 = vld [vmem:[#allocation8 + $0x18a8] ss:$12 sps:$4 sm:$0xff]   ;;  %v20198_v5 = vunpack.c.l.bf16 %v173_v31 }
 0x242   :  { %15863 = vmatprep.subr.bf16.mxu1 %v17507_v60  ;;  %v17531_v60 = vld [vmem:[#allocation8 + $0x18c4] ss:$12 sps:$4 sm:$0xff]  }
 0x244   :  { %12170 = vmatpush1.bf16.msra.mxu0 %v17499_v48  ;;  %v20202_v48 = vunpack.c.h.bf16 %v73_v46 }
 0x245   :  { %15864 = vmatpush3.bf16.msra.mxu1 %v17508_v13  ;;  %12171 = vmatprep.subr.bf16.mxu0 %v17506_v59  ;;  %v17538_v13 = vld [vmem:[#allocation8 + $0x1a0] ss:$12 sps:$4 sm:$0xff]   ;;  %v20204_v59 = vunpack.c.h.bf16 %v173_v31  ;;  %v17544_v31 = vld [vmem:[#allocation8 + $0x1908] ss:$12 sps:$4 sm:$0xff]  }
 0x246   :  { %15865 = vmatprep.subr.bf16.mxu1 %v17512_v24  ;;  %v17542_v24 = vld [vmem:[#allocation8 + $0x278] ss:$12 sps:$4 sm:$0xff]  }
 0x248   :  { %12172 = vmatpush1.bf16.msra.mxu0 %v17504_v26  ;;  %v289_v26 = vmul.f32 %v20196_v2, %v20196_v2 }
 0x249   :  { %15866 = vmatpush3.bf16.msra.mxu1 %v17513_v45  ;;  %12173 = vmatprep.subr.bf16.mxu0 %v17511_v15  ;;  %v17529_v45 = vld [vmem:[#allocation8 + $0x18c0] ss:$12 sps:$4 sm:$0xff]   ;;  %v355_v15 = vmul.f32 %v20198_v5, %v20198_v5 }
 0x24a   :  { %15867 = vmatprep.subr.bf16.mxu1 %v17517_v55  ;;  %v17536_v55 = vld [vmem:[#allocation8 + $0x18dc] ss:$12 sps:$4 sm:$0xff]  }
 0x24c   :  { %12174 = vmatpush1.bf16.msra.mxu0 %v17509_v33  ;;  %v17534_v33 = vld [vmem:[#allocation8 + $0x18d8] ss:$12 sps:$4 sm:$0xff]  }
 0x24d   :  { %15868 = vmatpush3.bf16.msra.mxu1 %v17518_v47  ;;  %12175 = vmatprep.subr.bf16.mxu0 %v17516_v61  ;;  %v17547_v47 = vld [vmem:[#allocation8 + $0x290] ss:$12 sps:$4 sm:$0xff]   ;;  %v17541_v61 = vld [vmem:[#allocation8 + $0x18f4] ss:$12 sps:$4 sm:$0xff]  }
 0x24e   :  { %15869 = vmatprep.subr.bf16.mxu1 %v17522_v17  ;;  %v388_v17 = vmul.f32 %v20204_v59, %v20204_v59 }
 0x250   :  { %12176 = vmatpush1.bf16.msra.mxu0 %v17514_v54  ;;  %v17539_v54 = vld [vmem:[#allocation8 + $0x18f0] ss:$12 sps:$4 sm:$0xff]  }
 0x251   :  { %15870 = vmatpush3.bf16.msra.mxu1 %v17523_v6  ;;  %12177 = vmatprep.subr.bf16.mxu0 %v17521_v23  ;;  %v421_v6 = vadd.f32 %v355_v15, %v289_v26  ;;  %v17552_v23 = vld [vmem:[#allocation8 + $0x2a8] ss:$12 sps:$4 sm:$0xff]   ;;  %v17554_v26 = vld [vmem:[#allocation8 + $0x1938] ss:$12 sps:$4 sm:$0xff]  }
 0x252   :  { %15871 = vmatprep.subr.bf16.mxu1 %v17527_v9  ;;  %v17548_v9 = vld [vmem:[#allocation8 + $0x1d0] ss:$12 sps:$4 sm:$0xff]   ;;  %v17561_v15 = vld [vmem:[#allocation8 + $0x1954] ss:$12 sps:$4 sm:$0xff]  }
 0x254   :  { %12178 = vmatpush1.bf16.msra.mxu0 %v17519_v1  ;;  %v17546_v1 = vld [vmem:[#allocation8 + $0x190c] ss:$12 sps:$4 sm:$0xff]  }
 0x255   :  { %15872 = vmatpush3.bf16.msra.mxu1 %v17528_v8  ;;  %12179 = vmatprep.subr.bf16.mxu0 %v17526_v50  ;;  %v487_v50 = vadd.f32 1e-30, %v421_v6  ;;  %v17573_v6 = vld [vmem:[#allocation8 + $0x308] ss:$12 sps:$4 sm:$0xff]  }
 0x256   :  { %15879 = vmatprep.subr.bf16.mxu1 %v17532_v51  ;;  %v17553_v51 = vld [vmem:[#allocation8 + $0x1e8] ss:$12 sps:$4 sm:$0xff]  }
 0x257   :  { %18961 = vrsqrt.f32 %v487_v50  ;;  %v754_v50 = vmul.f32 %v19327_v36, %v19270_v32  ;;  %v17587_v32 = vld [vmem:[#allocation8 + $0x410] ss:$12 sps:$4 sm:$0xff]   ;;  %v17581_v36 = vld [vmem:[#allocation8 + $0x19b4] ss:$12 sps:$4 sm:$0xff]  }
 0x258   :  { %12929 = vmatmul.mubr.bf16.vlgmr.msra.gmra.mrb[4].mxu1 %v19212_v10  ;;  %12180 = vmatpush1.bf16.msra.mxu0 %v17524_v57  ;;  %v17543_v10 = vld [vmem:[#allocation8 + $0x1b8] ss:$12 sps:$4 sm:$0xff]   ;;  %v17558_v57 = vld [vmem:[#allocation8 + $0x200] ss:$12 sps:$4 sm:$0xff]  }
 0x259   :  { %15880 = vmatpush3.bf16.msra.mxu1 %v17533_v40  ;;  %12969 = vmatprep.mubr.bf16.mxu1 %v19312_v20  ;;  %v322_v20 = vmul.f32 %v20202_v48, %v20202_v48  ;;  %v17557_v40 = vld [vmem:[#allocation8 + $0x2c0] ss:$12 sps:$4 sm:$0xff]  }
 0x25a   :  { %15881 = vmatprep.subr.bf16.mxu1 %v17537_v34  ;;  %12181 = vmatprep.subr.bf16.mxu0 %v17531_v60  ;;  %v17551_v34 = vld [vmem:[#allocation8 + $0x1924] ss:$12 sps:$4 sm:$0xff]  }
 0x25b   :  { %v454_v8 = vadd.f32 %v388_v17, %v322_v20  ;;  %v17562_v60 = vld [vmem:[#allocation8 + $0x2d8] ss:$12 sps:$4 sm:$0xff]  }
 0x25c   :  { %12182 = vmatpush1.bf16.msra.mxu0 %v17529_v45  ;;  %v17563_v45 = vld [vmem:[#allocation8 + $0x218] ss:$12 sps:$4 sm:$0xff]  }
 0x25d   :  { %15882 = vmatpush3.bf16.msra.mxu1 %v17538_v13  ;;  %12183 = vmatprep.subr.bf16.mxu0 %v17536_v55  ;;  %v520_v46 = vadd.f32 1e-30, %v454_v8  ;;  %v17549_v13 = vld [vmem:[#allocation8 + $0x1920] ss:$12 sps:$4 sm:$0xff]   ;;  %v17567_v55 = vld [vmem:[#allocation8 + $0x2f0] ss:$12 sps:$4 sm:$0xff]  }
 0x25e   :  { %15883 = vmatprep.subr.bf16.mxu1 %v17542_v24  ;;  %v17556_v24 = vld [vmem:[#allocation8 + $0x193c] ss:$12 sps:$4 sm:$0xff]  }
 0x25f   :  { %18963 = vrsqrt.f32 %v520_v46  ;;  %v17564_v8 = vld [vmem:[#allocation8 + $0x1968] ss:$12 sps:$4 sm:$0xff]   ;;  %v17582_v46 = vld [vmem:[#allocation8 + $0x3f8] ss:$12 sps:$4 sm:$0xff]  }
 0x260   :  { %12184 = vmatpush1.bf16.msra.mxu0 %v17534_v33  ;;  %v17559_v33 = vld [vmem:[#allocation8 + $0x1950] ss:$12 sps:$4 sm:$0xff]  }
 0x261   :  { %15884 = vmatpush3.bf16.msra.mxu1 %v17543_v10  ;;  %12185 = vmatprep.subr.bf16.mxu0 %v17541_v61  ;;  %v17568_v10 = vld [vmem:[#allocation8 + $0x230] ss:$12 sps:$4 sm:$0xff]   ;;  %v20214_v20 = vpop.eup %18961  ;;  %v17566_v61 = vld [vmem:[#allocation8 + $0x196c] ss:$12 sps:$4 sm:$0xff]  }
 0x262   :  { %15885 = vmatprep.subr.bf16.mxu1 %v17547_v47  ;;  %v17572_v47 = vld [vmem:[#allocation8 + $0x3c8] ss:$12 sps:$4 sm:$0xff]  }
 0x264   :  { %12186 = vmatpush1.bf16.msra.mxu0 %v17539_v54  ;;  %v619_v54 = vmul.f32 %v20214_v20, %v20196_v2 }
 0x265   :  { %15886 = vmatpush3.bf16.msra.mxu1 %v17548_v9  ;;  %12187 = vmatprep.subr.bf16.mxu0 %v17546_v1  ;;  %v17577_v9 = vld [vmem:[#allocation8 + $0x3e0] ss:$12 sps:$4 sm:$0xff]   ;;  %v17571_v1 = vld [vmem:[#allocation8 + $0x1984] ss:$12 sps:$4 sm:$0xff]  }
 0x266   :  { %15887 = vmatprep.subr.bf16.mxu1 %v17552_v23 }
 0x268   :  { %12188 = vmatpush1.bf16.msra.mxu0 %v17544_v31  ;;  %v17576_v31 = vld [vmem:[#allocation8 + $0x199c] ss:$12 sps:$4 sm:$0xff]  }
 0x269   :  { %15888 = vmatpush3.bf16.msra.mxu1 %v17553_v51  ;;  %12189 = vmatprep.subr.bf16.mxu0 %v17551_v34  ;;  %v20216_v17 = vpop.eup %18963  ;;  %v721_v51 = vmul.f32 %v19325_v35, %v19262_v12  ;;  %v17583_v12 = vld [vmem:[#allocation8 + $0x338] ss:$12 sps:$4 sm:$0xff]  }
 0x26a   :  { %15889 = vmatprep.subr.bf16.mxu1 %v17557_v40  ;;  %v652_v23 = vmul.f32 %v20216_v17, %v20202_v48  ;;  %v17578_v40 = vld [vmem:[#allocation8 + $0x320] ss:$12 sps:$4 sm:$0xff]   ;;  %v17574_v35 = vld [vmem:[#allocation8 + $0x1998] ss:$12 sps:$4 sm:$0xff]  }
 0x26b   :  { %v17569_v48 = vld [vmem:[#allocation8 + $0x1980] ss:$12 sps:$4 sm:$0xff]   ;;  %v20230_v34 = vpack.c.bf16 %v754_v50, %v721_v51  ;;  %v17613_v51 = vld [vmem:[#allocation8 + $0x488] ss:$12 sps:$4 sm:$0xff]  }
 0x26c   :  { %12190 = vmatpush1.bf16.msra.mxu0 %v17549_v13  ;;  %v20228_v2 = vpack.c.bf16 %v652_v23, %v619_v54  ;;  %v17593_v13 = vld [vmem:[#allocation8 + $0x368] ss:$12 sps:$4 sm:$0xff]   ;;  %v17608_v54 = vld [vmem:[#allocation8 + $0x3b0] ss:$12 sps:$4 sm:$0xff]   ;;  %v17617_v50 = vld [vmem:[#allocation8 + $0x560] ss:$12 sps:$4 sm:$0xff]  }
 0x26d   :  { %15890 = vmatpush3.bf16.msra.mxu1 %v17558_v57  ;;  %12191 = vmatprep.subr.bf16.mxu0 %v17556_v24  ;;  %v17579_v57 = vld [vmem:[#allocation8 + $0x19b0] ss:$12 sps:$4 sm:$0xff]   ;;  %v17597_v24 = vld [vmem:[#allocation8 + $0x440] ss:$12 sps:$4 sm:$0xff]   ;;  %v17612_v23 = vld [vmem:[#allocation8 + $0x548] ss:$12 sps:$4 sm:$0xff]  }
 0x26e   :  { %15891 = vmatprep.subr.bf16.mxu1 %v17562_v60  ;;  %v17586_v60 = vld [vmem:[#allocation8 + $0x19cc] ss:$12 sps:$4 sm:$0xff]  }
 0x270   :  { %12192 = vmatpush1.bf16.msra.mxu0 %v17554_v26  ;;  %v17598_v26 = vld [vmem:[#allocation8 + $0x380] ss:$12 sps:$4 sm:$0xff]  }
 0x271   :  { %15892 = vmatpush3.bf16.msra.mxu1 %v17563_v45  ;;  %12193 = vmatprep.subr.bf16.mxu0 %v17561_v15  ;;  %v17584_v45 = vld [vmem:[#allocation8 + $0x19c8] ss:$12 sps:$4 sm:$0xff]   ;;  %v17602_v15 = vld [vmem:[#allocation8 + $0x458] ss:$12 sps:$4 sm:$0xff]  }
 0x272   :  { %15893 = vmatprep.subr.bf16.mxu1 %v17567_v55  ;;  %v17591_v55 = vld [vmem:[#allocation8 + $0x19e4] ss:$12 sps:$4 sm:$0xff]  }
 0x274   :  { %12194 = vmatpush1.bf16.msra.mxu0 %v17559_v33  ;;  %v17603_v33 = vld [vmem:[#allocation8 + $0x398] ss:$12 sps:$4 sm:$0xff]  }
 0x275   :  { %15894 = vmatpush3.bf16.msra.mxu1 %v17568_v10  ;;  %12195 = vmatprep.subr.bf16.mxu0 %v17566_v61  ;;  %v17589_v10 = vld [vmem:[#allocation8 + $0x19e0] ss:$12 sps:$4 sm:$0xff]   ;;  %v17607_v61 = vld [vmem:[#allocation8 + $0x470] ss:$12 sps:$4 sm:$0xff]  }
 0x276   :  { %15901 = vmatprep.subr.bf16.mxu1 %v17572_v47  ;;  %v17596_v47 = vld [vmem:[#allocation8 + $0x19fc] ss:$12 sps:$4 sm:$0xff]  }
 0x278   :  { %12970 = vmatmul.mubr.bf16.vlgmr.msra.gmra.mrb[8].mxu1 %v19338_v0  ;;  %12196 = vmatpush1.bf16.msra.mxu0 %v17564_v8  ;;  %v17588_v0 = vld [vmem:[#allocation8 + $0x350] ss:$12 sps:$4 sm:$0xff]  }
 0x279   :  { %15902 = vmatpush3.bf16.msra.mxu1 %v17573_v6  ;;  %13010 = vmatprep.mubr.bf16.mxu1 %v19424_v53  ;;  %v17592_v53 = vld [vmem:[#allocation8 + $0x428] ss:$12 sps:$4 sm:$0xff]   ;;  %v17594_v6 = vld [vmem:[#allocation8 + $0x19f8] ss:$12 sps:$4 sm:$0xff]   ;;  %v17599_v8 = vld [vmem:[#allocation8 + $0x1a10] ss:$12 sps:$4 sm:$0xff]  }
 0x27a   :  { %15903 = vmatprep.subr.bf16.mxu1 %v17577_v9  ;;  %12208 = vmatprep.subr.bf16.mxu0 %v17571_v1  ;;  %v17601_v9 = vld [vmem:[#allocation8 + $0x1a14] ss:$12 sps:$4 sm:$0xff]   ;;  %v17606_v1 = vld [vmem:[#allocation8 + $0x1a2c] ss:$12 sps:$4 sm:$0xff]  }
 0x27b   :  { %12198 = vmatmul.mubr.bf16.vlgmr.msra.gmra.mrb[0].mxu0 %v20228_v2 }
 0x27c   :  { %12209 = vmatpush1.bf16.msra.mxu0 %v17569_v48  ;;  %12240 = vmatprep.mubr.bf16.mxu0 %v20230_v34  ;;  %v17618_v48 = vld [vmem:[#allocation8 + $0x4a0] ss:$12 sps:$4 sm:$0xff]  }
 0x27d   :  { %15904 = vmatpush3.bf16.msra.mxu1 %v17578_v40  ;;  %12210 = vmatprep.subr.bf16.mxu0 %v17576_v31  ;;  %v17604_v40 = vld [vmem:[#allocation8 + $0x1a28] ss:$12 sps:$4 sm:$0xff]   ;;  %v17622_v31 = vld [vmem:[#allocation8 + $0x578] ss:$12 sps:$4 sm:$0xff]  }
 0x27e   :  { %15905 = vmatprep.subr.bf16.mxu1 %v17582_v46  ;;  %v17611_v46 = vld [vmem:[#allocation8 + $0x1a44] ss:$12 sps:$4 sm:$0xff]  }
 0x280   :  { %12211 = vmatpush1.bf16.msra.mxu0 %v17574_v35  ;;  %v17623_v35 = vld [vmem:[#allocation8 + $0x4b8] ss:$12 sps:$4 sm:$0xff]  }
 0x281   :  { %15906 = vmatpush3.bf16.msra.mxu1 %v17583_v12  ;;  %12212 = vmatprep.subr.bf16.mxu0 %v17581_v36  ;;  %v17609_v12 = vld [vmem:[#allocation8 + $0x1a40] ss:$12 sps:$4 sm:$0xff]   ;;  %v17627_v36 = vld [vmem:[#allocation8 + $0x590] ss:$12 sps:$4 sm:$0xff]  }
 0x282   :  { %15907 = vmatprep.subr.bf16.mxu1 %v17587_v32  ;;  %v17616_v32 = vld [vmem:[#allocation8 + $0x1a5c] ss:$12 sps:$4 sm:$0xff]  }
 0x284   :  { %12213 = vmatpush1.bf16.msra.mxu0 %v17579_v57  ;;  %v17628_v57 = vld [vmem:[#allocation8 + $0x4d0] ss:$12 sps:$4 sm:$0xff]  }
 0x285   :  { %15908 = vmatpush3.bf16.msra.mxu1 %v17588_v0  ;;  %12214 = vmatprep.subr.bf16.mxu0 %v17586_v60  ;;  %v17614_v0 = vld [vmem:[#allocation8 + $0x1a58] ss:$12 sps:$4 sm:$0xff]   ;;  %v17619_v60 = vld [vmem:[#allocation8 + $0x1a70] ss:$12 sps:$4 sm:$0xff]  }
 0x286   :  { %15909 = vmatprep.subr.bf16.mxu1 %v17592_v53  ;;  %v17621_v53 = vld [vmem:[#allocation8 + $0x1a74] ss:$12 sps:$4 sm:$0xff]  }
 0x288   :  { %12215 = vmatpush1.bf16.msra.mxu0 %v17584_v45  ;;  %v17624_v45 = vld [vmem:[#allocation8 + $0x1a88] ss:$12 sps:$4 sm:$0xff]  }
 0x289   :  { %15910 = vmatpush3.bf16.msra.mxu1 %v17593_v13  ;;  %12216 = vmatprep.subr.bf16.mxu0 %v17591_v55  ;;  %v17633_v13 = vld [vmem:[#allocation8 + $0x4e8] ss:$12 sps:$4 sm:$0xff]   ;;  %v17631_v55 = vld [vmem:[#allocation8 + $0x1aa4] ss:$12 sps:$4 sm:$0xff]  }
 0x28a   :  { %15911 = vmatprep.subr.bf16.mxu1 %v17597_v24  ;;  %v17637_v24 = vld [vmem:[#allocation8 + $0x5c0] ss:$12 sps:$4 sm:$0xff]  }
 0x28c   :  { %12217 = vmatpush1.bf16.msra.mxu0 %v17589_v10  ;;  %v17629_v10 = vld [vmem:[#allocation8 + $0x1aa0] ss:$12 sps:$4 sm:$0xff]  }
 0x28d   :  { %15912 = vmatpush3.bf16.msra.mxu1 %v17598_v26  ;;  %12218 = vmatprep.subr.bf16.mxu0 %v17596_v47  ;;  %v17638_v26 = vld [vmem:[#allocation8 + $0x500] ss:$12 sps:$4 sm:$0xff]   ;;  %v17636_v47 = vld [vmem:[#allocation8 + $0x1abc] ss:$12 sps:$4 sm:$0xff]  }
 0x28e   :  { %15913 = vmatprep.subr.bf16.mxu1 %v17602_v15  ;;  %v17642_v15 = vld [vmem:[#allocation8 + $0x5d8] ss:$12 sps:$4 sm:$0xff]  }
 0x290   :  { %12219 = vmatpush1.bf16.msra.mxu0 %v17594_v6  ;;  %v17634_v6 = vld [vmem:[#allocation8 + $0x1ab8] ss:$12 sps:$4 sm:$0xff]  }
 0x291   :  { %15914 = vmatpush3.bf16.msra.mxu1 %v17603_v33  ;;  %12220 = vmatprep.subr.bf16.mxu0 %v17601_v9  ;;  %v17643_v33 = vld [vmem:[#allocation8 + $0x518] ss:$12 sps:$4 sm:$0xff]   ;;  %v17641_v9 = vld [vmem:[#allocation8 + $0x1ad4] ss:$12 sps:$4 sm:$0xff]  }
 0x292   :  { %15915 = vmatprep.subr.bf16.mxu1 %v17607_v61  ;;  %v17647_v61 = vld [vmem:[#allocation8 + $0x5f0] ss:$12 sps:$4 sm:$0xff]  }
 0x294   :  { %12221 = vmatpush1.bf16.msra.mxu0 %v17599_v8  ;;  %v17639_v8 = vld [vmem:[#allocation8 + $0x1ad0] ss:$12 sps:$4 sm:$0xff]  }
 0x295   :  { %15916 = vmatpush3.bf16.msra.mxu1 %v17608_v54  ;;  %12222 = vmatprep.subr.bf16.mxu0 %v17606_v1  ;;  %v17648_v54 = vld [vmem:[#allocation8 + $0x530] ss:$12 sps:$4 sm:$0xff]   ;;  %v17646_v1 = vld [vmem:[#allocation8 + $0x1aec] ss:$12 sps:$4 sm:$0xff]  }
 0x296   :  { %15923 = vmatprep.subr.bf16.mxu1 %v17612_v23  ;;  %v17652_v23 = vld [vmem:[#allocation8 + $0x6c8] ss:$12 sps:$4 sm:$0xff]  }
 0x298   :  { %13011 = vmatmul.mubr.bf16.vlgmr.msra.gmra.mrb[12].mxu1 %v19530_v16  ;;  %12223 = vmatpush1.bf16.msra.mxu0 %v17604_v40  ;;  %v17632_v16 = vld [vmem:[#allocation8 + $0x5a8] ss:$12 sps:$4 sm:$0xff]   ;;  %v720_v40 = vmul.f32 %v19198_v3, %v19142_v58  ;;  %v17649_v3 = vld [vmem:[#allocation8 + $0x1b00] ss:$12 sps:$4 sm:$0xff]  }
 0x299   :  { %15924 = vmatpush3.bf16.msra.mxu1 %v17613_v51  ;;  %13051 = vmatprep.mubr.bf16.mxu1 %v19552_v22  ;;  %v17626_v22 = vld [vmem:[#allocation8 + $0x1a8c] ss:$12 sps:$4 sm:$0xff]   ;;  %v17653_v51 = vld [vmem:[#allocation8 + $0x608] ss:$12 sps:$4 sm:$0xff]  }
 0x29a   :  { %15925 = vmatprep.subr.bf16.mxu1 %v17617_v50  ;;  %12224 = vmatprep.subr.bf16.mxu0 %v17611_v46  ;;  %v17657_v50 = vld [vmem:[#allocation8 + $0x6e0] ss:$12 sps:$4 sm:$0xff]   ;;  %v20918_v46 = vld [vmem:[#allocation13_spill] sm:$0xff] }
 0x29c   :  { %12225 = vmatpush1.bf16.msra.mxu0 %v17609_v12  ;;  %v17644_v12 = vld [vmem:[#allocation8 + $0x1ae8] ss:$12 sps:$4 sm:$0xff]  }
 0x29d   :  { %15926 = vmatpush3.bf16.msra.mxu1 %v17618_v48  ;;  %12226 = vmatprep.subr.bf16.mxu0 %v17616_v32  ;;  %v20919_v48 = vld [vmem:[#allocation18_spill] sm:$0xff]  ;;  %v17651_v32 = vld [vmem:[#allocation8 + $0x1b04] ss:$12 sps:$4 sm:$0xff]  }
 0x29e   :  { %15927 = vmatprep.subr.bf16.mxu1 %v17622_v31  ;;  %v753_v31 = vmul.f32 %v20919_v48, %v20918_v46  ;;  %v17676_v46 = vld [vmem:[#allocation8 + $0x1b7c] ss:$12 sps:$4 sm:$0xff]   ;;  %v17683_v48 = vld [vmem:[#allocation8 + $0x698] ss:$12 sps:$4 sm:$0xff]  }
 0x2a0   :  { %12227 = vmatpush1.bf16.msra.mxu0 %v17614_v0  ;;  %v20246_v58 = vpack.c.bf16 %v753_v31, %v720_v40  ;;  %v17669_v40 = vld [vmem:[#allocation8 + $0x1b60] ss:$12 sps:$4 sm:$0xff]   ;;  %v17687_v31 = vld [vmem:[#allocation8 + $0x770] ss:$12 sps:$4 sm:$0xff]  }
 0x2a1   :  { %15928 = vmatpush3.bf16.msra.mxu1 %v17623_v35  ;;  %12228 = vmatprep.subr.bf16.mxu0 %v17621_v53  ;;  %v20920_v35 = vld [vmem:[#allocation45_spill] sm:$0xff]  ;;  %v20922_v53 = vld [vmem:[#allocation46_spill] sm:$0xff] }
 0x2a2   :  { %15929 = vmatprep.subr.bf16.mxu1 %v17627_v36  ;;  %v20921_v36 = vld [vmem:[#allocation52_spill] sm:$0xff] }
 0x2a3   :  { %v723_v0 = vmul.f32 %v20921_v36, %v20920_v35  ;;  %v17688_v35 = vld [vmem:[#allocation8 + $0x6b0] ss:$12 sps:$4 sm:$0xff]   ;;  %v17692_v36 = vld [vmem:[#allocation8 + $0x848] ss:$12 sps:$4 sm:$0xff]  }
 0x2a4   :  { %12229 = vmatpush1.bf16.msra.mxu0 %v17619_v60  ;;  %v20924_v60 = vld [vmem:[#allocation80_spill] sm:$0xff] }
 0x2a5   :  { %15930 = vmatpush3.bf16.msra.mxu1 %v17628_v57  ;;  %12230 = vmatprep.subr.bf16.mxu0 %v17626_v22  ;;  %v20923_v57 = vld [vmem:[#allocation55_spill] sm:$0xff] }
 0x2a6   :  { %15931 = vmatprep.subr.bf16.mxu1 %v17632_v16  ;;  %v756_v16 = vmul.f32 %v20923_v57, %v20922_v53  ;;  %v17658_v22 = vld [vmem:[#allocation8 + $0x620] ss:$12 sps:$4 sm:$0xff]   ;;  %v17693_v57 = vld [vmem:[#allocation8 + $0x788] ss:$12 sps:$4 sm:$0xff]  }
 0x2a7   :  { %v17686_v53 = vld [vmem:[#allocation8 + $0x1bac] ss:$12 sps:$4 sm:$0xff]  }
 0x2a8   :  { %12231 = vmatpush1.bf16.msra.mxu0 %v17624_v45  ;;  %v17656_v45 = vld [vmem:[#allocation8 + $0x1b1c] ss:$12 sps:$4 sm:$0xff]  }
 0x2a9   :  { %15932 = vmatpush3.bf16.msra.mxu1 %v17633_v13  ;;  %12232 = vmatprep.subr.bf16.mxu0 %v17631_v55  ;;  %v17662_v13 = vld [vmem:[#allocation8 + $0x6f8] ss:$12 sps:$4 sm:$0xff]   ;;  %v20248_v55 = vpack.c.bf16 %v756_v16, %v723_v0  ;;  %v17679_v0 = vld [vmem:[#allocation8 + $0x1b90] ss:$12 sps:$4 sm:$0xff]   ;;  %v17697_v16 = vld [vmem:[#allocation8 + $0x860] ss:$12 sps:$4 sm:$0xff]  }
 0x2aa   :  { %15933 = vmatprep.subr.bf16.mxu1 %v17637_v24  ;;  %v20925_v24 = vld [vmem:[#allocation82_spill] sm:$0xff] }
 0x2ac   :  { %12233 = vmatpush1.bf16.msra.mxu0 %v17629_v10  ;;  %v17654_v10 = vld [vmem:[#allocation8 + $0x1b18] ss:$12 sps:$4 sm:$0xff]  }
 0x2ad   :  { %15934 = vmatpush3.bf16.msra.mxu1 %v17638_v26  ;;  %12234 = vmatprep.subr.bf16.mxu0 %v17636_v47  ;;  %v17663_v26 = vld [vmem:[#allocation8 + $0x638] ss:$12 sps:$4 sm:$0xff]   ;;  %v17661_v47 = vld [vmem:[#allocation8 + $0x1b34] ss:$12 sps:$4 sm:$0xff]  }
 0x2ae   :  { %15935 = vmatprep.subr.bf16.mxu1 %v17642_v15  ;;  %v17667_v15 = vld [vmem:[#allocation8 + $0x710] ss:$12 sps:$4 sm:$0xff]  }
 0x2b0   :  { %12235 = vmatpush1.bf16.msra.mxu0 %v17634_v6  ;;  %v17659_v6 = vld [vmem:[#allocation8 + $0x1b30] ss:$12 sps:$4 sm:$0xff]  }
 0x2b1   :  { %15936 = vmatpush3.bf16.msra.mxu1 %v17643_v33  ;;  %12236 = vmatprep.subr.bf16.mxu0 %v17641_v9  ;;  %v17668_v33 = vld [vmem:[#allocation8 + $0x650] ss:$12 sps:$4 sm:$0xff]   ;;  %v17666_v9 = vld [vmem:[#allocation8 + $0x1b4c] ss:$12 sps:$4 sm:$0xff]  }
 0x2b2   :  { %15937 = vmatprep.subr.bf16.mxu1 %v17647_v61  ;;  %v17672_v61 = vld [vmem:[#allocation8 + $0x728] ss:$12 sps:$4 sm:$0xff]  }
 0x2b4   :  { %12237 = vmatpush1.bf16.msra.mxu0 %v17639_v8  ;;  %v17664_v8 = vld [vmem:[#allocation8 + $0x1b48] ss:$12 sps:$4 sm:$0xff]  }
 0x2b5   :  { %15938 = vmatpush3.bf16.msra.mxu1 %v17648_v54  ;;  %12238 = vmatprep.subr.bf16.mxu0 %v17646_v1  ;;  %v17673_v54 = vld [vmem:[#allocation8 + $0x668] ss:$12 sps:$4 sm:$0xff]   ;;  %v17671_v1 = vld [vmem:[#allocation8 + $0x1b64] ss:$12 sps:$4 sm:$0xff]  }
 0x2b6   :  { %15945 = vmatprep.subr.bf16.mxu1 %v17652_v23  ;;  %v17677_v23 = vld [vmem:[#allocation8 + $0x740] ss:$12 sps:$4 sm:$0xff]  }
 0x2b8   :  { %13052 = vmatmul.mubr.bf16.vlgmr.msra.gmra.mrb[16].mxu1 %v20924_v60  ;;  %12239 = vmatpush1.bf16.msra.mxu0 %v17644_v12  ;;  %v17674_v12 = vld [vmem:[#allocation8 + $0x1b78] ss:$12 sps:$4 sm:$0xff]   ;;  %v17684_v60 = vld [vmem:[#allocation8 + $0x1ba8] ss:$12 sps:$4 sm:$0xff]  }
 0x2b9   :  { %15946 = vmatpush3.bf16.msra.mxu1 %v17653_v51  ;;  %13092 = vmatprep.mubr.bf16.mxu1 %v20925_v24  ;;  %v17678_v51 = vld [vmem:[#allocation8 + $0x680] ss:$12 sps:$4 sm:$0xff]  }
 0x2ba   :  { %15947 = vmatprep.subr.bf16.mxu1 %v17657_v50  ;;  %12251 = vmatprep.subr.bf16.mxu0 %v17651_v32  ;;  %v17682_v50 = vld [vmem:[#allocation8 + $0x758] ss:$12 sps:$4 sm:$0xff]   ;;  %v17681_v32 = vld [vmem:[#allocation8 + $0x1b94] ss:$12 sps:$4 sm:$0xff]  }
 0x2bb   :  { %12241 = vmatmul.mubr.bf16.vlgmr.msra.gmra.mrb[0].mxu0 %v20246_v58  ;;  %v17698_v24 = vld [vmem:[#allocation8 + $0x7a0] ss:$12 sps:$4 sm:$0xff]  }
 0x2bc   :  { %12252 = vmatpush1.bf16.msra.mxu0 %v17649_v3  ;;  %12283 = vmatprep.mubr.bf16.mxu0 %v20248_v55  ;;  %v17702_v3 = vld [vmem:[#allocation8 + $0x878] ss:$12 sps:$4 sm:$0xff]  }
 0x2bd   :  { %15948 = vmatpush3.bf16.msra.mxu1 %v17658_v22  ;;  %12253 = vmatprep.subr.bf16.mxu0 %v17656_v45  ;;  %v17691_v22 = vld [vmem:[#allocation8 + $0x1bc4] ss:$12 sps:$4 sm:$0xff]  }
 0x2be   :  { %15949 = vmatprep.subr.bf16.mxu1 %v17662_v13  ;;  %v20926_v13 = vld [vmem:[#allocation102_spill] sm:$0xff]  ;;  %v20927_v45 = vld [vmem:[#allocation103_spill] sm:$0xff] }
 0x2c0   :  { %12254 = vmatpush1.bf16.msra.mxu0 %v17654_v10  ;;  %v17703_v10 = vld [vmem:[#allocation8 + $0x7b8] ss:$12 sps:$4 sm:$0xff]  }
 0x2c1   :  { %15950 = vmatpush3.bf16.msra.mxu1 %v17663_v26  ;;  %12255 = vmatprep.subr.bf16.mxu0 %v17661_v47  ;;  %v17689_v26 = vld [vmem:[#allocation8 + $0x1bc0] ss:$12 sps:$4 sm:$0xff]   ;;  %v17707_v47 = vld [vmem:[#allocation8 + $0x890] ss:$12 sps:$4 sm:$0xff]  }
 0x2c2   :  { %15951 = vmatprep.subr.bf16.mxu1 %v17667_v15  ;;  %v17696_v15 = vld [vmem:[#allocation8 + $0x1bdc] ss:$12 sps:$4 sm:$0xff]  }
 0x2c4   :  { %12256 = vmatpush1.bf16.msra.mxu0 %v17659_v6  ;;  %v17708_v6 = vld [vmem:[#allocation8 + $0x7d0] ss:$12 sps:$4 sm:$0xff]  }
 0x2c5   :  { %15952 = vmatpush3.bf16.msra.mxu1 %v17668_v33  ;;  %12257 = vmatprep.subr.bf16.mxu0 %v17666_v9  ;;  %v17694_v33 = vld [vmem:[#allocation8 + $0x1bd8] ss:$12 sps:$4 sm:$0xff]   ;;  %v17712_v9 = vld [vmem:[#allocation8 + $0x8a8] ss:$12 sps:$4 sm:$0xff]  }
 0x2c6   :  { %15953 = vmatprep.subr.bf16.mxu1 %v17672_v61  ;;  %v17701_v61 = vld [vmem:[#allocation8 + $0x1bf4] ss:$12 sps:$4 sm:$0xff]  }
 0x2c8   :  { %12258 = vmatpush1.bf16.msra.mxu0 %v17664_v8  ;;  %v17713_v8 = vld [vmem:[#allocation8 + $0x7e8] ss:$12 sps:$4 sm:$0xff]  }
 0x2c9   :  { %15954 = vmatpush3.bf16.msra.mxu1 %v17673_v54  ;;  %12259 = vmatprep.subr.bf16.mxu0 %v17671_v1  ;;  %v17699_v54 = vld [vmem:[#allocation8 + $0x1bf0] ss:$12 sps:$4 sm:$0xff]   ;;  %v17717_v1 = vld [vmem:[#allocation8 + $0x8c0] ss:$12 sps:$4 sm:$0xff]  }
 0x2ca   :  { %15955 = vmatprep.subr.bf16.mxu1 %v17677_v23  ;;  %v17706_v23 = vld [vmem:[#allocation8 + $0x1c0c] ss:$12 sps:$4 sm:$0xff]  }
 0x2cc   :  { %12260 = vmatpush1.bf16.msra.mxu0 %v17669_v40  ;;  %v17718_v40 = vld [vmem:[#allocation8 + $0x800] ss:$12 sps:$4 sm:$0xff]  }
 0x2cd   :  { %15956 = vmatpush3.bf16.msra.mxu1 %v17678_v51  ;;  %12261 = vmatprep.subr.bf16.mxu0 %v17676_v46  ;;  %v17704_v51 = vld [vmem:[#allocation8 + $0x1c08] ss:$12 sps:$4 sm:$0xff]   ;;  %v17722_v46 = vld [vmem:[#allocation8 + $0x8d8] ss:$12 sps:$4 sm:$0xff]  }
 0x2ce   :  { %15957 = vmatprep.subr.bf16.mxu1 %v17682_v50  ;;  %v17711_v50 = vld [vmem:[#allocation8 + $0x1c24] ss:$12 sps:$4 sm:$0xff]  }
 0x2d0   :  { %12262 = vmatpush1.bf16.msra.mxu0 %v17674_v12  ;;  %v17723_v12 = vld [vmem:[#allocation8 + $0x818] ss:$12 sps:$4 sm:$0xff]  }
 0x2d1   :  { %15958 = vmatpush3.bf16.msra.mxu1 %v17683_v48  ;;  %12263 = vmatprep.subr.bf16.mxu0 %v17681_v32  ;;  %v17709_v48 = vld [vmem:[#allocation8 + $0x1c20] ss:$12 sps:$4 sm:$0xff]   ;;  %v17727_v32 = vld [vmem:[#allocation8 + $0x8f0] ss:$12 sps:$4 sm:$0xff]  }
 0x2d2   :  { %15959 = vmatprep.subr.bf16.mxu1 %v17687_v31  ;;  %v17716_v31 = vld [vmem:[#allocation8 + $0x1c3c] ss:$12 sps:$4 sm:$0xff]  }
 0x2d4   :  { %12264 = vmatpush1.bf16.msra.mxu0 %v17679_v0  ;;  %v17728_v0 = vld [vmem:[#allocation8 + $0x830] ss:$12 sps:$4 sm:$0xff]  }
 0x2d5   :  { %15960 = vmatpush3.bf16.msra.mxu1 %v17688_v35  ;;  %12265 = vmatprep.subr.bf16.mxu0 %v17686_v53  ;;  %v17714_v35 = vld [vmem:[#allocation8 + $0x1c38] ss:$12 sps:$4 sm:$0xff]   ;;  %v17732_v53 = vld [vmem:[#allocation8 + $0x9c8] ss:$12 sps:$4 sm:$0xff]  }
 0x2d6   :  { %15967 = vmatprep.subr.bf16.mxu1 %v17692_v36  ;;  %v17721_v36 = vld [vmem:[#allocation8 + $0x1c54] ss:$12 sps:$4 sm:$0xff]  }
 0x2d8   :  { %13093 = vmatmul.mubr.bf16.vlgmr.msra.gmra.mrb[20].mxu1 %v20926_v13  ;;  %12266 = vmatpush1.bf16.msra.mxu0 %v17684_v60  ;;  %v17733_v60 = vld [vmem:[#allocation8 + $0x908] ss:$12 sps:$4 sm:$0xff]  }
 0x2d9   :  { %15968 = vmatpush3.bf16.msra.mxu1 %v17693_v57  ;;  %13133 = vmatprep.mubr.bf16.mxu1 %v20927_v45  ;;  %v17719_v57 = vld [vmem:[#allocation8 + $0x1c50] ss:$12 sps:$4 sm:$0xff]  }
 0x2da   :  { %15969 = vmatprep.subr.bf16.mxu1 %v17697_v16  ;;  %12267 = vmatprep.subr.bf16.mxu0 %v17691_v22  ;;  %v17726_v16 = vld [vmem:[#allocation8 + $0x1c6c] ss:$12 sps:$4 sm:$0xff]   ;;  %v20928_v13 = vld [vmem:[#allocation25_spill] sm:$0xff] }
 0x2db   :  { %v17737_v22 = vld [vmem:[#allocation8 + $0x9e0] ss:$12 sps:$4 sm:$0xff]   ;;  %v20930_v45 = vld [vmem:[#allocation26_spill] sm:$0xff] }
 0x2dc   :  { %12268 = vmatpush1.bf16.msra.mxu0 %v17689_v26  ;;  %v20931_v26 = vld [vmem:[#allocation32_spill] sm:$0xff] }
 0x2dd   :  { %15970 = vmatpush3.bf16.msra.mxu1 %v17698_v24  ;;  %12269 = vmatprep.subr.bf16.mxu0 %v17696_v15  ;;  %v20929_v24 = vld [vmem:[#allocation31_spill] sm:$0xff]  ;;  %v755_v15 = vmul.f32 %v20931_v26, %v20930_v45 }
 0x2de   :  { %15971 = vmatprep.subr.bf16.mxu1 %v17702_v3  ;;  %v722_v3 = vmul.f32 %v20929_v24, %v20928_v13  ;;  %v17744_v13 = vld [vmem:[#allocation8 + $0x1cc8] ss:$12 sps:$4 sm:$0xff]   ;;  %v17751_v24 = vld [vmem:[#allocation8 + $0x1ce4] ss:$12 sps:$4 sm:$0xff]   ;;  %v17749_v26 = vld [vmem:[#allocation8 + $0x1ce0] ss:$12 sps:$4 sm:$0xff]  }
 0x2df   :  { %v17762_v45 = vld [vmem:[#allocation8 + $0xa58] ss:$12 sps:$4 sm:$0xff]  }
 0x2e0   :  { %12270 = vmatpush1.bf16.msra.mxu0 %v17694_v33  ;;  %v20932_v33 = vld [vmem:[#allocation66_spill] sm:$0xff] }
 0x2e1   :  { %15972 = vmatpush3.bf16.msra.mxu1 %v17703_v10  ;;  %12271 = vmatprep.subr.bf16.mxu0 %v17701_v61  ;;  %v17724_v10 = vld [vmem:[#allocation8 + $0x1c68] ss:$12 sps:$4 sm:$0xff]   ;;  %v20933_v61 = vld [vmem:[#allocation74_spill] sm:$0xff] }
 0x2e2   :  { %15973 = vmatprep.subr.bf16.mxu1 %v17707_v47  ;;  %v17731_v47 = vld [vmem:[#allocation8 + $0x1c84] ss:$12 sps:$4 sm:$0xff]  }
 0x2e4   :  { %12272 = vmatpush1.bf16.msra.mxu0 %v17699_v54  ;;  %v20935_v54 = vld [vmem:[#allocation75_spill] sm:$0xff] }
 0x2e5   :  { %15974 = vmatpush3.bf16.msra.mxu1 %v17708_v6  ;;  %12273 = vmatprep.subr.bf16.mxu0 %v17706_v23  ;;  %v725_v6 = vmul.f32 %v20933_v61, %v20932_v33  ;;  %v17763_v33 = vld [vmem:[#allocation8 + $0x998] ss:$12 sps:$4 sm:$0xff]  }
 0x2e6   :  { %15975 = vmatprep.subr.bf16.mxu1 %v17712_v9  ;;  %v20934_v9 = vld [vmem:[#allocation67_spill] sm:$0xff] }
 0x2e7   :  { %v758_v23 = vmul.f32 %v20935_v54, %v20934_v9  ;;  %v17754_v54 = vld [vmem:[#allocation8 + $0x1cf8] ss:$12 sps:$4 sm:$0xff]  }
 0x2e8   :  { %12274 = vmatpush1.bf16.msra.mxu0 %v17704_v51  ;;  %v17742_v51 = vld [vmem:[#allocation8 + $0x9f8] ss:$12 sps:$4 sm:$0xff]  }
 0x2e9   :  { %15976 = vmatpush3.bf16.msra.mxu1 %v17713_v8  ;;  %12275 = vmatprep.subr.bf16.mxu0 %v17711_v50  ;;  %v20936_v8 = vld [vmem:[#allocation122_spill] sm:$0xff]  ;;  %v20937_v50 = vld [vmem:[#allocation123_spill] sm:$0xff] }
 0x2ea   :  { %15977 = vmatprep.subr.bf16.mxu1 %v17717_v1  ;;  %v17738_v1 = vld [vmem:[#allocation8 + $0x920] ss:$12 sps:$4 sm:$0xff]  }
 0x2ec   :  { %12276 = vmatpush1.bf16.msra.mxu0 %v17709_v48  ;;  %v17736_v48 = vld [vmem:[#allocation8 + $0x1c9c] ss:$12 sps:$4 sm:$0xff]  }
 0x2ed   :  { %15978 = vmatpush3.bf16.msra.mxu1 %v17718_v40  ;;  %12277 = vmatprep.subr.bf16.mxu0 %v17716_v31  ;;  %v20264_v40 = vpack.c.bf16 %v755_v15, %v722_v3  ;;  %v20266_v31 = vpack.c.bf16 %v758_v23, %v725_v6  ;;  %v17758_v3 = vld [vmem:[#allocation8 + $0x980] ss:$12 sps:$4 sm:$0xff]   ;;  %v17767_v6 = vld [vmem:[#allocation8 + $0xa70] ss:$12 sps:$4 sm:$0xff]  }
 0x2ee   :  { %15979 = vmatprep.subr.bf16.mxu1 %v17722_v46  ;;  %v17729_v46 = vld [vmem:[#allocation8 + $0x1c80] ss:$12 sps:$4 sm:$0xff]  }
 0x2ef   :  { %v17761_v23 = vld [vmem:[#allocation8 + $0x1d14] ss:$12 sps:$4 sm:$0xff]  }
 0x2f0   :  { %12278 = vmatpush1.bf16.msra.mxu0 %v17714_v35  ;;  %v17734_v35 = vld [vmem:[#allocation8 + $0x1c98] ss:$12 sps:$4 sm:$0xff]  }
 0x2f1   :  { %15980 = vmatpush3.bf16.msra.mxu1 %v17723_v12  ;;  %12279 = vmatprep.subr.bf16.mxu0 %v17721_v36  ;;  %v17743_v12 = vld [vmem:[#allocation8 + $0x938] ss:$12 sps:$4 sm:$0xff]   ;;  %v17741_v36 = vld [vmem:[#allocation8 + $0x1cb4] ss:$12 sps:$4 sm:$0xff]  }
 0x2f2   :  { %15981 = vmatprep.subr.bf16.mxu1 %v17727_v32  ;;  %v17747_v32 = vld [vmem:[#allocation8 + $0xa10] ss:$12 sps:$4 sm:$0xff]  }
 0x2f4   :  { %12280 = vmatpush1.bf16.msra.mxu0 %v17719_v57  ;;  %v17739_v57 = vld [vmem:[#allocation8 + $0x1cb0] ss:$12 sps:$4 sm:$0xff]  }
 0x2f5   :  { %15982 = vmatpush3.bf16.msra.mxu1 %v17728_v0  ;;  %12281 = vmatprep.subr.bf16.mxu0 %v17726_v16  ;;  %v17748_v0 = vld [vmem:[#allocation8 + $0x950] ss:$12 sps:$4 sm:$0xff]   ;;  %v17746_v16 = vld [vmem:[#allocation8 + $0x1ccc] ss:$12 sps:$4 sm:$0xff]  }
 0x2f6   :  { %15989 = vmatprep.subr.bf16.mxu1 %v17732_v53  ;;  %v17752_v53 = vld [vmem:[#allocation8 + $0xa28] ss:$12 sps:$4 sm:$0xff]  }
 0x2f8   :  { %13134 = vmatmul.mubr.bf16.vlgmr.msra.gmra.mrb[24].mxu1 %v20936_v8  ;;  %12282 = vmatpush1.bf16.msra.mxu0 %v17724_v10  ;;  %v17756_v10 = vld [vmem:[#allocation8 + $0x1cfc] ss:$12 sps:$4 sm:$0xff]  }
 0x2f9   :  { %15990 = vmatpush3.bf16.msra.mxu1 %v17733_v60  ;;  %13174 = vmatprep.mubr.bf16.mxu1 %v20937_v50  ;;  %v17753_v60 = vld [vmem:[#allocation8 + $0x968] ss:$12 sps:$4 sm:$0xff]   ;;  %v17768_v8 = vld [vmem:[#allocation8 + $0x9b0] ss:$12 sps:$4 sm:$0xff]   ;;  %v17766_v50 = vld [vmem:[#allocation8 + $0x1d2c] ss:$12 sps:$4 sm:$0xff]  }
 0x2fa   :  { %15991 = vmatprep.subr.bf16.mxu1 %v17737_v22  ;;  %12294 = vmatprep.subr.bf16.mxu0 %v17731_v47  ;;  %v17757_v22 = vld [vmem:[#allocation8 + $0xa40] ss:$12 sps:$4 sm:$0xff]  }
 0x2fb   :  { %12284 = vmatmul.mubr.bf16.vlgmr.msra.gmra.mrb[0].mxu0 %v20264_v40 }
 0x2fc   :  { %12295 = vmatpush1.bf16.msra.mxu0 %v17729_v46  ;;  %12326 = vmatprep.mubr.bf16.mxu0 %v20266_v31  ;;  %v17773_v46 = vld [vmem:[#allocation8 + $0xa88] ss:$12 sps:$4 sm:$0xff]  }
 0x2fd   :  { %15992 = vmatpush3.bf16.msra.mxu1 %v17738_v1  ;;  %12296 = vmatprep.subr.bf16.mxu0 %v17736_v48  ;;  %v17772_v1 = vld [vmem:[#allocation8 + $0xb48] ss:$12 sps:$4 sm:$0xff]   ;;  %v17777_v48 = vld [vmem:[#allocation8 + $0xb60] ss:$12 sps:$4 sm:$0xff]  }
 0x2fe   :  { %15993 = vmatprep.subr.bf16.mxu1 %v17742_v51  ;;  %v17759_v51 = vld [vmem:[#allocation8 + $0x1d10] ss:$12 sps:$4 sm:$0xff]  }
 0x300   :  { %12297 = vmatpush1.bf16.msra.mxu0 %v17734_v35  ;;  %v17778_v35 = vld [vmem:[#allocation8 + $0xaa0] ss:$12 sps:$4 sm:$0xff]  }
 0x301   :  { %15994 = vmatpush3.bf16.msra.mxu1 %v17743_v12  ;;  %12298 = vmatprep.subr.bf16.mxu0 %v17741_v36  ;;  %v17764_v12 = vld [vmem:[#allocation8 + $0x1d28] ss:$12 sps:$4 sm:$0xff]   ;;  %v17782_v36 = vld [vmem:[#allocation8 + $0xb78] ss:$12 sps:$4 sm:$0xff]  }
 0x302   :  { %15995 = vmatprep.subr.bf16.mxu1 %v17747_v32  ;;  %v17771_v32 = vld [vmem:[#allocation8 + $0x1d44] ss:$12 sps:$4 sm:$0xff]  }
 0x304   :  { %12299 = vmatpush1.bf16.msra.mxu0 %v17739_v57  ;;  %v17783_v57 = vld [vmem:[#allocation8 + $0xab8] ss:$12 sps:$4 sm:$0xff]  }
 0x305   :  { %15996 = vmatpush3.bf16.msra.mxu1 %v17748_v0  ;;  %12300 = vmatprep.subr.bf16.mxu0 %v17746_v16  ;;  %v17769_v0 = vld [vmem:[#allocation8 + $0x1d40] ss:$12 sps:$4 sm:$0xff]   ;;  %v17787_v16 = vld [vmem:[#allocation8 + $0xb90] ss:$12 sps:$4 sm:$0xff]  }
 0x306   :  { %15997 = vmatprep.subr.bf16.mxu1 %v17752_v53  ;;  %v17776_v53 = vld [vmem:[#allocation8 + $0x1d5c] ss:$12 sps:$4 sm:$0xff]  }
 0x308   :  { %12301 = vmatpush1.bf16.msra.mxu0 %v17744_v13  ;;  %v17788_v13 = vld [vmem:[#allocation8 + $0xad0] ss:$12 sps:$4 sm:$0xff]  }
 0x309   :  { %15998 = vmatpush3.bf16.msra.mxu1 %v17753_v60  ;;  %12302 = vmatprep.subr.bf16.mxu0 %v17751_v24  ;;  %v17774_v60 = vld [vmem:[#allocation8 + $0x1d58] ss:$12 sps:$4 sm:$0xff]   ;;  %v17779_v24 = vld [vmem:[#allocation8 + $0x1d70] ss:$12 sps:$4 sm:$0xff]  }
 0x30a   :  { %15999 = vmatprep.subr.bf16.mxu1 %v17757_v22  ;;  %v17781_v22 = vld [vmem:[#allocation8 + $0x1d74] ss:$12 sps:$4 sm:$0xff]  }
 0x30b   :  { %v20270_v15 = vpop.f32.mrb[0].mxu1 }
 0x30c   :  { %v20272_v47 = vpop.f32.mrb[1].mxu1  ;;  %12303 = vmatpush1.bf16.msra.mxu0 %v17749_v26  ;;  %v17784_v26 = vld [vmem:[#allocation8 + $0x1d88] ss:$12 sps:$4 sm:$0xff]  }
 0x30d   :  { %v20274_v61 = vpop.f32.mrb[2].mxu1  ;;  %16000 = vmatpush3.bf16.msra.mxu1 %v17758_v3  ;;  %12304 = vmatprep.subr.bf16.mxu0 %v17756_v10  ;;  %v17793_v3 = vld [vmem:[#allocation8 + $0xae8] ss:$12 sps:$4 sm:$0xff]   ;;  %v17791_v10 = vld [vmem:[#allocation8 + $0x1da4] ss:$12 sps:$4 sm:$0xff]  }
 0x30e   :  { %v20276_v9 = vpop.f32.mrb[3].mxu1  ;;  %16001 = vmatprep.subr.bf16.mxu1 %v17762_v45  ;;  %v17797_v45 = vld [vmem:[#allocation8 + $0xbc0] ss:$12 sps:$4 sm:$0xff]  }
 0x310   :  { %12305 = vmatpush1.bf16.msra.mxu0 %v17754_v54  ;;  %v17789_v54 = vld [vmem:[#allocation8 + $0x1da0] ss:$12 sps:$4 sm:$0xff]  }
 0x311   :  { %16002 = vmatpush3.bf16.msra.mxu1 %v17763_v33  ;;  %12306 = vmatprep.subr.bf16.mxu0 %v17761_v23  ;;  %v17798_v33 = vld [vmem:[#allocation8 + $0xb00] ss:$12 sps:$4 sm:$0xff]   ;;  %v17796_v23 = vld [vmem:[#allocation8 + $0x1dbc] ss:$12 sps:$4 sm:$0xff]  }
 0x312   :  { %16003 = vmatprep.subr.bf16.mxu1 %v17767_v6  ;;  %v17802_v6 = vld [vmem:[#allocation8 + $0xbd8] ss:$12 sps:$4 sm:$0xff]  }
 0x314   :  { %12307 = vmatpush1.bf16.msra.mxu0 %v17759_v51 }
 0x315   :  { %16004 = vmatpush3.bf16.msra.mxu1 %v17768_v8  ;;  %12308 = vmatprep.subr.bf16.mxu0 %v17766_v50  ;;  %v17807_v50 = vld [vmem:[#allocation8 + $0xbf0] ss:$12 sps:$4 sm:$0xff]  }
 0x316   :  { %16011 = vmatprep.subr.bf16.mxu1 %v17772_v1  ;;  %v17803_v1 = vld [vmem:[#allocation8 + $0xb18] ss:$12 sps:$4 sm:$0xff]  }
 0x318   :  { %13175 = vmatmul.mubr.bf16.vlgmr.msra.gmra.mrb[28].mxu1 %v20106_v27  ;;  %12309 = vmatpush1.bf16.msra.mxu0 %v17764_v12  ;;  %v17792_v27 = vld [vmem:[#allocation8 + $0xba8] ss:$12 sps:$4 sm:$0xff]  }
 0x319   :  { %16012 = vmatpush3.bf16.msra.mxu1 %v17773_v46  ;;  %13215 = vmatprep.mubr.bf16.mxu1 %v20108_v29  ;;  %v17786_v29 = vld [vmem:[#allocation8 + $0x1d8c] ss:$12 sps:$4 sm:$0xff]  }
 0x31a   :  { %16013 = vmatprep.subr.bf16.mxu1 %v17777_v48  ;;  %12310 = vmatprep.subr.bf16.mxu0 %v17771_v32  ;;  %v17794_v32 = vld [vmem:[#allocation8 + $0x1db8] ss:$12 sps:$4 sm:$0xff]  }
 0x31c   :  { %12311 = vmatpush1.bf16.msra.mxu0 %v17769_v0  ;;  %v17808_v0 = vld [vmem:[#allocation8 + $0xb30] ss:$12 sps:$4 sm:$0xff]  }
 0x31d   :  { %16014 = vmatpush3.bf16.msra.mxu1 %v17778_v35  ;;  %12312 = vmatprep.subr.bf16.mxu0 %v17776_v53  ;;  %v17801_v35 = vld [vmem:[#allocation8 + $0x1dd4] ss:$12 sps:$4 sm:$0xff]  }
 0x31e   :  { %16015 = vmatprep.subr.bf16.mxu1 %v17782_v36  ;;  %v17812_v53 = vld [vmem:[#allocation8 + $0xcc8] ss:$12 sps:$4 sm:$0xff]  }
 0x320   :  { %12313 = vmatpush1.bf16.msra.mxu0 %v17774_v60  ;;  %v17813_v60 = vld [vmem:[#allocation8 + $0xc08] ss:$12 sps:$4 sm:$0xff]  }
 0x321   :  { %16016 = vmatpush3.bf16.msra.mxu1 %v17783_v57  ;;  %12314 = vmatprep.subr.bf16.mxu0 %v17781_v22  ;;  %v17799_v57 = vld [vmem:[#allocation8 + $0x1dd0] ss:$12 sps:$4 sm:$0xff]   ;;  %v17817_v22 = vld [vmem:[#allocation8 + $0xce0] ss:$12 sps:$4 sm:$0xff]  }
 0x322   :  { %16017 = vmatprep.subr.bf16.mxu1 %v17787_v16  ;;  %v17806_v16 = vld [vmem:[#allocation8 + $0x1dec] ss:$12 sps:$4 sm:$0xff]  }
 0x324   :  { %12315 = vmatpush1.bf16.msra.mxu0 %v17779_v24 }
 0x325   :  { %16018 = vmatpush3.bf16.msra.mxu1 %v17788_v13  ;;  %12316 = vmatprep.subr.bf16.mxu0 %v17786_v29  ;;  %v20938_v13 = vld [vmem:[#allocation39_spill] sm:$0xff]  ;;  %v20940_v29 = vld [vmem:[#allocation40_spill] sm:$0xff] }
 0x326   :  { %16019 = vmatprep.subr.bf16.mxu1 %v17792_v27  ;;  %v20939_v27 = vld [vmem:[#allocation43_spill] sm:$0xff] }
 0x327   :  { %v724_v24 = vmul.f32 %v20939_v27, %v20938_v13  ;;  %v17819_v13 = vld [vmem:[#allocation8 + $0x1e30] ss:$12 sps:$4 sm:$0xff]   ;;  %v17826_v27 = vld [vmem:[#allocation8 + $0x1e4c] ss:$12 sps:$4 sm:$0xff]  }
 0x328   :  { %12317 = vmatpush1.bf16.msra.mxu0 %v17784_v26  ;;  %v17804_v26 = vld [vmem:[#allocation8 + $0x1de8] ss:$12 sps:$4 sm:$0xff]  }
 0x329   :  { %16020 = vmatpush3.bf16.msra.mxu1 %v17793_v3  ;;  %12318 = vmatprep.subr.bf16.mxu0 %v17791_v10  ;;  %v20941_v3 = vld [vmem:[#allocation44_spill] sm:$0xff]  ;;  %v17811_v10 = vld [vmem:[#allocation8 + $0x1e04] ss:$12 sps:$4 sm:$0xff]  }
 0x32a   :  { %16021 = vmatprep.subr.bf16.mxu1 %v17797_v45  ;;  %v757_v45 = vmul.f32 %v20941_v3, %v20940_v29  ;;  %v17837_v29 = vld [vmem:[#allocation8 + $0xd40] ss:$12 sps:$4 sm:$0xff]   ;;  %v17824_v3 = vld [vmem:[#allocation8 + $0x1e48] ss:$12 sps:$4 sm:$0xff]  }
 0x32b   :  { %v15873_v8 = vpop.f32.mrb[4].mxu1 }
 0x32c   :  { %v15874_v51 = vpop.f32.mrb[5].mxu1  ;;  %12319 = vmatpush1.bf16.msra.mxu0 %v17789_v54 }
 0x32d   :  { %16022 = vmatpush3.bf16.msra.mxu1 %v17798_v33  ;;  %v20280_v46 = vadd.f32 %v15874_v51, %v15873_v8  ;;  %v15876_v48 = vpop.f32.mrb[6].mxu1  ;;  %12320 = vmatprep.subr.bf16.mxu0 %v17796_v23  ;;  %v20942_v33 = vld [vmem:[#allocation86_spill] sm:$0xff]  ;;  %v20944_v23 = vld [vmem:[#allocation87_spill] sm:$0xff] }
 0x32e   :  { %16023 = vmatprep.subr.bf16.mxu1 %v17802_v6  ;;  %v15877_v12 = vpop.f32.mrb[7].mxu1  ;;  %v20943_v6 = vld [vmem:[#allocation94_spill] sm:$0xff]  ;;  %v20945_v8 = vld [vmem:[#allocation95_spill] sm:$0xff] }
 0x32f   :  { %v20282_v36 = vadd.f32 %v15877_v12, %v15876_v48  ;;  %v727_v54 = vmul.f32 %v20943_v6, %v20942_v33  ;;  %v17818_v51 = vld [vmem:[#allocation8 + $0xc20] ss:$12 sps:$4 sm:$0xff]   ;;  %v20294_v12 = vpack.c.bf16 %v757_v45, %v724_v24  ;;  %v17833_v24 = vld [vmem:[#allocation8 + $0xc68] ss:$12 sps:$4 sm:$0xff]   ;;  %v17831_v45 = vld [vmem:[#allocation8 + $0x1e64] ss:$12 sps:$4 sm:$0xff]  }
 0x330   :  { %12321 = vmatpush1.bf16.msra.mxu0 %v17794_v32  ;;  %v20946_v48 = vld [vmem:[#allocation24_spill] sm:$0xff] }
 0x331   :  { %16024 = vmatpush3.bf16.msra.mxu1 %v17803_v1  ;;  %12322 = vmatprep.subr.bf16.mxu0 %v17801_v35  ;;  %v760_v1 = vmul.f32 %v20945_v8, %v20944_v23  ;;  %v17809_v32 = vld [vmem:[#allocation8 + $0x1e00] ss:$12 sps:$4 sm:$0xff]   ;;  %v17816_v35 = vld [vmem:[#allocation8 + $0x1e1c] ss:$12 sps:$4 sm:$0xff]   ;;  %v17843_v8 = vld [vmem:[#allocation8 + $0xc98] ss:$12 sps:$4 sm:$0xff]  }
 0x332   :  { %16025 = vmatprep.subr.bf16.mxu1 %v17807_v50  ;;  %v17822_v50 = vld [vmem:[#allocation8 + $0xcf8] ss:$12 sps:$4 sm:$0xff]   ;;  %v17829_v33 = vld [vmem:[#allocation8 + $0x1e60] ss:$12 sps:$4 sm:$0xff]  }
 0x334   :  { %12323 = vmatpush1.bf16.msra.mxu0 %v17799_v57  ;;  %v17827_v57 = vld [vmem:[#allocation8 + $0xd10] ss:$12 sps:$4 sm:$0xff]  }
 0x335   :  { %16026 = vmatpush3.bf16.msra.mxu1 %v17808_v0  ;;  %12324 = vmatprep.subr.bf16.mxu0 %v17806_v16  ;;  %v20296_v0 = vpack.c.bf16 %v760_v1, %v727_v54  ;;  %v17821_v16 = vld [vmem:[#allocation8 + $0x1e34] ss:$12 sps:$4 sm:$0xff]   ;;  %v17836_v54 = vld [vmem:[#allocation8 + $0x1e7c] ss:$12 sps:$4 sm:$0xff]  }
 0x336   :  { %16033 = vmatprep.subr.bf16.mxu1 %v17812_v53  ;;  %v17823_v53 = vld [vmem:[#allocation8 + $0xc38] ss:$12 sps:$4 sm:$0xff]  }
 0x338   :  { %13216 = vmatmul.mubr.bf16.vlgmr.msra.gmra.mrb[32].mxu1 %v20178_v25  ;;  %12325 = vmatpush1.bf16.msra.mxu0 %v17804_v26  ;;  %v17814_v25 = vld [vmem:[#allocation8 + $0x1e18] ss:$12 sps:$4 sm:$0xff]   ;;  %v17838_v26 = vld [vmem:[#allocation8 + $0xc80] ss:$12 sps:$4 sm:$0xff]  }
 0x339   :  { %16034 = vmatpush3.bf16.msra.mxu1 %v17813_v60  ;;  %13256 = vmatprep.mubr.bf16.mxu1 %v20946_v48  ;;  %v17828_v60 = vld [vmem:[#allocation8 + $0xc50] ss:$12 sps:$4 sm:$0xff]  }
 0x33a   :  { %16035 = vmatprep.subr.bf16.mxu1 %v17817_v22  ;;  %12337 = vmatprep.subr.bf16.mxu0 %v17811_v10  ;;  %v17832_v22 = vld [vmem:[#allocation8 + $0xd28] ss:$12 sps:$4 sm:$0xff]   ;;  %v17842_v10 = vld [vmem:[#allocation8 + $0xd58] ss:$12 sps:$4 sm:$0xff]  }
 0x33b   :  { %12327 = vmatmul.mubr.bf16.vlgmr.msra.gmra.mrb[0].mxu0 %v20294_v12 }
 0x33c   :  { %12338 = vmatpush1.bf16.msra.mxu0 %v17809_v32  ;;  %12369 = vmatprep.mubr.bf16.mxu0 %v20296_v0  ;;  %v17834_v32 = vld [vmem:[#allocation8 + $0x1e78] ss:$12 sps:$4 sm:$0xff]  }
 0x33d   :  { %16036 = vmatpush3.bf16.msra.mxu1 %v17818_v51  ;;  %12339 = vmatprep.subr.bf16.mxu0 %v17816_v35 }
 0x33e   :  { %16037 = vmatprep.subr.bf16.mxu1 %v17822_v50  ;;  %v17847_v50 = vld [vmem:[#allocation8 + $0xd70] ss:$12 sps:$4 sm:$0xff]  }
 0x340   :  { %12340 = vmatpush1.bf16.msra.mxu0 %v17814_v25  ;;  %v17848_v25 = vld [vmem:[#allocation8 + $0xcb0] ss:$12 sps:$4 sm:$0xff]  }
 0x341   :  { %16038 = vmatpush3.bf16.msra.mxu1 %v17823_v53  ;;  %12341 = vmatprep.subr.bf16.mxu0 %v17821_v16 }
 0x342   :  { %16039 = vmatprep.subr.bf16.mxu1 %v17827_v57  ;;  %v17841_v57 = vld [vmem:[#allocation8 + $0x1e94] ss:$12 sps:$4 sm:$0xff]  }
 0x344   :  { %12342 = vmatpush1.bf16.msra.mxu0 %v17819_v13  ;;  %v17846_v13 = vld [vmem:[#allocation8 + $0x1eac] ss:$12 sps:$4 sm:$0xff]  }
 0x345   :  { %16040 = vmatpush3.bf16.msra.mxu1 %v17828_v60  ;;  %12343 = vmatprep.subr.bf16.mxu0 %v17826_v27  ;;  %v17852_v60 = vld [vmem:[#allocation8 + $0xe48] ss:$12 sps:$4 sm:$0xff]  }
 0x346   :  { %16041 = vmatprep.subr.bf16.mxu1 %v17832_v22  ;;  %v17839_v22 = vld [vmem:[#allocation8 + $0x1e90] ss:$12 sps:$4 sm:$0xff]   ;;  %v17853_v27 = vld [vmem:[#allocation8 + $0xd88] ss:$12 sps:$4 sm:$0xff]  }
 0x348   :  { %12344 = vmatpush1.bf16.msra.mxu0 %v17824_v3  ;;  %v20947_v3 = vld [vmem:[#allocation23_spill] sm:$0xff] }
 0x349   :  { %16042 = vmatpush3.bf16.msra.mxu1 %v17833_v24  ;;  %12345 = vmatprep.subr.bf16.mxu0 %v17831_v45  ;;  %v17857_v24 = vld [vmem:[#allocation8 + $0xe60] ss:$12 sps:$4 sm:$0xff]  }
 0x34a   :  { %16043 = vmatprep.subr.bf16.mxu1 %v17837_v29  ;;  %v17851_v29 = vld [vmem:[#allocation8 + $0x1ec4] ss:$12 sps:$4 sm:$0xff]   ;;  %v17858_v45 = vld [vmem:[#allocation8 + $0xda0] ss:$12 sps:$4 sm:$0xff]  }
 0x34b   :  { %v15895_v6 = vpop.f32.mrb[8].mxu1 }
 0x34c   :  { %v15896_v23 = vpop.f32.mrb[9].mxu1  ;;  %12346 = vmatpush1.bf16.msra.mxu0 %v17829_v33  ;;  %v17856_v33 = vld [vmem:[#allocation8 + $0x1edc] ss:$12 sps:$4 sm:$0xff]  }
 0x34d   :  { %v15897_v1 = vadd.f32 %v15896_v23, %v15895_v6  ;;  %v15898_v51 = vpop.f32.mrb[10].mxu1  ;;  %16044 = vmatpush3.bf16.msra.mxu1 %v17838_v26  ;;  %12347 = vmatprep.subr.bf16.mxu0 %v17836_v54  ;;  %v20948_v26 = vld [vmem:[#allocation35_spill] sm:$0xff]  ;;  %v17867_v54 = vld [vmem:[#allocation8 + $0xe90] ss:$12 sps:$4 sm:$0xff]  }
 0x34e   :  { %v15899_v48 = vpop.f32.mrb[11].mxu1  ;;  %16045 = vmatprep.subr.bf16.mxu1 %v17842_v10  ;;  %v17849_v10 = vld [vmem:[#allocation8 + $0x1ec0] ss:$12 sps:$4 sm:$0xff]   ;;  %v17863_v6 = vld [vmem:[#allocation8 + $0xdb8] ss:$12 sps:$4 sm:$0xff]  }
 0x34f   :  { %v20301_v35 = vadd.f32 %v15897_v1, %v20280_v46  ;;  %v15900_v53 = vadd.f32 %v15899_v48, %v15898_v51  ;;  %v17844_v46 = vld [vmem:[#allocation8 + $0x1ea8] ss:$12 sps:$4 sm:$0xff]   ;;  %v17854_v23 = vld [vmem:[#allocation8 + $0x1ed8] ss:$12 sps:$4 sm:$0xff]   ;;  %v17868_v1 = vld [vmem:[#allocation8 + $0xdd0] ss:$12 sps:$4 sm:$0xff]  }
 0x350   :  { %12348 = vmatpush1.bf16.msra.mxu0 %v17834_v32  ;;  %v17872_v51 = vld [vmem:[#allocation8 + $0xea8] ss:$12 sps:$4 sm:$0xff]   ;;  %v17866_v48 = vld [vmem:[#allocation8 + $0x1f0c] ss:$12 sps:$4 sm:$0xff]  }
 0x351   :  { %v20304_v16 = vadd.f32 %v15900_v53, %v20282_v36  ;;  %16046 = vmatpush3.bf16.msra.mxu1 %v17843_v8  ;;  %12349 = vmatprep.subr.bf16.mxu0 %v17841_v57  ;;  %v17862_v36 = vld [vmem:[#allocation8 + $0xe78] ss:$12 sps:$4 sm:$0xff]   ;;  %v17861_v8 = vld [vmem:[#allocation8 + $0x1ef4] ss:$12 sps:$4 sm:$0xff]  }
 0x352   :  { %16047 = vmatprep.subr.bf16.mxu1 %v17847_v50  ;;  %v17859_v50 = vld [vmem:[#allocation8 + $0x1ef0] ss:$12 sps:$4 sm:$0xff]   ;;  %v17873_v32 = vld [vmem:[#allocation8 + $0xde8] ss:$12 sps:$4 sm:$0xff]   ;;  %v17877_v53 = vld [vmem:[#allocation8 + $0xec0] ss:$12 sps:$4 sm:$0xff]  }
 0x353   :  { %v17864_v57 = vld [vmem:[#allocation8 + $0x1f08] ss:$12 sps:$4 sm:$0xff]  }
 0x354   :  { %12350 = vmatpush1.bf16.msra.mxu0 %v17839_v22  ;;  %v17882_v22 = vld [vmem:[#allocation8 + $0xed8] ss:$12 sps:$4 sm:$0xff]  }
 0x355   :  { %16048 = vmatpush3.bf16.msra.mxu1 %v17848_v25  ;;  %12351 = vmatprep.subr.bf16.mxu0 %v17846_v13  ;;  %v17871_v25 = vld [vmem:[#allocation8 + $0x1f24] ss:$12 sps:$4 sm:$0xff]   ;;  %v17869_v13 = vld [vmem:[#allocation8 + $0x1f20] ss:$12 sps:$4 sm:$0xff]  }
 0x356   :  { %16055 = vmatprep.subr.bf16.mxu1 %v17852_v60  ;;  %v17878_v60 = vld [vmem:[#allocation8 + $0xe00] ss:$12 sps:$4 sm:$0xff]  }
 0x358   :  { %13257 = vmatmul.mubr.bf16.vlgmr.msra.gmra.mrb[36].mxu1 %v20947_v3  ;;  %12352 = vmatpush1.bf16.msra.mxu0 %v17844_v46 }
 0x359   :  { %16056 = vmatpush3.bf16.msra.mxu1 %v17853_v27  ;;  %13297 = vmatprep.mubr.bf16.mxu1 %v20948_v26 }
 0x35a   :  { %16057 = vmatprep.subr.bf16.mxu1 %v17857_v24  ;;  %12353 = vmatprep.subr.bf16.mxu0 %v17851_v29  ;;  %v17876_v24 = vld [vmem:[#allocation8 + $0x1f3c] ss:$12 sps:$4 sm:$0xff]   ;;  %v17883_v29 = vld [vmem:[#allocation8 + $0xe18] ss:$12 sps:$4 sm:$0xff]  }
 0x35c   :  { %12354 = vmatpush1.bf16.msra.mxu0 %v17849_v10  ;;  %v17874_v10 = vld [vmem:[#allocation8 + $0x1f38] ss:$12 sps:$4 sm:$0xff]  }
 0x35d   :  { %16058 = vmatpush3.bf16.msra.mxu1 %v17858_v45  ;;  %12355 = vmatprep.subr.bf16.mxu0 %v17856_v33 }
 0x35e   :  { %16059 = vmatprep.subr.bf16.mxu1 %v17862_v36  ;;  %v17887_v36 = vld [vmem:[#allocation8 + $0xef0] ss:$12 sps:$4 sm:$0xff]  }
 0x360   :  { %12356 = vmatpush1.bf16.msra.mxu0 %v17854_v23  ;;  %v17888_v23 = vld [vmem:[#allocation8 + $0xe30] ss:$12 sps:$4 sm:$0xff]  }
 0x361   :  { %16060 = vmatpush3.bf16.msra.mxu1 %v17863_v6  ;;  %12357 = vmatprep.subr.bf16.mxu0 %v17861_v8 }
 0x362   :  { %16061 = vmatprep.subr.bf16.mxu1 %v17867_v54  ;;  %v17881_v54 = vld [vmem:[#allocation8 + $0x1f54] ss:$12 sps:$4 sm:$0xff]  }
 0x364   :  { %12358 = vmatpush1.bf16.msra.mxu0 %v17859_v50  ;;  %v17886_v50 = vld [vmem:[#allocation8 + $0x1f6c] ss:$12 sps:$4 sm:$0xff]  }
 0x365   :  { %16062 = vmatpush3.bf16.msra.mxu1 %v17868_v1  ;;  %12359 = vmatprep.subr.bf16.mxu0 %v17866_v48  ;;  %v17892_v1 = vld [vmem:[#allocation8 + $0xfc8] ss:$12 sps:$4 sm:$0xff]  }
 0x366   :  { %16063 = vmatprep.subr.bf16.mxu1 %v17872_v51  ;;  %v17879_v51 = vld [vmem:[#allocation8 + $0x1f50] ss:$12 sps:$4 sm:$0xff]   ;;  %v17893_v48 = vld [vmem:[#allocation8 + $0xf08] ss:$12 sps:$4 sm:$0xff]  }
 0x368   :  { %12360 = vmatpush1.bf16.msra.mxu0 %v17864_v57 }
 0x369   :  { %16064 = vmatpush3.bf16.msra.mxu1 %v17873_v32  ;;  %12361 = vmatprep.subr.bf16.mxu0 %v17871_v25  ;;  %v17897_v32 = vld [vmem:[#allocation8 + $0xfe0] ss:$12 sps:$4 sm:$0xff]   ;;  %v20951_v25 = vld [vmem:[#allocation54_spill] sm:$0xff] }
 0x36a   :  { %16065 = vmatprep.subr.bf16.mxu1 %v17877_v53  ;;  %v20950_v53 = vld [vmem:[#allocation61_spill] sm:$0xff] }
 0x36b   :  { %v15917_v27 = vpop.f32.mrb[12].mxu1 }
 0x36c   :  { %v15918_v46 = vpop.f32.mrb[13].mxu1  ;;  %12362 = vmatpush1.bf16.msra.mxu0 %v17869_v13  ;;  %v17891_v13 = vld [vmem:[#allocation8 + $0x1f84] ss:$12 sps:$4 sm:$0xff]  }
 0x36d   :  { %v15919_v3 = vadd.f32 %v15918_v46, %v15917_v27  ;;  %v15920_v45 = vpop.f32.mrb[14].mxu1  ;;  %16066 = vmatpush3.bf16.msra.mxu1 %v17878_v60  ;;  %12363 = vmatprep.subr.bf16.mxu0 %v17876_v24  ;;  %v20952_v60 = vld [vmem:[#allocation62_spill] sm:$0xff] }
 0x36e   :  { %v15921_v26 = vpop.f32.mrb[15].mxu1  ;;  %16067 = vmatprep.subr.bf16.mxu1 %v17882_v22  ;;  %v759_v22 = vmul.f32 %v20952_v60, %v20951_v25  ;;  %v20953_v27 = vld [vmem:[#allocation106_spill] sm:$0xff] }
 0x36f   :  { %v20309_v33 = vadd.f32 %v15919_v3, %v20301_v35  ;;  %v15922_v6 = vadd.f32 %v15921_v26, %v15920_v45  ;;  %v20949_v35 = vld [vmem:[#allocation53_spill] sm:$0xff]  ;;  %v20954_v24 = vld [vmem:[#allocation114_spill] sm:$0xff]  ;;  %v20956_v3 = vld [vmem:[#allocation115_spill] sm:$0xff] }
 0x370   :  { %12364 = vmatpush1.bf16.msra.mxu0 %v17874_v10  ;;  %v726_v57 = vmul.f32 %v20950_v53, %v20949_v35  ;;  %v729_v46 = vmul.f32 %v20954_v24, %v20953_v27  ;;  %v17898_v26 = vld [vmem:[#allocation8 + $0xf20] ss:$12 sps:$4 sm:$0xff]   ;;  %v17902_v10 = vld [vmem:[#allocation8 + $0xff8] ss:$12 sps:$4 sm:$0xff]   ;;  %v17907_v53 = vld [vmem:[#allocation8 + $0x1010] ss:$12 sps:$4 sm:$0xff]  }
 0x371   :  { %v20312_v8 = vadd.f32 %v15922_v6, %v20304_v16  ;;  %16068 = vmatpush3.bf16.msra.mxu1 %v17883_v29  ;;  %12365 = vmatprep.subr.bf16.mxu0 %v17881_v54  ;;  %v17884_v16 = vld [vmem:[#allocation8 + $0x1f68] ss:$12 sps:$4 sm:$0xff]   ;;  %v20955_v29 = vld [vmem:[#allocation107_spill] sm:$0xff]  ;;  %v17899_v25 = vld [vmem:[#allocation8 + $0x1fb0] ss:$12 sps:$4 sm:$0xff]  }
 0x372   :  { %16069 = vmatprep.subr.bf16.mxu1 %v17887_v36  ;;  %v762_v45 = vmul.f32 %v20956_v3, %v20955_v29  ;;  %v20957_v36 = vld [vmem:[#allocation38_spill] sm:$0xff]  ;;  %v20958_v6 = vld [vmem:[#allocation51_spill] sm:$0xff]  ;;  %v20324_v54 = vpack.c.bf16 %v759_v22, %v726_v57  ;;  %v17913_v22 = vld [vmem:[#allocation8 + $0xf68] ss:$12 sps:$4 sm:$0xff]  }
 0x373   :  { %v17903_v35 = vld [vmem:[#allocation8 + $0xf38] ss:$12 sps:$4 sm:$0xff]   ;;  %v17908_v57 = vld [vmem:[#allocation8 + $0xf50] ss:$12 sps:$4 sm:$0xff]   ;;  %v17918_v24 = vld [vmem:[#allocation8 + $0xf80] ss:$12 sps:$4 sm:$0xff]  }
 0x374   :  { %12366 = vmatpush1.bf16.msra.mxu0 %v17879_v51  ;;  %v20326_v51 = vpack.c.bf16 %v762_v45, %v729_v46  ;;  %v17906_v60 = vld [vmem:[#allocation8 + $0x1fcc] ss:$12 sps:$4 sm:$0xff]   ;;  %v17911_v27 = vld [vmem:[#allocation8 + $0x1fe4] ss:$12 sps:$4 sm:$0xff]   ;;  %v17916_v45 = vld [vmem:[#allocation8 + $0x1ffc] ss:$12 sps:$4 sm:$0xff]  }
 0x375   :  { %16070 = vmatpush3.bf16.msra.mxu1 %v17888_v23  ;;  %12367 = vmatprep.subr.bf16.mxu0 %v17886_v50  ;;  %v17889_v23 = vld [vmem:[#allocation8 + $0x1f80] ss:$12 sps:$4 sm:$0xff]   ;;  %v17894_v50 = vld [vmem:[#allocation8 + $0x1f98] ss:$12 sps:$4 sm:$0xff]  }
 0x376   :  { %16077 = vmatprep.subr.bf16.mxu1 %v17892_v1  ;;  %v17896_v1 = vld [vmem:[#allocation8 + $0x1f9c] ss:$12 sps:$4 sm:$0xff]   ;;  %v17922_v46 = vld [vmem:[#allocation8 + $0x1058] ss:$12 sps:$4 sm:$0xff]   ;;  %v17909_v29 = vld [vmem:[#allocation8 + $0x1fe0] ss:$12 sps:$4 sm:$0xff]  }
 0x378   :  { %13298 = vmatmul.mubr.bf16.vlgmr.msra.gmra.mrb[40].mxu1 %v20957_v36  ;;  %12368 = vmatpush1.bf16.msra.mxu0 %v17884_v16  ;;  %v17917_v16 = vld [vmem:[#allocation8 + $0x1040] ss:$12 sps:$4 sm:$0xff]  }
 0x379   :  { %16078 = vmatpush3.bf16.msra.mxu1 %v17893_v48  ;;  %13338 = vmatprep.mubr.bf16.mxu1 %v20958_v6  ;;  %v17901_v48 = vld [vmem:[#allocation8 + $0x1fb4] ss:$12 sps:$4 sm:$0xff]  }
 0x37a   :  { %16079 = vmatprep.subr.bf16.mxu1 %v17897_v32  ;;  %12380 = vmatprep.subr.bf16.mxu0 %v17891_v13  ;;  %v17912_v32 = vld [vmem:[#allocation8 + $0x1028] ss:$12 sps:$4 sm:$0xff]  }
 0x37b   :  { %12370 = vmatmul.mubr.bf16.vlgmr.msra.gmra.mrb[0].mxu0 %v20324_v54  ;;  %v17904_v13 = vld [vmem:[#allocation8 + $0x1fc8] ss:$12 sps:$4 sm:$0xff]  }
 0x37c   :  { %12381 = vmatpush1.bf16.msra.mxu0 %v17889_v23  ;;  %12412 = vmatprep.mubr.bf16.mxu0 %v20326_v51  ;;  %v17927_v23 = vld [vmem:[#allocation8 + $0x1070] ss:$12 sps:$4 sm:$0xff]  }
 0x37d   :  { %16080 = vmatpush3.bf16.msra.mxu1 %v17898_v26  ;;  %12382 = vmatprep.subr.bf16.mxu0 %v17896_v1  ;;  %v17923_v26 = vld [vmem:[#allocation8 + $0xf98] ss:$12 sps:$4 sm:$0xff]  }
 0x37e   :  { %16081 = vmatprep.subr.bf16.mxu1 %v17902_v10 }
 0x380   :  { %12383 = vmatpush1.bf16.msra.mxu0 %v17894_v50 }
 0x381   :  { %16082 = vmatpush3.bf16.msra.mxu1 %v17903_v35  ;;  %12384 = vmatprep.subr.bf16.mxu0 %v17901_v48  ;;  %v17914_v35 = vld [vmem:[#allocation8 + $0x1ff8] ss:$12 sps:$4 sm:$0xff]   ;;  %v17921_v48 = vld [vmem:[#allocation8 + $0x2014] ss:$12 sps:$4 sm:$0xff]  }
 0x382   :  { %16083 = vmatprep.subr.bf16.mxu1 %v17907_v53 }
 0x384   :  { %12385 = vmatpush1.bf16.msra.mxu0 %v17899_v25  ;;  %v17932_v25 = vld [vmem:[#allocation8 + $0x1148] ss:$12 sps:$4 sm:$0xff]  }
 0x385   :  { %16084 = vmatpush3.bf16.msra.mxu1 %v17908_v57  ;;  %12386 = vmatprep.subr.bf16.mxu0 %v17906_v60  ;;  %v17928_v57 = vld [vmem:[#allocation8 + $0xfb0] ss:$12 sps:$4 sm:$0xff]  }
 0x386   :  { %16085 = vmatprep.subr.bf16.mxu1 %v17912_v32  ;;  %v17919_v60 = vld [vmem:[#allocation8 + $0x2010] ss:$12 sps:$4 sm:$0xff]  }
 0x388   :  { %12387 = vmatpush1.bf16.msra.mxu0 %v17904_v13  ;;  %v17937_v13 = vld [vmem:[#allocation8 + $0x1160] ss:$12 sps:$4 sm:$0xff]  }
 0x389   :  { %16086 = vmatpush3.bf16.msra.mxu1 %v17913_v22  ;;  %12388 = vmatprep.subr.bf16.mxu0 %v17911_v27  ;;  %v17926_v22 = vld [vmem:[#allocation8 + $0x202c] ss:$12 sps:$4 sm:$0xff]   ;;  %v17931_v27 = vld [vmem:[#allocation8 + $0x2044] ss:$12 sps:$4 sm:$0xff]  }
 0x38a   :  { %16087 = vmatprep.subr.bf16.mxu1 %v17917_v16  ;;  %v17933_v16 = vld [vmem:[#allocation8 + $0x1088] ss:$12 sps:$4 sm:$0xff]  }
 0x38b   :  { %v15939_v3 = vpop.f32.mrb[16].mxu1 }
 0x38c   :  { %v15940_v36 = vpop.f32.mrb[17].mxu1  ;;  %12389 = vmatpush1.bf16.msra.mxu0 %v17909_v29  ;;  %v20960_v29 = vld [vmem:[#allocation65_spill] sm:$0xff] }
 0x38d   :  { %v15941_v10 = vadd.f32 %v15940_v36, %v15939_v3  ;;  %v15942_v6 = vpop.f32.mrb[18].mxu1  ;;  %16088 = vmatpush3.bf16.msra.mxu1 %v17918_v24  ;;  %12390 = vmatprep.subr.bf16.mxu0 %v17916_v45  ;;  %v20959_v24 = vld [vmem:[#allocation60_spill] sm:$0xff]  ;;  %v17943_v36 = vld [vmem:[#allocation8 + $0x10b8] ss:$12 sps:$4 sm:$0xff]  }
 0x38e   :  { %v15943_v1 = vpop.f32.mrb[19].mxu1  ;;  %16089 = vmatprep.subr.bf16.mxu1 %v17922_v46  ;;  %v17938_v46 = vld [vmem:[#allocation8 + $0x10a0] ss:$12 sps:$4 sm:$0xff]   ;;  %v17936_v45 = vld [vmem:[#allocation8 + $0x205c] ss:$12 sps:$4 sm:$0xff]  }
 0x38f   :  { %v20331_v53 = vadd.f32 %v15941_v10, %v20309_v33  ;;  %v15944_v50 = vadd.f32 %v15943_v1, %v15942_v6  ;;  %v17924_v33 = vld [vmem:[#allocation8 + $0x2028] ss:$12 sps:$4 sm:$0xff]   ;;  %v17929_v3 = vld [vmem:[#allocation8 + $0x2040] ss:$12 sps:$4 sm:$0xff]   ;;  %v17934_v10 = vld [vmem:[#allocation8 + $0x2058] ss:$12 sps:$4 sm:$0xff]  }
 0x390   :  { %12391 = vmatpush1.bf16.msra.mxu0 %v17914_v35  ;;  %v17941_v6 = vld [vmem:[#allocation8 + $0x2074] ss:$12 sps:$4 sm:$0xff]   ;;  %v17939_v35 = vld [vmem:[#allocation8 + $0x2070] ss:$12 sps:$4 sm:$0xff]  }
 0x391   :  { %v20334_v32 = vadd.f32 %v15944_v50, %v20312_v8  ;;  %16090 = vmatpush3.bf16.msra.mxu1 %v17923_v26  ;;  %12392 = vmatprep.subr.bf16.mxu0 %v17921_v48  ;;  %v17942_v8 = vld [vmem:[#allocation8 + $0x1178] ss:$12 sps:$4 sm:$0xff]   ;;  %v17947_v26 = vld [vmem:[#allocation8 + $0x1190] ss:$12 sps:$4 sm:$0xff]   ;;  %v17952_v1 = vld [vmem:[#allocation8 + $0x11a8] ss:$12 sps:$4 sm:$0xff]  }
 0x392   :  { %16091 = vmatprep.subr.bf16.mxu1 %v17927_v23  ;;  %v17948_v23 = vld [vmem:[#allocation8 + $0x10d0] ss:$12 sps:$4 sm:$0xff]   ;;  %v17946_v50 = vld [vmem:[#allocation8 + $0x208c] ss:$12 sps:$4 sm:$0xff]   ;;  %v17953_v48 = vld [vmem:[#allocation8 + $0x10e8] ss:$12 sps:$4 sm:$0xff]  }
 0x394   :  { %12393 = vmatpush1.bf16.msra.mxu0 %v17919_v60  ;;  %v17951_v60 = vld [vmem:[#allocation8 + $0x20a4] ss:$12 sps:$4 sm:$0xff]  }
 0x395   :  { %16092 = vmatpush3.bf16.msra.mxu1 %v17928_v57  ;;  %12394 = vmatprep.subr.bf16.mxu0 %v17926_v22  ;;  %v17957_v57 = vld [vmem:[#allocation8 + $0x11c0] ss:$12 sps:$4 sm:$0xff]  }
 0x396   :  { %16099 = vmatprep.subr.bf16.mxu1 %v17932_v25  ;;  %v17944_v25 = vld [vmem:[#allocation8 + $0x2088] ss:$12 sps:$4 sm:$0xff]   ;;  %v17958_v22 = vld [vmem:[#allocation8 + $0x1100] ss:$12 sps:$4 sm:$0xff]  }
 0x398   :  { %13339 = vmatmul.mubr.bf16.vlgmr.msra.gmra.mrb[44].mxu1 %v20959_v24  ;;  %12395 = vmatpush1.bf16.msra.mxu0 %v17924_v33 }
 0x399   :  { %16100 = vmatpush3.bf16.msra.mxu1 %v17933_v16  ;;  %13379 = vmatprep.mubr.bf16.mxu1 %v20960_v29  ;;  %v17962_v16 = vld [vmem:[#allocation8 + $0x11d8] ss:$12 sps:$4 sm:$0xff]  }
 0x39a   :  { %16101 = vmatprep.subr.bf16.mxu1 %v17937_v13  ;;  %12396 = vmatprep.subr.bf16.mxu0 %v17931_v27  ;;  %v17949_v13 = vld [vmem:[#allocation8 + $0x20a0] ss:$12 sps:$4 sm:$0xff]   ;;  %v17956_v27 = vld [vmem:[#allocation8 + $0x20bc] ss:$12 sps:$4 sm:$0xff]  }
 0x39c   :  { %12397 = vmatpush1.bf16.msra.mxu0 %v17929_v3  ;;  %v17967_v3 = vld [vmem:[#allocation8 + $0x11f0] ss:$12 sps:$4 sm:$0xff]  }
 0x39d   :  { %16102 = vmatpush3.bf16.msra.mxu1 %v17938_v46  ;;  %12398 = vmatprep.subr.bf16.mxu0 %v17936_v45  ;;  %v17963_v46 = vld [vmem:[#allocation8 + $0x1118] ss:$12 sps:$4 sm:$0xff]  }
 0x39e   :  { %16103 = vmatprep.subr.bf16.mxu1 %v17942_v8 }
 0x3a0   :  { %12399 = vmatpush1.bf16.msra.mxu0 %v17934_v10 }
 0x3a1   :  { %16104 = vmatpush3.bf16.msra.mxu1 %v17943_v36  ;;  %12400 = vmatprep.subr.bf16.mxu0 %v17941_v6  ;;  %v17954_v36 = vld [vmem:[#allocation8 + $0x20b8] ss:$12 sps:$4 sm:$0xff]   ;;  %v17961_v6 = vld [vmem:[#allocation8 + $0x20d4] ss:$12 sps:$4 sm:$0xff]  }
 0x3a2   :  { %16105 = vmatprep.subr.bf16.mxu1 %v17947_v26 }
 0x3a4   :  { %12401 = vmatpush1.bf16.msra.mxu0 %v17939_v35  ;;  %v17972_v35 = vld [vmem:[#allocation8 + $0x12c8] ss:$12 sps:$4 sm:$0xff]  }
 0x3a5   :  { %16106 = vmatpush3.bf16.msra.mxu1 %v17948_v23  ;;  %12402 = vmatprep.subr.bf16.mxu0 %v17946_v50  ;;  %v17968_v23 = vld [vmem:[#allocation8 + $0x1130] ss:$12 sps:$4 sm:$0xff]  }
 0x3a6   :  { %16107 = vmatprep.subr.bf16.mxu1 %v17952_v1  ;;  %v17959_v50 = vld [vmem:[#allocation8 + $0x20d0] ss:$12 sps:$4 sm:$0xff]  }
 0x3a8   :  { %12403 = vmatpush1.bf16.msra.mxu0 %v17944_v25  ;;  %v17977_v25 = vld [vmem:[#allocation8 + $0x12e0] ss:$12 sps:$4 sm:$0xff]  }
 0x3a9   :  { %16108 = vmatpush3.bf16.msra.mxu1 %v17953_v48  ;;  %12404 = vmatprep.subr.bf16.mxu0 %v17951_v60  ;;  %v17966_v48 = vld [vmem:[#allocation8 + $0x20ec] ss:$12 sps:$4 sm:$0xff]  }
 0x3aa   :  { %16109 = vmatprep.subr.bf16.mxu1 %v17957_v57  ;;  %v17973_v57 = vld [vmem:[#allocation8 + $0x1208] ss:$12 sps:$4 sm:$0xff]  }
 0x3ab   :  { %v15961_v33 = vpop.f32.mrb[20].mxu1  ;;  %v20962_v60 = vld [vmem:[#allocation76_spill] sm:$0xff] }
 0x3ac   :  { %v15962_v24 = vpop.f32.mrb[21].mxu1  ;;  %12405 = vmatpush1.bf16.msra.mxu0 %v17949_v13  ;;  %v20964_v13 = vld [vmem:[#allocation77_spill] sm:$0xff] }
 0x3ad   :  { %v15963_v8 = vadd.f32 %v15962_v24, %v15961_v33  ;;  %v15964_v29 = vpop.f32.mrb[22].mxu1  ;;  %16110 = vmatpush3.bf16.msra.mxu1 %v17958_v22  ;;  %12406 = vmatprep.subr.bf16.mxu0 %v17956_v27  ;;  %v17971_v27 = vld [vmem:[#allocation8 + $0x2104] ss:$12 sps:$4 sm:$0xff]   ;;  %v20965_v24 = vld [vmem:[#allocation126_spill] sm:$0xff] }
 0x3ae   :  { %v15965_v45 = vpop.f32.mrb[23].mxu1  ;;  %16111 = vmatprep.subr.bf16.mxu1 %v17962_v16  ;;  %v20963_v16 = vld [vmem:[#allocation71_spill] sm:$0xff] }
 0x3af   :  { %v20339_v26 = vadd.f32 %v15963_v8, %v20331_v53  ;;  %v15966_v10 = vadd.f32 %v15965_v45, %v15964_v29  ;;  %v20961_v53 = vld [vmem:[#allocation70_spill] sm:$0xff]  ;;  %v761_v33 = vmul.f32 %v20964_v13, %v20963_v16  ;;  %v20966_v8 = vld [vmem:[#allocation127_spill] sm:$0xff]  ;;  %v17993_v16 = vld [vmem:[#allocation8 + $0x1268] ss:$12 sps:$4 sm:$0xff]  }
 0x3b0   :  { %12407 = vmatpush1.bf16.msra.mxu0 %v17954_v36  ;;  %v728_v22 = vmul.f32 %v20962_v60, %v20961_v53  ;;  %v764_v29 = vmul.f32 %v20084_v21, %v20966_v8  ;;  %v17978_v45 = vld [vmem:[#allocation8 + $0x1220] ss:$12 sps:$4 sm:$0xff]   ;;  %v17982_v36 = vld [vmem:[#allocation8 + $0x12f8] ss:$12 sps:$4 sm:$0xff]   ;;  %v17987_v21 = vld [vmem:[#allocation8 + $0x1310] ss:$12 sps:$4 sm:$0xff]  }
 0x3b1   :  { %v20342_v1 = vadd.f32 %v15966_v10, %v20334_v32  ;;  %16112 = vmatpush3.bf16.msra.mxu1 %v17963_v46  ;;  %12408 = vmatprep.subr.bf16.mxu0 %v17961_v6  ;;  %v17964_v32 = vld [vmem:[#allocation8 + $0x20e8] ss:$12 sps:$4 sm:$0xff]   ;;  %v731_v46 = vmul.f32 %v20082_v41, %v20965_v24  ;;  %v17983_v41 = vld [vmem:[#allocation8 + $0x1238] ss:$12 sps:$4 sm:$0xff]   ;;  %v17988_v53 = vld [vmem:[#allocation8 + $0x1250] ss:$12 sps:$4 sm:$0xff]  }
 0x3b2   :  { %16113 = vmatprep.subr.bf16.mxu1 %v17967_v3  ;;  %v20967_v3 = vld [vmem:[#allocation84_spill] sm:$0xff]  ;;  %v20968_v10 = vld [vmem:[#allocation85_spill] sm:$0xff]  ;;  %v20354_v6 = vpack.c.bf16 %v761_v33, %v728_v22  ;;  %v18002_v24 = vld [vmem:[#allocation8 + $0x1358] ss:$12 sps:$4 sm:$0xff]  }
 0x3b3   :  { %v17979_v60 = vld [vmem:[#allocation8 + $0x2130] ss:$12 sps:$4 sm:$0xff]   ;;  %v17986_v22 = vld [vmem:[#allocation8 + $0x214c] ss:$12 sps:$4 sm:$0xff]   ;;  %v17984_v33 = vld [vmem:[#allocation8 + $0x2148] ss:$12 sps:$4 sm:$0xff]  }
 0x3b4   :  { %12409 = vmatpush1.bf16.msra.mxu0 %v17959_v50  ;;  %v20356_v50 = vpack.c.bf16 %v764_v29, %v731_v46  ;;  %v17997_v13 = vld [vmem:[#allocation8 + $0x1340] ss:$12 sps:$4 sm:$0xff]   ;;  %v17996_v29 = vld [vmem:[#allocation8 + $0x217c] ss:$12 sps:$4 sm:$0xff]  }
 0x3b5   :  { %16114 = vmatpush3.bf16.msra.mxu1 %v17968_v23  ;;  %12410 = vmatprep.subr.bf16.mxu0 %v17966_v48  ;;  %v17969_v23 = vld [vmem:[#allocation8 + $0x2100] ss:$12 sps:$4 sm:$0xff]   ;;  %v17974_v48 = vld [vmem:[#allocation8 + $0x2118] ss:$12 sps:$4 sm:$0xff]  }
 0x3b6   :  { %16121 = vmatprep.subr.bf16.mxu1 %v17972_v35  ;;  %v17976_v35 = vld [vmem:[#allocation8 + $0x211c] ss:$12 sps:$4 sm:$0xff]   ;;  %v17989_v46 = vld [vmem:[#allocation8 + $0x2160] ss:$12 sps:$4 sm:$0xff]  }
 0x3b8   :  { %13380 = vmatmul.mubr.bf16.vlgmr.msra.gmra.mrb[48].mxu1 %v20967_v3  ;;  %12411 = vmatpush1.bf16.msra.mxu0 %v17964_v32  ;;  %v17991_v32 = vld [vmem:[#allocation8 + $0x2164] ss:$12 sps:$4 sm:$0xff]  }
 0x3b9   :  { %16122 = vmatpush3.bf16.msra.mxu1 %v17973_v57  ;;  %13420 = vmatprep.mubr.bf16.mxu1 %v20968_v10  ;;  %v17981_v57 = vld [vmem:[#allocation8 + $0x2134] ss:$12 sps:$4 sm:$0xff]  }
 0x3ba   :  { %16123 = vmatprep.subr.bf16.mxu1 %v17977_v25  ;;  %12423 = vmatprep.subr.bf16.mxu0 %v17971_v27  ;;  %v17992_v25 = vld [vmem:[#allocation8 + $0x1328] ss:$12 sps:$4 sm:$0xff]   ;;  %v17998_v27 = vld [vmem:[#allocation8 + $0x1280] ss:$12 sps:$4 sm:$0xff]  }
 0x3bb   :  { %12413 = vmatmul.mubr.bf16.vlgmr.msra.gmra.mrb[0].mxu0 %v20354_v6 }
 0x3bc   :  { %12424 = vmatpush1.bf16.msra.mxu0 %v17969_v23  ;;  %12455 = vmatprep.mubr.bf16.mxu0 %v20356_v50  ;;  %v18007_v23 = vld [vmem:[#allocation8 + $0x1370] ss:$12 sps:$4 sm:$0xff]  }
 0x3bd   :  { %16124 = vmatpush3.bf16.msra.mxu1 %v17978_v45  ;;  %12425 = vmatprep.subr.bf16.mxu0 %v17976_v35  ;;  %v18003_v45 = vld [vmem:[#allocation8 + $0x1298] ss:$12 sps:$4 sm:$0xff]  }
 0x3be   :  { %16125 = vmatprep.subr.bf16.mxu1 %v17982_v36 }
 0x3c0   :  { %12426 = vmatpush1.bf16.msra.mxu0 %v17974_v48 }
 0x3c1   :  { %16126 = vmatpush3.bf16.msra.mxu1 %v17983_v41  ;;  %12427 = vmatprep.subr.bf16.mxu0 %v17981_v57  ;;  %v17994_v41 = vld [vmem:[#allocation8 + $0x2178] ss:$12 sps:$4 sm:$0xff]   ;;  %v18001_v57 = vld [vmem:[#allocation8 + $0x2194] ss:$12 sps:$4 sm:$0xff]  }
 0x3c2   :  { %16127 = vmatprep.subr.bf16.mxu1 %v17987_v21 }
 0x3c4   :  { %12428 = vmatpush1.bf16.msra.mxu0 %v17979_v60  ;;  %v18012_v60 = vld [vmem:[#allocation8 + $0x1448] ss:$12 sps:$4 sm:$0xff]  }
 0x3c5   :  { %16128 = vmatpush3.bf16.msra.mxu1 %v17988_v53  ;;  %12429 = vmatprep.subr.bf16.mxu0 %v17986_v22  ;;  %v18008_v53 = vld [vmem:[#allocation8 + $0x12b0] ss:$12 sps:$4 sm:$0xff]  }
 0x3c6   :  { %16129 = vmatprep.subr.bf16.mxu1 %v17992_v25  ;;  %v17999_v22 = vld [vmem:[#allocation8 + $0x2190] ss:$12 sps:$4 sm:$0xff]  }
 0x3c8   :  { %12430 = vmatpush1.bf16.msra.mxu0 %v17984_v33  ;;  %v18017_v33 = vld [vmem:[#allocation8 + $0x1460] ss:$12 sps:$4 sm:$0xff]  }
 0x3c9   :  { %16130 = vmatpush3.bf16.msra.mxu1 %v17993_v16  ;;  %12431 = vmatprep.subr.bf16.mxu0 %v17991_v32  ;;  %v18006_v16 = vld [vmem:[#allocation8 + $0x21ac] ss:$12 sps:$4 sm:$0xff]   ;;  %v18011_v32 = vld [vmem:[#allocation8 + $0x21c4] ss:$12 sps:$4 sm:$0xff]  }
 0x3ca   :  { %16131 = vmatprep.subr.bf16.mxu1 %v17997_v13  ;;  %v18013_v13 = vld [vmem:[#allocation8 + $0x1388] ss:$12 sps:$4 sm:$0xff]  }
 0x3cb   :  { %v15983_v8 = vpop.f32.mrb[24].mxu1 }
 0x3cc   :  { %v15984_v3 = vpop.f32.mrb[25].mxu1  ;;  %12432 = vmatpush1.bf16.msra.mxu0 %v17989_v46  ;;  %v20970_v46 = vld [vmem:[#allocation105_spill] sm:$0xff] }
 0x3cd   :  { %v15985_v36 = vadd.f32 %v15984_v3, %v15983_v8  ;;  %v15986_v10 = vpop.f32.mrb[26].mxu1  ;;  %16132 = vmatpush3.bf16.msra.mxu1 %v17998_v27  ;;  %12433 = vmatprep.subr.bf16.mxu0 %v17996_v29  ;;  %v20969_v27 = vld [vmem:[#allocation104_spill] sm:$0xff]  ;;  %v18023_v3 = vld [vmem:[#allocation8 + $0x13b8] ss:$12 sps:$4 sm:$0xff]  }
 0x3ce   :  { %v15987_v35 = vpop.f32.mrb[27].mxu1  ;;  %16133 = vmatprep.subr.bf16.mxu1 %v18002_v24  ;;  %v18018_v24 = vld [vmem:[#allocation8 + $0x13a0] ss:$12 sps:$4 sm:$0xff]   ;;  %v18016_v29 = vld [vmem:[#allocation8 + $0x21dc] ss:$12 sps:$4 sm:$0xff]  }
 0x3cf   :  { %v20361_v21 = vadd.f32 %v15985_v36, %v20339_v26  ;;  %v15988_v48 = vadd.f32 %v15987_v35, %v15986_v10  ;;  %v18004_v26 = vld [vmem:[#allocation8 + $0x21a8] ss:$12 sps:$4 sm:$0xff]   ;;  %v18009_v8 = vld [vmem:[#allocation8 + $0x21c0] ss:$12 sps:$4 sm:$0xff]   ;;  %v18014_v36 = vld [vmem:[#allocation8 + $0x21d8] ss:$12 sps:$4 sm:$0xff]  }
 0x3d0   :  { %12434 = vmatpush1.bf16.msra.mxu0 %v17994_v41  ;;  %v18021_v10 = vld [vmem:[#allocation8 + $0x21f4] ss:$12 sps:$4 sm:$0xff]   ;;  %v18019_v41 = vld [vmem:[#allocation8 + $0x21f0] ss:$12 sps:$4 sm:$0xff]  }
 0x3d1   :  { %v20364_v25 = vadd.f32 %v15988_v48, %v20342_v1  ;;  %16134 = vmatpush3.bf16.msra.mxu1 %v18003_v45  ;;  %12435 = vmatprep.subr.bf16.mxu0 %v18001_v57  ;;  %v18022_v1 = vld [vmem:[#allocation8 + $0x1478] ss:$12 sps:$4 sm:$0xff]   ;;  %v18027_v45 = vld [vmem:[#allocation8 + $0x1490] ss:$12 sps:$4 sm:$0xff]   ;;  %v18032_v35 = vld [vmem:[#allocation8 + $0x14a8] ss:$12 sps:$4 sm:$0xff]  }
 0x3d2   :  { %16135 = vmatprep.subr.bf16.mxu1 %v18007_v23  ;;  %v18028_v23 = vld [vmem:[#allocation8 + $0x13d0] ss:$12 sps:$4 sm:$0xff]   ;;  %v18026_v48 = vld [vmem:[#allocation8 + $0x220c] ss:$12 sps:$4 sm:$0xff]   ;;  %v18033_v57 = vld [vmem:[#allocation8 + $0x13e8] ss:$12 sps:$4 sm:$0xff]  }
 0x3d4   :  { %12436 = vmatpush1.bf16.msra.mxu0 %v17999_v22  ;;  %v18031_v22 = vld [vmem:[#allocation8 + $0x2224] ss:$12 sps:$4 sm:$0xff]  }
 0x3d5   :  { %16136 = vmatpush3.bf16.msra.mxu1 %v18008_v53  ;;  %12437 = vmatprep.subr.bf16.mxu0 %v18006_v16  ;;  %v18037_v53 = vld [vmem:[#allocation8 + $0x14c0] ss:$12 sps:$4 sm:$0xff]  }
 0x3d6   :  { %16143 = vmatprep.subr.bf16.mxu1 %v18012_v60  ;;  %v18024_v60 = vld [vmem:[#allocation8 + $0x2208] ss:$12 sps:$4 sm:$0xff]   ;;  %v18038_v16 = vld [vmem:[#allocation8 + $0x1400] ss:$12 sps:$4 sm:$0xff]  }
 0x3d8   :  { %13421 = vmatmul.mubr.bf16.vlgmr.msra.gmra.mrb[52].mxu1 %v20969_v27  ;;  %12438 = vmatpush1.bf16.msra.mxu0 %v18004_v26 }
 0x3d9   :  { %16144 = vmatpush3.bf16.msra.mxu1 %v18013_v13  ;;  %13461 = vmatprep.mubr.bf16.mxu1 %v20970_v46  ;;  %v18042_v13 = vld [vmem:[#allocation8 + $0x14d8] ss:$12 sps:$4 sm:$0xff]  }
 0x3da   :  { %16145 = vmatprep.subr.bf16.mxu1 %v18017_v33  ;;  %12439 = vmatprep.subr.bf16.mxu0 %v18011_v32  ;;  %v18029_v33 = vld [vmem:[#allocation8 + $0x2220] ss:$12 sps:$4 sm:$0xff]   ;;  %v18036_v32 = vld [vmem:[#allocation8 + $0x223c] ss:$12 sps:$4 sm:$0xff]  }
 0x3dc   :  { %12440 = vmatpush1.bf16.msra.mxu0 %v18009_v8  ;;  %v18047_v8 = vld [vmem:[#allocation8 + $0x14f0] ss:$12 sps:$4 sm:$0xff]  }
 0x3dd   :  { %16146 = vmatpush3.bf16.msra.mxu1 %v18018_v24  ;;  %12441 = vmatprep.subr.bf16.mxu0 %v18016_v29  ;;  %v18043_v24 = vld [vmem:[#allocation8 + $0x1418] ss:$12 sps:$4 sm:$0xff]  }
 0x3de   :  { %16147 = vmatprep.subr.bf16.mxu1 %v18022_v1 }
 0x3e0   :  { %12442 = vmatpush1.bf16.msra.mxu0 %v18014_v36 }
 0x3e1   :  { %16148 = vmatpush3.bf16.msra.mxu1 %v18023_v3  ;;  %12443 = vmatprep.subr.bf16.mxu0 %v18021_v10  ;;  %v18034_v3 = vld [vmem:[#allocation8 + $0x2238] ss:$12 sps:$4 sm:$0xff]   ;;  %v18041_v10 = vld [vmem:[#allocation8 + $0x2254] ss:$12 sps:$4 sm:$0xff]  }
 0x3e2   :  { %16149 = vmatprep.subr.bf16.mxu1 %v18027_v45 }
 0x3e4   :  { %12444 = vmatpush1.bf16.msra.mxu0 %v18019_v41  ;;  %v18052_v41 = vld [vmem:[#allocation8 + $0x15c8] ss:$12 sps:$4 sm:$0xff]  }
 0x3e5   :  { %16150 = vmatpush3.bf16.msra.mxu1 %v18028_v23  ;;  %12445 = vmatprep.subr.bf16.mxu0 %v18026_v48  ;;  %v18048_v23 = vld [vmem:[#allocation8 + $0x1430] ss:$12 sps:$4 sm:$0xff]  }
 0x3e6   :  { %16151 = vmatprep.subr.bf16.mxu1 %v18032_v35  ;;  %v18039_v48 = vld [vmem:[#allocation8 + $0x2250] ss:$12 sps:$4 sm:$0xff]  }
 0x3e8   :  { %12446 = vmatpush1.bf16.msra.mxu0 %v18024_v60  ;;  %v18057_v60 = vld [vmem:[#allocation8 + $0x15e0] ss:$12 sps:$4 sm:$0xff]  }
 0x3e9   :  { %16152 = vmatpush3.bf16.msra.mxu1 %v18033_v57  ;;  %12447 = vmatprep.subr.bf16.mxu0 %v18031_v22  ;;  %v18046_v57 = vld [vmem:[#allocation8 + $0x226c] ss:$12 sps:$4 sm:$0xff]  }
 0x3ea   :  { %16153 = vmatprep.subr.bf16.mxu1 %v18037_v53  ;;  %v18053_v53 = vld [vmem:[#allocation8 + $0x1508] ss:$12 sps:$4 sm:$0xff]  }
 0x3eb   :  { %v16005_v26 = vpop.f32.mrb[28].mxu1  ;;  %v20972_v22 = vld [vmem:[#allocation96_spill] sm:$0xff] }
 0x3ec   :  { %v16006_v27 = vpop.f32.mrb[29].mxu1  ;;  %12448 = vmatpush1.bf16.msra.mxu0 %v18029_v33  ;;  %v20974_v33 = vld [vmem:[#allocation97_spill] sm:$0xff] }
 0x3ed   :  { %v16007_v1 = vadd.f32 %v16006_v27, %v16005_v26  ;;  %v16008_v46 = vpop.f32.mrb[30].mxu1  ;;  %16154 = vmatpush3.bf16.msra.mxu1 %v18038_v16  ;;  %12449 = vmatprep.subr.bf16.mxu0 %v18036_v32  ;;  %v18051_v32 = vld [vmem:[#allocation8 + $0x2284] ss:$12 sps:$4 sm:$0xff]   ;;  %v733_v27 = vmul.f32 %v20166_v14, %v20130_v7 }
 0x3ee   :  { %v16009_v29 = vpop.f32.mrb[31].mxu1  ;;  %16155 = vmatprep.subr.bf16.mxu1 %v18042_v13  ;;  %v20973_v13 = vld [vmem:[#allocation89_spill] sm:$0xff]  ;;  %v18063_v7 = vld [vmem:[#allocation8 + $0x1538] ss:$12 sps:$4 sm:$0xff]  }
 0x3ef   :  { %v20369_v45 = vadd.f32 %v16007_v1, %v20361_v21  ;;  %v16010_v36 = vadd.f32 %v16009_v29, %v16008_v46  ;;  %v20971_v21 = vld [vmem:[#allocation88_spill] sm:$0xff]  ;;  %v763_v26 = vmul.f32 %v20974_v33, %v20973_v13  ;;  %v20976_v29 = vld [vmem:[#allocation125_spill] sm:$0xff]  ;;  %v18054_v14 = vld [vmem:[#allocation8 + $0x2298] ss:$12 sps:$4 sm:$0xff]  }
 0x3f0   :  { %12450 = vmatpush1.bf16.msra.mxu0 %v18034_v3  ;;  %v730_v16 = vmul.f32 %v20972_v22, %v20971_v21  ;;  %v20975_v1 = vld [vmem:[#allocation124_spill] sm:$0xff]  ;;  %v18082_v33 = vld [vmem:[#allocation8 + $0x1658] ss:$12 sps:$4 sm:$0xff]  }
 0x3f1   :  { %v20372_v35 = vadd.f32 %v16010_v36, %v20364_v25  ;;  %16156 = vmatpush3.bf16.msra.mxu1 %v18043_v24  ;;  %12451 = vmatprep.subr.bf16.mxu0 %v18041_v10  ;;  %v18044_v25 = vld [vmem:[#allocation8 + $0x2268] ss:$12 sps:$4 sm:$0xff]   ;;  %v766_v24 = vmul.f32 %v20168_v39, %v20136_v28  ;;  %v18058_v46 = vld [vmem:[#allocation8 + $0x1520] ss:$12 sps:$4 sm:$0xff]   ;;  %v18067_v28 = vld [vmem:[#allocation8 + $0x1610] ss:$12 sps:$4 sm:$0xff]  }
 0x3f2   :  { %16157 = vmatprep.subr.bf16.mxu1 %v18047_v8  ;;  %v18062_v8 = vld [vmem:[#allocation8 + $0x15f8] ss:$12 sps:$4 sm:$0xff]   ;;  %v20384_v3 = vpack.c.bf16 %v763_v26, %v730_v16  ;;  %v18049_v36 = vld [vmem:[#allocation8 + $0x2280] ss:$12 sps:$4 sm:$0xff]   ;;  %v18056_v10 = vld [vmem:[#allocation8 + $0x229c] ss:$12 sps:$4 sm:$0xff]  }
 0x3f3   :  { %v18061_v39 = vld [vmem:[#allocation8 + $0x22b4] ss:$12 sps:$4 sm:$0xff]   ;;  %v18071_v16 = vld [vmem:[#allocation8 + $0x22e4] ss:$12 sps:$4 sm:$0xff]  }
 0x3f4   :  { %12452 = vmatpush1.bf16.msra.mxu0 %v18039_v48  ;;  %v18072_v48 = vld [vmem:[#allocation8 + $0x1628] ss:$12 sps:$4 sm:$0xff]   ;;  %v18077_v21 = vld [vmem:[#allocation8 + $0x1640] ss:$12 sps:$4 sm:$0xff]  }
 0x3f5   :  { %16158 = vmatpush3.bf16.msra.mxu1 %v18048_v23  ;;  %12453 = vmatprep.subr.bf16.mxu0 %v18046_v57  ;;  %v20386_v23 = vpack.c.bf16 %v766_v24, %v733_v27  ;;  %v18059_v57 = vld [vmem:[#allocation8 + $0x22b0] ss:$12 sps:$4 sm:$0xff]   ;;  %v18064_v22 = vld [vmem:[#allocation8 + $0x22c8] ss:$12 sps:$4 sm:$0xff]   ;;  %v18078_v13 = vld [vmem:[#allocation8 + $0x1580] ss:$12 sps:$4 sm:$0xff]  }
 0x3f6   :  { %16165 = vmatprep.subr.bf16.mxu1 %v18052_v41  ;;  %v18068_v41 = vld [vmem:[#allocation8 + $0x1550] ss:$12 sps:$4 sm:$0xff]   ;;  %v18069_v26 = vld [vmem:[#allocation8 + $0x22e0] ss:$12 sps:$4 sm:$0xff]   ;;  %v18083_v24 = vld [vmem:[#allocation8 + $0x1598] ss:$12 sps:$4 sm:$0xff]  }
 0x3f8   :  { %13462 = vmatmul.mubr.bf16.vlgmr.msra.gmra.mrb[56].mxu1 %v20975_v1  ;;  %12454 = vmatpush1.bf16.msra.mxu0 %v18044_v25 }
 0x3f9   :  { %16166 = vmatpush3.bf16.msra.mxu1 %v18053_v53  ;;  %13502 = vmatprep.mubr.bf16.mxu1 %v20976_v29  ;;  %v18066_v53 = vld [vmem:[#allocation8 + $0x22cc] ss:$12 sps:$4 sm:$0xff]  }
 0x3fa   :  { %16167 = vmatprep.subr.bf16.mxu1 %v18057_v60  ;;  %12466 = vmatprep.subr.bf16.mxu0 %v18051_v32  ;;  %v18073_v60 = vld [vmem:[#allocation8 + $0x1568] ss:$12 sps:$4 sm:$0xff]  }
 0x3fb   :  { %12456 = vmatmul.mubr.bf16.vlgmr.msra.gmra.mrb[0].mxu0 %v20384_v3  ;;  %v18076_v32 = vld [vmem:[#allocation8 + $0x22fc] ss:$12 sps:$4 sm:$0xff]  }
 0x3fc   :  { %12467 = vmatpush1.bf16.msra.mxu0 %v18049_v36  ;;  %12498 = vmatprep.mubr.bf16.mxu0 %v20386_v23  ;;  %v18074_v36 = vld [vmem:[#allocation8 + $0x22f8] ss:$12 sps:$4 sm:$0xff]  }
 0x3fd   :  { %16168 = vmatpush3.bf16.msra.mxu1 %v18058_v46  ;;  %12468 = vmatprep.subr.bf16.mxu0 %v18056_v10 }
 0x3fe   :  { %16169 = vmatprep.subr.bf16.mxu1 %v18062_v8  ;;  %v18087_v8 = vld [vmem:[#allocation8 + $0x1670] ss:$12 sps:$4 sm:$0xff]  }
 0x400   :  { %12469 = vmatpush1.bf16.msra.mxu0 %v18054_v14  ;;  %v18088_v14 = vld [vmem:[#allocation8 + $0x15b0] ss:$12 sps:$4 sm:$0xff]  }
 0x401   :  { %16170 = vmatpush3.bf16.msra.mxu1 %v18063_v7  ;;  %12470 = vmatprep.subr.bf16.mxu0 %v18061_v39 }
 0x402   :  { %16171 = vmatprep.subr.bf16.mxu1 %v18067_v28  ;;  %v18081_v28 = vld [vmem:[#allocation8 + $0x2314] ss:$12 sps:$4 sm:$0xff]  }
 0x404   :  { %12471 = vmatpush1.bf16.msra.mxu0 %v18059_v57  ;;  %v18086_v57 = vld [vmem:[#allocation8 + $0x232c] ss:$12 sps:$4 sm:$0xff]  }
 0x405   :  { %16172 = vmatpush3.bf16.msra.mxu1 %v18068_v41  ;;  %12472 = vmatprep.subr.bf16.mxu0 %v18066_v53  ;;  %v18092_v41 = vld [vmem:[#allocation8 + $0x1748] ss:$12 sps:$4 sm:$0xff]  }
 0x406   :  { %16173 = vmatprep.subr.bf16.mxu1 %v18072_v48  ;;  %v18079_v48 = vld [vmem:[#allocation8 + $0x2310] ss:$12 sps:$4 sm:$0xff]   ;;  %v18093_v53 = vld [vmem:[#allocation8 + $0x1688] ss:$12 sps:$4 sm:$0xff]  }
 0x408   :  { %12473 = vmatpush1.bf16.msra.mxu0 %v18064_v22  ;;  %v18098_v22 = vld [vmem:[#allocation8 + $0x16a0] ss:$12 sps:$4 sm:$0xff]  }
 0x409   :  { %16174 = vmatpush3.bf16.msra.mxu1 %v18073_v60  ;;  %12474 = vmatprep.subr.bf16.mxu0 %v18071_v16  ;;  %v18097_v60 = vld [vmem:[#allocation8 + $0x1760] ss:$12 sps:$4 sm:$0xff]  }
 0x40a   :  { %16175 = vmatprep.subr.bf16.mxu1 %v18077_v21  ;;  %v18091_v21 = vld [vmem:[#allocation8 + $0x2344] ss:$12 sps:$4 sm:$0xff]   ;;  %v18089_v16 = vld [vmem:[#allocation8 + $0x2340] ss:$12 sps:$4 sm:$0xff]  }
 0x40b   :  { %v16027_v25 = vpop.f32.mrb[32].mxu1 }
 0x40c   :  { %v16028_v27 = vpop.f32.mrb[33].mxu1  ;;  %12475 = vmatpush1.bf16.msra.mxu0 %v18069_v26  ;;  %v18107_v26 = vld [vmem:[#allocation8 + $0x1790] ss:$12 sps:$4 sm:$0xff]  }
 0x40d   :  { %v16029_v1 = vadd.f32 %v16028_v27, %v16027_v25  ;;  %v16030_v46 = vpop.f32.mrb[34].mxu1  ;;  %16176 = vmatpush3.bf16.msra.mxu1 %v18078_v13  ;;  %12476 = vmatprep.subr.bf16.mxu0 %v18076_v32  ;;  %v18096_v13 = vld [vmem:[#allocation8 + $0x235c] ss:$12 sps:$4 sm:$0xff]   ;;  %v18094_v25 = vld [vmem:[#allocation8 + $0x2358] ss:$12 sps:$4 sm:$0xff]  }
 0x40e   :  { %v16031_v29 = vpop.f32.mrb[35].mxu1  ;;  %16177 = vmatprep.subr.bf16.mxu1 %v18082_v33  ;;  %v18103_v33 = vld [vmem:[#allocation8 + $0x16b8] ss:$12 sps:$4 sm:$0xff]   ;;  %v18101_v32 = vld [vmem:[#allocation8 + $0x2374] ss:$12 sps:$4 sm:$0xff]  }
 0x40f   :  { %v20391_v10 = vadd.f32 %v16029_v1, %v20369_v45  ;;  %v16032_v7 = vadd.f32 %v16031_v29, %v16030_v46  ;;  %v18084_v45 = vld [vmem:[#allocation8 + $0x2328] ss:$12 sps:$4 sm:$0xff]   ;;  %v18108_v27 = vld [vmem:[#allocation8 + $0x16d0] ss:$12 sps:$4 sm:$0xff]   ;;  %v18117_v46 = vld [vmem:[#allocation8 + $0x17c0] ss:$12 sps:$4 sm:$0xff]  }
 0x410   :  { %12477 = vmatpush1.bf16.msra.mxu0 %v18074_v36  ;;  %v18113_v1 = vld [vmem:[#allocation8 + $0x16e8] ss:$12 sps:$4 sm:$0xff]   ;;  %v18111_v29 = vld [vmem:[#allocation8 + $0x23a4] ss:$12 sps:$4 sm:$0xff]   ;;  %v18118_v36 = vld [vmem:[#allocation8 + $0x1700] ss:$12 sps:$4 sm:$0xff]  }
 0x411   :  { %v20394_v39 = vadd.f32 %v16032_v7, %v20372_v35  ;;  %16178 = vmatpush3.bf16.msra.mxu1 %v18083_v24  ;;  %12478 = vmatprep.subr.bf16.mxu0 %v18081_v28  ;;  %v18102_v35 = vld [vmem:[#allocation8 + $0x1778] ss:$12 sps:$4 sm:$0xff]   ;;  %v18099_v24 = vld [vmem:[#allocation8 + $0x2370] ss:$12 sps:$4 sm:$0xff]   ;;  %v18109_v28 = vld [vmem:[#allocation8 + $0x23a0] ss:$12 sps:$4 sm:$0xff]  }
 0x412   :  { %16179 = vmatprep.subr.bf16.mxu1 %v18087_v8  ;;  %v18104_v8 = vld [vmem:[#allocation8 + $0x2388] ss:$12 sps:$4 sm:$0xff]   ;;  %v18122_v7 = vld [vmem:[#allocation8 + $0x17d8] ss:$12 sps:$4 sm:$0xff]  }
 0x414   :  { %12479 = vmatpush1.bf16.msra.mxu0 %v18079_v48 }
 0x415   :  { %16180 = vmatpush3.bf16.msra.mxu1 %v18088_v14  ;;  %12480 = vmatprep.subr.bf16.mxu0 %v18086_v57  ;;  %v18123_v57 = vld [vmem:[#allocation8 + $0x1718] ss:$12 sps:$4 sm:$0xff]  }
 0x416   :  { %16187 = vmatprep.subr.bf16.mxu1 %v18092_v41  ;;  %v18116_v41 = vld [vmem:[#allocation8 + $0x23bc] ss:$12 sps:$4 sm:$0xff]  }
 0x418   :  { %13503 = vmatmul.mubr.bf16.vlgmr.msra.gmra.mrb[60].mxu1 %v20120_v49  ;;  %12481 = vmatpush1.bf16.msra.mxu0 %v18084_v45  ;;  %v18112_v49 = vld [vmem:[#allocation8 + $0x17a8] ss:$12 sps:$4 sm:$0xff]   ;;  %v18127_v45 = vld [vmem:[#allocation8 + $0x17f0] ss:$12 sps:$4 sm:$0xff]  }
 0x419   :  { %16188 = vmatpush3.bf16.msra.mxu1 %v18093_v53  ;;  %13543 = vmatprep.mubr.bf16.mxu1 %v20122_v11  ;;  %v18106_v11 = vld [vmem:[#allocation8 + $0x238c] ss:$12 sps:$4 sm:$0xff]  }
 0x41a   :  { %16189 = vmatprep.subr.bf16.mxu1 %v18097_v60  ;;  %12482 = vmatprep.subr.bf16.mxu0 %v18091_v21 }
 0x41c   :  { %12483 = vmatpush1.bf16.msra.mxu0 %v18089_v16 }
 0x41d   :  { %16190 = vmatpush3.bf16.msra.mxu1 %v18098_v22  ;;  %12484 = vmatprep.subr.bf16.mxu0 %v18096_v13  ;;  %v18114_v22 = vld [vmem:[#allocation8 + $0x23b8] ss:$12 sps:$4 sm:$0xff]   ;;  %v18121_v13 = vld [vmem:[#allocation8 + $0x23d4] ss:$12 sps:$4 sm:$0xff]  }
 0x41e   :  { %16191 = vmatprep.subr.bf16.mxu1 %v18102_v35 }
 0x420   :  { %12485 = vmatpush1.bf16.msra.mxu0 %v18094_v25  ;;  %v18132_v25 = vld [vmem:[#allocation8 + $0x18c8] ss:$12 sps:$4 sm:$0xff]  }
 0x421   :  { %16192 = vmatpush3.bf16.msra.mxu1 %v18103_v33  ;;  %12486 = vmatprep.subr.bf16.mxu0 %v18101_v32  ;;  %v18128_v33 = vld [vmem:[#allocation8 + $0x1730] ss:$12 sps:$4 sm:$0xff]  }
 0x422   :  { %16193 = vmatprep.subr.bf16.mxu1 %v18107_v26  ;;  %v18119_v32 = vld [vmem:[#allocation8 + $0x23d0] ss:$12 sps:$4 sm:$0xff]  }
 0x424   :  { %12487 = vmatpush1.bf16.msra.mxu0 %v18099_v24  ;;  %v18137_v24 = vld [vmem:[#allocation8 + $0x18e0] ss:$12 sps:$4 sm:$0xff]  }
 0x425   :  { %16194 = vmatpush3.bf16.msra.mxu1 %v18108_v27  ;;  %12488 = vmatprep.subr.bf16.mxu0 %v18106_v11  ;;  %v18126_v27 = vld [vmem:[#allocation8 + $0x23ec] ss:$12 sps:$4 sm:$0xff]  }
 0x426   :  { %16195 = vmatprep.subr.bf16.mxu1 %v18112_v49  ;;  %v18133_v49 = vld [vmem:[#allocation8 + $0x1808] ss:$12 sps:$4 sm:$0xff]  }
 0x427   :  { %v20978_v11 = vld [vmem:[#allocation116_spill] sm:$0xff] }
 0x428   :  { %12489 = vmatpush1.bf16.msra.mxu0 %v18104_v8  ;;  %v20980_v8 = vld [vmem:[#allocation117_spill] sm:$0xff] }
 0x429   :  { %16196 = vmatpush3.bf16.msra.mxu1 %v18113_v1  ;;  %12490 = vmatprep.subr.bf16.mxu0 %v18111_v29 }
 0x42a   :  { %16197 = vmatprep.subr.bf16.mxu1 %v18117_v46  ;;  %v20979_v46 = vld [vmem:[#allocation109_spill] sm:$0xff] }
 0x42b   :  { %v16049_v14 = vpop.f32.mrb[36].mxu1  ;;  %v765_v29 = vmul.f32 %v20980_v8, %v20979_v46  ;;  %v18158_v46 = vld [vmem:[#allocation8 + $0x1880] ss:$12 sps:$4 sm:$0xff]   ;;  %v18162_v8 = vld [vmem:[#allocation8 + $0x1958] ss:$12 sps:$4 sm:$0xff]  }
 0x42c   :  { %v16050_v48 = vpop.f32.mrb[37].mxu1  ;;  %12491 = vmatpush1.bf16.msra.mxu0 %v18109_v28  ;;  %v20982_v28 = vld [vmem:[#allocation19_spill] sm:$0xff] }
 0x42d   :  { %v16051_v53 = vadd.f32 %v16050_v48, %v16049_v14  ;;  %v16052_v60 = vpop.f32.mrb[38].mxu1  ;;  %16198 = vmatpush3.bf16.msra.mxu1 %v18118_v36  ;;  %12492 = vmatprep.subr.bf16.mxu0 %v18116_v41  ;;  %v18131_v36 = vld [vmem:[#allocation8 + $0x2404] ss:$12 sps:$4 sm:$0xff]   ;;  %v20983_v41 = vld [vmem:[#allocation16_spill] sm:$0xff] }
 0x42e   :  { %v16053_v21 = vpop.f32.mrb[39].mxu1  ;;  %16199 = vmatprep.subr.bf16.mxu1 %v18122_v7  ;;  %v20981_v7 = vld [vmem:[#allocation14_spill] sm:$0xff]  ;;  %v20984_v48 = vld [vmem:[#allocation21_spill] sm:$0xff] }
 0x42f   :  { %v20399_v35 = vadd.f32 %v16051_v53, %v20391_v10  ;;  %v16054_v16 = vadd.f32 %v16053_v21, %v16052_v60  ;;  %v20977_v10 = vld [vmem:[#allocation108_spill] sm:$0xff]  ;;  %v735_v14 = vmul.f32 %v20982_v28, %v20981_v7  ;;  %v18142_v60 = vld [vmem:[#allocation8 + $0x18f8] ss:$12 sps:$4 sm:$0xff]  }
 0x430   :  { %12493 = vmatpush1.bf16.msra.mxu0 %v18114_v22  ;;  %v732_v1 = vmul.f32 %v20978_v11, %v20977_v10  ;;  %v18138_v53 = vld [vmem:[#allocation8 + $0x1820] ss:$12 sps:$4 sm:$0xff]   ;;  %v18136_v22 = vld [vmem:[#allocation8 + $0x241c] ss:$12 sps:$4 sm:$0xff]   ;;  %v18163_v28 = vld [vmem:[#allocation8 + $0x1898] ss:$12 sps:$4 sm:$0xff]  }
 0x431   :  { %v20402_v26 = vadd.f32 %v16054_v16, %v20394_v39  ;;  %16200 = vmatpush3.bf16.msra.mxu1 %v18123_v57  ;;  %12494 = vmatprep.subr.bf16.mxu0 %v18121_v13  ;;  %v18124_v39 = vld [vmem:[#allocation8 + $0x23e8] ss:$12 sps:$4 sm:$0xff]   ;;  %v768_v57 = vmul.f32 %v20984_v48, %v20983_v41  ;;  %v18129_v21 = vld [vmem:[#allocation8 + $0x2400] ss:$12 sps:$4 sm:$0xff]   ;;  %v18143_v13 = vld [vmem:[#allocation8 + $0x1838] ss:$12 sps:$4 sm:$0xff]  }
 0x432   :  { %16201 = vmatprep.subr.bf16.mxu1 %v18127_v45  ;;  %v20414_v45 = vpack.c.bf16 %v765_v29, %v732_v1  ;;  %v18157_v10 = vld [vmem:[#allocation8 + $0x1940] ss:$12 sps:$4 sm:$0xff]   ;;  %v18144_v11 = vld [vmem:[#allocation8 + $0x2448] ss:$12 sps:$4 sm:$0xff]   ;;  %v18151_v1 = vld [vmem:[#allocation8 + $0x2464] ss:$12 sps:$4 sm:$0xff]  }
 0x433   :  { %v20416_v16 = vpack.c.bf16 %v768_v57, %v735_v14  ;;  %v18149_v29 = vld [vmem:[#allocation8 + $0x2460] ss:$12 sps:$4 sm:$0xff]   ;;  %v18167_v48 = vld [vmem:[#allocation8 + $0x1970] ss:$12 sps:$4 sm:$0xff]  }
 0x434   :  { %12495 = vmatpush1.bf16.msra.mxu0 %v18119_v32  ;;  %v18152_v32 = vld [vmem:[#allocation8 + $0x1928] ss:$12 sps:$4 sm:$0xff]  }
 0x435   :  { %16202 = vmatpush3.bf16.msra.mxu1 %v18128_v33  ;;  %12496 = vmatprep.subr.bf16.mxu0 %v18126_v27  ;;  %v18147_v33 = vld [vmem:[#allocation8 + $0x1910] ss:$12 sps:$4 sm:$0xff]  }
 0x436   :  { %16209 = vmatprep.subr.bf16.mxu1 %v18132_v25  ;;  %v18141_v25 = vld [vmem:[#allocation8 + $0x2434] ss:$12 sps:$4 sm:$0xff]   ;;  %v18139_v27 = vld [vmem:[#allocation8 + $0x2430] ss:$12 sps:$4 sm:$0xff]  }
 0x438   :  { %13544 = vmatmul.mubr.bf16.vlgmr.msra.gmra.mrb[64].mxu1 %v20190_v42  ;;  %12497 = vmatpush1.bf16.msra.mxu0 %v18124_v39  ;;  %v18134_v42 = vld [vmem:[#allocation8 + $0x2418] ss:$12 sps:$4 sm:$0xff]  }
 0x439   :  { %16210 = vmatpush3.bf16.msra.mxu1 %v18133_v49  ;;  %13584 = vmatprep.mubr.bf16.mxu1 %v20192_v30  ;;  %v18148_v30 = vld [vmem:[#allocation8 + $0x1850] ss:$12 sps:$4 sm:$0xff]   ;;  %v18146_v49 = vld [vmem:[#allocation8 + $0x244c] ss:$12 sps:$4 sm:$0xff]  }
 0x43a   :  { %16211 = vmatprep.subr.bf16.mxu1 %v18137_v24  ;;  %12509 = vmatprep.subr.bf16.mxu0 %v18131_v36  ;;  %v18153_v24 = vld [vmem:[#allocation8 + $0x1868] ss:$12 sps:$4 sm:$0xff]  }
 0x43b   :  { %12499 = vmatmul.mubr.bf16.vlgmr.msra.gmra.mrb[0].mxu0 %v20414_v45  ;;  %v18156_v36 = vld [vmem:[#allocation8 + $0x247c] ss:$12 sps:$4 sm:$0xff]  }
 0x43c   :  { %12510 = vmatpush1.bf16.msra.mxu0 %v18129_v21  ;;  %12541 = vmatprep.mubr.bf16.mxu0 %v20416_v16 }
 0x43d   :  { %16212 = vmatpush3.bf16.msra.mxu1 %v18138_v53  ;;  %12511 = vmatprep.subr.bf16.mxu0 %v18136_v22  ;;  %v18154_v53 = vld [vmem:[#allocation8 + $0x2478] ss:$12 sps:$4 sm:$0xff]   ;;  %v18161_v22 = vld [vmem:[#allocation8 + $0x2494] ss:$12 sps:$4 sm:$0xff]  }
 0x43e   :  { %16213 = vmatprep.subr.bf16.mxu1 %v18142_v60 }
 0x440   :  { %12512 = vmatpush1.bf16.msra.mxu0 %v18134_v42  ;;  %v18172_v42 = vld [vmem:[#allocation8 + $0x1a48] ss:$12 sps:$4 sm:$0xff]  }
 0x441   :  { %16214 = vmatpush3.bf16.msra.mxu1 %v18143_v13  ;;  %12513 = vmatprep.subr.bf16.mxu0 %v18141_v25  ;;  %v18168_v13 = vld [vmem:[#allocation8 + $0x18b0] ss:$12 sps:$4 sm:$0xff]  }
 0x442   :  { %16215 = vmatprep.subr.bf16.mxu1 %v18147_v33  ;;  %v18159_v25 = vld [vmem:[#allocation8 + $0x2490] ss:$12 sps:$4 sm:$0xff]  }
 0x444   :  { %12514 = vmatpush1.bf16.msra.mxu0 %v18139_v27  ;;  %v18177_v27 = vld [vmem:[#allocation8 + $0x1a60] ss:$12 sps:$4 sm:$0xff]  }
 0x445   :  { %16216 = vmatpush3.bf16.msra.mxu1 %v18148_v30  ;;  %12515 = vmatprep.subr.bf16.mxu0 %v18146_v49  ;;  %v18166_v30 = vld [vmem:[#allocation8 + $0x24ac] ss:$12 sps:$4 sm:$0xff]   ;;  %v18171_v49 = vld [vmem:[#allocation8 + $0x24c4] ss:$12 sps:$4 sm:$0xff]  }
 0x446   :  { %16217 = vmatprep.subr.bf16.mxu1 %v18152_v32  ;;  %v18173_v32 = vld [vmem:[#allocation8 + $0x1988] ss:$12 sps:$4 sm:$0xff]  }
 0x448   :  { %12516 = vmatpush1.bf16.msra.mxu0 %v18144_v11  ;;  %v18176_v11 = vld [vmem:[#allocation8 + $0x24dc] ss:$12 sps:$4 sm:$0xff]  }
 0x449   :  { %16218 = vmatpush3.bf16.msra.mxu1 %v18153_v24  ;;  %12517 = vmatprep.subr.bf16.mxu0 %v18151_v1  ;;  %v18178_v24 = vld [vmem:[#allocation8 + $0x19a0] ss:$12 sps:$4 sm:$0xff]   ;;  %v18183_v1 = vld [vmem:[#allocation8 + $0x19b8] ss:$12 sps:$4 sm:$0xff]  }
 0x44a   :  { %16219 = vmatprep.subr.bf16.mxu1 %v18157_v10  ;;  %v18169_v10 = vld [vmem:[#allocation8 + $0x24c0] ss:$12 sps:$4 sm:$0xff]  }
 0x44b   :  { %v16071_v39 = vpop.f32.mrb[40].mxu1 }
 0x44c   :  { %v16072_v7 = vpop.f32.mrb[41].mxu1  ;;  %12518 = vmatpush1.bf16.msra.mxu0 %v18149_v29  ;;  %v18181_v29 = vld [vmem:[#allocation8 + $0x24f4] ss:$12 sps:$4 sm:$0xff]  }
 0x44d   :  { %v16073_v14 = vadd.f32 %v16072_v7, %v16071_v39  ;;  %v16074_v41 = vpop.f32.mrb[42].mxu1  ;;  %16220 = vmatpush3.bf16.msra.mxu1 %v18158_v46  ;;  %12519 = vmatprep.subr.bf16.mxu0 %v18156_v36  ;;  %v18187_v46 = vld [vmem:[#allocation8 + $0x1a90] ss:$12 sps:$4 sm:$0xff]   ;;  %v18193_v7 = vld [vmem:[#allocation8 + $0x19e8] ss:$12 sps:$4 sm:$0xff]  }
 0x44e   :  { %v16075_v57 = vpop.f32.mrb[43].mxu1  ;;  %16221 = vmatprep.subr.bf16.mxu1 %v18162_v8  ;;  %v18174_v8 = vld [vmem:[#allocation8 + $0x24d8] ss:$12 sps:$4 sm:$0xff]   ;;  %v18188_v39 = vld [vmem:[#allocation8 + $0x19d0] ss:$12 sps:$4 sm:$0xff]  }
 0x44f   :  { %v20421_v60 = vadd.f32 %v16073_v14, %v20399_v35  ;;  %v16076_v21 = vadd.f32 %v16075_v57, %v16074_v41  ;;  %v18164_v35 = vld [vmem:[#allocation8 + $0x24a8] ss:$12 sps:$4 sm:$0xff]   ;;  %v18179_v36 = vld [vmem:[#allocation8 + $0x24f0] ss:$12 sps:$4 sm:$0xff]   ;;  %v18202_v57 = vld [vmem:[#allocation8 + $0x1ad8] ss:$12 sps:$4 sm:$0xff]  }
 0x450   :  { %12520 = vmatpush1.bf16.msra.mxu0 %v18154_v53  ;;  %v18184_v14 = vld [vmem:[#allocation8 + $0x2508] ss:$12 sps:$4 sm:$0xff]   ;;  %v18191_v41 = vld [vmem:[#allocation8 + $0x2524] ss:$12 sps:$4 sm:$0xff]   ;;  %v18189_v53 = vld [vmem:[#allocation8 + $0x2520] ss:$12 sps:$4 sm:$0xff]  }
 0x451   :  { %v20424_v33 = vadd.f32 %v16076_v21, %v20402_v26  ;;  %16222 = vmatpush3.bf16.msra.mxu1 %v18163_v28  ;;  %12521 = vmatprep.subr.bf16.mxu0 %v18161_v22  ;;  %v18182_v26 = vld [vmem:[#allocation8 + $0x1a78] ss:$12 sps:$4 sm:$0xff]   ;;  %v18197_v28 = vld [vmem:[#allocation8 + $0x1ac0] ss:$12 sps:$4 sm:$0xff]   ;;  %v18196_v22 = vld [vmem:[#allocation8 + $0x253c] ss:$12 sps:$4 sm:$0xff]  }
 0x452   :  { %16223 = vmatprep.subr.bf16.mxu1 %v18167_v48  ;;  %v18198_v48 = vld [vmem:[#allocation8 + $0x1a00] ss:$12 sps:$4 sm:$0xff]  }
 0x454   :  { %12522 = vmatpush1.bf16.msra.mxu0 %v18159_v25 }
 0x455   :  { %16224 = vmatpush3.bf16.msra.mxu1 %v18168_v13  ;;  %12523 = vmatprep.subr.bf16.mxu0 %v18166_v30 }
 0x456   :  { %16231 = vmatprep.subr.bf16.mxu1 %v18172_v42  ;;  %v18203_v42 = vld [vmem:[#allocation8 + $0x1a18] ss:$12 sps:$4 sm:$0xff]  }
 0x458   :  { %13585 = vmatmul.mubr.bf16.vlgmr.msra.gmra.mrb[68].mxu1 %v20228_v2  ;;  %12524 = vmatpush1.bf16.msra.mxu0 %v18164_v35  ;;  %v18192_v2 = vld [vmem:[#allocation8 + $0x1aa8] ss:$12 sps:$4 sm:$0xff]   ;;  %v18194_v35 = vld [vmem:[#allocation8 + $0x2538] ss:$12 sps:$4 sm:$0xff]  }
 0x459   :  { %16232 = vmatpush3.bf16.msra.mxu1 %v18173_v32  ;;  %13625 = vmatprep.mubr.bf16.mxu1 %v20230_v34  ;;  %v18186_v34 = vld [vmem:[#allocation8 + $0x250c] ss:$12 sps:$4 sm:$0xff]   ;;  %v18207_v32 = vld [vmem:[#allocation8 + $0x1af0] ss:$12 sps:$4 sm:$0xff]  }
 0x45a   :  { %16233 = vmatprep.subr.bf16.mxu1 %v18177_v27  ;;  %12525 = vmatprep.subr.bf16.mxu0 %v18171_v49 }
 0x45c   :  { %12526 = vmatpush1.bf16.msra.mxu0 %v18169_v10  ;;  %v18208_v10 = vld [vmem:[#allocation8 + $0x1a30] ss:$12 sps:$4 sm:$0xff]  }
 0x45d   :  { %16234 = vmatpush3.bf16.msra.mxu1 %v18178_v24  ;;  %12527 = vmatprep.subr.bf16.mxu0 %v18176_v11 }
 0x45e   :  { %16235 = vmatprep.subr.bf16.mxu1 %v18182_v26  ;;  %v18201_v26 = vld [vmem:[#allocation8 + $0x2554] ss:$12 sps:$4 sm:$0xff]  }
 0x460   :  { %12528 = vmatpush1.bf16.msra.mxu0 %v18174_v8  ;;  %v18206_v8 = vld [vmem:[#allocation8 + $0x256c] ss:$12 sps:$4 sm:$0xff]  }
 0x461   :  { %16236 = vmatpush3.bf16.msra.mxu1 %v18183_v1  ;;  %12529 = vmatprep.subr.bf16.mxu0 %v18181_v29  ;;  %v18212_v1 = vld [vmem:[#allocation8 + $0x1bc8] ss:$12 sps:$4 sm:$0xff]  }
 0x462   :  { %16237 = vmatprep.subr.bf16.mxu1 %v18187_v46  ;;  %v18199_v46 = vld [vmem:[#allocation8 + $0x2550] ss:$12 sps:$4 sm:$0xff]   ;;  %v18213_v29 = vld [vmem:[#allocation8 + $0x1b08] ss:$12 sps:$4 sm:$0xff]  }
 0x464   :  { %12530 = vmatpush1.bf16.msra.mxu0 %v18179_v36  ;;  %v20986_v36 = vld [vmem:[#allocation129_spill] sm:$0xff] }
 0x465   :  { %16238 = vmatpush3.bf16.msra.mxu1 %v18188_v39  ;;  %12531 = vmatprep.subr.bf16.mxu0 %v18186_v34  ;;  %v18217_v39 = vld [vmem:[#allocation8 + $0x1be0] ss:$12 sps:$4 sm:$0xff]   ;;  %v767_v34 = vmul.f32 %v20088_v18, %v20986_v36 }
 0x466   :  { %16239 = vmatprep.subr.bf16.mxu1 %v18192_v2  ;;  %v18209_v18 = vld [vmem:[#allocation8 + $0x2580] ss:$12 sps:$4 sm:$0xff]  }
 0x468   :  { %12532 = vmatpush1.bf16.msra.mxu0 %v18184_v14  ;;  %v20988_v14 = vld [vmem:[#allocation36_spill] sm:$0xff] }
 0x469   :  { %16240 = vmatpush3.bf16.msra.mxu1 %v18193_v7  ;;  %12533 = vmatprep.subr.bf16.mxu0 %v18191_v41  ;;  %v18211_v7 = vld [vmem:[#allocation8 + $0x2584] ss:$12 sps:$4 sm:$0xff]  }
 0x46a   :  { %16241 = vmatprep.subr.bf16.mxu1 %v18197_v28  ;;  %v20987_v28 = vld [vmem:[#allocation29_spill] sm:$0xff] }
 0x46b   :  { %v16093_v21 = vpop.f32.mrb[44].mxu1  ;;  %v737_v41 = vmul.f32 %v20988_v14, %v20987_v28  ;;  %v18247_v28 = vld [vmem:[#allocation8 + $0x1c70] ss:$12 sps:$4 sm:$0xff]  }
 0x46c   :  { %v16094_v13 = vpop.f32.mrb[45].mxu1  ;;  %12534 = vmatpush1.bf16.msra.mxu0 %v18189_v53 }
 0x46d   :  { %v16095_v25 = vadd.f32 %v16094_v13, %v16093_v21  ;;  %v16096_v30 = vpop.f32.mrb[46].mxu1  ;;  %16242 = vmatpush3.bf16.msra.mxu1 %v18198_v48  ;;  %12535 = vmatprep.subr.bf16.mxu0 %v18196_v22  ;;  %v20989_v48 = vld [vmem:[#allocation30_spill] sm:$0xff]  ;;  %v18218_v21 = vld [vmem:[#allocation8 + $0x1b20] ss:$12 sps:$4 sm:$0xff]  }
 0x46e   :  { %v16097_v27 = vpop.f32.mrb[47].mxu1  ;;  %16243 = vmatprep.subr.bf16.mxu1 %v18202_v57  ;;  %v20990_v57 = vld [vmem:[#allocation37_spill] sm:$0xff]  ;;  %v18222_v22 = vld [vmem:[#allocation8 + $0x1bf8] ss:$12 sps:$4 sm:$0xff]   ;;  %v18216_v13 = vld [vmem:[#allocation8 + $0x259c] ss:$12 sps:$4 sm:$0xff]  }
 0x46f   :  { %v20429_v49 = vadd.f32 %v16095_v25, %v20421_v60  ;;  %v16098_v24 = vadd.f32 %v16097_v27, %v16096_v30  ;;  %v20985_v60 = vld [vmem:[#allocation128_spill] sm:$0xff]  ;;  %v770_v53 = vmul.f32 %v20990_v57, %v20989_v48  ;;  %v18223_v25 = vld [vmem:[#allocation8 + $0x1b38] ss:$12 sps:$4 sm:$0xff]   ;;  %v18227_v30 = vld [vmem:[#allocation8 + $0x1c10] ss:$12 sps:$4 sm:$0xff]  }
 0x470   :  { %12536 = vmatpush1.bf16.msra.mxu0 %v18194_v35  ;;  %v734_v2 = vmul.f32 %v20086_v62, %v20985_v60  ;;  %v18232_v27 = vld [vmem:[#allocation8 + $0x1c28] ss:$12 sps:$4 sm:$0xff]   ;;  %v18219_v35 = vld [vmem:[#allocation8 + $0x25b0] ss:$12 sps:$4 sm:$0xff]  }
 0x471   :  { %v20432_v11 = vadd.f32 %v16098_v24, %v20424_v33  ;;  %16244 = vmatpush3.bf16.msra.mxu1 %v18203_v42  ;;  %12537 = vmatprep.subr.bf16.mxu0 %v18201_v26  ;;  %v18204_v33 = vld [vmem:[#allocation8 + $0x2568] ss:$12 sps:$4 sm:$0xff]   ;;  %v20446_v42 = vpack.c.bf16 %v770_v53, %v737_v41  ;;  %v18226_v24 = vld [vmem:[#allocation8 + $0x25cc] ss:$12 sps:$4 sm:$0xff]  }
 0x472   :  { %16245 = vmatprep.subr.bf16.mxu1 %v18207_v32  ;;  %v20444_v62 = vpack.c.bf16 %v767_v34, %v734_v2  ;;  %v18221_v32 = vld [vmem:[#allocation8 + $0x25b4] ss:$12 sps:$4 sm:$0xff]   ;;  %v18236_v2 = vld [vmem:[#allocation8 + $0x25fc] ss:$12 sps:$4 sm:$0xff]   ;;  %v18243_v34 = vld [vmem:[#allocation8 + $0x1b98] ss:$12 sps:$4 sm:$0xff]  }
 0x473   :  { %v18233_v26 = vld [vmem:[#allocation8 + $0x1b68] ss:$12 sps:$4 sm:$0xff]   ;;  %v18234_v41 = vld [vmem:[#allocation8 + $0x25f8] ss:$12 sps:$4 sm:$0xff]  }
 0x474   :  { %12538 = vmatpush1.bf16.msra.mxu0 %v18199_v46  ;;  %v18231_v46 = vld [vmem:[#allocation8 + $0x25e4] ss:$12 sps:$4 sm:$0xff]   ;;  %v18241_v53 = vld [vmem:[#allocation8 + $0x2614] ss:$12 sps:$4 sm:$0xff]  }
 0x475   :  { %16246 = vmatpush3.bf16.msra.mxu1 %v18208_v10  ;;  %12539 = vmatprep.subr.bf16.mxu0 %v18206_v8  ;;  %v18237_v10 = vld [vmem:[#allocation8 + $0x1c40] ss:$12 sps:$4 sm:$0xff]  }
 0x476   :  { %16253 = vmatprep.subr.bf16.mxu1 %v18212_v1  ;;  %v18224_v1 = vld [vmem:[#allocation8 + $0x25c8] ss:$12 sps:$4 sm:$0xff]   ;;  %v18238_v8 = vld [vmem:[#allocation8 + $0x1b80] ss:$12 sps:$4 sm:$0xff]  }
 0x478   :  { %13626 = vmatmul.mubr.bf16.vlgmr.msra.gmra.mrb[72].mxu1 %v20246_v58  ;;  %12540 = vmatpush1.bf16.msra.mxu0 %v18204_v33  ;;  %v18214_v58 = vld [vmem:[#allocation8 + $0x2598] ss:$12 sps:$4 sm:$0xff]  }
 0x479   :  { %16254 = vmatpush3.bf16.msra.mxu1 %v18213_v29  ;;  %13666 = vmatprep.mubr.bf16.mxu1 %v20248_v55  ;;  %v18228_v55 = vld [vmem:[#allocation8 + $0x1b50] ss:$12 sps:$4 sm:$0xff]   ;;  %v18242_v29 = vld [vmem:[#allocation8 + $0x1c58] ss:$12 sps:$4 sm:$0xff]  }
 0x47a   :  { %16255 = vmatprep.subr.bf16.mxu1 %v18217_v39  ;;  %12552 = vmatprep.subr.bf16.mxu0 %v18211_v7  ;;  %v18229_v39 = vld [vmem:[#allocation8 + $0x25e0] ss:$12 sps:$4 sm:$0xff]  }
 0x47b   :  { %12542 = vmatmul.mubr.bf16.vlgmr.msra.gmra.mrb[0].mxu0 %v20444_v62 }
 0x47c   :  { %12553 = vmatpush1.bf16.msra.mxu0 %v18209_v18  ;;  %12584 = vmatprep.mubr.bf16.mxu0 %v20446_v42  ;;  %v18252_v18 = vld [vmem:[#allocation8 + $0x1d48] ss:$12 sps:$4 sm:$0xff]  }
 0x47d   :  { %16256 = vmatpush3.bf16.msra.mxu1 %v18218_v21  ;;  %12554 = vmatprep.subr.bf16.mxu0 %v18216_v13  ;;  %v18248_v21 = vld [vmem:[#allocation8 + $0x1bb0] ss:$12 sps:$4 sm:$0xff]  }
 0x47e   :  { %16257 = vmatprep.subr.bf16.mxu1 %v18222_v22  ;;  %v18239_v13 = vld [vmem:[#allocation8 + $0x2610] ss:$12 sps:$4 sm:$0xff]  }
 0x480   :  { %12555 = vmatpush1.bf16.msra.mxu0 %v18214_v58  ;;  %v18257_v58 = vld [vmem:[#allocation8 + $0x1d60] ss:$12 sps:$4 sm:$0xff]  }
 0x481   :  { %16258 = vmatpush3.bf16.msra.mxu1 %v18223_v25  ;;  %12556 = vmatprep.subr.bf16.mxu0 %v18221_v32  ;;  %v18246_v25 = vld [vmem:[#allocation8 + $0x262c] ss:$12 sps:$4 sm:$0xff]   ;;  %v18251_v32 = vld [vmem:[#allocation8 + $0x2644] ss:$12 sps:$4 sm:$0xff]  }
 0x482   :  { %16259 = vmatprep.subr.bf16.mxu1 %v18227_v30  ;;  %v18253_v30 = vld [vmem:[#allocation8 + $0x1c88] ss:$12 sps:$4 sm:$0xff]  }
 0x484   :  { %12557 = vmatpush1.bf16.msra.mxu0 %v18219_v35  ;;  %v18256_v35 = vld [vmem:[#allocation8 + $0x265c] ss:$12 sps:$4 sm:$0xff]  }
 0x485   :  { %16260 = vmatpush3.bf16.msra.mxu1 %v18228_v55  ;;  %12558 = vmatprep.subr.bf16.mxu0 %v18226_v24  ;;  %v18258_v55 = vld [vmem:[#allocation8 + $0x1ca0] ss:$12 sps:$4 sm:$0xff]   ;;  %v18263_v24 = vld [vmem:[#allocation8 + $0x1cb8] ss:$12 sps:$4 sm:$0xff]  }
 0x486   :  { %16261 = vmatprep.subr.bf16.mxu1 %v18232_v27  ;;  %v18249_v27 = vld [vmem:[#allocation8 + $0x2640] ss:$12 sps:$4 sm:$0xff]  }
 0x488   :  { %12559 = vmatpush1.bf16.msra.mxu0 %v18224_v1  ;;  %v18261_v1 = vld [vmem:[#allocation8 + $0x2674] ss:$12 sps:$4 sm:$0xff]  }
 0x489   :  { %16262 = vmatpush3.bf16.msra.mxu1 %v18233_v26  ;;  %12560 = vmatprep.subr.bf16.mxu0 %v18231_v46  ;;  %v18267_v26 = vld [vmem:[#allocation8 + $0x1d90] ss:$12 sps:$4 sm:$0xff]  }
 0x48a   :  { %16263 = vmatprep.subr.bf16.mxu1 %v18237_v10  ;;  %v18254_v10 = vld [vmem:[#allocation8 + $0x2658] ss:$12 sps:$4 sm:$0xff]   ;;  %v18268_v46 = vld [vmem:[#allocation8 + $0x1cd0] ss:$12 sps:$4 sm:$0xff]  }
 0x48b   :  { %v16115_v60 = vpop.f32.mrb[48].mxu1 }
 0x48c   :  { %v16116_v36 = vpop.f32.mrb[49].mxu1  ;;  %12561 = vmatpush1.bf16.msra.mxu0 %v18229_v39  ;;  %v18277_v39 = vld [vmem:[#allocation8 + $0x1dc0] ss:$12 sps:$4 sm:$0xff]  }
 0x48d   :  { %v16117_v33 = vadd.f32 %v16116_v36, %v16115_v60  ;;  %v16118_v7 = vpop.f32.mrb[50].mxu1  ;;  %16264 = vmatpush3.bf16.msra.mxu1 %v18238_v8  ;;  %12562 = vmatprep.subr.bf16.mxu0 %v18236_v2  ;;  %v18259_v8 = vld [vmem:[#allocation8 + $0x2670] ss:$12 sps:$4 sm:$0xff]   ;;  %v18264_v60 = vld [vmem:[#allocation8 + $0x2688] ss:$12 sps:$4 sm:$0xff]  }
 0x48e   :  { %v16119_v14 = vpop.f32.mrb[51].mxu1  ;;  %16265 = vmatprep.subr.bf16.mxu1 %v18242_v29  ;;  %v18273_v29 = vld [vmem:[#allocation8 + $0x1ce8] ss:$12 sps:$4 sm:$0xff]   ;;  %v18271_v2 = vld [vmem:[#allocation8 + $0x26a4] ss:$12 sps:$4 sm:$0xff]  }
 0x48f   :  { %v20451_v48 = vadd.f32 %v16117_v33, %v20429_v49  ;;  %v16120_v57 = vadd.f32 %v16119_v14, %v16118_v7  ;;  %v18244_v49 = vld [vmem:[#allocation8 + $0x2628] ss:$12 sps:$4 sm:$0xff]   ;;  %v18278_v36 = vld [vmem:[#allocation8 + $0x1d00] ss:$12 sps:$4 sm:$0xff]  }
 0x490   :  { %12563 = vmatpush1.bf16.msra.mxu0 %v18234_v41  ;;  %v18269_v33 = vld [vmem:[#allocation8 + $0x26a0] ss:$12 sps:$4 sm:$0xff]   ;;  %v18283_v41 = vld [vmem:[#allocation8 + $0x1d18] ss:$12 sps:$4 sm:$0xff]  }
 0x491   :  { %v20454_v22 = vadd.f32 %v16120_v57, %v20432_v11  ;;  %16266 = vmatpush3.bf16.msra.mxu1 %v18243_v34  ;;  %12564 = vmatprep.subr.bf16.mxu0 %v18241_v53  ;;  %v18262_v11 = vld [vmem:[#allocation8 + $0x1d78] ss:$12 sps:$4 sm:$0xff]  }
 0x492   :  { %16267 = vmatprep.subr.bf16.mxu1 %v18247_v28  ;;  %v18282_v34 = vld [vmem:[#allocation8 + $0x1dd8] ss:$12 sps:$4 sm:$0xff]   ;;  %v18276_v28 = vld [vmem:[#allocation8 + $0x26bc] ss:$12 sps:$4 sm:$0xff]  }
 0x494   :  { %12565 = vmatpush1.bf16.msra.mxu0 %v18239_v13  ;;  %v18274_v13 = vld [vmem:[#allocation8 + $0x26b8] ss:$12 sps:$4 sm:$0xff]  }
 0x495   :  { %16268 = vmatpush3.bf16.msra.mxu1 %v18248_v21  ;;  %12566 = vmatprep.subr.bf16.mxu0 %v18246_v25  ;;  %v18287_v21 = vld [vmem:[#allocation8 + $0x1df0] ss:$12 sps:$4 sm:$0xff]  }
 0x496   :  { %16275 = vmatprep.subr.bf16.mxu1 %v18252_v18 }
 0x498   :  { %13667 = vmatmul.mubr.bf16.vlgmr.msra.gmra.mrb[76].mxu1 %v20264_v40  ;;  %12567 = vmatpush1.bf16.msra.mxu0 %v18244_v49  ;;  %v18272_v40 = vld [vmem:[#allocation8 + $0x1da8] ss:$12 sps:$4 sm:$0xff]   ;;  %v18288_v49 = vld [vmem:[#allocation8 + $0x1d30] ss:$12 sps:$4 sm:$0xff]  }
 0x499   :  { %16276 = vmatpush3.bf16.msra.mxu1 %v18253_v30  ;;  %13707 = vmatprep.mubr.bf16.mxu1 %v20266_v31  ;;  %v18266_v31 = vld [vmem:[#allocation8 + $0x268c] ss:$12 sps:$4 sm:$0xff]  }
 0x49a   :  { %16277 = vmatprep.subr.bf16.mxu1 %v18257_v58  ;;  %12568 = vmatprep.subr.bf16.mxu0 %v18251_v32  ;;  %v18281_v58 = vld [vmem:[#allocation8 + $0x26d4] ss:$12 sps:$4 sm:$0xff]  }
 0x49c   :  { %12569 = vmatpush1.bf16.msra.mxu0 %v18249_v27  ;;  %v18286_v27 = vld [vmem:[#allocation8 + $0x26ec] ss:$12 sps:$4 sm:$0xff]  }
 0x49d   :  { %16278 = vmatpush3.bf16.msra.mxu1 %v18258_v55  ;;  %12570 = vmatprep.subr.bf16.mxu0 %v18256_v35  ;;  %v18292_v55 = vld [vmem:[#allocation8 + $0x1ec8] ss:$12 sps:$4 sm:$0xff]  }
 0x49e   :  { %16279 = vmatprep.subr.bf16.mxu1 %v18262_v11  ;;  %v18279_v11 = vld [vmem:[#allocation8 + $0x26d0] ss:$12 sps:$4 sm:$0xff]   ;;  %v18293_v35 = vld [vmem:[#allocation8 + $0x1e08] ss:$12 sps:$4 sm:$0xff]  }
 0x4a0   :  { %12571 = vmatpush1.bf16.msra.mxu0 %v18254_v10 }
 0x4a1   :  { %16280 = vmatpush3.bf16.msra.mxu1 %v18263_v24  ;;  %12572 = vmatprep.subr.bf16.mxu0 %v18261_v1  ;;  %v18297_v24 = vld [vmem:[#allocation8 + $0x1ee0] ss:$12 sps:$4 sm:$0xff]   ;;  %v20993_v1 = vld [vmem:[#allocation17_spill] sm:$0xff] }
 0x4a2   :  { %16281 = vmatprep.subr.bf16.mxu1 %v18267_v26  ;;  %v20992_v26 = vld [vmem:[#allocation20_spill] sm:$0xff] }
 0x4a4   :  { %12573 = vmatpush1.bf16.msra.mxu0 %v18259_v8  ;;  %v18291_v8 = vld [vmem:[#allocation8 + $0x2704] ss:$12 sps:$4 sm:$0xff]  }
 0x4a5   :  { %16282 = vmatpush3.bf16.msra.mxu1 %v18268_v46  ;;  %12574 = vmatprep.subr.bf16.mxu0 %v18266_v31  ;;  %v20994_v46 = vld [vmem:[#allocation22_spill] sm:$0xff]  ;;  %v20995_v31 = vld [vmem:[#allocation49_spill] sm:$0xff] }
 0x4a6   :  { %16283 = vmatprep.subr.bf16.mxu1 %v18272_v40  ;;  %v769_v40 = vmul.f32 %v20994_v46, %v20993_v1 }
 0x4a8   :  { %12575 = vmatpush1.bf16.msra.mxu0 %v18264_v60  ;;  %v20997_v60 = vld [vmem:[#allocation50_spill] sm:$0xff] }
 0x4a9   :  { %16284 = vmatpush3.bf16.msra.mxu1 %v18273_v29  ;;  %12576 = vmatprep.subr.bf16.mxu0 %v18271_v2  ;;  %v20996_v29 = vld [vmem:[#allocation58_spill] sm:$0xff]  ;;  %v20998_v2 = vld [vmem:[#allocation59_spill] sm:$0xff] }
 0x4aa   :  { %16285 = vmatprep.subr.bf16.mxu1 %v18277_v39  ;;  %v739_v39 = vmul.f32 %v20996_v29, %v20995_v31  ;;  %v18314_v31 = vld [vmem:[#allocation8 + $0x2778] ss:$12 sps:$4 sm:$0xff]  }
 0x4ab   :  { %v16137_v7 = vpop.f32.mrb[52].mxu1 }
 0x4ac   :  { %v16138_v14 = vpop.f32.mrb[53].mxu1  ;;  %12577 = vmatpush1.bf16.msra.mxu0 %v18269_v33  ;;  %v18302_v33 = vld [vmem:[#allocation8 + $0x1ef8] ss:$12 sps:$4 sm:$0xff]  }
 0x4ad   :  { %v16139_v57 = vadd.f32 %v16138_v14, %v16137_v7  ;;  %v16140_v53 = vpop.f32.mrb[54].mxu1  ;;  %16286 = vmatpush3.bf16.msra.mxu1 %v18278_v36  ;;  %12578 = vmatprep.subr.bf16.mxu0 %v18276_v28  ;;  %v772_v36 = vmul.f32 %v20998_v2, %v20997_v60  ;;  %v18289_v28 = vld [vmem:[#allocation8 + $0x2700] ss:$12 sps:$4 sm:$0xff]   ;;  %v18296_v14 = vld [vmem:[#allocation8 + $0x271c] ss:$12 sps:$4 sm:$0xff]  }
 0x4ae   :  { %v16141_v18 = vpop.f32.mrb[55].mxu1  ;;  %16287 = vmatprep.subr.bf16.mxu1 %v18282_v34  ;;  %v18298_v34 = vld [vmem:[#allocation8 + $0x1e20] ss:$12 sps:$4 sm:$0xff]  }
 0x4af   :  { %v20459_v25 = vadd.f32 %v16139_v57, %v20451_v48  ;;  %v16142_v30 = vadd.f32 %v16141_v18, %v16140_v53  ;;  %v20991_v48 = vld [vmem:[#allocation15_spill] sm:$0xff]  ;;  %v18307_v53 = vld [vmem:[#allocation8 + $0x1f10] ss:$12 sps:$4 sm:$0xff]   ;;  %v18312_v18 = vld [vmem:[#allocation8 + $0x1f28] ss:$12 sps:$4 sm:$0xff]  }
 0x4b0   :  { %12579 = vmatpush1.bf16.msra.mxu0 %v18274_v13  ;;  %v736_v10 = vmul.f32 %v20992_v26, %v20991_v48  ;;  %v18303_v57 = vld [vmem:[#allocation8 + $0x1e38] ss:$12 sps:$4 sm:$0xff]   ;;  %v18299_v13 = vld [vmem:[#allocation8 + $0x2730] ss:$12 sps:$4 sm:$0xff]   ;;  %v18321_v60 = vld [vmem:[#allocation8 + $0x2794] ss:$12 sps:$4 sm:$0xff]  }
 0x4b1   :  { %v20462_v32 = vadd.f32 %v16142_v30, %v20454_v22  ;;  %16288 = vmatpush3.bf16.msra.mxu1 %v18283_v41  ;;  %12580 = vmatprep.subr.bf16.mxu0 %v18281_v58  ;;  %v18284_v22 = vld [vmem:[#allocation8 + $0x26e8] ss:$12 sps:$4 sm:$0xff]   ;;  %v20476_v41 = vpack.c.bf16 %v772_v36, %v739_v39  ;;  %v18306_v30 = vld [vmem:[#allocation8 + $0x274c] ss:$12 sps:$4 sm:$0xff]   ;;  %v18328_v36 = vld [vmem:[#allocation8 + $0x1eb0] ss:$12 sps:$4 sm:$0xff]  }
 0x4b2   :  { %16289 = vmatprep.subr.bf16.mxu1 %v18287_v21  ;;  %v20474_v7 = vpack.c.bf16 %v769_v40, %v736_v10  ;;  %v18301_v21 = vld [vmem:[#allocation8 + $0x2734] ss:$12 sps:$4 sm:$0xff]   ;;  %v18316_v26 = vld [vmem:[#allocation8 + $0x277c] ss:$12 sps:$4 sm:$0xff]   ;;  %v18323_v40 = vld [vmem:[#allocation8 + $0x1e98] ss:$12 sps:$4 sm:$0xff]  }
 0x4b3   :  { %v18313_v58 = vld [vmem:[#allocation8 + $0x1e68] ss:$12 sps:$4 sm:$0xff]  }
 0x4b4   :  { %12581 = vmatpush1.bf16.msra.mxu0 %v18279_v11  ;;  %v18311_v11 = vld [vmem:[#allocation8 + $0x2764] ss:$12 sps:$4 sm:$0xff]  }
 0x4b5   :  { %16290 = vmatpush3.bf16.msra.mxu1 %v18288_v49  ;;  %12582 = vmatprep.subr.bf16.mxu0 %v18286_v27  ;;  %v18317_v49 = vld [vmem:[#allocation8 + $0x1f40] ss:$12 sps:$4 sm:$0xff]  }
 0x4b6   :  { %16297 = vmatprep.subr.bf16.mxu1 %v18292_v55  ;;  %v18304_v55 = vld [vmem:[#allocation8 + $0x2748] ss:$12 sps:$4 sm:$0xff]   ;;  %v18318_v27 = vld [vmem:[#allocation8 + $0x1e80] ss:$12 sps:$4 sm:$0xff]  }
 0x4b8   :  { %13708 = vmatmul.mubr.bf16.vlgmr.msra.gmra.mrb[80].mxu1 %v20294_v12  ;;  %12583 = vmatpush1.bf16.msra.mxu0 %v18284_v22  ;;  %v18294_v12 = vld [vmem:[#allocation8 + $0x2718] ss:$12 sps:$4 sm:$0xff]  }
 0x4b9   :  { %16298 = vmatpush3.bf16.msra.mxu1 %v18293_v35  ;;  %13748 = vmatprep.mubr.bf16.mxu1 %v20296_v0  ;;  %v18308_v0 = vld [vmem:[#allocation8 + $0x1e50] ss:$12 sps:$4 sm:$0xff]   ;;  %v18322_v35 = vld [vmem:[#allocation8 + $0x1f58] ss:$12 sps:$4 sm:$0xff]  }
 0x4ba   :  { %16299 = vmatprep.subr.bf16.mxu1 %v18297_v24  ;;  %12595 = vmatprep.subr.bf16.mxu0 %v18291_v8  ;;  %v18309_v24 = vld [vmem:[#allocation8 + $0x2760] ss:$12 sps:$4 sm:$0xff]   ;;  %v18327_v8 = vld [vmem:[#allocation8 + $0x1f70] ss:$12 sps:$4 sm:$0xff]  }
 0x4bb   :  { %12585 = vmatmul.mubr.bf16.vlgmr.msra.gmra.mrb[0].mxu0 %v20474_v7 }
 0x4bc   :  { %12596 = vmatpush1.bf16.msra.mxu0 %v18289_v28  ;;  %12627 = vmatprep.mubr.bf16.mxu0 %v20476_v41  ;;  %v18326_v28 = vld [vmem:[#allocation8 + $0x27ac] ss:$12 sps:$4 sm:$0xff]  }
 0x4bd   :  { %16300 = vmatpush3.bf16.msra.mxu1 %v18298_v34  ;;  %12597 = vmatprep.subr.bf16.mxu0 %v18296_v14  ;;  %v18332_v34 = vld [vmem:[#allocation8 + $0x2048] ss:$12 sps:$4 sm:$0xff]  }
 0x4be   :  { %16301 = vmatprep.subr.bf16.mxu1 %v18302_v33  ;;  %v18319_v33 = vld [vmem:[#allocation8 + $0x2790] ss:$12 sps:$4 sm:$0xff]   ;;  %v18333_v14 = vld [vmem:[#allocation8 + $0x1f88] ss:$12 sps:$4 sm:$0xff]  }
 0x4c0   :  { %12598 = vmatpush1.bf16.msra.mxu0 %v18294_v12  ;;  %v18342_v12 = vld [vmem:[#allocation8 + $0x2078] ss:$12 sps:$4 sm:$0xff]  }
 0x4c1   :  { %16302 = vmatpush3.bf16.msra.mxu1 %v18303_v57  ;;  %12599 = vmatprep.subr.bf16.mxu0 %v18301_v21  ;;  %v18337_v57 = vld [vmem:[#allocation8 + $0x2060] ss:$12 sps:$4 sm:$0xff]  }
 0x4c2   :  { %16303 = vmatprep.subr.bf16.mxu1 %v18307_v53  ;;  %v18331_v53 = vld [vmem:[#allocation8 + $0x27c4] ss:$12 sps:$4 sm:$0xff]   ;;  %v18329_v21 = vld [vmem:[#allocation8 + $0x27c0] ss:$12 sps:$4 sm:$0xff]  }
 0x4c4   :  { %12600 = vmatpush1.bf16.msra.mxu0 %v18299_v13  ;;  %v18347_v13 = vld [vmem:[#allocation8 + $0x2090] ss:$12 sps:$4 sm:$0xff]  }
 0x4c5   :  { %16304 = vmatpush3.bf16.msra.mxu1 %v18308_v0  ;;  %12601 = vmatprep.subr.bf16.mxu0 %v18306_v30  ;;  %v18336_v0 = vld [vmem:[#allocation8 + $0x27dc] ss:$12 sps:$4 sm:$0xff]   ;;  %v18334_v30 = vld [vmem:[#allocation8 + $0x27d8] ss:$12 sps:$4 sm:$0xff]  }
 0x4c6   :  { %16305 = vmatprep.subr.bf16.mxu1 %v18312_v18  ;;  %v18343_v18 = vld [vmem:[#allocation8 + $0x1fb8] ss:$12 sps:$4 sm:$0xff]  }
 0x4c8   :  { %12602 = vmatpush1.bf16.msra.mxu0 %v18304_v55  ;;  %v18346_v55 = vld [vmem:[#allocation8 + $0x280c] ss:$12 sps:$4 sm:$0xff]  }
 0x4c9   :  { %16306 = vmatpush3.bf16.msra.mxu1 %v18313_v58  ;;  %12603 = vmatprep.subr.bf16.mxu0 %v18311_v11  ;;  %v18341_v58 = vld [vmem:[#allocation8 + $0x27f4] ss:$12 sps:$4 sm:$0xff]  }
 0x4ca   :  { %16307 = vmatprep.subr.bf16.mxu1 %v18317_v49  ;;  %v18352_v49 = vld [vmem:[#allocation8 + $0x20a8] ss:$12 sps:$4 sm:$0xff]  }
 0x4cb   :  { %v16159_v48 = vpop.f32.mrb[56].mxu1  ;;  %v18353_v11 = vld [vmem:[#allocation8 + $0x1fe8] ss:$12 sps:$4 sm:$0xff]  }
 0x4cc   :  { %v16160_v10 = vpop.f32.mrb[57].mxu1  ;;  %12604 = vmatpush1.bf16.msra.mxu0 %v18309_v24  ;;  %v18351_v24 = vld [vmem:[#allocation8 + $0x2824] ss:$12 sps:$4 sm:$0xff]  }
 0x4cd   :  { %v16161_v1 = vadd.f32 %v16160_v10, %v16159_v48  ;;  %v16162_v46 = vpop.f32.mrb[58].mxu1  ;;  %16308 = vmatpush3.bf16.msra.mxu1 %v18318_v27  ;;  %12605 = vmatprep.subr.bf16.mxu0 %v18316_v26  ;;  %v18357_v27 = vld [vmem:[#allocation8 + $0x20c0] ss:$12 sps:$4 sm:$0xff]   ;;  %v18362_v26 = vld [vmem:[#allocation8 + $0x20d8] ss:$12 sps:$4 sm:$0xff]  }
 0x4ce   :  { %v16163_v22 = vpop.f32.mrb[59].mxu1  ;;  %16309 = vmatprep.subr.bf16.mxu1 %v18322_v35  ;;  %v18344_v35 = vld [vmem:[#allocation8 + $0x2808] ss:$12 sps:$4 sm:$0xff]   ;;  %v18358_v48 = vld [vmem:[#allocation8 + $0x2000] ss:$12 sps:$4 sm:$0xff]  }
 0x4cf   :  { %v20481_v29 = vadd.f32 %v16161_v1, %v20459_v25  ;;  %v16164_v39 = vadd.f32 %v16163_v22, %v16162_v46  ;;  %v18324_v25 = vld [vmem:[#allocation8 + $0x27a8] ss:$12 sps:$4 sm:$0xff]   ;;  %v18349_v10 = vld [vmem:[#allocation8 + $0x2820] ss:$12 sps:$4 sm:$0xff]  }
 0x4d0   :  { %12606 = vmatpush1.bf16.msra.mxu0 %v18314_v31  ;;  %v18356_v46 = vld [vmem:[#allocation8 + $0x283c] ss:$12 sps:$4 sm:$0xff]   ;;  %v18363_v31 = vld [vmem:[#allocation8 + $0x2018] ss:$12 sps:$4 sm:$0xff]  }
 0x4d1   :  { %v20484_v2 = vadd.f32 %v16164_v39, %v20462_v32  ;;  %16310 = vmatpush3.bf16.msra.mxu1 %v18323_v40  ;;  %12607 = vmatprep.subr.bf16.mxu0 %v18321_v60  ;;  %v18338_v32 = vld [vmem:[#allocation8 + $0x1fa0] ss:$12 sps:$4 sm:$0xff]   ;;  %v18367_v60 = vld [vmem:[#allocation8 + $0x20f0] ss:$12 sps:$4 sm:$0xff]  }
 0x4d2   :  { %16311 = vmatprep.subr.bf16.mxu1 %v18327_v8 }
 0x4d4   :  { %12608 = vmatpush1.bf16.msra.mxu0 %v18319_v33 }
 0x4d5   :  { %16312 = vmatpush3.bf16.msra.mxu1 %v18328_v36  ;;  %12609 = vmatprep.subr.bf16.mxu0 %v18326_v28  ;;  %v18354_v36 = vld [vmem:[#allocation8 + $0x2838] ss:$12 sps:$4 sm:$0xff]   ;;  %v18361_v28 = vld [vmem:[#allocation8 + $0x2854] ss:$12 sps:$4 sm:$0xff]  }
 0x4d6   :  { %16319 = vmatprep.subr.bf16.mxu1 %v18332_v34 }
 0x4d8   :  { %13749 = vmatmul.mubr.bf16.vlgmr.msra.gmra.mrb[84].mxu1 %v20324_v54  ;;  %12610 = vmatpush1.bf16.msra.mxu0 %v18324_v25  ;;  %v18348_v54 = vld [vmem:[#allocation8 + $0x1fd0] ss:$12 sps:$4 sm:$0xff]   ;;  %v18372_v25 = vld [vmem:[#allocation8 + $0x21c8] ss:$12 sps:$4 sm:$0xff]  }
 0x4d9   :  { %16320 = vmatpush3.bf16.msra.mxu1 %v18333_v14  ;;  %13789 = vmatprep.mubr.bf16.mxu1 %v20326_v51  ;;  %v18339_v51 = vld [vmem:[#allocation8 + $0x27f0] ss:$12 sps:$4 sm:$0xff]  }
 0x4da   :  { %16321 = vmatprep.subr.bf16.mxu1 %v18337_v57  ;;  %12611 = vmatprep.subr.bf16.mxu0 %v18331_v53  ;;  %v18368_v57 = vld [vmem:[#allocation8 + $0x2030] ss:$12 sps:$4 sm:$0xff]  }
 0x4db   :  { %v18359_v53 = vld [vmem:[#allocation8 + $0x2850] ss:$12 sps:$4 sm:$0xff]  }
 0x4dc   :  { %12612 = vmatpush1.bf16.msra.mxu0 %v18329_v21  ;;  %v20999_v21 = vld [vmem:[#allocation27_spill] sm:$0xff] }
 0x4dd   :  { %16322 = vmatpush3.bf16.msra.mxu1 %v18338_v32  ;;  %12613 = vmatprep.subr.bf16.mxu0 %v18336_v0  ;;  %v18366_v32 = vld [vmem:[#allocation8 + $0x286c] ss:$12 sps:$4 sm:$0xff]  }
 0x4de   :  { %16323 = vmatprep.subr.bf16.mxu1 %v18342_v12  ;;  %v18373_v12 = vld [vmem:[#allocation8 + $0x2108] ss:$12 sps:$4 sm:$0xff]  }
 0x4e0   :  { %12614 = vmatpush1.bf16.msra.mxu0 %v18334_v30 }
 0x4e1   :  { %16324 = vmatpush3.bf16.msra.mxu1 %v18343_v18  ;;  %12615 = vmatprep.subr.bf16.mxu0 %v18341_v58  ;;  %v21001_v18 = vld [vmem:[#allocation28_spill] sm:$0xff] }
 0x4e2   :  { %16325 = vmatprep.subr.bf16.mxu1 %v18347_v13  ;;  %v21002_v13 = vld [vmem:[#allocation34_spill] sm:$0xff]  ;;  %v18377_v58 = vld [vmem:[#allocation8 + $0x21e0] ss:$12 sps:$4 sm:$0xff]  }
 0x4e3   :  { %v771_v30 = vmul.f32 %v21002_v13, %v21001_v18  ;;  %v18403_v13 = vld [vmem:[#allocation8 + $0x2198] ss:$12 sps:$4 sm:$0xff]  }
 0x4e4   :  { %12616 = vmatpush1.bf16.msra.mxu0 %v18339_v51 }
 0x4e5   :  { %16326 = vmatpush3.bf16.msra.mxu1 %v18348_v54  ;;  %12617 = vmatprep.subr.bf16.mxu0 %v18346_v55  ;;  %v21003_v54 = vld [vmem:[#allocation68_spill] sm:$0xff]  ;;  %v21005_v55 = vld [vmem:[#allocation69_spill] sm:$0xff] }
 0x4e6   :  { %16327 = vmatprep.subr.bf16.mxu1 %v18352_v49  ;;  %v21004_v49 = vld [vmem:[#allocation78_spill] sm:$0xff] }
 0x4e7   :  { %v741_v51 = vmul.f32 %v21004_v49, %v21003_v54 }
 0x4e8   :  { %12618 = vmatpush1.bf16.msra.mxu0 %v18344_v35  ;;  %v18371_v35 = vld [vmem:[#allocation8 + $0x2884] ss:$12 sps:$4 sm:$0xff]  }
 0x4e9   :  { %16328 = vmatpush3.bf16.msra.mxu1 %v18353_v11  ;;  %12619 = vmatprep.subr.bf16.mxu0 %v18351_v24  ;;  %v21006_v11 = vld [vmem:[#allocation79_spill] sm:$0xff] }
 0x4ea   :  { %16329 = vmatprep.subr.bf16.mxu1 %v18357_v27  ;;  %v774_v27 = vmul.f32 %v21006_v11, %v21005_v55  ;;  %v18378_v24 = vld [vmem:[#allocation8 + $0x2120] ss:$12 sps:$4 sm:$0xff]   ;;  %v18408_v11 = vld [vmem:[#allocation8 + $0x21b0] ss:$12 sps:$4 sm:$0xff]  }
 0x4eb   :  { %v16181_v1 = vpop.f32.mrb[60].mxu1 }
 0x4ec   :  { %v16182_v40 = vpop.f32.mrb[61].mxu1  ;;  %12620 = vmatpush1.bf16.msra.mxu0 %v18349_v10  ;;  %v18369_v10 = vld [vmem:[#allocation8 + $0x2880] ss:$12 sps:$4 sm:$0xff]  }
 0x4ed   :  { %v16183_v22 = vadd.f32 %v16182_v40, %v16181_v1  ;;  %v16184_v8 = vpop.f32.mrb[62].mxu1  ;;  %16330 = vmatpush3.bf16.msra.mxu1 %v18358_v48  ;;  %12621 = vmatprep.subr.bf16.mxu0 %v18356_v46  ;;  %v20506_v1 = vpack.c.bf16 %v774_v27, %v741_v51  ;;  %v18376_v46 = vld [vmem:[#allocation8 + $0x289c] ss:$12 sps:$4 sm:$0xff]   ;;  %v18383_v40 = vld [vmem:[#allocation8 + $0x2138] ss:$12 sps:$4 sm:$0xff]  }
 0x4ee   :  { %v16185_v39 = vpop.f32.mrb[63].mxu1  ;;  %16331 = vmatprep.subr.bf16.mxu1 %v18362_v26  ;;  %v18382_v26 = vld [vmem:[#allocation8 + $0x21f8] ss:$12 sps:$4 sm:$0xff]   ;;  %v18401_v51 = vld [vmem:[#allocation8 + $0x2914] ss:$12 sps:$4 sm:$0xff]  }
 0x4ef   :  { %v20489_v34 = vadd.f32 %v16183_v22, %v20481_v29  ;;  %v16186_v33 = vadd.f32 %v16185_v39, %v16184_v8  ;;  %v21000_v29 = vld [vmem:[#allocation33_spill] sm:$0xff]  ;;  %v18374_v22 = vld [vmem:[#allocation8 + $0x2898] ss:$12 sps:$4 sm:$0xff]  }
 0x4f0   :  { %12622 = vmatpush1.bf16.msra.mxu0 %v18354_v36  ;;  %v738_v0 = vmul.f32 %v21000_v29, %v20999_v21  ;;  %v18388_v8 = vld [vmem:[#allocation8 + $0x2150] ss:$12 sps:$4 sm:$0xff]   ;;  %v18393_v36 = vld [vmem:[#allocation8 + $0x2168] ss:$12 sps:$4 sm:$0xff]  }
 0x4f1   :  { %v20492_v14 = vadd.f32 %v16186_v33, %v20484_v2  ;;  %16332 = vmatpush3.bf16.msra.mxu1 %v18363_v31  ;;  %12623 = vmatprep.subr.bf16.mxu0 %v18361_v28  ;;  %v18364_v2 = vld [vmem:[#allocation8 + $0x2868] ss:$12 sps:$4 sm:$0xff]   ;;  %v18379_v39 = vld [vmem:[#allocation8 + $0x28b0] ss:$12 sps:$4 sm:$0xff]   ;;  %v18397_v33 = vld [vmem:[#allocation8 + $0x2240] ss:$12 sps:$4 sm:$0xff]  }
 0x4f2   :  { %16333 = vmatprep.subr.bf16.mxu1 %v18367_v60  ;;  %v20504_v48 = vpack.c.bf16 %v771_v30, %v738_v0  ;;  %v18392_v31 = vld [vmem:[#allocation8 + $0x2228] ss:$12 sps:$4 sm:$0xff]   ;;  %v18386_v60 = vld [vmem:[#allocation8 + $0x28cc] ss:$12 sps:$4 sm:$0xff]  }
 0x4f3   :  { %v18384_v28 = vld [vmem:[#allocation8 + $0x28c8] ss:$12 sps:$4 sm:$0xff]  }
 0x4f4   :  { %12624 = vmatpush1.bf16.msra.mxu0 %v18359_v53  ;;  %v18402_v53 = vld [vmem:[#allocation8 + $0x2258] ss:$12 sps:$4 sm:$0xff]   ;;  %v18396_v21 = vld [vmem:[#allocation8 + $0x28fc] ss:$12 sps:$4 sm:$0xff]  }
 0x4f5   :  { %16334 = vmatpush3.bf16.msra.mxu1 %v18368_v57  ;;  %12625 = vmatprep.subr.bf16.mxu0 %v18366_v32  ;;  %v18391_v57 = vld [vmem:[#allocation8 + $0x28e4] ss:$12 sps:$4 sm:$0xff]   ;;  %v18389_v32 = vld [vmem:[#allocation8 + $0x28e0] ss:$12 sps:$4 sm:$0xff]   ;;  %v18412_v27 = vld [vmem:[#allocation8 + $0x2348] ss:$12 sps:$4 sm:$0xff]  }
 0x4f6   :  { %16341 = vmatprep.subr.bf16.mxu1 %v18372_v25  ;;  %v18398_v25 = vld [vmem:[#allocation8 + $0x2180] ss:$12 sps:$4 sm:$0xff]  }
 0x4f8   :  { %13790 = vmatmul.mubr.bf16.vlgmr.msra.gmra.mrb[88].mxu1 %v20354_v6  ;;  %12626 = vmatpush1.bf16.msra.mxu0 %v18364_v2  ;;  %v18387_v6 = vld [vmem:[#allocation8 + $0x2210] ss:$12 sps:$4 sm:$0xff]   ;;  %v18394_v2 = vld [vmem:[#allocation8 + $0x28f8] ss:$12 sps:$4 sm:$0xff]  }
 0x4f9   :  { %16342 = vmatpush3.bf16.msra.mxu1 %v18373_v12  ;;  %13830 = vmatprep.mubr.bf16.mxu1 %v20356_v50  ;;  %v18381_v50 = vld [vmem:[#allocation8 + $0x28b4] ss:$12 sps:$4 sm:$0xff]  }
 0x4fa   :  { %16343 = vmatprep.subr.bf16.mxu1 %v18377_v58  ;;  %12638 = vmatprep.subr.bf16.mxu0 %v18371_v35  ;;  %v18407_v58 = vld [vmem:[#allocation8 + $0x2270] ss:$12 sps:$4 sm:$0xff]  }
 0x4fb   :  { %12628 = vmatmul.mubr.bf16.vlgmr.msra.gmra.mrb[0].mxu0 %v20504_v48  ;;  %v18399_v35 = vld [vmem:[#allocation8 + $0x2910] ss:$12 sps:$4 sm:$0xff]  }
 0x4fc   :  { %12639 = vmatpush1.bf16.msra.mxu0 %v18369_v10  ;;  %12670 = vmatprep.mubr.bf16.mxu0 %v20506_v1  ;;  %v18417_v10 = vld [vmem:[#allocation8 + $0x2360] ss:$12 sps:$4 sm:$0xff]  }
 0x4fd   :  { %16344 = vmatpush3.bf16.msra.mxu1 %v18378_v24  ;;  %12640 = vmatprep.subr.bf16.mxu0 %v18376_v46  ;;  %v18406_v24 = vld [vmem:[#allocation8 + $0x292c] ss:$12 sps:$4 sm:$0xff]   ;;  %v18411_v46 = vld [vmem:[#allocation8 + $0x2944] ss:$12 sps:$4 sm:$0xff]  }
 0x4fe   :  { %16345 = vmatprep.subr.bf16.mxu1 %v18382_v26  ;;  %v18413_v26 = vld [vmem:[#allocation8 + $0x2288] ss:$12 sps:$4 sm:$0xff]  }
 0x500   :  { %12641 = vmatpush1.bf16.msra.mxu0 %v18374_v22  ;;  %v18416_v22 = vld [vmem:[#allocation8 + $0x295c] ss:$12 sps:$4 sm:$0xff]  }
 0x501   :  { %16346 = vmatpush3.bf16.msra.mxu1 %v18383_v40  ;;  %12642 = vmatprep.subr.bf16.mxu0 %v18381_v50  ;;  %v18422_v40 = vld [vmem:[#allocation8 + $0x2378] ss:$12 sps:$4 sm:$0xff]  }
 0x502   :  { %16347 = vmatprep.subr.bf16.mxu1 %v18387_v6  ;;  %v18409_v6 = vld [vmem:[#allocation8 + $0x2940] ss:$12 sps:$4 sm:$0xff]   ;;  %v18423_v50 = vld [vmem:[#allocation8 + $0x22b8] ss:$12 sps:$4 sm:$0xff]  }
 0x504   :  { %12643 = vmatpush1.bf16.msra.mxu0 %v18379_v39  ;;  %v18421_v39 = vld [vmem:[#allocation8 + $0x2974] ss:$12 sps:$4 sm:$0xff]  }
 0x505   :  { %16348 = vmatpush3.bf16.msra.mxu1 %v18388_v8  ;;  %12644 = vmatprep.subr.bf16.mxu0 %v18386_v60  ;;  %v18427_v8 = vld [vmem:[#allocation8 + $0x2390] ss:$12 sps:$4 sm:$0xff]   ;;  %v18432_v60 = vld [vmem:[#allocation8 + $0x23a8] ss:$12 sps:$4 sm:$0xff]  }
 0x506   :  { %16349 = vmatprep.subr.bf16.mxu1 %v18392_v31  ;;  %v18414_v31 = vld [vmem:[#allocation8 + $0x2958] ss:$12 sps:$4 sm:$0xff]  }
 0x508   :  { %12645 = vmatpush1.bf16.msra.mxu0 %v18384_v28  ;;  %v18437_v28 = vld [vmem:[#allocation8 + $0x23c0] ss:$12 sps:$4 sm:$0xff]  }
 0x509   :  { %16350 = vmatpush3.bf16.msra.mxu1 %v18393_v36  ;;  %12646 = vmatprep.subr.bf16.mxu0 %v18391_v57  ;;  %v18426_v36 = vld [vmem:[#allocation8 + $0x298c] ss:$12 sps:$4 sm:$0xff]   ;;  %v18424_v57 = vld [vmem:[#allocation8 + $0x2988] ss:$12 sps:$4 sm:$0xff]  }
 0x50a   :  { %16351 = vmatprep.subr.bf16.mxu1 %v18397_v33  ;;  %v18433_v33 = vld [vmem:[#allocation8 + $0x22e8] ss:$12 sps:$4 sm:$0xff]  }
 0x50b   :  { %v16203_v12 = vpop.f32.mrb[64].mxu1 }
 0x50c   :  { %v16204_v29 = vpop.f32.mrb[65].mxu1  ;;  %12647 = vmatpush1.bf16.msra.mxu0 %v18389_v32  ;;  %v18442_v32 = vld [vmem:[#allocation8 + $0x23d8] ss:$12 sps:$4 sm:$0xff]  }
 0x50d   :  { %v16205_v0 = vadd.f32 %v16204_v29, %v16203_v12  ;;  %v16206_v18 = vpop.f32.mrb[66].mxu1  ;;  %16352 = vmatpush3.bf16.msra.mxu1 %v18398_v25  ;;  %12648 = vmatprep.subr.bf16.mxu0 %v18396_v21  ;;  %v18431_v25 = vld [vmem:[#allocation8 + $0x29a4] ss:$12 sps:$4 sm:$0xff]   ;;  %v18429_v12 = vld [vmem:[#allocation8 + $0x29a0] ss:$12 sps:$4 sm:$0xff]  }
 0x50e   :  { %v16207_v30 = vpop.f32.mrb[67].mxu1  ;;  %16353 = vmatprep.subr.bf16.mxu1 %v18402_v53  ;;  %v18438_v53 = vld [vmem:[#allocation8 + $0x2300] ss:$12 sps:$4 sm:$0xff]   ;;  %v18436_v29 = vld [vmem:[#allocation8 + $0x29bc] ss:$12 sps:$4 sm:$0xff]  }
 0x50f   :  { %v20511_v54 = vadd.f32 %v16205_v0, %v20489_v34  ;;  %v16208_v49 = vadd.f32 %v16207_v30, %v16206_v18  ;;  %v18404_v34 = vld [vmem:[#allocation8 + $0x2928] ss:$12 sps:$4 sm:$0xff]   ;;  %v18443_v30 = vld [vmem:[#allocation8 + $0x2318] ss:$12 sps:$4 sm:$0xff]  }
 0x510   :  { %12649 = vmatpush1.bf16.msra.mxu0 %v18394_v2  ;;  %v18447_v2 = vld [vmem:[#allocation8 + $0x23f0] ss:$12 sps:$4 sm:$0xff]  }
 0x511   :  { %v20514_v55 = vadd.f32 %v16208_v49, %v20492_v14  ;;  %16354 = vmatpush3.bf16.msra.mxu1 %v18403_v13  ;;  %12650 = vmatprep.subr.bf16.mxu0 %v18401_v51  ;;  %v18418_v14 = vld [vmem:[#allocation8 + $0x22a0] ss:$12 sps:$4 sm:$0xff]   ;;  %v18434_v49 = vld [vmem:[#allocation8 + $0x29b8] ss:$12 sps:$4 sm:$0xff]  }
 0x512   :  { %16355 = vmatprep.subr.bf16.mxu1 %v18407_v58 }
 0x514   :  { %12651 = vmatpush1.bf16.msra.mxu0 %v18399_v35 }
 0x515   :  { %16356 = vmatpush3.bf16.msra.mxu1 %v18408_v11  ;;  %12652 = vmatprep.subr.bf16.mxu0 %v18406_v24  ;;  %v18448_v24 = vld [vmem:[#allocation8 + $0x2330] ss:$12 sps:$4 sm:$0xff]  }
 0x516   :  { %16363 = vmatprep.subr.bf16.mxu1 %v18412_v27  ;;  %v18441_v27 = vld [vmem:[#allocation8 + $0x29d4] ss:$12 sps:$4 sm:$0xff]  }
 0x518   :  { %13831 = vmatmul.mubr.bf16.vlgmr.msra.gmra.mrb[92].mxu1 %v20384_v3  ;;  %12653 = vmatpush1.bf16.msra.mxu0 %v18404_v34  ;;  %v18428_v3 = vld [vmem:[#allocation8 + $0x22d0] ss:$12 sps:$4 sm:$0xff]   ;;  %v18446_v34 = vld [vmem:[#allocation8 + $0x29ec] ss:$12 sps:$4 sm:$0xff]  }
 0x519   :  { %16364 = vmatpush3.bf16.msra.mxu1 %v18413_v26  ;;  %13871 = vmatprep.mubr.bf16.mxu1 %v20386_v23  ;;  %v18419_v23 = vld [vmem:[#allocation8 + $0x2970] ss:$12 sps:$4 sm:$0xff]   ;;  %v18452_v26 = vld [vmem:[#allocation8 + $0x24c8] ss:$12 sps:$4 sm:$0xff]  }
 0x51a   :  { %16365 = vmatprep.subr.bf16.mxu1 %v18417_v10  ;;  %12654 = vmatprep.subr.bf16.mxu0 %v18411_v46  ;;  %v18439_v10 = vld [vmem:[#allocation8 + $0x29d0] ss:$12 sps:$4 sm:$0xff]   ;;  %v18453_v46 = vld [vmem:[#allocation8 + $0x2408] ss:$12 sps:$4 sm:$0xff]  }
 0x51c   :  { %12655 = vmatpush1.bf16.msra.mxu0 %v18409_v6  ;;  %v21009_v6 = vld [vmem:[#allocation42_spill] sm:$0xff] }
 0x51d   :  { %16366 = vmatpush3.bf16.msra.mxu1 %v18418_v14  ;;  %12656 = vmatprep.subr.bf16.mxu0 %v18416_v22  ;;  %v21007_v14 = vld [vmem:[#allocation41_spill] sm:$0xff]  ;;  %v21010_v22 = vld [vmem:[#allocation48_spill] sm:$0xff] }
 0x51e   :  { %16367 = vmatprep.subr.bf16.mxu1 %v18422_v40 }
 0x520   :  { %12657 = vmatpush1.bf16.msra.mxu0 %v18414_v31  ;;  %v21011_v31 = vld [vmem:[#allocation90_spill] sm:$0xff] }
 0x521   :  { %16368 = vmatpush3.bf16.msra.mxu1 %v18423_v50  ;;  %12658 = vmatprep.subr.bf16.mxu0 %v18421_v39  ;;  %v773_v50 = vmul.f32 %v21010_v22, %v21009_v6  ;;  %v21012_v39 = vld [vmem:[#allocation98_spill] sm:$0xff] }
 0x522   :  { %16369 = vmatprep.subr.bf16.mxu1 %v18427_v8  ;;  %v18457_v8 = vld [vmem:[#allocation8 + $0x24e0] ss:$12 sps:$4 sm:$0xff]   ;;  %v18487_v22 = vld [vmem:[#allocation8 + $0x2570] ss:$12 sps:$4 sm:$0xff]  }
 0x524   :  { %12659 = vmatpush1.bf16.msra.mxu0 %v18419_v23  ;;  %v21014_v23 = vld [vmem:[#allocation99_spill] sm:$0xff] }
 0x525   :  { %16370 = vmatpush3.bf16.msra.mxu1 %v18428_v3  ;;  %12660 = vmatprep.subr.bf16.mxu0 %v18426_v36  ;;  %v743_v3 = vmul.f32 %v21012_v39, %v21011_v31  ;;  %v18481_v31 = vld [vmem:[#allocation8 + $0x2a94] ss:$12 sps:$4 sm:$0xff]  }
 0x526   :  { %16371 = vmatprep.subr.bf16.mxu1 %v18432_v60  ;;  %v21013_v60 = vld [vmem:[#allocation91_spill] sm:$0xff] }
 0x527   :  { %v776_v36 = vmul.f32 %v21014_v23, %v21013_v60  ;;  %v18492_v60 = vld [vmem:[#allocation8 + $0x2648] ss:$12 sps:$4 sm:$0xff]   ;;  %v18479_v23 = vld [vmem:[#allocation8 + $0x2a90] ss:$12 sps:$4 sm:$0xff]  }
 0x528   :  { %12661 = vmatpush1.bf16.msra.mxu0 %v18424_v57 }
 0x529   :  { %16372 = vmatpush3.bf16.msra.mxu1 %v18433_v33  ;;  %12662 = vmatprep.subr.bf16.mxu0 %v18431_v25  ;;  %v18451_v33 = vld [vmem:[#allocation8 + $0x2a04] ss:$12 sps:$4 sm:$0xff]  }
 0x52a   :  { %16373 = vmatprep.subr.bf16.mxu1 %v18437_v28  ;;  %v18458_v28 = vld [vmem:[#allocation8 + $0x2420] ss:$12 sps:$4 sm:$0xff]   ;;  %v18462_v25 = vld [vmem:[#allocation8 + $0x24f8] ss:$12 sps:$4 sm:$0xff]  }
 0x52b   :  { %v16225_v21 = vpop.f32.mrb[68].mxu1 }
 0x52c   :  { %v16226_v0 = vpop.f32.mrb[69].mxu1  ;;  %12663 = vmatpush1.bf16.msra.mxu0 %v18429_v12  ;;  %v18456_v12 = vld [vmem:[#allocation8 + $0x2a1c] ss:$12 sps:$4 sm:$0xff]  }
 0x52d   :  { %v16227_v18 = vadd.f32 %v16226_v0, %v16225_v21  ;;  %v16228_v13 = vpop.f32.mrb[70].mxu1  ;;  %16374 = vmatpush3.bf16.msra.mxu1 %v18438_v53  ;;  %12664 = vmatprep.subr.bf16.mxu0 %v18436_v29  ;;  %v18449_v53 = vld [vmem:[#allocation8 + $0x2a00] ss:$12 sps:$4 sm:$0xff]   ;;  %v18463_v21 = vld [vmem:[#allocation8 + $0x2438] ss:$12 sps:$4 sm:$0xff]  }
 0x52e   :  { %v16229_v58 = vpop.f32.mrb[71].mxu1  ;;  %16375 = vmatprep.subr.bf16.mxu1 %v18442_v32  ;;  %v20536_v32 = vpack.c.bf16 %v776_v36, %v743_v3  ;;  %v18454_v29 = vld [vmem:[#allocation8 + $0x2a18] ss:$12 sps:$4 sm:$0xff]   ;;  %v18468_v0 = vld [vmem:[#allocation8 + $0x2450] ss:$12 sps:$4 sm:$0xff]  }
 0x52f   :  { %v20519_v51 = vadd.f32 %v16227_v18, %v20511_v54  ;;  %v16230_v11 = vadd.f32 %v16229_v58, %v16228_v13  ;;  %v21008_v54 = vld [vmem:[#allocation47_spill] sm:$0xff]  ;;  %v18472_v18 = vld [vmem:[#allocation8 + $0x2528] ss:$12 sps:$4 sm:$0xff]   ;;  %v18459_v13 = vld [vmem:[#allocation8 + $0x2a30] ss:$12 sps:$4 sm:$0xff]  }
 0x530   :  { %12665 = vmatpush1.bf16.msra.mxu0 %v18434_v49  ;;  %v740_v40 = vmul.f32 %v21008_v54, %v21007_v14  ;;  %v18473_v58 = vld [vmem:[#allocation8 + $0x2468] ss:$12 sps:$4 sm:$0xff]   ;;  %v18488_v3 = vld [vmem:[#allocation8 + $0x24b0] ss:$12 sps:$4 sm:$0xff]   ;;  %v18486_v36 = vld [vmem:[#allocation8 + $0x2aac] ss:$12 sps:$4 sm:$0xff]  }
 0x531   :  { %v20522_v35 = vadd.f32 %v16230_v11, %v20514_v55  ;;  %16376 = vmatpush3.bf16.msra.mxu1 %v18443_v30  ;;  %12666 = vmatprep.subr.bf16.mxu0 %v18441_v27  ;;  %v18444_v55 = vld [vmem:[#allocation8 + $0x29e8] ss:$12 sps:$4 sm:$0xff]   ;;  %v18466_v30 = vld [vmem:[#allocation8 + $0x2a4c] ss:$12 sps:$4 sm:$0xff]   ;;  %v18471_v11 = vld [vmem:[#allocation8 + $0x2a64] ss:$12 sps:$4 sm:$0xff]  }
 0x532   :  { %16377 = vmatprep.subr.bf16.mxu1 %v18447_v2  ;;  %v20534_v57 = vpack.c.bf16 %v773_v50, %v740_v40  ;;  %v18477_v2 = vld [vmem:[#allocation8 + $0x2540] ss:$12 sps:$4 sm:$0xff]   ;;  %v18464_v49 = vld [vmem:[#allocation8 + $0x2a48] ss:$12 sps:$4 sm:$0xff]   ;;  %v18483_v40 = vld [vmem:[#allocation8 + $0x2498] ss:$12 sps:$4 sm:$0xff]  }
 0x533   :  { %v18478_v27 = vld [vmem:[#allocation8 + $0x2480] ss:$12 sps:$4 sm:$0xff]   ;;  %v18474_v50 = vld [vmem:[#allocation8 + $0x2a78] ss:$12 sps:$4 sm:$0xff]  }
 0x534   :  { %12667 = vmatpush1.bf16.msra.mxu0 %v18439_v10 }
 0x535   :  { %16378 = vmatpush3.bf16.msra.mxu1 %v18448_v24  ;;  %12668 = vmatprep.subr.bf16.mxu0 %v18446_v34  ;;  %v18482_v24 = vld [vmem:[#allocation8 + $0x2558] ss:$12 sps:$4 sm:$0xff]   ;;  %v18476_v34 = vld [vmem:[#allocation8 + $0x2a7c] ss:$12 sps:$4 sm:$0xff]  }
 0x536   :  { %16385 = vmatprep.subr.bf16.mxu1 %v18452_v26  ;;  %v18469_v26 = vld [vmem:[#allocation8 + $0x2a60] ss:$12 sps:$4 sm:$0xff]  }
 0x538   :  { %13872 = vmatmul.mubr.bf16.vlgmr.msra.gmra.mrb[96].mxu1 %v20414_v45  ;;  %12669 = vmatpush1.bf16.msra.mxu0 %v18444_v55  ;;  %v18467_v45 = vld [vmem:[#allocation8 + $0x2510] ss:$12 sps:$4 sm:$0xff]  }
 0x539   :  { %16386 = vmatpush3.bf16.msra.mxu1 %v18453_v46  ;;  %13912 = vmatprep.mubr.bf16.mxu1 %v20416_v16  ;;  %v18461_v16 = vld [vmem:[#allocation8 + $0x2a34] ss:$12 sps:$4 sm:$0xff]  }
 0x53a   :  { %16387 = vmatprep.subr.bf16.mxu1 %v18457_v8  ;;  %12681 = vmatprep.subr.bf16.mxu0 %v18451_v33  ;;  %v18493_v33 = vld [vmem:[#allocation8 + $0x2588] ss:$12 sps:$4 sm:$0xff]  }
 0x53b   :  { %12671 = vmatmul.mubr.bf16.vlgmr.msra.gmra.mrb[0].mxu0 %v20534_v57 }
 0x53c   :  { %12682 = vmatpush1.bf16.msra.mxu0 %v18449_v53  ;;  %12713 = vmatprep.mubr.bf16.mxu0 %v20536_v32  ;;  %v18502_v53 = vld [vmem:[#allocation8 + $0x2678] ss:$12 sps:$4 sm:$0xff]  }
 0x53d   :  { %16388 = vmatpush3.bf16.msra.mxu1 %v18458_v28  ;;  %12683 = vmatprep.subr.bf16.mxu0 %v18456_v12  ;;  %v18497_v28 = vld [vmem:[#allocation8 + $0x2660] ss:$12 sps:$4 sm:$0xff]  }
 0x53e   :  { %16389 = vmatprep.subr.bf16.mxu1 %v18462_v25  ;;  %v18491_v25 = vld [vmem:[#allocation8 + $0x2ac4] ss:$12 sps:$4 sm:$0xff]   ;;  %v18489_v12 = vld [vmem:[#allocation8 + $0x2ac0] ss:$12 sps:$4 sm:$0xff]  }
 0x540   :  { %12684 = vmatpush1.bf16.msra.mxu0 %v18454_v29  ;;  %v18507_v29 = vld [vmem:[#allocation8 + $0x2690] ss:$12 sps:$4 sm:$0xff]  }
 0x541   :  { %16390 = vmatpush3.bf16.msra.mxu1 %v18463_v21  ;;  %12685 = vmatprep.subr.bf16.mxu0 %v18461_v16  ;;  %v18496_v21 = vld [vmem:[#allocation8 + $0x2adc] ss:$12 sps:$4 sm:$0xff]   ;;  %v18494_v16 = vld [vmem:[#allocation8 + $0x2ad8] ss:$12 sps:$4 sm:$0xff]  }
 0x542   :  { %16391 = vmatprep.subr.bf16.mxu1 %v18467_v45  ;;  %v18503_v45 = vld [vmem:[#allocation8 + $0x25b8] ss:$12 sps:$4 sm:$0xff]  }
 0x544   :  { %12686 = vmatpush1.bf16.msra.mxu0 %v18459_v13  ;;  %v18506_v13 = vld [vmem:[#allocation8 + $0x2b0c] ss:$12 sps:$4 sm:$0xff]  }
 0x545   :  { %16392 = vmatpush3.bf16.msra.mxu1 %v18468_v0  ;;  %12687 = vmatprep.subr.bf16.mxu0 %v18466_v30  ;;  %v18501_v0 = vld [vmem:[#allocation8 + $0x2af4] ss:$12 sps:$4 sm:$0xff]  }
 0x546   :  { %16393 = vmatprep.subr.bf16.mxu1 %v18472_v18  ;;  %v18512_v18 = vld [vmem:[#allocation8 + $0x26a8] ss:$12 sps:$4 sm:$0xff]  }
 0x547   :  { %v18513_v30 = vld [vmem:[#allocation8 + $0x25e8] ss:$12 sps:$4 sm:$0xff]  }
 0x548   :  { %12688 = vmatpush1.bf16.msra.mxu0 %v18464_v49  ;;  %v18511_v49 = vld [vmem:[#allocation8 + $0x2b24] ss:$12 sps:$4 sm:$0xff]  }
 0x549   :  { %16394 = vmatpush3.bf16.msra.mxu1 %v18473_v58  ;;  %12689 = vmatprep.subr.bf16.mxu0 %v18471_v11  ;;  %v18517_v58 = vld [vmem:[#allocation8 + $0x26c0] ss:$12 sps:$4 sm:$0xff]  }
 0x54a   :  { %16395 = vmatprep.subr.bf16.mxu1 %v18477_v2  ;;  %v18504_v2 = vld [vmem:[#allocation8 + $0x2b08] ss:$12 sps:$4 sm:$0xff]   ;;  %v18518_v11 = vld [vmem:[#allocation8 + $0x2600] ss:$12 sps:$4 sm:$0xff]  }
 0x54b   :  { %v16247_v10 = vpop.f32.mrb[72].mxu1 }
 0x54c   :  { %v16248_v46 = vpop.f32.mrb[73].mxu1  ;;  %12690 = vmatpush1.bf16.msra.mxu0 %v18469_v26 }
 0x54d   :  { %v16249_v14 = vadd.f32 %v16248_v46, %v16247_v10  ;;  %v16250_v54 = vpop.f32.mrb[74].mxu1  ;;  %16396 = vmatpush3.bf16.msra.mxu1 %v18478_v27  ;;  %12691 = vmatprep.subr.bf16.mxu0 %v18476_v34  ;;  %v18522_v27 = vld [vmem:[#allocation8 + $0x26d8] ss:$12 sps:$4 sm:$0xff]   ;;  %v18516_v10 = vld [vmem:[#allocation8 + $0x2b3c] ss:$12 sps:$4 sm:$0xff]  }
 0x54e   :  { %v16251_v6 = vpop.f32.mrb[75].mxu1  ;;  %16397 = vmatprep.subr.bf16.mxu1 %v18482_v24  ;;  %v18509_v24 = vld [vmem:[#allocation8 + $0x2b20] ss:$12 sps:$4 sm:$0xff]  }
 0x54f   :  { %v20541_v8 = vadd.f32 %v16249_v14, %v20519_v51  ;;  %v16252_v55 = vadd.f32 %v16251_v6, %v16250_v54  ;;  %v18484_v51 = vld [vmem:[#allocation8 + $0x2aa8] ss:$12 sps:$4 sm:$0xff]   ;;  %v18523_v54 = vld [vmem:[#allocation8 + $0x2618] ss:$12 sps:$4 sm:$0xff]   ;;  %v18527_v6 = vld [vmem:[#allocation8 + $0x26f0] ss:$12 sps:$4 sm:$0xff]  }
 0x550   :  { %12692 = vmatpush1.bf16.msra.mxu0 %v18474_v50 }
 0x551   :  { %v20544_v39 = vadd.f32 %v16252_v55, %v20522_v35  ;;  %16398 = vmatpush3.bf16.msra.mxu1 %v18483_v40  ;;  %12693 = vmatprep.subr.bf16.mxu0 %v18481_v31  ;;  %v18498_v35 = vld [vmem:[#allocation8 + $0x25a0] ss:$12 sps:$4 sm:$0xff]  }
 0x552   :  { %16399 = vmatprep.subr.bf16.mxu1 %v18487_v22  ;;  %v18514_v22 = vld [vmem:[#allocation8 + $0x2b38] ss:$12 sps:$4 sm:$0xff]   ;;  %v18521_v31 = vld [vmem:[#allocation8 + $0x2b54] ss:$12 sps:$4 sm:$0xff]  }
 0x554   :  { %12694 = vmatpush1.bf16.msra.mxu0 %v18479_v23  ;;  %v18532_v23 = vld [vmem:[#allocation8 + $0x27c8] ss:$12 sps:$4 sm:$0xff]  }
 0x555   :  { %16400 = vmatpush3.bf16.msra.mxu1 %v18488_v3  ;;  %12695 = vmatprep.subr.bf16.mxu0 %v18486_v36  ;;  %v18519_v36 = vld [vmem:[#allocation8 + $0x2b50] ss:$12 sps:$4 sm:$0xff]  }
 0x556   :  { %16407 = vmatprep.subr.bf16.mxu1 %v18492_v60  ;;  %v18528_v60 = vld [vmem:[#allocation8 + $0x2630] ss:$12 sps:$4 sm:$0xff]  }
 0x558   :  { %13913 = vmatmul.mubr.bf16.vlgmr.msra.gmra.mrb[100].mxu1 %v20444_v62  ;;  %12696 = vmatpush1.bf16.msra.mxu0 %v18484_v51  ;;  %v18508_v62 = vld [vmem:[#allocation8 + $0x25d0] ss:$12 sps:$4 sm:$0xff]   ;;  %v21015_v51 = vld [vmem:[#allocation56_spill] sm:$0xff] }
 0x559   :  { %16408 = vmatpush3.bf16.msra.mxu1 %v18493_v33  ;;  %13953 = vmatprep.mubr.bf16.mxu1 %v20446_v42  ;;  %v18499_v42 = vld [vmem:[#allocation8 + $0x2af0] ss:$12 sps:$4 sm:$0xff]   ;;  %v18526_v33 = vld [vmem:[#allocation8 + $0x2b6c] ss:$12 sps:$4 sm:$0xff]  }
 0x55a   :  { %16409 = vmatprep.subr.bf16.mxu1 %v18497_v28  ;;  %12697 = vmatprep.subr.bf16.mxu0 %v18491_v25  ;;  %v18533_v28 = vld [vmem:[#allocation8 + $0x2708] ss:$12 sps:$4 sm:$0xff]  }
 0x55c   :  { %12698 = vmatpush1.bf16.msra.mxu0 %v18489_v12 }
 0x55d   :  { %16410 = vmatpush3.bf16.msra.mxu1 %v18498_v35  ;;  %12699 = vmatprep.subr.bf16.mxu0 %v18496_v21  ;;  %v21017_v35 = vld [vmem:[#allocation57_spill] sm:$0xff]  ;;  %v18537_v21 = vld [vmem:[#allocation8 + $0x27e0] ss:$12 sps:$4 sm:$0xff]  }
 0x55e   :  { %16411 = vmatprep.subr.bf16.mxu1 %v18502_v53  ;;  %v21018_v53 = vld [vmem:[#allocation64_spill] sm:$0xff] }
 0x55f   :  { %v775_v12 = vmul.f32 %v21018_v53, %v21017_v35  ;;  %v18554_v35 = vld [vmem:[#allocation8 + $0x2bf8] ss:$12 sps:$4 sm:$0xff]  }
 0x560   :  { %12700 = vmatpush1.bf16.msra.mxu0 %v18494_v16 }
 0x561   :  { %16412 = vmatpush3.bf16.msra.mxu1 %v18503_v45  ;;  %12701 = vmatprep.subr.bf16.mxu0 %v18501_v0  ;;  %v21019_v45 = vld [vmem:[#allocation110_spill] sm:$0xff]  ;;  %v21021_v0 = vld [vmem:[#allocation111_spill] sm:$0xff] }
 0x562   :  { %16413 = vmatprep.subr.bf16.mxu1 %v18507_v29  ;;  %v21020_v29 = vld [vmem:[#allocation118_spill] sm:$0xff] }
 0x563   :  { %v745_v16 = vmul.f32 %v21020_v29, %v21019_v45  ;;  %v18568_v45 = vld [vmem:[#allocation8 + $0x27b0] ss:$12 sps:$4 sm:$0xff]   ;;  %v18572_v29 = vld [vmem:[#allocation8 + $0x2948] ss:$12 sps:$4 sm:$0xff]  }
 0x564   :  { %12702 = vmatpush1.bf16.msra.mxu0 %v18499_v42  ;;  %v18531_v42 = vld [vmem:[#allocation8 + $0x2b84] ss:$12 sps:$4 sm:$0xff]  }
 0x565   :  { %16414 = vmatpush3.bf16.msra.mxu1 %v18508_v62  ;;  %12703 = vmatprep.subr.bf16.mxu0 %v18506_v13  ;;  %v21022_v62 = vld [vmem:[#allocation119_spill] sm:$0xff] }
 0x566   :  { %16415 = vmatprep.subr.bf16.mxu1 %v18512_v18  ;;  %v778_v18 = vmul.f32 %v21022_v62, %v21021_v0  ;;  %v18538_v13 = vld [vmem:[#allocation8 + $0x2720] ss:$12 sps:$4 sm:$0xff]   ;;  %v18573_v62 = vld [vmem:[#allocation8 + $0x2888] ss:$12 sps:$4 sm:$0xff]  }
 0x567   :  { %v18566_v0 = vld [vmem:[#allocation8 + $0x2c2c] ss:$12 sps:$4 sm:$0xff]  }
 0x568   :  { %12704 = vmatpush1.bf16.msra.mxu0 %v18504_v2  ;;  %v18529_v2 = vld [vmem:[#allocation8 + $0x2b80] ss:$12 sps:$4 sm:$0xff]  }
 0x569   :  { %16416 = vmatpush3.bf16.msra.mxu1 %v18513_v30  ;;  %12705 = vmatprep.subr.bf16.mxu0 %v18511_v49  ;;  %v20566_v49 = vpack.c.bf16 %v778_v18, %v745_v16  ;;  %v18559_v16 = vld [vmem:[#allocation8 + $0x2c10] ss:$12 sps:$4 sm:$0xff]   ;;  %v18577_v18 = vld [vmem:[#allocation8 + $0x2960] ss:$12 sps:$4 sm:$0xff]  }
 0x56a   :  { %16417 = vmatprep.subr.bf16.mxu1 %v18517_v58  ;;  %v18542_v58 = vld [vmem:[#allocation8 + $0x27f8] ss:$12 sps:$4 sm:$0xff]  }
 0x56b   :  { %v16269_v26 = vpop.f32.mrb[76].mxu1 }
 0x56c   :  { %v16270_v34 = vpop.f32.mrb[77].mxu1  ;;  %12706 = vmatpush1.bf16.msra.mxu0 %v18509_v24  ;;  %v18534_v24 = vld [vmem:[#allocation8 + $0x2b98] ss:$12 sps:$4 sm:$0xff]  }
 0x56d   :  { %v16271_v46 = vadd.f32 %v16270_v34, %v16269_v26  ;;  %v16272_v14 = vpop.f32.mrb[78].mxu1  ;;  %16418 = vmatpush3.bf16.msra.mxu1 %v18518_v11  ;;  %12707 = vmatprep.subr.bf16.mxu0 %v18516_v10  ;;  %v18536_v11 = vld [vmem:[#allocation8 + $0x2b9c] ss:$12 sps:$4 sm:$0xff]  }
 0x56e   :  { %v16273_v40 = vpop.f32.mrb[79].mxu1  ;;  %16419 = vmatprep.subr.bf16.mxu1 %v18522_v27  ;;  %v18543_v27 = vld [vmem:[#allocation8 + $0x2738] ss:$12 sps:$4 sm:$0xff]   ;;  %v18548_v26 = vld [vmem:[#allocation8 + $0x2750] ss:$12 sps:$4 sm:$0xff]  }
 0x56f   :  { %v20549_v50 = vadd.f32 %v16271_v46, %v20541_v8  ;;  %v16274_v55 = vadd.f32 %v16273_v40, %v16272_v14  ;;  %v21016_v8 = vld [vmem:[#allocation63_spill] sm:$0xff]  ;;  %v18552_v10 = vld [vmem:[#allocation8 + $0x2828] ss:$12 sps:$4 sm:$0xff]   ;;  %v18539_v34 = vld [vmem:[#allocation8 + $0x2bb0] ss:$12 sps:$4 sm:$0xff]  }
 0x570   :  { %12708 = vmatpush1.bf16.msra.mxu0 %v18514_v22  ;;  %v742_v25 = vmul.f32 %v21016_v8, %v21015_v51  ;;  %v18546_v46 = vld [vmem:[#allocation8 + $0x2bcc] ss:$12 sps:$4 sm:$0xff]   ;;  %v18553_v14 = vld [vmem:[#allocation8 + $0x2768] ss:$12 sps:$4 sm:$0xff]  }
 0x571   :  { %v20552_v3 = vadd.f32 %v16274_v55, %v20544_v39  ;;  %16420 = vmatpush3.bf16.msra.mxu1 %v18523_v54  ;;  %12709 = vmatprep.subr.bf16.mxu0 %v18521_v31  ;;  %v18524_v39 = vld [vmem:[#allocation8 + $0x2b68] ss:$12 sps:$4 sm:$0xff]   ;;  %v18557_v54 = vld [vmem:[#allocation8 + $0x2840] ss:$12 sps:$4 sm:$0xff]   ;;  %v18562_v55 = vld [vmem:[#allocation8 + $0x2858] ss:$12 sps:$4 sm:$0xff]  }
 0x572   :  { %16421 = vmatprep.subr.bf16.mxu1 %v18527_v6  ;;  %v20564_v30 = vpack.c.bf16 %v775_v12, %v742_v25  ;;  %v18544_v40 = vld [vmem:[#allocation8 + $0x2bc8] ss:$12 sps:$4 sm:$0xff]   ;;  %v18551_v6 = vld [vmem:[#allocation8 + $0x2be4] ss:$12 sps:$4 sm:$0xff]   ;;  %v18558_v22 = vld [vmem:[#allocation8 + $0x2780] ss:$12 sps:$4 sm:$0xff]  }
 0x573   :  { %v18549_v31 = vld [vmem:[#allocation8 + $0x2be0] ss:$12 sps:$4 sm:$0xff]   ;;  %v18563_v51 = vld [vmem:[#allocation8 + $0x2798] ss:$12 sps:$4 sm:$0xff]   ;;  %v18567_v25 = vld [vmem:[#allocation8 + $0x2870] ss:$12 sps:$4 sm:$0xff]  }
 0x574   :  { %12710 = vmatpush1.bf16.msra.mxu0 %v18519_v36 }
 0x575   :  { %16422 = vmatpush3.bf16.msra.mxu1 %v18528_v60  ;;  %12711 = vmatprep.subr.bf16.mxu0 %v18526_v33 }
 0x576   :  { %16429 = vmatprep.subr.bf16.mxu1 %v18532_v23  ;;  %v18556_v23 = vld [vmem:[#allocation8 + $0x2bfc] ss:$12 sps:$4 sm:$0xff]  }
 0x578   :  { %13954 = vmatmul.mubr.bf16.vlgmr.msra.gmra.mrb[104].mxu1 %v20474_v7  ;;  %12712 = vmatpush1.bf16.msra.mxu0 %v18524_v39  ;;  %v18547_v7 = vld [vmem:[#allocation8 + $0x2810] ss:$12 sps:$4 sm:$0xff]  }
 0x579   :  { %16430 = vmatpush3.bf16.msra.mxu1 %v18533_v28  ;;  %13994 = vmatprep.mubr.bf16.mxu1 %v20476_v41  ;;  %v18541_v41 = vld [vmem:[#allocation8 + $0x2bb4] ss:$12 sps:$4 sm:$0xff]  }
 0x57a   :  { %16431 = vmatprep.subr.bf16.mxu1 %v18537_v21  ;;  %12724 = vmatprep.subr.bf16.mxu0 %v18531_v42  ;;  %v18561_v21 = vld [vmem:[#allocation8 + $0x2c14] ss:$12 sps:$4 sm:$0xff]   ;;  %v18571_v42 = vld [vmem:[#allocation8 + $0x2c44] ss:$12 sps:$4 sm:$0xff]  }
 0x57b   :  { %12714 = vmatmul.mubr.bf16.vlgmr.msra.gmra.mrb[0].mxu0 %v20564_v30 }
 0x57c   :  { %12725 = vmatpush1.bf16.msra.mxu0 %v18529_v2  ;;  %12756 = vmatprep.mubr.bf16.mxu0 %v20566_v49  ;;  %v18576_v2 = vld [vmem:[#allocation8 + $0x2c5c] ss:$12 sps:$4 sm:$0xff]  }
 0x57d   :  { %16432 = vmatpush3.bf16.msra.mxu1 %v18538_v13  ;;  %12726 = vmatprep.subr.bf16.mxu0 %v18536_v11  ;;  %v18582_v13 = vld [vmem:[#allocation8 + $0x2978] ss:$12 sps:$4 sm:$0xff]  }
 0x57e   :  { %16433 = vmatprep.subr.bf16.mxu1 %v18542_v58  ;;  %v18569_v58 = vld [vmem:[#allocation8 + $0x2c40] ss:$12 sps:$4 sm:$0xff]   ;;  %v18583_v11 = vld [vmem:[#allocation8 + $0x28b8] ss:$12 sps:$4 sm:$0xff]  }
 0x580   :  { %12727 = vmatpush1.bf16.msra.mxu0 %v18534_v24  ;;  %v18581_v24 = vld [vmem:[#allocation8 + $0x2c74] ss:$12 sps:$4 sm:$0xff]  }
 0x581   :  { %16434 = vmatpush3.bf16.msra.mxu1 %v18543_v27  ;;  %12728 = vmatprep.subr.bf16.mxu0 %v18541_v41  ;;  %v18587_v27 = vld [vmem:[#allocation8 + $0x2990] ss:$12 sps:$4 sm:$0xff]   ;;  %v18592_v41 = vld [vmem:[#allocation8 + $0x29a8] ss:$12 sps:$4 sm:$0xff]  }
 0x582   :  { %16435 = vmatprep.subr.bf16.mxu1 %v18547_v7  ;;  %v18574_v7 = vld [vmem:[#allocation8 + $0x2c58] ss:$12 sps:$4 sm:$0xff]  }
 0x584   :  { %12729 = vmatpush1.bf16.msra.mxu0 %v18539_v34  ;;  %v18597_v34 = vld [vmem:[#allocation8 + $0x29c0] ss:$12 sps:$4 sm:$0xff]  }
 0x585   :  { %16436 = vmatpush3.bf16.msra.mxu1 %v18548_v26  ;;  %12730 = vmatprep.subr.bf16.mxu0 %v18546_v46  ;;  %v18586_v26 = vld [vmem:[#allocation8 + $0x2c8c] ss:$12 sps:$4 sm:$0xff]   ;;  %v18584_v46 = vld [vmem:[#allocation8 + $0x2c88] ss:$12 sps:$4 sm:$0xff]  }
 0x586   :  { %16437 = vmatprep.subr.bf16.mxu1 %v18552_v10  ;;  %v18593_v10 = vld [vmem:[#allocation8 + $0x28e8] ss:$12 sps:$4 sm:$0xff]  }
 0x588   :  { %12731 = vmatpush1.bf16.msra.mxu0 %v18544_v40  ;;  %v18602_v40 = vld [vmem:[#allocation8 + $0x29d8] ss:$12 sps:$4 sm:$0xff]  }
 0x589   :  { %16438 = vmatpush3.bf16.msra.mxu1 %v18553_v14  ;;  %12732 = vmatprep.subr.bf16.mxu0 %v18551_v6  ;;  %v18591_v14 = vld [vmem:[#allocation8 + $0x2ca4] ss:$12 sps:$4 sm:$0xff]   ;;  %v18589_v6 = vld [vmem:[#allocation8 + $0x2ca0] ss:$12 sps:$4 sm:$0xff]  }
 0x58a   :  { %16439 = vmatprep.subr.bf16.mxu1 %v18557_v54  ;;  %v18598_v54 = vld [vmem:[#allocation8 + $0x2900] ss:$12 sps:$4 sm:$0xff]  }
 0x58b   :  { %v16291_v60 = vpop.f32.mrb[80].mxu1 }
 0x58c   :  { %v16292_v36 = vpop.f32.mrb[81].mxu1  ;;  %12733 = vmatpush1.bf16.msra.mxu0 %v18549_v31 }
 0x58d   :  { %v16293_v33 = vadd.f32 %v16292_v36, %v16291_v60  ;;  %v16294_v28 = vpop.f32.mrb[82].mxu1  ;;  %16440 = vmatpush3.bf16.msra.mxu1 %v18558_v22  ;;  %12734 = vmatprep.subr.bf16.mxu0 %v18556_v23  ;;  %v18603_v36 = vld [vmem:[#allocation8 + $0x2918] ss:$12 sps:$4 sm:$0xff]  }
 0x58e   :  { %v16295_v8 = vpop.f32.mrb[83].mxu1  ;;  %16441 = vmatprep.subr.bf16.mxu1 %v18562_v55  ;;  %v18596_v55 = vld [vmem:[#allocation8 + $0x2cbc] ss:$12 sps:$4 sm:$0xff]  }
 0x58f   :  { %v20571_v53 = vadd.f32 %v16293_v33, %v20549_v50  ;;  %v16296_v12 = vadd.f32 %v16295_v8, %v16294_v28  ;;  %v18564_v50 = vld [vmem:[#allocation8 + $0x2c28] ss:$12 sps:$4 sm:$0xff]   ;;  %v18607_v28 = vld [vmem:[#allocation8 + $0x29f0] ss:$12 sps:$4 sm:$0xff]  }
 0x590   :  { %12735 = vmatpush1.bf16.msra.mxu0 %v18554_v35  ;;  %v18601_v35 = vld [vmem:[#allocation8 + $0x2cd4] ss:$12 sps:$4 sm:$0xff]  }
 0x591   :  { %v20574_v39 = vadd.f32 %v16296_v12, %v20552_v3  ;;  %16442 = vmatpush3.bf16.msra.mxu1 %v18563_v51  ;;  %12736 = vmatprep.subr.bf16.mxu0 %v18561_v21  ;;  %v18578_v3 = vld [vmem:[#allocation8 + $0x28a0] ss:$12 sps:$4 sm:$0xff]   ;;  %v18594_v51 = vld [vmem:[#allocation8 + $0x2cb8] ss:$12 sps:$4 sm:$0xff]   ;;  %v18608_v21 = vld [vmem:[#allocation8 + $0x2930] ss:$12 sps:$4 sm:$0xff]  }
 0x592   :  { %16443 = vmatprep.subr.bf16.mxu1 %v18567_v25 }
 0x594   :  { %12737 = vmatpush1.bf16.msra.mxu0 %v18559_v16  ;;  %v18606_v16 = vld [vmem:[#allocation8 + $0x2cec] ss:$12 sps:$4 sm:$0xff]  }
 0x595   :  { %16444 = vmatpush3.bf16.msra.mxu1 %v18568_v45  ;;  %12738 = vmatprep.subr.bf16.mxu0 %v18566_v0  ;;  %v18612_v45 = vld [vmem:[#allocation8 + $0x2ac8] ss:$12 sps:$4 sm:$0xff]  }
 0x596   :  { %16451 = vmatprep.subr.bf16.mxu1 %v18572_v29  ;;  %v18599_v29 = vld [vmem:[#allocation8 + $0x2cd0] ss:$12 sps:$4 sm:$0xff]   ;;  %v18613_v0 = vld [vmem:[#allocation8 + $0x2a08] ss:$12 sps:$4 sm:$0xff]  }
 0x598   :  { %13995 = vmatmul.mubr.bf16.vlgmr.msra.gmra.mrb[108].mxu1 %v20504_v48  ;;  %12739 = vmatpush1.bf16.msra.mxu0 %v18564_v50  ;;  %v18588_v48 = vld [vmem:[#allocation8 + $0x28d0] ss:$12 sps:$4 sm:$0xff]  }
 0x599   :  { %16452 = vmatpush3.bf16.msra.mxu1 %v18573_v62  ;;  %14035 = vmatprep.mubr.bf16.mxu1 %v20506_v1  ;;  %v18579_v1 = vld [vmem:[#allocation8 + $0x2c70] ss:$12 sps:$4 sm:$0xff]   ;;  %v21023_v62 = vld [vmem:[#allocation72_spill] sm:$0xff] }
 0x59a   :  { %16453 = vmatprep.subr.bf16.mxu1 %v18577_v18  ;;  %12740 = vmatprep.subr.bf16.mxu0 %v18571_v42  ;;  %v21025_v50 = vld [vmem:[#allocation73_spill] sm:$0xff]  ;;  %v21026_v42 = vld [vmem:[#allocation83_spill] sm:$0xff] }
 0x59c   :  { %12741 = vmatpush1.bf16.msra.mxu0 %v18569_v58  ;;  %v21027_v58 = vld [vmem:[#allocation130_spill] sm:$0xff] }
 0x59d   :  { %16454 = vmatpush3.bf16.msra.mxu1 %v18578_v3  ;;  %12742 = vmatprep.subr.bf16.mxu0 %v18576_v2  ;;  %v777_v3 = vmul.f32 %v21026_v42, %v21025_v50  ;;  %v747_v2 = vmul.f32 %v20094_v19, %v21027_v58  ;;  %v18616_v19 = vld [vmem:[#allocation8 + $0x2d1c] ss:$12 sps:$4 sm:$0xff]   ;;  %v18651_v58 = vld [vmem:[#allocation8 + $0x2dc4] ss:$12 sps:$4 sm:$0xff]  }
 0x59e   :  { %16455 = vmatprep.subr.bf16.mxu1 %v18582_v13  ;;  %v18617_v13 = vld [vmem:[#allocation8 + $0x2ae0] ss:$12 sps:$4 sm:$0xff]   ;;  %v18652_v50 = vld [vmem:[#allocation8 + $0x2c48] ss:$12 sps:$4 sm:$0xff]   ;;  %v18639_v42 = vld [vmem:[#allocation8 + $0x2d90] ss:$12 sps:$4 sm:$0xff]  }
 0x5a0   :  { %12743 = vmatpush1.bf16.msra.mxu0 %v18574_v7  ;;  %v18611_v7 = vld [vmem:[#allocation8 + $0x2d04] ss:$12 sps:$4 sm:$0xff]  }
 0x5a1   :  { %16456 = vmatpush3.bf16.msra.mxu1 %v18583_v11  ;;  %12744 = vmatprep.subr.bf16.mxu0 %v18581_v24  ;;  %v21028_v11 = vld [vmem:[#allocation131_spill] sm:$0xff] }
 0x5a2   :  { %16457 = vmatprep.subr.bf16.mxu1 %v18587_v27  ;;  %v780_v27 = vmul.f32 %v20100_v43, %v21028_v11  ;;  %v18618_v24 = vld [vmem:[#allocation8 + $0x2a20] ss:$12 sps:$4 sm:$0xff]   ;;  %v18623_v43 = vld [vmem:[#allocation8 + $0x2a38] ss:$12 sps:$4 sm:$0xff]  }
 0x5a3   :  { %v18649_v11 = vld [vmem:[#allocation8 + $0x2dc0] ss:$12 sps:$4 sm:$0xff]  }
 0x5a4   :  { %12745 = vmatpush1.bf16.msra.mxu0 %v18579_v1  ;;  %v18609_v1 = vld [vmem:[#allocation8 + $0x2d00] ss:$12 sps:$4 sm:$0xff]  }
 0x5a5   :  { %16458 = vmatpush3.bf16.msra.mxu1 %v18588_v48  ;;  %12746 = vmatprep.subr.bf16.mxu0 %v18586_v26  ;;  %v20596_v26 = vpack.c.bf16 %v780_v27, %v747_v2  ;;  %v18662_v2 = vld [vmem:[#allocation8 + $0x2c78] ss:$12 sps:$4 sm:$0xff]   ;;  %v18656_v27 = vld [vmem:[#allocation8 + $0x2ddc] ss:$12 sps:$4 sm:$0xff]  }
 0x5a6   :  { %16459 = vmatprep.subr.bf16.mxu1 %v18592_v41  ;;  %v18622_v41 = vld [vmem:[#allocation8 + $0x2af8] ss:$12 sps:$4 sm:$0xff]  }
 0x5a8   :  { %12747 = vmatpush1.bf16.msra.mxu0 %v18584_v46  ;;  %v18632_v46 = vld [vmem:[#allocation8 + $0x2b28] ss:$12 sps:$4 sm:$0xff]  }
 0x5a9   :  { %16460 = vmatpush3.bf16.msra.mxu1 %v18593_v10  ;;  %12748 = vmatprep.subr.bf16.mxu0 %v18591_v14  ;;  %v18614_v10 = vld [vmem:[#allocation8 + $0x2d18] ss:$12 sps:$4 sm:$0xff]   ;;  %v18619_v14 = vld [vmem:[#allocation8 + $0x2d30] ss:$12 sps:$4 sm:$0xff]  }
 0x5aa   :  { %16461 = vmatprep.subr.bf16.mxu1 %v18597_v34  ;;  %v18628_v34 = vld [vmem:[#allocation8 + $0x2a50] ss:$12 sps:$4 sm:$0xff]  }
 0x5ab   :  { %v16313_v22 = vpop.f32.mrb[84].mxu1 }
 0x5ac   :  { %v16314_v31 = vpop.f32.mrb[85].mxu1  ;;  %12749 = vmatpush1.bf16.msra.mxu0 %v18589_v6  ;;  %v18637_v6 = vld [vmem:[#allocation8 + $0x2b40] ss:$12 sps:$4 sm:$0xff]  }
 0x5ad   :  { %v16315_v60 = vadd.f32 %v16314_v31, %v16313_v22  ;;  %v16316_v23 = vpop.f32.mrb[86].mxu1  ;;  %16462 = vmatpush3.bf16.msra.mxu1 %v18598_v54  ;;  %12750 = vmatprep.subr.bf16.mxu0 %v18596_v55  ;;  %v18626_v54 = vld [vmem:[#allocation8 + $0x2d4c] ss:$12 sps:$4 sm:$0xff]   ;;  %v18624_v22 = vld [vmem:[#allocation8 + $0x2d48] ss:$12 sps:$4 sm:$0xff]  }
 0x5ae   :  { %v16317_v33 = vpop.f32.mrb[87].mxu1  ;;  %16463 = vmatprep.subr.bf16.mxu1 %v18602_v40  ;;  %v18633_v40 = vld [vmem:[#allocation8 + $0x2a68] ss:$12 sps:$4 sm:$0xff]   ;;  %v18631_v55 = vld [vmem:[#allocation8 + $0x2d64] ss:$12 sps:$4 sm:$0xff]  }
 0x5af   :  { %v20579_v8 = vadd.f32 %v16315_v60, %v20571_v53  ;;  %v16318_v25 = vadd.f32 %v16317_v33, %v16316_v23  ;;  %v21024_v53 = vld [vmem:[#allocation81_spill] sm:$0xff]  ;;  %v18638_v31 = vld [vmem:[#allocation8 + $0x2a80] ss:$12 sps:$4 sm:$0xff]   ;;  %v18642_v60 = vld [vmem:[#allocation8 + $0x2b58] ss:$12 sps:$4 sm:$0xff]  }
 0x5b0   :  { %12751 = vmatpush1.bf16.msra.mxu0 %v18594_v51  ;;  %v744_v18 = vmul.f32 %v21024_v53, %v21023_v62  ;;  %v18629_v23 = vld [vmem:[#allocation8 + $0x2d60] ss:$12 sps:$4 sm:$0xff]   ;;  %v18636_v33 = vld [vmem:[#allocation8 + $0x2d7c] ss:$12 sps:$4 sm:$0xff]  }
 0x5b1   :  { %v20582_v12 = vadd.f32 %v16318_v25, %v20574_v39  ;;  %16464 = vmatpush3.bf16.msra.mxu1 %v18603_v36  ;;  %12752 = vmatprep.subr.bf16.mxu0 %v18601_v35  ;;  %v18604_v39 = vld [vmem:[#allocation8 + $0x2ce8] ss:$12 sps:$4 sm:$0xff]   ;;  %v18643_v35 = vld [vmem:[#allocation8 + $0x2a98] ss:$12 sps:$4 sm:$0xff]  }
 0x5b2   :  { %16465 = vmatprep.subr.bf16.mxu1 %v18607_v28  ;;  %v20594_v48 = vpack.c.bf16 %v777_v3, %v744_v18  ;;  %v18641_v62 = vld [vmem:[#allocation8 + $0x2d94] ss:$12 sps:$4 sm:$0xff]   ;;  %v18648_v18 = vld [vmem:[#allocation8 + $0x2ab0] ss:$12 sps:$4 sm:$0xff]   ;;  %v18646_v3 = vld [vmem:[#allocation8 + $0x2dac] ss:$12 sps:$4 sm:$0xff]  }
 0x5b4   :  { %12753 = vmatpush1.bf16.msra.mxu0 %v18599_v29  ;;  %v18634_v29 = vld [vmem:[#allocation8 + $0x2d78] ss:$12 sps:$4 sm:$0xff]  }
 0x5b5   :  { %16466 = vmatpush3.bf16.msra.mxu1 %v18608_v21  ;;  %12754 = vmatprep.subr.bf16.mxu0 %v18606_v16 }
 0x5b6   :  { %16473 = vmatprep.subr.bf16.mxu1 %v18612_v45  ;;  %v18647_v45 = vld [vmem:[#allocation8 + $0x2b70] ss:$12 sps:$4 sm:$0xff]  }
 0x5b8   :  { %14036 = vmatmul.mubr.bf16.vlgmr.msra.gmra.mrb[112].mxu1 %v20534_v57  ;;  %12755 = vmatpush1.bf16.msra.mxu0 %v18604_v39  ;;  %v18627_v57 = vld [vmem:[#allocation8 + $0x2b10] ss:$12 sps:$4 sm:$0xff]   ;;  %v18657_v39 = vld [vmem:[#allocation8 + $0x2c60] ss:$12 sps:$4 sm:$0xff]  }
 0x5b9   :  { %16474 = vmatpush3.bf16.msra.mxu1 %v18613_v0  ;;  %14076 = vmatprep.mubr.bf16.mxu1 %v20536_v32  ;;  %v18621_v32 = vld [vmem:[#allocation8 + $0x2d34] ss:$12 sps:$4 sm:$0xff]  }
 0x5ba   :  { %16475 = vmatprep.subr.bf16.mxu1 %v18617_v13  ;;  %12767 = vmatprep.subr.bf16.mxu0 %v18611_v7  ;;  %v18653_v13 = vld [vmem:[#allocation8 + $0x2b88] ss:$12 sps:$4 sm:$0xff]   ;;  %v18663_v7 = vld [vmem:[#allocation8 + $0x2bb8] ss:$12 sps:$4 sm:$0xff]  }
 0x5bb   :  { %12757 = vmatmul.mubr.bf16.vlgmr.msra.gmra.mrb[0].mxu0 %v20594_v48 }
 0x5bc   :  { %12768 = vmatpush1.bf16.msra.mxu0 %v18609_v1  ;;  %12799 = vmatprep.mubr.bf16.mxu0 %v20596_v26  ;;  %v18661_v1 = vld [vmem:[#allocation8 + $0x2df4] ss:$12 sps:$4 sm:$0xff]  }
 0x5bd   :  { %16476 = vmatpush3.bf16.msra.mxu1 %v18618_v24  ;;  %12769 = vmatprep.subr.bf16.mxu0 %v18616_v19  ;;  %v18667_v24 = vld [vmem:[#allocation8 + $0x2c90] ss:$12 sps:$4 sm:$0xff]   ;;  %v18672_v19 = vld [vmem:[#allocation8 + $0x2ca8] ss:$12 sps:$4 sm:$0xff]  }
 0x5be   :  { %16477 = vmatprep.subr.bf16.mxu1 %v18622_v41  ;;  %v18654_v41 = vld [vmem:[#allocation8 + $0x2dd8] ss:$12 sps:$4 sm:$0xff]  }
 0x5c0   :  { %12770 = vmatpush1.bf16.msra.mxu0 %v18614_v10  ;;  %v18677_v10 = vld [vmem:[#allocation8 + $0x2cc0] ss:$12 sps:$4 sm:$0xff]  }
 0x5c1   :  { %16478 = vmatpush3.bf16.msra.mxu1 %v18623_v43  ;;  %12771 = vmatprep.subr.bf16.mxu0 %v18621_v32  ;;  %v18666_v43 = vld [vmem:[#allocation8 + $0x2e0c] ss:$12 sps:$4 sm:$0xff]   ;;  %v18664_v32 = vld [vmem:[#allocation8 + $0x2e08] ss:$12 sps:$4 sm:$0xff]  }
 0x5c2   :  { %16479 = vmatprep.subr.bf16.mxu1 %v18627_v57  ;;  %v18673_v57 = vld [vmem:[#allocation8 + $0x2be8] ss:$12 sps:$4 sm:$0xff]  }
 0x5c4   :  { %12772 = vmatpush1.bf16.msra.mxu0 %v18619_v14  ;;  %v18682_v14 = vld [vmem:[#allocation8 + $0x2cd8] ss:$12 sps:$4 sm:$0xff]  }
 0x5c5   :  { %16480 = vmatpush3.bf16.msra.mxu1 %v18628_v34  ;;  %12773 = vmatprep.subr.bf16.mxu0 %v18626_v54  ;;  %v18671_v34 = vld [vmem:[#allocation8 + $0x2e24] ss:$12 sps:$4 sm:$0xff]   ;;  %v18669_v54 = vld [vmem:[#allocation8 + $0x2e20] ss:$12 sps:$4 sm:$0xff]  }
 0x5c6   :  { %16481 = vmatprep.subr.bf16.mxu1 %v18632_v46  ;;  %v18678_v46 = vld [vmem:[#allocation8 + $0x2c00] ss:$12 sps:$4 sm:$0xff]  }
 0x5c8   :  { %12774 = vmatpush1.bf16.msra.mxu0 %v18624_v22 }
 0x5c9   :  { %16482 = vmatpush3.bf16.msra.mxu1 %v18633_v40  ;;  %12775 = vmatprep.subr.bf16.mxu0 %v18631_v55 }
 0x5ca   :  { %16483 = vmatprep.subr.bf16.mxu1 %v18637_v6  ;;  %v18676_v6 = vld [vmem:[#allocation8 + $0x2e3c] ss:$12 sps:$4 sm:$0xff]  }
 0x5cb   :  { %v16335_v36 = vpop.f32.mrb[88].mxu1 }
 0x5cc   :  { %v16336_v28 = vpop.f32.mrb[89].mxu1  ;;  %12776 = vmatpush1.bf16.msra.mxu0 %v18629_v23 }
 0x5cd   :  { %v16337_v51 = vadd.f32 %v16336_v28, %v16335_v36  ;;  %v16338_v25 = vpop.f32.mrb[90].mxu1  ;;  %16484 = vmatpush3.bf16.msra.mxu1 %v18638_v31  ;;  %12777 = vmatprep.subr.bf16.mxu0 %v18636_v33  ;;  %v18687_v36 = vld [vmem:[#allocation8 + $0x2cf0] ss:$12 sps:$4 sm:$0xff]   ;;  %v18674_v33 = vld [vmem:[#allocation8 + $0x2e38] ss:$12 sps:$4 sm:$0xff]  }
 0x5ce   :  { %v16339_v21 = vpop.f32.mrb[91].mxu1  ;;  %16485 = vmatprep.subr.bf16.mxu1 %v18642_v60  ;;  %v18683_v60 = vld [vmem:[#allocation8 + $0x2c18] ss:$12 sps:$4 sm:$0xff]  }
 0x5cf   :  { %v20601_v16 = vadd.f32 %v16337_v51, %v20579_v8  ;;  %v16340_v0 = vadd.f32 %v16339_v21, %v16338_v25  ;;  %v18644_v8 = vld [vmem:[#allocation8 + $0x2da8] ss:$12 sps:$4 sm:$0xff]   ;;  %v18688_v21 = vld [vmem:[#allocation8 + $0x2c30] ss:$12 sps:$4 sm:$0xff]  }
 0x5d0   :  { %12778 = vmatpush1.bf16.msra.mxu0 %v18634_v29  ;;  %v18681_v25 = vld [vmem:[#allocation8 + $0x2e54] ss:$12 sps:$4 sm:$0xff]   ;;  %v18679_v29 = vld [vmem:[#allocation8 + $0x2e50] ss:$12 sps:$4 sm:$0xff]  }
 0x5d1   :  { %v20604_v53 = vadd.f32 %v16340_v0, %v20582_v12  ;;  %16486 = vmatpush3.bf16.msra.mxu1 %v18643_v35  ;;  %12779 = vmatprep.subr.bf16.mxu0 %v18641_v62  ;;  %v18658_v12 = vld [vmem:[#allocation8 + $0x2ba0] ss:$12 sps:$4 sm:$0xff]   ;;  %v18693_v62 = vld [vmem:[#allocation8 + $0x2d08] ss:$12 sps:$4 sm:$0xff]  }
 0x5d2   :  { %16487 = vmatprep.subr.bf16.mxu1 %v18647_v45  ;;  %v18692_v45 = vld [vmem:[#allocation8 + $0x2dc8] ss:$12 sps:$4 sm:$0xff]   ;;  %v18686_v0 = vld [vmem:[#allocation8 + $0x2e6c] ss:$12 sps:$4 sm:$0xff]  }
 0x5d4   :  { %12780 = vmatpush1.bf16.msra.mxu0 %v18639_v42  ;;  %v21031_v42 = vld [vmem:[#allocation93_spill] sm:$0xff] }
 0x5d5   :  { %16488 = vmatpush3.bf16.msra.mxu1 %v18648_v18  ;;  %12781 = vmatprep.subr.bf16.mxu0 %v18646_v3  ;;  %v21029_v18 = vld [vmem:[#allocation92_spill] sm:$0xff]  ;;  %v21032_v3 = vld [vmem:[#allocation101_spill] sm:$0xff] }
 0x5d6   :  { %16495 = vmatprep.subr.bf16.mxu1 %v18652_v50 }
 0x5d8   :  { %14077 = vmatmul.mubr.bf16.vlgmr.msra.gmra.mrb[116].mxu1 %v20564_v30  ;;  %12782 = vmatpush1.bf16.msra.mxu0 %v18644_v8  ;;  %v18668_v30 = vld [vmem:[#allocation8 + $0x2bd0] ss:$12 sps:$4 sm:$0xff]   ;;  %v749_v8 = vmul.f32 %v20174_v38, %v20150_v52 }
 0x5d9   :  { %16496 = vmatpush3.bf16.msra.mxu1 %v18653_v13  ;;  %14117 = vmatprep.mubr.bf16.mxu1 %v20566_v49  ;;  %v18659_v49 = vld [vmem:[#allocation8 + $0x2df0] ss:$12 sps:$4 sm:$0xff]   ;;  %v779_v13 = vmul.f32 %v21032_v3, %v21031_v42  ;;  %v18743_v3 = vld [vmem:[#allocation8 + $0x2eb8] ss:$12 sps:$4 sm:$0xff]  }
 0x5da   :  { %16497 = vmatprep.subr.bf16.mxu1 %v18657_v39  ;;  %12783 = vmatprep.subr.bf16.mxu0 %v18651_v58  ;;  %v18697_v39 = vld [vmem:[#allocation8 + $0x2de0] ss:$12 sps:$4 sm:$0xff]   ;;  %v782_v58 = vmul.f32 %v20176_v37, %v20156_v44  ;;  %v18696_v52 = vld [vmem:[#allocation8 + $0x2e9c] ss:$12 sps:$4 sm:$0xff]   ;;  %v18703_v44 = vld [vmem:[#allocation8 + $0x2d38] ss:$12 sps:$4 sm:$0xff]  }
 0x5db   :  { %v18707_v38 = vld [vmem:[#allocation8 + $0x2e10] ss:$12 sps:$4 sm:$0xff]   ;;  %v18694_v37 = vld [vmem:[#allocation8 + $0x2e98] ss:$12 sps:$4 sm:$0xff]  }
 0x5dc   :  { %12784 = vmatpush1.bf16.msra.mxu0 %v18649_v11  ;;  %v18736_v42 = vld [vmem:[#allocation8 + $0x2f5c] ss:$12 sps:$4 sm:$0xff]  }
 0x5dd   :  { %16498 = vmatpush3.bf16.msra.mxu1 %v18658_v12  ;;  %12785 = vmatprep.subr.bf16.mxu0 %v18656_v27  ;;  %v18691_v12 = vld [vmem:[#allocation8 + $0x2e84] ss:$12 sps:$4 sm:$0xff]  }
 0x5de   :  { %16499 = vmatprep.subr.bf16.mxu1 %v18662_v2  ;;  %v18698_v2 = vld [vmem:[#allocation8 + $0x2d20] ss:$12 sps:$4 sm:$0xff]   ;;  %v18702_v27 = vld [vmem:[#allocation8 + $0x2df8] ss:$12 sps:$4 sm:$0xff]  }
 0x5e0   :  { %12786 = vmatpush1.bf16.msra.mxu0 %v18654_v41  ;;  %v18712_v41 = vld [vmem:[#allocation8 + $0x2e28] ss:$12 sps:$4 sm:$0xff]  }
 0x5e1   :  { %16500 = vmatpush3.bf16.msra.mxu1 %v18663_v7  ;;  %12787 = vmatprep.subr.bf16.mxu0 %v18661_v1  ;;  %v18689_v7 = vld [vmem:[#allocation8 + $0x2e80] ss:$12 sps:$4 sm:$0xff]   ;;  %v18699_v1 = vld [vmem:[#allocation8 + $0x2eb0] ss:$12 sps:$4 sm:$0xff]  }
 0x5e2   :  { %16501 = vmatprep.subr.bf16.mxu1 %v18667_v24  ;;  %v20626_v24 = vpack.c.bf16 %v782_v58, %v749_v8  ;;  %v18748_v8 = vld [vmem:[#allocation8 + $0x2ed0] ss:$12 sps:$4 sm:$0xff]   ;;  %v18752_v58 = vld [vmem:[#allocation8 + $0x2fa8] ss:$12 sps:$4 sm:$0xff]  }
 0x5e4   :  { %12788 = vmatpush1.bf16.msra.mxu0 %v18659_v49  ;;  %v18717_v49 = vld [vmem:[#allocation8 + $0x2e40] ss:$12 sps:$4 sm:$0xff]  }
 0x5e5   :  { %16502 = vmatpush3.bf16.msra.mxu1 %v18668_v30  ;;  %12789 = vmatprep.subr.bf16.mxu0 %v18666_v43  ;;  %v18706_v30 = vld [vmem:[#allocation8 + $0x2ecc] ss:$12 sps:$4 sm:$0xff]   ;;  %v18704_v43 = vld [vmem:[#allocation8 + $0x2ec8] ss:$12 sps:$4 sm:$0xff]  }
 0x5e6   :  { %16503 = vmatprep.subr.bf16.mxu1 %v18672_v19  ;;  %v18713_v19 = vld [vmem:[#allocation8 + $0x2d68] ss:$12 sps:$4 sm:$0xff]  }
 0x5e8   :  { %12790 = vmatpush1.bf16.msra.mxu0 %v18664_v32  ;;  %v18722_v32 = vld [vmem:[#allocation8 + $0x2e58] ss:$12 sps:$4 sm:$0xff]  }
 0x5e9   :  { %16504 = vmatpush3.bf16.msra.mxu1 %v18673_v57  ;;  %12791 = vmatprep.subr.bf16.mxu0 %v18671_v34  ;;  %v18711_v57 = vld [vmem:[#allocation8 + $0x2ee4] ss:$12 sps:$4 sm:$0xff]   ;;  %v18709_v34 = vld [vmem:[#allocation8 + $0x2ee0] ss:$12 sps:$4 sm:$0xff]  }
 0x5ea   :  { %16505 = vmatprep.subr.bf16.mxu1 %v18677_v10  ;;  %v18718_v10 = vld [vmem:[#allocation8 + $0x2d80] ss:$12 sps:$4 sm:$0xff]  }
 0x5eb   :  { %v16357_v40 = vpop.f32.mrb[92].mxu1 }
 0x5ec   :  { %v16358_v22 = vpop.f32.mrb[93].mxu1  ;;  %12792 = vmatpush1.bf16.msra.mxu0 %v18669_v54 }
 0x5ed   :  { %v16359_v55 = vadd.f32 %v16358_v22, %v16357_v40  ;;  %v16360_v31 = vpop.f32.mrb[94].mxu1  ;;  %16506 = vmatpush3.bf16.msra.mxu1 %v18678_v46  ;;  %12793 = vmatprep.subr.bf16.mxu0 %v18676_v6  ;;  %v18723_v22 = vld [vmem:[#allocation8 + $0x2d98] ss:$12 sps:$4 sm:$0xff]  }
 0x5ee   :  { %v16361_v23 = vpop.f32.mrb[95].mxu1  ;;  %16507 = vmatprep.subr.bf16.mxu1 %v18682_v14  ;;  %v18716_v14 = vld [vmem:[#allocation8 + $0x2efc] ss:$12 sps:$4 sm:$0xff]  }
 0x5ef   :  { %v20609_v28 = vadd.f32 %v16359_v55, %v20601_v16  ;;  %v16362_v51 = vadd.f32 %v16361_v23, %v16360_v31  ;;  %v21030_v16 = vld [vmem:[#allocation100_spill] sm:$0xff]  ;;  %v18727_v31 = vld [vmem:[#allocation8 + $0x2e70] ss:$12 sps:$4 sm:$0xff]  }
 0x5f0   :  { %12794 = vmatpush1.bf16.msra.mxu0 %v18674_v33  ;;  %v746_v50 = vmul.f32 %v21030_v16, %v21029_v18  ;;  %v18721_v33 = vld [vmem:[#allocation8 + $0x2f14] ss:$12 sps:$4 sm:$0xff]   ;;  %v18731_v18 = vld [vmem:[#allocation8 + $0x2f44] ss:$12 sps:$4 sm:$0xff]  }
 0x5f1   :  { %v20612_v35 = vadd.f32 %v16362_v51, %v20604_v53  ;;  %16508 = vmatpush3.bf16.msra.mxu1 %v18683_v60  ;;  %12795 = vmatprep.subr.bf16.mxu0 %v18681_v25  ;;  %v18684_v53 = vld [vmem:[#allocation8 + $0x2e68] ss:$12 sps:$4 sm:$0xff]   ;;  %v18714_v60 = vld [vmem:[#allocation8 + $0x2ef8] ss:$12 sps:$4 sm:$0xff]   ;;  %v18728_v25 = vld [vmem:[#allocation8 + $0x2db0] ss:$12 sps:$4 sm:$0xff]  }
 0x5f2   :  { %16509 = vmatprep.subr.bf16.mxu1 %v18687_v36  ;;  %v20624_v11 = vpack.c.bf16 %v779_v13, %v746_v50  ;;  %v18742_v16 = vld [vmem:[#allocation8 + $0x2f78] ss:$12 sps:$4 sm:$0xff]   ;;  %v18729_v50 = vld [vmem:[#allocation8 + $0x2f40] ss:$12 sps:$4 sm:$0xff]   ;;  %v18747_v13 = vld [vmem:[#allocation8 + $0x2f90] ss:$12 sps:$4 sm:$0xff]  }
 0x5f4   :  { %12796 = vmatpush1.bf16.msra.mxu0 %v18679_v29  ;;  %v18726_v29 = vld [vmem:[#allocation8 + $0x2f2c] ss:$12 sps:$4 sm:$0xff]  }
 0x5f5   :  { %16510 = vmatpush3.bf16.msra.mxu1 %v18688_v21  ;;  %12797 = vmatprep.subr.bf16.mxu0 %v18686_v0  ;;  %v18732_v21 = vld [vmem:[#allocation8 + $0x2f48] ss:$12 sps:$4 sm:$0xff]  }
 0x5f6   :  { %16517 = vmatprep.subr.bf16.mxu1 %v18692_v45  ;;  %v18719_v45 = vld [vmem:[#allocation8 + $0x2f10] ss:$12 sps:$4 sm:$0xff]   ;;  %v18733_v0 = vld [vmem:[#allocation8 + $0x2e88] ss:$12 sps:$4 sm:$0xff]  }
 0x5f8   :  { %14118 = vmatmul.mubr.bf16.vlgmr.msra.gmra.mrb[120].mxu1 %v20594_v48  ;;  %12798 = vmatpush1.bf16.msra.mxu0 %v18684_v53  ;;  %v18701_v48 = vld [vmem:[#allocation8 + $0x2eb4] ss:$12 sps:$4 sm:$0xff]  }
 0x5f9   :  { %16518 = vmatpush3.bf16.msra.mxu1 %v18693_v62  ;;  %14158 = vmatprep.mubr.bf16.mxu1 %v20596_v26  ;;  %v18708_v26 = vld [vmem:[#allocation8 + $0x2d50] ss:$12 sps:$4 sm:$0xff]   ;;  %v18737_v62 = vld [vmem:[#allocation8 + $0x2f60] ss:$12 sps:$4 sm:$0xff]  }
 0x5fa   :  { %16519 = vmatprep.subr.bf16.mxu1 %v18697_v39  ;;  %12810 = vmatprep.subr.bf16.mxu0 %v18691_v12  ;;  %v18734_v39 = vld [vmem:[#allocation8 + $0x2f58] ss:$12 sps:$4 sm:$0xff]   ;;  %v18741_v53 = vld [vmem:[#allocation8 + $0x2f74] ss:$12 sps:$4 sm:$0xff]   ;;  %v18739_v12 = vld [vmem:[#allocation8 + $0x2f70] ss:$12 sps:$4 sm:$0xff]  }
 0x5fb   :  { %12800 = vmatmul.mubr.bf16.vlgmr.msra.gmra.mrb[0].mxu0 %v20624_v11 }
 0x5fc   :  { %12811 = vmatpush1.bf16.msra.mxu0 %v18689_v7  ;;  %12842 = vmatprep.mubr.bf16.mxu0 %v20626_v24  ;;  %v18744_v7 = vld [vmem:[#allocation8 + $0x2f88] ss:$12 sps:$4 sm:$0xff]  }
 0x5fd   :  { %16520 = vmatpush3.bf16.msra.mxu1 %v18698_v2  ;;  %12812 = vmatprep.subr.bf16.mxu0 %v18696_v52  ;;  %v18746_v2 = vld [vmem:[#allocation8 + $0x2f8c] ss:$12 sps:$4 sm:$0xff]  }
 0x5fe   :  { %16521 = vmatprep.subr.bf16.mxu1 %v18702_v27  ;;  %v18757_v27 = vld [vmem:[#allocation8 + $0x2fc0] ss:$12 sps:$4 sm:$0xff]  }
 0x5ff   :  { %v18758_v52 = vld [vmem:[#allocation8 + $0x2f00] ss:$12 sps:$4 sm:$0xff]  }
 0x600   :  { %12813 = vmatpush1.bf16.msra.mxu0 %v18694_v37 }
 0x601   :  { %16522 = vmatpush3.bf16.msra.mxu1 %v18703_v44  ;;  %12814 = vmatprep.subr.bf16.mxu0 %v18701_v48  ;;  %v18762_v44 = vld [vmem:[#allocation8 + $0x2fd8] ss:$12 sps:$4 sm:$0xff]   ;;  %v18756_v48 = vld [vmem:[#allocation8 + $0x2fbc] ss:$12 sps:$4 sm:$0xff]  }
 0x602   :  { %16523 = vmatprep.subr.bf16.mxu1 %v18707_v38  ;;  %v18749_v38 = vld [vmem:[#allocation8 + $0x2fa0] ss:$12 sps:$4 sm:$0xff]  }
 0x604   :  { %12815 = vmatpush1.bf16.msra.mxu0 %v18699_v1 }
 0x605   :  { %16524 = vmatpush3.bf16.msra.mxu1 %v18708_v26  ;;  %12816 = vmatprep.subr.bf16.mxu0 %v18706_v30  ;;  %v18763_v30 = vld [vmem:[#allocation8 + $0x2f18] ss:$12 sps:$4 sm:$0xff]  }
 0x606   :  { %16525 = vmatprep.subr.bf16.mxu1 %v18712_v41 }
 0x608   :  { %12817 = vmatpush1.bf16.msra.mxu0 %v18704_v43  ;;  %v18754_v43 = vld [vmem:[#allocation8 + $0x2fb8] ss:$12 sps:$4 sm:$0xff]  }
 0x609   :  { %16526 = vmatpush3.bf16.msra.mxu1 %v18713_v19  ;;  %12818 = vmatprep.subr.bf16.mxu0 %v18711_v57 }
 0x60a   :  { %16527 = vmatprep.subr.bf16.mxu1 %v18717_v49  ;;  %v18767_v49 = vld [vmem:[#allocation8 + $0x2ff0] ss:$12 sps:$4 sm:$0xff]  }
 0x60b   :  { %v16379_v46 = vpop.f32.mrb[96].mxu1 }
 0x60c   :  { %v16380_v54 = vpop.f32.mrb[97].mxu1  ;;  %12819 = vmatpush1.bf16.msra.mxu0 %v18709_v34  ;;  %v21033_v34 = vld [vmem:[#allocation112_spill] sm:$0xff] }
 0x60d   :  { %v16381_v40 = vadd.f32 %v16380_v54, %v16379_v46  ;;  %v16382_v6 = vpop.f32.mrb[98].mxu1  ;;  %16528 = vmatpush3.bf16.msra.mxu1 %v18718_v10  ;;  %12820 = vmatprep.subr.bf16.mxu0 %v18716_v14  ;;  %v21034_v46 = vld [vmem:[#allocation120_spill] sm:$0xff]  ;;  %v21035_v54 = vld [vmem:[#allocation113_spill] sm:$0xff] }
 0x60e   :  { %v16383_v55 = vpop.f32.mrb[99].mxu1  ;;  %16529 = vmatprep.subr.bf16.mxu1 %v18722_v32  ;;  %v18761_v32 = vld [vmem:[#allocation8 + $0x2fd4] ss:$12 sps:$4 sm:$0xff]   ;;  %v748_v14 = vmul.f32 %v21034_v46, %v21033_v34  ;;  %v18806_v34 = vld [vmem:[#allocation8 + $0x30ac] ss:$12 sps:$4 sm:$0xff]  }
 0x60f   :  { %v20631_v23 = vadd.f32 %v16381_v40, %v20609_v28  ;;  %v16384_v36 = vadd.f32 %v16383_v55, %v16382_v6  ;;  %v18724_v28 = vld [vmem:[#allocation8 + $0x2f28] ss:$12 sps:$4 sm:$0xff]   ;;  %v18768_v55 = vld [vmem:[#allocation8 + $0x2f30] ss:$12 sps:$4 sm:$0xff]  }
 0x610   :  { %12821 = vmatpush1.bf16.msra.mxu0 %v18714_v60  ;;  %v21036_v40 = vld [vmem:[#allocation121_spill] sm:$0xff]  ;;  %v784_v60 = vmul.f32 %v20216_v17, %v20204_v59  ;;  %v18782_v59 = vld [vmem:[#allocation8 + $0x30f8] ss:$12 sps:$4 sm:$0xff]   ;;  %v18776_v17 = vld [vmem:[#allocation8 + $0x301c] ss:$12 sps:$4 sm:$0xff]  }
 0x611   :  { %v20634_v51 = vadd.f32 %v16384_v36, %v20612_v35  ;;  %16530 = vmatpush3.bf16.msra.mxu1 %v18723_v22  ;;  %12822 = vmatprep.subr.bf16.mxu0 %v18721_v33  ;;  %v18738_v35 = vld [vmem:[#allocation8 + $0x2ea0] ss:$12 sps:$4 sm:$0xff]   ;;  %v781_v6 = vmul.f32 %v21036_v40, %v21035_v54  ;;  %v18759_v36 = vld [vmem:[#allocation8 + $0x2fd0] ss:$12 sps:$4 sm:$0xff]  }
 0x612   :  { %16531 = vmatprep.subr.bf16.mxu1 %v18727_v31  ;;  %v751_v31 = vmul.f32 %v20214_v20, %v20198_v5  ;;  %v18766_v33 = vld [vmem:[#allocation8 + $0x2fec] ss:$12 sps:$4 sm:$0xff]   ;;  %v18817_v54 = vld [vmem:[#allocation8 + $0x30f4] ss:$12 sps:$4 sm:$0xff]   ;;  %v18815_v40 = vld [vmem:[#allocation8 + $0x30f0] ss:$12 sps:$4 sm:$0xff]  }
 0x613   :  { %v18778_v5 = vld [vmem:[#allocation8 + $0x3020] ss:$12 sps:$4 sm:$0xff]  }
 0x614   :  { %12823 = vmatpush1.bf16.msra.mxu0 %v18719_v45  ;;  %v817_v45 = vpack.c.bf16 %v784_v60, %v751_v31  ;;  %v18769_v20 = vld [vmem:[#allocation8 + $0x3000] ss:$12 sps:$4 sm:$0xff]  }
 0x615   :  { %16532 = vmatpush3.bf16.msra.mxu1 %v18728_v25  ;;  %12824 = vmatprep.subr.bf16.mxu0 %v18726_v29  ;;  %v814_v25 = vpack.c.bf16 %v781_v6, %v748_v14  ;;  %v18764_v29 = vld [vmem:[#allocation8 + $0x2fe8] ss:$12 sps:$4 sm:$0xff]   ;;  %v18811_v14 = vld [vmem:[#allocation8 + $0x30c4] ss:$12 sps:$4 sm:$0xff]   ;;  %v18820_v6 = vld [vmem:[#allocation8 + $0x310c] ss:$12 sps:$4 sm:$0xff]  }
 0x616   :  { %16539 = vmatprep.subr.bf16.mxu1 %v18732_v21  ;;  %v18773_v21 = vld [vmem:[#allocation8 + $0x3008] ss:$12 sps:$4 sm:$0xff]   ;;  %v18821_v31 = vld [vmem:[#allocation8 + $0x3120] ss:$12 sps:$4 sm:$0xff]  }
 0x618   :  { %14159 = vmatmul.mubr.bf16.vlgmr.msra.gmra.mrb[124].mxu1 %v20624_v11  ;;  %12825 = vmatpush1.bf16.msra.mxu0 %v18724_v28  ;;  %v18753_v11 = vld [vmem:[#allocation8 + $0x2ee8] ss:$12 sps:$4 sm:$0xff]   ;;  %v18787_v28 = vld [vmem:[#allocation8 + $0x3110] ss:$12 sps:$4 sm:$0xff]  }
 0x619   :  { %16540 = vmatpush3.bf16.msra.mxu1 %v18733_v0  ;;  %14199 = vmatprep.mubr.bf16.mxu1 %v20626_v24  ;;  %v18751_v24 = vld [vmem:[#allocation8 + $0x2fa4] ss:$12 sps:$4 sm:$0xff]  }
 0x61a   :  { %16541 = vmatprep.subr.bf16.mxu1 %v18737_v62  ;;  %12826 = vmatprep.subr.bf16.mxu0 %v18731_v18  ;;  %v18771_v0 = vld [vmem:[#allocation8 + $0x3004] ss:$12 sps:$4 sm:$0xff]  }
 0x61b   :  { %v18783_v62 = vld [vmem:[#allocation8 + $0x3038] ss:$12 sps:$4 sm:$0xff]  }
 0x61c   :  { %12827 = vmatpush1.bf16.msra.mxu0 %v18729_v50  ;;  %v18774_v18 = vld [vmem:[#allocation8 + $0x3018] ss:$12 sps:$4 sm:$0xff]   ;;  %v18792_v50 = vld [vmem:[#allocation8 + $0x3128] ss:$12 sps:$4 sm:$0xff]  }
 0x61d   :  { %16542 = vmatpush3.bf16.msra.mxu1 %v18738_v35  ;;  %12828 = vmatprep.subr.bf16.mxu0 %v18736_v42  ;;  %v18781_v35 = vld [vmem:[#allocation8 + $0x3034] ss:$12 sps:$4 sm:$0xff]   ;;  %v18779_v42 = vld [vmem:[#allocation8 + $0x3030] ss:$12 sps:$4 sm:$0xff]  }
 0x61e   :  { %16543 = vmatprep.subr.bf16.mxu1 %v18742_v16  ;;  %v18788_v16 = vld [vmem:[#allocation8 + $0x3050] ss:$12 sps:$4 sm:$0xff]  }
 0x620   :  { %12829 = vmatpush1.bf16.msra.mxu0 %v18734_v39  ;;  %v18797_v39 = vld [vmem:[#allocation8 + $0x3140] ss:$12 sps:$4 sm:$0xff]  }
 0x621   :  { %16544 = vmatpush3.bf16.msra.mxu1 %v18743_v3  ;;  %12830 = vmatprep.subr.bf16.mxu0 %v18741_v53  ;;  %v18786_v3 = vld [vmem:[#allocation8 + $0x304c] ss:$12 sps:$4 sm:$0xff]   ;;  %v18784_v53 = vld [vmem:[#allocation8 + $0x3048] ss:$12 sps:$4 sm:$0xff]  }
 0x622   :  { %16545 = vmatprep.subr.bf16.mxu1 %v18747_v13  ;;  %v18793_v13 = vld [vmem:[#allocation8 + $0x3068] ss:$12 sps:$4 sm:$0xff]  }
 0x624   :  { %12831 = vmatpush1.bf16.msra.mxu0 %v18739_v12  ;;  %v18802_v12 = vld [vmem:[#allocation8 + $0x3158] ss:$12 sps:$4 sm:$0xff]  }
 0x625   :  { %16546 = vmatpush3.bf16.msra.mxu1 %v18748_v8  ;;  %12832 = vmatprep.subr.bf16.mxu0 %v18746_v2  ;;  %v18791_v8 = vld [vmem:[#allocation8 + $0x3064] ss:$12 sps:$4 sm:$0xff]   ;;  %v18789_v2 = vld [vmem:[#allocation8 + $0x3060] ss:$12 sps:$4 sm:$0xff]  }
 0x626   :  { %16547 = vmatprep.subr.bf16.mxu1 %v18752_v58  ;;  %v18798_v58 = vld [vmem:[#allocation8 + $0x3080] ss:$12 sps:$4 sm:$0xff]  }
 0x628   :  { %12833 = vmatpush1.bf16.msra.mxu0 %v18744_v7 }
 0x629   :  { %16548 = vmatpush3.bf16.msra.mxu1 %v18753_v11  ;;  %12834 = vmatprep.subr.bf16.mxu0 %v18751_v24 }
 0x62a   :  { %16549 = vmatprep.subr.bf16.mxu1 %v18757_v27  ;;  %v18796_v27 = vld [vmem:[#allocation8 + $0x307c] ss:$12 sps:$4 sm:$0xff]  }
 0x62b   :  { %v16401_v37 = vpop.f32.mrb[100].mxu1 }
 0x62c   :  { %v16402_v26 = vpop.f32.mrb[101].mxu1  ;;  %12835 = vmatpush1.bf16.msra.mxu0 %v18749_v38 }
 0x62d   :  { %v16403_v41 = vadd.f32 %v16402_v26, %v16401_v37  ;;  %v16404_v1 = vpop.f32.mrb[102].mxu1  ;;  %16550 = vmatpush3.bf16.msra.mxu1 %v18758_v52  ;;  %12836 = vmatprep.subr.bf16.mxu0 %v18756_v48  ;;  %v18807_v37 = vld [vmem:[#allocation8 + $0x3170] ss:$12 sps:$4 sm:$0xff]   ;;  %v18794_v48 = vld [vmem:[#allocation8 + $0x3078] ss:$12 sps:$4 sm:$0xff]  }
 0x62e   :  { %v16405_v19 = vpop.f32.mrb[103].mxu1  ;;  %16551 = vmatprep.subr.bf16.mxu1 %v18762_v44  ;;  %v18803_v44 = vld [vmem:[#allocation8 + $0x3098] ss:$12 sps:$4 sm:$0xff]  }
 0x62f   :  { %v20639_v57 = vadd.f32 %v16403_v41, %v20631_v23  ;;  %v16406_v10 = vadd.f32 %v16405_v19, %v16404_v1  ;;  %v18772_v23 = vld [vmem:[#allocation8 + $0x30c8] ss:$12 sps:$4 sm:$0xff]  }
 0x630   :  { %12837 = vmatpush1.bf16.msra.mxu0 %v18754_v43  ;;  %v18801_v1 = vld [vmem:[#allocation8 + $0x3094] ss:$12 sps:$4 sm:$0xff]  }
 0x631   :  { %v20646_v22 = vadd.f32 %v16406_v10, %v20634_v51  ;;  %16552 = vmatpush3.bf16.msra.mxu1 %v18763_v30  ;;  %12838 = vmatprep.subr.bf16.mxu0 %v18761_v32  ;;  %v18777_v51 = vld [vmem:[#allocation8 + $0x30e0] ss:$12 sps:$4 sm:$0xff]   ;;  %v18808_v10 = vld [vmem:[#allocation8 + $0x30b0] ss:$12 sps:$4 sm:$0xff]  }
 0x632   :  { %16553 = vmatprep.subr.bf16.mxu1 %v18767_v49  ;;  %v21037_v30 = vld [vmem:[#allocation132_spill] sm:$0xff]  ;;  %v783_v49 = vmul.f32 %v20104_v56, %v20064_v63  ;;  %v18799_v32 = vld [vmem:[#allocation8 + $0x3090] ss:$12 sps:$4 sm:$0xff]   ;;  %v18812_v56 = vld [vmem:[#allocation8 + $0x30d8] ss:$12 sps:$4 sm:$0xff]  }
 0x633   :  { %v750_v19 = vmul.f32 %v20102_v4, %v21037_v30  ;;  %v18809_v4 = vld [vmem:[#allocation8 + $0x30c0] ss:$12 sps:$4 sm:$0xff]   ;;  %v18814_v63 = vld [vmem:[#allocation8 + $0x30dc] ss:$12 sps:$4 sm:$0xff]  }
 0x634   :  { %12839 = vmatpush1.bf16.msra.mxu0 %v18759_v36 }
 0x635   :  { %16554 = vmatpush3.bf16.msra.mxu1 %v18768_v55  ;;  %12840 = vmatprep.subr.bf16.mxu0 %v18766_v33  ;;  %v816_v46 = vpack.c.bf16 %v783_v49, %v750_v19  ;;  %v18823_v55 = vld [vmem:[#allocation8 + $0x3124] ss:$12 sps:$4 sm:$0xff]  }
 0x636   :  { %16561 = vmatprep.subr.bf16.mxu1 %v18772_v23  ;;  %v18826_v23 = vld [vmem:[#allocation8 + $0x313c] ss:$12 sps:$4 sm:$0xff]  }
 0x638   :  { %14200 = vmatmul.mubr.bf16.vlgmr.msra.gmra.mrb[128].mxu1 %v814_v25  ;;  %12841 = vmatpush1.bf16.msra.mxu0 %v18764_v29 }
 0x639   :  { %16562 = vmatpush3.bf16.msra.mxu1 %v18773_v21  ;;  %14240 = vmatprep.mubr.bf16.mxu1 %v817_v45 }
 0x63a   :  { %16563 = vmatprep.subr.bf16.mxu1 %v18777_v51  ;;  %12853 = vmatprep.subr.bf16.mxu0 %v18771_v0  ;;  %v18829_v0 = vld [vmem:[#allocation8 + $0x3154] ss:$12 sps:$4 sm:$0xff]  }
 0x63b   :  { %12843 = vmatmul.mubr.bf16.vlgmr.msra.gmra.mrb[0].mxu0 %v814_v25 }
 0x63c   :  { %12854 = vmatpush1.bf16.msra.mxu0 %v18769_v20  ;;  %12885 = vmatprep.mubr.bf16.mxu0 %v817_v45  ;;  %v18824_v45 = vld [vmem:[#allocation8 + $0x3138] ss:$12 sps:$4 sm:$0xff]  }
 0x63d   :  { %16564 = vmatpush3.bf16.msra.mxu1 %v18778_v5  ;;  %12855 = vmatprep.subr.bf16.mxu0 %v18776_v17  ;;  %v18832_v20 = vld [vmem:[#allocation8 + $0x316c] ss:$12 sps:$4 sm:$0xff]   ;;  %v18830_v17 = vld [vmem:[#allocation8 + $0x3168] ss:$12 sps:$4 sm:$0xff]  }
 0x63e   :  { %16565 = vmatprep.subr.bf16.mxu1 %v18782_v59  ;;  %v18827_v59 = vld [vmem:[#allocation8 + $0x3150] ss:$12 sps:$4 sm:$0xff]  }
 0x640   :  { %12856 = vmatpush1.bf16.msra.mxu0 %v18774_v18 }
 0x641   :  { %16566 = vmatpush3.bf16.msra.mxu1 %v18783_v62  ;;  %12857 = vmatprep.subr.bf16.mxu0 %v18781_v35 }
 0x642   :  { %16567 = vmatprep.subr.bf16.mxu1 %v18787_v28 }
 0x644   :  { %12858 = vmatpush1.bf16.msra.mxu0 %v18779_v42 }
 0x645   :  { %16568 = vmatpush3.bf16.msra.mxu1 %v18788_v16  ;;  %12859 = vmatprep.subr.bf16.mxu0 %v18786_v3 }
 0x646   :  { %16569 = vmatprep.subr.bf16.mxu1 %v18792_v50 }
 0x648   :  { %12860 = vmatpush1.bf16.msra.mxu0 %v18784_v53 }
 0x649   :  { %16570 = vmatpush3.bf16.msra.mxu1 %v18793_v13  ;;  %12861 = vmatprep.subr.bf16.mxu0 %v18791_v8 }
 0x64a   :  { %16571 = vmatprep.subr.bf16.mxu1 %v18797_v39 }
 0x64b   :  { %v16423_v11 = vpop.f32.mrb[104].mxu1 }
 0x64c   :  { %v16424_v7 = vpop.f32.mrb[105].mxu1  ;;  %12862 = vmatpush1.bf16.msra.mxu0 %v18789_v2 }
 0x64d   :  { %v16425_v24 = vadd.f32 %v16424_v7, %v16423_v11  ;;  %v16426_v52 = vpop.f32.mrb[106].mxu1  ;;  %16572 = vmatpush3.bf16.msra.mxu1 %v18798_v58  ;;  %12863 = vmatprep.subr.bf16.mxu0 %v18796_v27 }
 0x64e   :  { %v16427_v38 = vpop.f32.mrb[107].mxu1  ;;  %16573 = vmatprep.subr.bf16.mxu1 %v18802_v12 }
 0x64f   :  { %v13956_v26 = vadd.f32 %v16425_v24, %v20639_v57  ;;  %v16428_v41 = vadd.f32 %v16427_v38, %v16426_v52  ;;  %v18804_v57 = vld [vmem:[#allocation8 + $0x30a8] ss:$12 sps:$4 sm:$0xff]  }
 0x650   :  { %12864 = vmatpush1.bf16.msra.mxu0 %v18794_v48 }
 0x651   :  { %v13959_v43 = vadd.f32 %v16428_v41, %v20646_v22  ;;  %16574 = vmatpush3.bf16.msra.mxu1 %v18803_v44  ;;  %12865 = vmatprep.subr.bf16.mxu0 %v18801_v1  ;;  %v18818_v22 = vld [vmem:[#allocation8 + $0x3108] ss:$12 sps:$4 sm:$0xff]  }
 0x652   :  { %16575 = vmatprep.subr.bf16.mxu1 %v18807_v37 }
 0x654   :  { %12866 = vmatpush1.bf16.msra.mxu0 %v18799_v32 }
 0x655   :  { %16576 = vmatpush3.bf16.msra.mxu1 %v18808_v10  ;;  %12867 = vmatprep.subr.bf16.mxu0 %v18806_v34 }
 0x658   :  { %14241 = vmatmul.mubr.bf16.vlgmr.msra.gmra.mrb[132].mxu1 %v816_v46  ;;  %12868 = vmatpush1.bf16.msra.mxu0 %v18804_v57 }
 0x659   :  { %12869 = vmatprep.subr.bf16.mxu0 %v18811_v14 }
 0x65c   :  { %12870 = vmatpush1.bf16.msra.mxu0 %v18809_v4 }
 0x65d   :  { %12871 = vmatprep.subr.bf16.mxu0 %v18814_v63 }
 0x660   :  { %12872 = vmatpush1.bf16.msra.mxu0 %v18812_v56 }
 0x661   :  { %12873 = vmatprep.subr.bf16.mxu0 %v18817_v54 }
 0x664   :  { %12874 = vmatpush1.bf16.msra.mxu0 %v18815_v40 }
 0x665   :  { %12875 = vmatprep.subr.bf16.mxu0 %v18820_v6 }
 0x668   :  { %12876 = vmatpush1.bf16.msra.mxu0 %v18818_v22 }
 0x669   :  { %12877 = vmatprep.subr.bf16.mxu0 %v18823_v55 }
 0x66b   :  { %v16445_v60 = vpop.f32.mrb[108].mxu1 }
 0x66c   :  { %v16446_v36 = vpop.f32.mrb[109].mxu1  ;;  %12878 = vmatpush1.bf16.msra.mxu0 %v18821_v31 }
 0x66d   :  { %v16447_v33 = vadd.f32 %v16446_v36, %v16445_v60  ;;  %v16448_v25 = vpop.f32.mrb[110].mxu1  ;;  %12879 = vmatprep.subr.bf16.mxu0 %v18826_v23 }
 0x66e   :  { %v16449_v21 = vpop.f32.mrb[111].mxu1 }
 0x66f   :  { %v13997_v51 = vadd.f32 %v16447_v33, %v13956_v26  ;;  %v16450_v29 = vadd.f32 %v16449_v21, %v16448_v25 }
 0x670   :  { %12880 = vmatpush1.bf16.msra.mxu0 %v18824_v45 }
 0x671   :  { %v14000_v5 = vadd.f32 %v16450_v29, %v13959_v43  ;;  %12881 = vmatprep.subr.bf16.mxu0 %v18829_v0 }
 0x674   :  { %12882 = vmatpush1.bf16.msra.mxu0 %v18827_v59 }
 0x675   :  { %12883 = vmatprep.subr.bf16.mxu0 %v18832_v20 }
 0x678   :  { %12884 = vmatpush1.bf16.msra.mxu0 %v18830_v17 }
 0x67b   :  { %12886 = vmatmul.mubr.bf16.vlgmr.msra.gmra.mrb[0].mxu0 %v816_v46 }
 0x68b   :  { %v16467_v62 = vpop.f32.mrb[112].mxu1 }
 0x68c   :  { %v16468_v28 = vpop.f32.mrb[113].mxu1 }
 0x68d   :  { %v16469_v18 = vadd.f32 %v16468_v28, %v16467_v62  ;;  %v16470_v35 = vpop.f32.mrb[114].mxu1 }
 0x68e   :  { %v16471_v16 = vpop.f32.mrb[115].mxu1 }
 0x68f   :  { %v14038_v50 = vadd.f32 %v16469_v18, %v13997_v51  ;;  %v16472_v42 = vadd.f32 %v16471_v16, %v16470_v35 }
 0x691   :  { %v14041_v3 = vadd.f32 %v16472_v42, %v14000_v5 }
 0x6ab   :  { %v16489_v13 = vpop.f32.mrb[116].mxu1 }
 0x6ac   :  { %v16490_v39 = vpop.f32.mrb[117].mxu1 }
 0x6ad   :  { %v16491_v53 = vadd.f32 %v16490_v39, %v16489_v13  ;;  %v16492_v8 = vpop.f32.mrb[118].mxu1 }
 0x6ae   :  { %v16493_v58 = vpop.f32.mrb[119].mxu1 }
 0x6af   :  { %v14079_v12 = vadd.f32 %v16491_v53, %v14038_v50  ;;  %v16494_v2 = vadd.f32 %v16493_v58, %v16492_v8 }
 0x6b1   :  { %v14082_v11 = vadd.f32 %v16494_v2, %v14041_v3 }
 0x6cb   :  { %v16511_v27 = vpop.f32.mrb[120].mxu1 }
 0x6cc   :  { %v16512_v7 = vpop.f32.mrb[121].mxu1 }
 0x6cd   :  { %v16513_v24 = vadd.f32 %v16512_v7, %v16511_v27  ;;  %v16514_v52 = vpop.f32.mrb[122].mxu1 }
 0x6ce   :  { %v16515_v44 = vpop.f32.mrb[123].mxu1 }
 0x6cf   :  { %v14120_v38 = vadd.f32 %v16513_v24, %v14079_v12  ;;  %v16516_v37 = vadd.f32 %v16515_v44, %v16514_v52 }
 0x6d1   :  { %v14123_v48 = vadd.f32 %v16516_v37, %v14082_v11 }
 0x6eb   :  { %v16533_v26 = vpop.f32.mrb[124].mxu1 }
 0x6ec   :  { %v16534_v41 = vpop.f32.mrb[125].mxu1 }
 0x6ed   :  { %v16535_v1 = vadd.f32 %v16534_v41, %v16533_v26  ;;  %v16536_v30 = vpop.f32.mrb[126].mxu1 }
 0x6ee   :  { %v16537_v19 = vpop.f32.mrb[127].mxu1 }
 0x6ef   :  { %v14161_v49 = vadd.f32 %v16535_v1, %v14120_v38  ;;  %v16538_v43 = vadd.f32 %v16537_v19, %v16536_v30 }
 0x6f1   :  { %v14164_v10 = vadd.f32 %v16538_v43, %v14123_v48 }
 0x70b   :  { %v16555_v32 = vpop.f32.mrb[128].mxu1 }
 0x70c   :  { %v16556_v34 = vpop.f32.mrb[129].mxu1 }
 0x70d   :  { %v16557_v46 = vadd.f32 %v16556_v34, %v16555_v32  ;;  %v16558_v57 = vpop.f32.mrb[130].mxu1 }
 0x70e   :  { %v16559_v14 = vpop.f32.mrb[131].mxu1 }
 0x70f   :  { %v14202_v4 = vadd.f32 %v16557_v46, %v14161_v49  ;;  %v16560_v63 = vadd.f32 %v16559_v14, %v16558_v57 }
 0x711   :  { %v14205_v56 = vadd.f32 %v16560_v63, %v14164_v10 }
 0x72b   :  { %v16577_v54 = vpop.f32.mrb[132].mxu1 }
 0x72c   :  { %v16578_v40 = vpop.f32.mrb[133].mxu1 }
 0x72d   :  { %v16579_v6 = vadd.f32 %v16578_v40, %v16577_v54  ;;  %v16580_v22 = vpop.f32.mrb[134].mxu1 }
 0x72e   :  { %v16581_v55 = vpop.f32.mrb[135].mxu1 }
 0x72f   :  { %v14243_v31 = vadd.f32 %v16579_v6, %v14202_v4  ;;  %v16582_v60 = vadd.f32 %v16581_v55, %v16580_v22 }
 0x731   :  { %14251 = vst [vmem:[#allocation9 + $0x10] sm:$0xff] %v14243_v31  ;;  %v14246_v23 = vadd.f32 %v16582_v60, %v14205_v56 }
 0x733   :  { %14254 = vst [vmem:[#allocation9 + $0x28] sm:$0xff] %v14246_v23 }
 0x74e   :  { %v12887_v36 = vpop.f32.mrb[0].mxu0 }
 0x74f   :  { %v16583_v33 = vadd.f32 %v12887_v36, %v20270_v15  ;;  %v12889_v25 = vpop.f32.mrb[1].mxu0 }
 0x750   :  { %v16584_v21 = vadd.f32 %v12889_v25, %v20272_v47  ;;  %v12891_v45 = vpop.f32.mrb[2].mxu0 }
 0x751   :  { %14249 = vst [vmem:[#allocation9] sm:$0xff] %v16583_v33  ;;  %v16585_v51 = vadd.f32 %v12891_v45, %v20274_v61  ;;  %v12893_v29 = vpop.f32.mrb[3].mxu0 }
 0x752   :  { %14250 = vst [vmem:[#allocation9 + $0x8] sm:$0xff] %v16584_v21  ;;  %v16586_v0 = vadd.f32 %v12893_v29, %v20276_v9 }
 0x753   :  { %14252 = vst [vmem:[#allocation9 + $0x18] sm:$0xff] %v16585_v51 }
 0x754   :  { %14253 = vst [vmem:[#allocation9 + $0x20] sm:$0xff] %v16586_v0 }
 0x755   :  { %19042 = shalt.err (!%p19039_p0)
}
 0x756   :  { %s19043_s27 = scalar_lea.hbm %s20677_s3, 768 }
 0x757   :  { %p19044_p1 = scmp.ne.s32.totalorder %s20677_s3, %s19043_s27  ;;  %p19047_p2 = scmp.lt.u32.totalorder %s19043_s27, %s20677_s3 }
 0x759   :  { %p19049_p3 = pnand %p19047_p2, %p19044_p1 }
 0x75b   :  { %19052 = shalt.err (!%p19049_p3)
}
 0x75c   :  { %s19067_s5 = smov 384   ;;  %s19068_s6 = smov 24  }
 0x75d   :  { %14266 = dma.vmem_to_hbm [thread:$0]  %s14261_s23, 768, %s20677_s3, [#allocation5], %s19067_s5, %s19067_s5, %s19068_s6  }
 0x75e   :  { %19057 = dma.done.wait [#allocation5], 768  }
 0x75f   :  { %19058 = vsyncadd [#allocation5], 4294966528 }
 0x760   :  { %14270 = vsyncpa [#allocation4], 1 }
 0x761   :  { %14271 = vsyncpa [#allocation7], 1 }
 0x762   :  { %14272 = vsyncpa [#allocation5], 1 }

</bundles_post_ra>
